<compile_context>
chip_gen: v7x
topology: tpu7x:2x2x1
jax: 0.10.0
libtpu: 0.0.40
codegen_flags: <defaults>
</compile_context>

<pallas_src>
import functools

import jax
import jax.numpy as jnp
from jax.experimental import pallas as pl
from jax.experimental.pallas import tpu as pltpu

G_CH_D = 128   # g_ch_d
G_CH_Y = 64    # g_ch_y
LEAKY_SLOPE = 0.01


def _cdiv(a, b):
    return -(-a // b)


def _round_up(a, b):
    return _cdiv(a, b) * b


def _row_tiling(m):
    """Row tile (<=512, multiple of 16) and padded M; >=2 grid steps when possible."""
    tm = min(512, max(16, _round_up(_cdiv(m, 2), 16)))
    return tm, _round_up(m, tm)


def _pick_band(h, row_bytes, budget=4 << 20):
    """Largest divisor of h (<=32) whose in-kernel working set stays ~within budget."""
    cap = int(max(2, min(32, budget // max(row_bytes, 1))))
    for r in range(min(cap, h), 1, -1):
        if h % r == 0:
            return r
    return h   # odd / prime h (>=2): one band per image


# ---------------------------------------------------------------------------
# Kernel 1: fused 1x1 conv  (sum_i X_i @ W_i) + b [+ LeakyReLU]
# Used for: block-0 adaptor / dc_conv1 (K-split over feature & ctx, so the
# concat is never materialised), dc_conv1 of blocks 1-2, and the final conv2.
# ---------------------------------------------------------------------------

def _mm_kernel(*refs, n_in, act, slope):
    o_ref = refs[-1]
    xs = refs[:n_in]
    ws = refs[n_in:2 * n_in]
    b_ref = refs[2 * n_in]

    acc = jnp.dot(xs[0][...], ws[0][...], preferred_element_type=jnp.float32)
    for x_r, w_r in zip(xs[1:], ws[1:]):
        acc = acc + jnp.dot(x_r[...], w_r[...], preferred_element_type=jnp.float32)
    acc = acc + b_ref[...]
    if act == "leaky_relu":
        acc = jnp.maximum(acc, 0.0) + slope * jnp.minimum(acc, 0.0)
    o_ref[...] = acc.astype(o_ref.dtype)


def matmul_multi(xs, ws, b, act=None, out_dtype=jnp.bfloat16):
    """sum_i xs[i] @ ws[i] + b, optional fused LeakyReLU.  xs[i]: (M, K_i) bf16."""
    m = xs[0].shape[0]
    n = ws[0].shape[1]
    tm, m_pad = _row_tiling(m)
    if m_pad != m:   # rare (ragged frame sizes): pad rows, crop after
        xs = [jnp.pad(x, ((0, m_pad - m), (0, 0))) for x in xs]
    nm = m_pad // tm

    in_specs = [pl.BlockSpec((tm, x.shape[1]), lambda i: (i, 0)) for x in xs]
    in_specs += [pl.BlockSpec(w.shape, lambda i: (0, 0)) for w in ws]
    in_specs += [pl.BlockSpec((1, n), lambda i: (0, 0))]

    out = pl.pallas_call(
        functools.partial(_mm_kernel, n_in=len(xs), act=act, slope=LEAKY_SLOPE),
        out_shape=jax.ShapeDtypeStruct((m_pad, n), out_dtype),
        grid=(nm,),
        in_specs=in_specs,
        out_specs=pl.BlockSpec((tm, n), lambda i: (i, 0)),
        compiler_params=pltpu.CompilerParams(dimension_semantics=("parallel",)),
    )(*xs, *ws, b.reshape(1, n).astype(jnp.float32))
    return out[:m] if m_pad != m else out


# ---------------------------------------------------------------------------
# Kernel 2: fused  dc_conv2 + identity  ->  ConvFFN(fc1 -> LeakyReLU -> fc2) + x
# The (tm, 256) FFN hidden never leaves VMEM.
# ---------------------------------------------------------------------------

def _dc2_ffn_kernel(y_ref, id_ref, w2_ref, b2_ref, wf1_ref, bf1_ref,
                    wf2_ref, bf2_ref, o_ref, *, slope):
    x = (jnp.dot(y_ref[...], w2_ref[...], preferred_element_type=jnp.float32)
         + b2_ref[...] + id_ref[...].astype(jnp.float32))
    h = (jnp.dot(x.astype(jnp.bfloat16), wf1_ref[...],
                 preferred_element_type=jnp.float32) + bf1_ref[...])
    h = jnp.maximum(h, 0.0) + slope * jnp.minimum(h, 0.0)
    y = (jnp.dot(h.astype(jnp.bfloat16), wf2_ref[...],
                 preferred_element_type=jnp.float32) + bf2_ref[...] + x)
    o_ref[...] = y.astype(o_ref.dtype)


def dc2_ffn(y, identity, blk):
    """y, identity: (M, C) bf16 -> (M, C) bf16."""
    m, c = y.shape
    ch = blk["ffn_w1"].shape[1]
    tm, m_pad = _row_tiling(m)
    if m_pad != m:
        y = jnp.pad(y, ((0, m_pad - m), (0, 0)))
        identity = jnp.pad(identity, ((0, m_pad - m), (0, 0)))
    nm = m_pad // tm

    out = pl.pallas_call(
        functools.partial(_dc2_ffn_kernel, slope=LEAKY_SLOPE),
        out_shape=jax.ShapeDtypeStruct((m_pad, c), jnp.bfloat16),
        grid=(nm,),
        in_specs=[
            pl.BlockSpec((tm, c), lambda i: (i, 0)),
            pl.BlockSpec((tm, c), lambda i: (i, 0)),
            pl.BlockSpec(blk["dc2_w"].shape, lambda i: (0, 0)),
            pl.BlockSpec((1, c), lambda i: (0, 0)),
            pl.BlockSpec(blk["ffn_w1"].shape, lambda i: (0, 0)),
            pl.BlockSpec((1, ch), lambda i: (0, 0)),
            pl.BlockSpec(blk["ffn_w2"].shape, lambda i: (0, 0)),
            pl.BlockSpec((1, c), lambda i: (0, 0)),
        ],
        out_specs=pl.BlockSpec((tm, c), lambda i: (i, 0)),
        compiler_params=pltpu.CompilerParams(dimension_semantics=("parallel",)),
    )(y, identity, blk["dc2_w"], blk["dc2_b"], blk["ffn_w1"], blk["ffn_b1"],
      blk["ffn_w2"], blk["ffn_b2"])
    return out[:m] if m_pad != m else out


# ---------------------------------------------------------------------------
# Kernels 3 & 4: banded 3x3 convolutions (dense on the MXU, depthwise on the
# VPU).  A band of R output rows per grid step; the 1-row vertical halo comes
# from TWO row-shifted band BlockSpecs on the same zero-padded input (2x DMA
# amplification instead of 3x, and no im2col tensor in HBM).
# ---------------------------------------------------------------------------

def _conv3x3_band_kernel(xa_ref, xb_ref, w_ref, b_ref, o_ref, *, r_band, wo):
    slab = jnp.concatenate([xa_ref[0], xb_ref[0]], axis=0)      # (2R, W+2, cin) bf16
    cout = o_ref.shape[-1]
    acc = jnp.zeros((r_band * wo, cout), jnp.float32)
    for dh in range(3):
        rows = slab[dh:dh + r_band]                             # (R, W+2, cin)
        for dw in range(3):
            lhs = rows[:, dw:dw + wo, :].reshape(r_band * wo, -1)
            acc = acc + jnp.dot(lhs, w_ref[3 * dh + dw],
                                preferred_element_type=jnp.float32)
    o_ref[0] = (acc + b_ref[...]).reshape(r_band, wo, cout).astype(o_ref.dtype)


def _dw3x3_band_kernel(xa_ref, xb_ref, w_ref, b_ref, o_ref, *, r_band, wo):
    # f32 math on the VPU (no bf16 VALU on v5e); inputs arrive as bf16.
    slab = jnp.concatenate([xa_ref[0], xb_ref[0]], axis=0).astype(jnp.float32)
    c = o_ref.shape[-1]
    acc = jnp.zeros((r_band, wo, c), jnp.float32)
    for dh in range(3):
        rows = slab[dh:dh + r_band]                             # (R, W+2, C) f32
        for dw in range(3):
            acc = acc + rows[:, dw:dw + wo, :] * w_ref[3 * dh + dw]
    o_ref[0] = (acc + b_ref[...]).astype(o_ref.dtype)


def _run_band_conv(x, kernel, consts, const_specs, cout, out_dtype=jnp.bfloat16):
    n, h, w, cin = x.shape
    crop = h
    if h < 2:                                   # degenerate 1-row input
        x = jnp.pad(x, ((0, 0), (0, 2 - h), (0, 0), (0, 0)))
        h = 2
    row_bytes = ((w + 2) * cin + w * cout) * 4   # in-kernel f32 working set per row
    r = _pick_band(h, row_bytes)
    nb = h // r
    # padded rows: 1 top + (r-1) bottom  ->  (nb + 1) * r rows total
    xp = jnp.pad(x, ((0, 0), (1, r - 1), (1, 1), (0, 0)))
    blk = (1, r, w + 2, cin)

    out = pl.pallas_call(
        functools.partial(kernel, r_band=r, wo=w),
        out_shape=jax.ShapeDtypeStruct((n, h, w, cout), out_dtype),
        grid=(n, nb),
        in_specs=[pl.BlockSpec(blk, lambda bi, ri: (bi, ri, 0, 0)),
                  pl.BlockSpec(blk, lambda bi, ri: (bi, ri + 1, 0, 0))] + const_specs,
        out_specs=pl.BlockSpec((1, r, w, cout), lambda bi, ri: (bi, ri, 0, 0)),
        compiler_params=pltpu.CompilerParams(
            dimension_semantics=("parallel", "parallel")),
    )(xp, xp, *consts)
    return out[:, :crop] if crop != h else out


def conv3x3(x, p):
    cin = x.shape[-1]
    cout = p["w9"].shape[-1]
    const_specs = [pl.BlockSpec((9, cin, cout), lambda bi, ri: (0, 0, 0)),
                   pl.BlockSpec((1, cout), lambda bi, ri: (0, 0))]
    return _run_band_conv(x, _conv3x3_band_kernel, [p["w9"], p["b"]],
                          const_specs, cout)


def dwconv3x3(x, w9, b):
    c = x.shape[-1]
    const_specs = [pl.BlockSpec((9, c), lambda bi, ri: (0, 0)),
                   pl.BlockSpec((1, c), lambda bi, ri: (0, 0))]
    return _run_band_conv(x, _dw3x3_band_kernel, [w9, b], const_specs, c)


# ---------------------------------------------------------------------------
# JAX glue
# ---------------------------------------------------------------------------

def pixel_shuffle(x, r):
    n, h, w, crr = x.shape
    c = crr // (r * r)
    x = x.reshape(n, h, w, c, r, r)
    x = jnp.transpose(x, (0, 1, 4, 2, 5, 3))
    return x.reshape(n, h * r, w * r, c)


def _decoder_forward(PP, x_nchw, ctx_nchw, quant_step):
    x = jnp.transpose(x_nchw, (0, 2, 3, 1)).astype(jnp.bfloat16)    # NCHW -> NHWC
    ctx = jnp.transpose(ctx_nchw, (0, 2, 3, 1)).astype(jnp.bfloat16)
    n, hh, ww, _ = ctx.shape
    m = n * hh * ww

    # self.up = SubpelConv2x(g_ch_y, g_ch_d, 3, padding=1)
    up = conv3x3(x, PP["up"])                       # (n, h, w, 4*g_ch_d) bf16
    feature = pixel_shuffle(up, 2)                  # (n, 2h, 2w, g_ch_d) bf16
    f2 = feature.reshape(m, G_CH_D)
    c2 = ctx.reshape(m, G_CH_D)

    blocks = PP["conv1"]
    b0 = blocks[0]
    # block 0: concat(feature, ctx) never materialised -> K-split matmuls
    identity = matmul_multi([f2, c2], [b0["ad_w1"], b0["ad_w2"]], b0["ad_b"])
    hid = matmul_multi([f2, c2], [b0["dc1_w1"], b0["dc1_w2"]], b0["dc1_b"],
                       act="leaky_relu")
    hid = dwconv3x3(hid.reshape(n, hh, ww, G_CH_D), b0["dw_w9"], b0["dw_b"])
    xcur = dc2_ffn(hid.reshape(m, G_CH_D), identity, b0)

    for blk in blocks[1:]:
        hid = matmul_multi([xcur], [blk["dc1_w"]], blk["dc1_b"], act="leaky_relu")
        hid = dwconv3x3(hid.reshape(n, hh, ww, G_CH_D), blk["dw_w9"], blk["dw_b"])
        xcur = dc2_ffn(hid.reshape(m, G_CH_D), xcur, blk)

    # conv2 (1x1) with quant_step folded:  (X@W+b)*q == X@(W*q) + b*q
    q = quant_step.reshape(-1).astype(jnp.float32)
    w2 = (PP["conv2"]["w"] * q[None, :]).astype(jnp.bfloat16)
    b2 = (PP["conv2"]["b"] * q).astype(jnp.float32)
    out = matmul_multi([xcur], [w2], b2, out_dtype=jnp.float32)
    return jnp.transpose(out.reshape(n, hh, ww, G_CH_D), (0, 3, 1, 2))


decoder_forward = jax.jit(_decoder_forward)


# ---------------------------------------------------------------------------
# Parameter init (f32, PyTorch-like layout) and one-time kernel-ready prep
# ---------------------------------------------------------------------------

class ParamGen:
    def __init__(self, seed):
        self._key = jax.random.PRNGKey(seed)
        self._n = 0

    def normal(self, shape, std):
        self._n += 1
        k = jax.random.fold_in(self._key, self._n)
        return std * jax.random.normal(k, shape, jnp.float32)


def init_conv1x1(pg, cin, cout):
    return {"w": pg.normal((cin, cout), (1.0 / cin) ** 0.5),
            "b": pg.normal((cout,), 0.02)}


def init_conv3x3(pg, cin, cout):
    return {"w": pg.normal((3, 3, cin, cout), (1.0 / (9 * cin)) ** 0.5),
            "b": pg.normal((cout,), 0.02)}


def init_dcb(pg, cin, cout):
    p = {"dc_conv1": init_conv1x1(pg, cin, cout),
         "dw_w": pg.normal((3, 3, cout), (1.0 / 9.0) ** 0.5),
         "dw_b": pg.normal((cout,), 0.02),
         "dc_conv2": init_conv1x1(pg, cout, cout),
         "ffn_fc1": init_conv1x1(pg, cout, 2 * cout),
         "ffn_fc2": init_conv1x1(pg, 2 * cout, cout)}
    if cin != cout:
        p["adaptor"] = init_conv1x1(pg, cin, cout)
    return p


def init_decoder(seed=0):
    pg = ParamGen(seed)
    return {"up": init_conv3x3(pg, G_CH_Y, G_CH_D * 4),
            "conv1": [init_dcb(pg, G_CH_D * 2, G_CH_D),
                      init_dcb(pg, G_CH_D, G_CH_D),
                      init_dcb(pg, G_CH_D, G_CH_D)],
            "conv2": init_conv1x1(pg, G_CH_D, G_CH_D)}


def _prep_1x1(p):
    return p["w"].astype(jnp.bfloat16), p["b"].reshape(1, -1).astype(jnp.float32)


def prepare_params(P):
    """One-time cast / reshape of weights into the layout the kernels expect."""
    uw = P["up"]["w"]
    PP = {"up": {"w9": uw.reshape(9, uw.shape[2], uw.shape[3]).astype(jnp.bfloat16),
                 "b": P["up"]["b"].reshape(1, -1).astype(jnp.float32)},
          "conv1": [],
          "conv2": {"w": P["conv2"]["w"].astype(jnp.float32),
                    "b": P["conv2"]["b"].astype(jnp.float32)}}
    for blk in P["conv1"]:
        c = blk["dw_b"].shape[0]
        d = {}
        if "adaptor" in blk:
            aw, ab = _prep_1x1(blk["adaptor"])
            d["ad_w1"], d["ad_w2"], d["ad_b"] = aw[:G_CH_D], aw[G_CH_D:], ab
            cw, cb = _prep_1x1(blk["dc_conv1"])
            d["dc1_w1"], d["dc1_w2"], d["dc1_b"] = cw[:G_CH_D], cw[G_CH_D:], cb
        else:
            d["dc1_w"], d["dc1_b"] = _prep_1x1(blk["dc_conv1"])
        d["dw_w9"] = blk["dw_w"].reshape(9, c).astype(jnp.float32)
        d["dw_b"] = blk["dw_b"].reshape(1, c).astype(jnp.float32)
        d["dc2_w"], d["dc2_b"] = _prep_1x1(blk["dc_conv2"])
        d["ffn_w1"], d["ffn_b1"] = _prep_1x1(blk["ffn_fc1"])
        d["ffn_w2"], d["ffn_b2"] = _prep_1x1(blk["ffn_fc2"])
        PP["conv1"].append(d)
    return PP


# ---------------------------------------------------------------------------
# Pure-JAX reference (mirrors the kernels' bf16-storage / f32-accumulate path)
# ---------------------------------------------------------------------------

def _ref_conv1x1(x, p, act=None):
    y = jnp.einsum("nhwc,cd->nhwd", x.astype(jnp.bfloat16),
                   p["w"].astype(jnp.bfloat16),
                   preferred_element_type=jnp.float32) + p["b"].reshape(-1)
    if act == "leaky_relu":
        y = jnp.maximum(y, 0.0) + LEAKY_SLOPE * jnp.minimum(y, 0.0)
    return y


def _ref_conv3x3(x, p):
    n, h, w, _ = x.shape
    cout = p["w"].shape[-1]
    xp = jnp.pad(x, ((0, 0), (1, 1), (1, 1), (0, 0)))
    wb = p["w"].astype(jnp.bfloat16)
    acc = jnp.zeros((n, h, w, cout), jnp.float32)
    for dh in range(3):
        for dw in range(3):
            acc = acc + jnp.einsum("nhwc,cd->nhwd",
                                   xp[:, dh:dh + h, dw:dw + w, :], wb[dh, dw],
                                   preferred_element_type=jnp.float32)
    return acc + p["b"]


def _ref_dwconv3x3(x, w, b):
    n, h, wd, _ = x.shape
    xp = jnp.pad(x, ((0, 0), (1, 1), (1, 1), (0, 0))).astype(jnp.float32)
    acc = jnp.zeros(x.shape, jnp.float32)
    for dh in range(3):
        for dw in range(3):
            acc = acc + xp[:, dh:dh + h, dw:dw + wd, :] * w[dh, dw]
    return acc + b


@jax.jit
def decoder_reference(P, x_nchw, ctx_nchw, quant_step):
    bf = jnp.bfloat16
    x = jnp.transpose(x_nchw, (0, 2, 3, 1)).astype(bf)
    ctx = jnp.transpose(ctx_nchw, (0, 2, 3, 1)).astype(bf)
    up = _ref_conv3x3(x, P["up"]).astype(bf)
    cur = jnp.concatenate([pixel_shuffle(up, 2), ctx], axis=-1)
    for blk in P["conv1"]:
        identity = (_ref_conv1x1(cur, blk["adaptor"]).astype(bf)
                    if "adaptor" in blk else cur)
        hid = _ref_conv1x1(cur, blk["dc_conv1"], act="leaky_relu").astype(bf)
        hid = _ref_dwconv3x3(hid, blk["dw_w"], blk["dw_b"]).astype(bf)
        xv = _ref_conv1x1(hid, blk["dc_conv2"]) + identity.astype(jnp.float32)
        h2 = _ref_conv1x1(xv, blk["ffn_fc1"], act="leaky_relu")
        cur = (_ref_conv1x1(h2, blk["ffn_fc2"]) + xv).astype(bf)
    q = quant_step.reshape(-1)
    out = _ref_conv1x1(cur, {"w": P["conv2"]["w"] * q[None, :],
                             "b": P["conv2"]["b"] * q})
    return jnp.transpose(out, (0, 3, 1, 2))


# ---------------------------------------------------------------------------


if __name__ == "__main__":
    key = jax.random.PRNGKey(0)
    k1, k2, k3 = jax.random.split(key, 3)
    N, h, w = 2, 8, 8
    x = jax.random.normal(k1, (N, G_CH_Y, h, w), jnp.float32)
    ctx = jax.random.normal(k2, (N, G_CH_D, 2 * h, 2 * w), jnp.float32)
    quant = jax.random.uniform(k3, (1, G_CH_D, 1, 1), jnp.float32, 0.5, 1.5)

    P = init_decoder(seed=0)
    PP = prepare_params(P)

    feat = jax.block_until_ready(decoder_forward(PP, x, ctx, quant))
    assert feat.shape == (N, G_CH_D, 2 * h, 2 * w)
    assert feat.dtype == jnp.float32
    assert bool(jnp.all(jnp.isfinite(feat)))

    ref = jax.block_until_ready(decoder_reference(P, x, ctx, quant))
    err = float(jnp.max(jnp.abs(feat - ref)))
    scale = float(jnp.max(jnp.abs(ref))) + 1e-6
    assert err <= 2e-2 * scale + 1e-3, f"mismatch vs reference: {err} (scale {scale})"

    print("KERNEL_OK")
</pallas_src>

<mosaic_0001>
module attributes {stable_mosaic.version = 11 : i64} {
  func.func @_conv3x3_band_kernel(%arg0: i32, %arg1: i32, %arg2: memref<1x8x10x64xbf16, #tpu.memory_space<vmem>>, %arg3: memref<1x8x10x64xbf16, #tpu.memory_space<vmem>>, %arg4: memref<9x64x512xbf16, #tpu.memory_space<vmem>>, %arg5: memref<1x512xf32, #tpu.memory_space<vmem>>, %arg6: memref<1x8x8x512xbf16, #tpu.memory_space<vmem>>) attributes {dimension_semantics = [#tpu.dimension_semantics<parallel>, #tpu.dimension_semantics<parallel>], iteration_bounds = array<i64: 2, 1>, scalar_prefetch = 0 : i64, scratch_operands = 0 : i64, tpu.core_type = #tpu.core_type<tc>, window_params = [{transform_indices = @transform_0, window_bounds = array<i64: 1, 8, 10, 64>}, {transform_indices = @transform_1, window_bounds = array<i64: 1, 8, 10, 64>}, {pipeline_mode = #tpu.pipeline_mode<synchronous>, transform_indices = @transform_2, window_bounds = array<i64: 9, 64, 512>}, {pipeline_mode = #tpu.pipeline_mode<synchronous>, transform_indices = @transform_3, window_bounds = array<i64: 1, 512>}, {transform_indices = @transform_4, window_bounds = array<i64: 1, 8, 8, 512>}]} {
    %c0 = arith.constant 0 : index
    %c0_0 = arith.constant 0 : index
    %c0_1 = arith.constant 0 : index
    %c0_2 = arith.constant 0 : index
    %0 = vector.load %arg2[%c0, %c0_0, %c0_1, %c0_2] : memref<1x8x10x64xbf16, #tpu.memory_space<vmem>>, vector<1x8x10x64xbf16>
    %1 = vector.shape_cast %0 : vector<1x8x10x64xbf16> to vector<8x10x64xbf16>
    %c0_3 = arith.constant 0 : index
    %c0_4 = arith.constant 0 : index
    %c0_5 = arith.constant 0 : index
    %c0_6 = arith.constant 0 : index
    %2 = vector.load %arg3[%c0_3, %c0_4, %c0_5, %c0_6] : memref<1x8x10x64xbf16, #tpu.memory_space<vmem>>, vector<1x8x10x64xbf16>
    %3 = vector.shape_cast %2 : vector<1x8x10x64xbf16> to vector<8x10x64xbf16>
    %4 = tpu.concatenate %1, %3 in 0 : vector<8x10x64xbf16>, vector<8x10x64xbf16> -> vector<16x10x64xbf16>
    %cst = arith.constant 0.000000e+00 : f32
    %5 = vector.broadcast %cst : f32 to vector<64x512xf32>
    %6 = vector.extract_strided_slice %4 {offsets = [0, 0, 0], sizes = [8, 10, 64], strides = [1, 1, 1]} : vector<16x10x64xbf16> to vector<8x10x64xbf16>
    %7 = vector.extract_strided_slice %6 {offsets = [0, 0, 0], sizes = [8, 8, 64], strides = [1, 1, 1]} : vector<8x10x64xbf16> to vector<8x8x64xbf16>
    %8 = vector.shape_cast %7 : vector<8x8x64xbf16> to vector<64x64xbf16>
    %c0_7 = arith.constant 0 : index
    %c0_8 = arith.constant 0 : index
    %c0_9 = arith.constant 0 : index
    %9 = vector.load %arg4[%c0_7, %c0_8, %c0_9] : memref<9x64x512xbf16, #tpu.memory_space<vmem>>, vector<1x64x512xbf16>
    %10 = vector.shape_cast %9 : vector<1x64x512xbf16> to vector<64x512xbf16>
    %cst_10 = arith.constant dense<0.000000e+00> : vector<64x512xf32>
    %11 = tpu.matmul %8, %10, %cst_10 {dimension_numbers = #tpu.dot_dimension_numbers<[1], [0], [0], [1], [0, 0, 1, 1], [], []>} : vector<64x64xbf16>, vector<64x512xbf16>, vector<64x512xf32> -> vector<64x512xf32>
    %12 = arith.addf %5, %11 : vector<64x512xf32>
    %13 = vector.extract_strided_slice %6 {offsets = [0, 1, 0], sizes = [8, 8, 64], strides = [1, 1, 1]} : vector<8x10x64xbf16> to vector<8x8x64xbf16>
    %14 = vector.shape_cast %13 : vector<8x8x64xbf16> to vector<64x64xbf16>
    %c1 = arith.constant 1 : index
    %c0_11 = arith.constant 0 : index
    %c0_12 = arith.constant 0 : index
    %15 = vector.load %arg4[%c1, %c0_11, %c0_12] : memref<9x64x512xbf16, #tpu.memory_space<vmem>>, vector<1x64x512xbf16>
    %16 = vector.shape_cast %15 : vector<1x64x512xbf16> to vector<64x512xbf16>
    %cst_13 = arith.constant dense<0.000000e+00> : vector<64x512xf32>
    %17 = tpu.matmul %14, %16, %cst_13 {dimension_numbers = #tpu.dot_dimension_numbers<[1], [0], [0], [1], [0, 0, 1, 1], [], []>} : vector<64x64xbf16>, vector<64x512xbf16>, vector<64x512xf32> -> vector<64x512xf32>
    %18 = arith.addf %12, %17 : vector<64x512xf32>
    %19 = vector.extract_strided_slice %6 {offsets = [0, 2, 0], sizes = [8, 8, 64], strides = [1, 1, 1]} : vector<8x10x64xbf16> to vector<8x8x64xbf16>
    %20 = vector.shape_cast %19 : vector<8x8x64xbf16> to vector<64x64xbf16>
    %c2 = arith.constant 2 : index
    %c0_14 = arith.constant 0 : index
    %c0_15 = arith.constant 0 : index
    %21 = vector.load %arg4[%c2, %c0_14, %c0_15] : memref<9x64x512xbf16, #tpu.memory_space<vmem>>, vector<1x64x512xbf16>
    %22 = vector.shape_cast %21 : vector<1x64x512xbf16> to vector<64x512xbf16>
    %cst_16 = arith.constant dense<0.000000e+00> : vector<64x512xf32>
    %23 = tpu.matmul %20, %22, %cst_16 {dimension_numbers = #tpu.dot_dimension_numbers<[1], [0], [0], [1], [0, 0, 1, 1], [], []>} : vector<64x64xbf16>, vector<64x512xbf16>, vector<64x512xf32> -> vector<64x512xf32>
    %24 = arith.addf %18, %23 : vector<64x512xf32>
    %25 = vector.extract_strided_slice %4 {offsets = [1, 0, 0], sizes = [8, 10, 64], strides = [1, 1, 1]} : vector<16x10x64xbf16> to vector<8x10x64xbf16>
    %26 = vector.extract_strided_slice %25 {offsets = [0, 0, 0], sizes = [8, 8, 64], strides = [1, 1, 1]} : vector<8x10x64xbf16> to vector<8x8x64xbf16>
    %27 = vector.shape_cast %26 : vector<8x8x64xbf16> to vector<64x64xbf16>
    %c3 = arith.constant 3 : index
    %c0_17 = arith.constant 0 : index
    %c0_18 = arith.constant 0 : index
    %28 = vector.load %arg4[%c3, %c0_17, %c0_18] : memref<9x64x512xbf16, #tpu.memory_space<vmem>>, vector<1x64x512xbf16>
    %29 = vector.shape_cast %28 : vector<1x64x512xbf16> to vector<64x512xbf16>
    %cst_19 = arith.constant dense<0.000000e+00> : vector<64x512xf32>
    %30 = tpu.matmul %27, %29, %cst_19 {dimension_numbers = #tpu.dot_dimension_numbers<[1], [0], [0], [1], [0, 0, 1, 1], [], []>} : vector<64x64xbf16>, vector<64x512xbf16>, vector<64x512xf32> -> vector<64x512xf32>
    %31 = arith.addf %24, %30 : vector<64x512xf32>
    %32 = vector.extract_strided_slice %25 {offsets = [0, 1, 0], sizes = [8, 8, 64], strides = [1, 1, 1]} : vector<8x10x64xbf16> to vector<8x8x64xbf16>
    %33 = vector.shape_cast %32 : vector<8x8x64xbf16> to vector<64x64xbf16>
    %c4 = arith.constant 4 : index
    %c0_20 = arith.constant 0 : index
    %c0_21 = arith.constant 0 : index
    %34 = vector.load %arg4[%c4, %c0_20, %c0_21] : memref<9x64x512xbf16, #tpu.memory_space<vmem>>, vector<1x64x512xbf16>
    %35 = vector.shape_cast %34 : vector<1x64x512xbf16> to vector<64x512xbf16>
    %cst_22 = arith.constant dense<0.000000e+00> : vector<64x512xf32>
    %36 = tpu.matmul %33, %35, %cst_22 {dimension_numbers = #tpu.dot_dimension_numbers<[1], [0], [0], [1], [0, 0, 1, 1], [], []>} : vector<64x64xbf16>, vector<64x512xbf16>, vector<64x512xf32> -> vector<64x512xf32>
    %37 = arith.addf %31, %36 : vector<64x512xf32>
    %38 = vector.extract_strided_slice %25 {offsets = [0, 2, 0], sizes = [8, 8, 64], strides = [1, 1, 1]} : vector<8x10x64xbf16> to vector<8x8x64xbf16>
    %39 = vector.shape_cast %38 : vector<8x8x64xbf16> to vector<64x64xbf16>
    %c5 = arith.constant 5 : index
    %c0_23 = arith.constant 0 : index
    %c0_24 = arith.constant 0 : index
    %40 = vector.load %arg4[%c5, %c0_23, %c0_24] : memref<9x64x512xbf16, #tpu.memory_space<vmem>>, vector<1x64x512xbf16>
    %41 = vector.shape_cast %40 : vector<1x64x512xbf16> to vector<64x512xbf16>
    %cst_25 = arith.constant dense<0.000000e+00> : vector<64x512xf32>
    %42 = tpu.matmul %39, %41, %cst_25 {dimension_numbers = #tpu.dot_dimension_numbers<[1], [0], [0], [1], [0, 0, 1, 1], [], []>} : vector<64x64xbf16>, vector<64x512xbf16>, vector<64x512xf32> -> vector<64x512xf32>
    %43 = arith.addf %37, %42 : vector<64x512xf32>
    %44 = vector.extract_strided_slice %4 {offsets = [2, 0, 0], sizes = [8, 10, 64], strides = [1, 1, 1]} : vector<16x10x64xbf16> to vector<8x10x64xbf16>
    %45 = vector.extract_strided_slice %44 {offsets = [0, 0, 0], sizes = [8, 8, 64], strides = [1, 1, 1]} : vector<8x10x64xbf16> to vector<8x8x64xbf16>
    %46 = vector.shape_cast %45 : vector<8x8x64xbf16> to vector<64x64xbf16>
    %c6 = arith.constant 6 : index
    %c0_26 = arith.constant 0 : index
    %c0_27 = arith.constant 0 : index
    %47 = vector.load %arg4[%c6, %c0_26, %c0_27] : memref<9x64x512xbf16, #tpu.memory_space<vmem>>, vector<1x64x512xbf16>
    %48 = vector.shape_cast %47 : vector<1x64x512xbf16> to vector<64x512xbf16>
    %cst_28 = arith.constant dense<0.000000e+00> : vector<64x512xf32>
    %49 = tpu.matmul %46, %48, %cst_28 {dimension_numbers = #tpu.dot_dimension_numbers<[1], [0], [0], [1], [0, 0, 1, 1], [], []>} : vector<64x64xbf16>, vector<64x512xbf16>, vector<64x512xf32> -> vector<64x512xf32>
    %50 = arith.addf %43, %49 : vector<64x512xf32>
    %51 = vector.extract_strided_slice %44 {offsets = [0, 1, 0], sizes = [8, 8, 64], strides = [1, 1, 1]} : vector<8x10x64xbf16> to vector<8x8x64xbf16>
    %52 = vector.shape_cast %51 : vector<8x8x64xbf16> to vector<64x64xbf16>
    %c7 = arith.constant 7 : index
    %c0_29 = arith.constant 0 : index
    %c0_30 = arith.constant 0 : index
    %53 = vector.load %arg4[%c7, %c0_29, %c0_30] : memref<9x64x512xbf16, #tpu.memory_space<vmem>>, vector<1x64x512xbf16>
    %54 = vector.shape_cast %53 : vector<1x64x512xbf16> to vector<64x512xbf16>
    %cst_31 = arith.constant dense<0.000000e+00> : vector<64x512xf32>
    %55 = tpu.matmul %52, %54, %cst_31 {dimension_numbers = #tpu.dot_dimension_numbers<[1], [0], [0], [1], [0, 0, 1, 1], [], []>} : vector<64x64xbf16>, vector<64x512xbf16>, vector<64x512xf32> -> vector<64x512xf32>
    %56 = arith.addf %50, %55 : vector<64x512xf32>
    %57 = vector.extract_strided_slice %44 {offsets = [0, 2, 0], sizes = [8, 8, 64], strides = [1, 1, 1]} : vector<8x10x64xbf16> to vector<8x8x64xbf16>
    %58 = vector.shape_cast %57 : vector<8x8x64xbf16> to vector<64x64xbf16>
    %c8 = arith.constant 8 : index
    %c0_32 = arith.constant 0 : index
    %c0_33 = arith.constant 0 : index
    %59 = vector.load %arg4[%c8, %c0_32, %c0_33] : memref<9x64x512xbf16, #tpu.memory_space<vmem>>, vector<1x64x512xbf16>
    %60 = vector.shape_cast %59 : vector<1x64x512xbf16> to vector<64x512xbf16>
    %cst_34 = arith.constant dense<0.000000e+00> : vector<64x512xf32>
    %61 = tpu.matmul %58, %60, %cst_34 {dimension_numbers = #tpu.dot_dimension_numbers<[1], [0], [0], [1], [0, 0, 1, 1], [], []>} : vector<64x64xbf16>, vector<64x512xbf16>, vector<64x512xf32> -> vector<64x512xf32>
    %62 = arith.addf %56, %61 : vector<64x512xf32>
    %c0_35 = arith.constant 0 : index
    %c0_36 = arith.constant 0 : index
    %63 = vector.load %arg5[%c0_35, %c0_36] : memref<1x512xf32, #tpu.memory_space<vmem>>, vector<1x512xf32>
    %64 = vector.broadcast %63 : vector<1x512xf32> to vector<64x512xf32>
    %65 = arith.addf %62, %64 : vector<64x512xf32>
    %66 = vector.shape_cast %65 : vector<64x512xf32> to vector<8x8x512xf32>
    %67 = arith.truncf %66 : vector<8x8x512xf32> to vector<8x8x512xbf16>
    %c0_37 = arith.constant 0 : index
    %c0_38 = arith.constant 0 : index
    %c0_39 = arith.constant 0 : index
    %c0_40 = arith.constant 0 : index
    %68 = vector.load %arg6[%c0_37, %c0_38, %c0_39, %c0_40] : memref<1x8x8x512xbf16, #tpu.memory_space<vmem>>, vector<1x8x8x512xbf16>
    %69 = vector.shape_cast %68 : vector<1x8x8x512xbf16> to vector<8x8x512xbf16>
    %70 = vector.shape_cast %67 : vector<8x8x512xbf16> to vector<1x8x8x512xbf16>
    tpu.vector_store %arg6[%c0_37, %c0_38, %c0_39, %c0_40], %70 {strides = array<i32>} : memref<1x8x8x512xbf16, #tpu.memory_space<vmem>>, vector<1x8x8x512xbf16>,
    return
  }
  func.func @transform_0(%arg0: i32, %arg1: i32) -> (i32, i32, i32, i32) {
    %c0_i32 = arith.constant 0 : i32
    %c0_i32_0 = arith.constant 0 : i32
    %c0_i32_1 = arith.constant 0 : i32
    return %arg0, %arg1, %c0_i32, %c0_i32_0 : i32, i32, i32, i32
  }
  func.func @transform_1(%arg0: i32, %arg1: i32) -> (i32, i32, i32, i32) {
    %c1_i32 = arith.constant 1 : i32
    %0 = arith.addi %arg1, %c1_i32 : i32
    %c0_i32 = arith.constant 0 : i32
    %c0_i32_0 = arith.constant 0 : i32
    %c0_i32_1 = arith.constant 0 : i32
    return %arg0, %0, %c0_i32, %c0_i32_0 : i32, i32, i32, i32
  }
  func.func @transform_2(%arg0: i32, %arg1: i32) -> (i32, i32, i32) {
    %c0_i32 = arith.constant 0 : i32
    %c0_i32_0 = arith.constant 0 : i32
    %c0_i32_1 = arith.constant 0 : i32
    %c0_i32_2 = arith.constant 0 : i32
    return %c0_i32, %c0_i32_0, %c0_i32_1 : i32, i32, i32
  }
  func.func @transform_3(%arg0: i32, %arg1: i32) -> (i32, i32) {
    %c0_i32 = arith.constant 0 : i32
    %c0_i32_0 = arith.constant 0 : i32
    %c0_i32_1 = arith.constant 0 : i32
    return %c0_i32, %c0_i32_0 : i32, i32
  }
  func.func @transform_4(%arg0: i32, %arg1: i32) -> (i32, i32, i32, i32) {
    %c0_i32 = arith.constant 0 : i32
    %c0_i32_0 = arith.constant 0 : i32
    %c0_i32_1 = arith.constant 0 : i32
    return %arg0, %arg1, %c0_i32, %c0_i32_0 : i32, i32, i32, i32
  }
}

module attributes {stable_mosaic.version = 11 : i64} {
  func.func @_mm_kernel(%arg0: i32, %arg1: memref<256x128xbf16, #tpu.memory_space<vmem>>, %arg2: memref<256x128xbf16, #tpu.memory_space<vmem>>, %arg3: memref<128x128xbf16, #tpu.memory_space<vmem>>, %arg4: memref<128x128xbf16, #tpu.memory_space<vmem>>, %arg5: memref<1x128xf32, #tpu.memory_space<vmem>>, %arg6: memref<256x128xbf16, #tpu.memory_space<vmem>>) attributes {dimension_semantics = [#tpu.dimension_semantics<parallel>], iteration_bounds = array<i64: 2>, scalar_prefetch = 0 : i64, scratch_operands = 0 : i64, tpu.core_type = #tpu.core_type<tc>, window_params = [{transform_indices = @transform_0, window_bounds = array<i64: 256, 128>}, {transform_indices = @transform_1, window_bounds = array<i64: 256, 128>}, {pipeline_mode = #tpu.pipeline_mode<synchronous>, transform_indices = @transform_2, window_bounds = array<i64: 128, 128>}, {pipeline_mode = #tpu.pipeline_mode<synchronous>, transform_indices = @transform_3, window_bounds = array<i64: 128, 128>}, {pipeline_mode = #tpu.pipeline_mode<synchronous>, transform_indices = @transform_4, window_bounds = array<i64: 1, 128>}, {transform_indices = @transform_5, window_bounds = array<i64: 256, 128>}]} {
    %c0 = arith.constant 0 : index
    %c0_0 = arith.constant 0 : index
    %0 = vector.load %arg1[%c0, %c0_0] : memref<256x128xbf16, #tpu.memory_space<vmem>>, vector<256x128xbf16>
    %c0_1 = arith.constant 0 : index
    %c0_2 = arith.constant 0 : index
    %1 = vector.load %arg3[%c0_1, %c0_2] : memref<128x128xbf16, #tpu.memory_space<vmem>>, vector<128x128xbf16>
    %cst = arith.constant dense<0.000000e+00> : vector<256x128xf32>
    %2 = tpu.matmul %0, %1, %cst {dimension_numbers = #tpu.dot_dimension_numbers<[1], [0], [0], [1], [0, 0, 1, 1], [], []>} : vector<256x128xbf16>, vector<128x128xbf16>, vector<256x128xf32> -> vector<256x128xf32>
    %c0_3 = arith.constant 0 : index
    %c0_4 = arith.constant 0 : index
    %3 = vector.load %arg2[%c0_3, %c0_4] : memref<256x128xbf16, #tpu.memory_space<vmem>>, vector<256x128xbf16>
    %c0_5 = arith.constant 0 : index
    %c0_6 = arith.constant 0 : index
    %4 = vector.load %arg4[%c0_5, %c0_6] : memref<128x128xbf16, #tpu.memory_space<vmem>>, vector<128x128xbf16>
    %cst_7 = arith.constant dense<0.000000e+00> : vector<256x128xf32>
    %5 = tpu.matmul %3, %4, %cst_7 {dimension_numbers = #tpu.dot_dimension_numbers<[1], [0], [0], [1], [0, 0, 1, 1], [], []>} : vector<256x128xbf16>, vector<128x128xbf16>, vector<256x128xf32> -> vector<256x128xf32>
    %6 = arith.addf %2, %5 : vector<256x128xf32>
    %c0_8 = arith.constant 0 : index
    %c0_9 = arith.constant 0 : index
    %7 = vector.load %arg5[%c0_8, %c0_9] : memref<1x128xf32, #tpu.memory_space<vmem>>, vector<1x128xf32>
    %8 = vector.broadcast %7 : vector<1x128xf32> to vector<256x128xf32>
    %9 = arith.addf %6, %8 : vector<256x128xf32>
    %cst_10 = arith.constant 0.000000e+00 : f32
    %10 = vector.broadcast %cst_10 : f32 to vector<256x128xf32>
    %11 = arith.maximumf %9, %10 : vector<256x128xf32>
    %cst_11 = arith.constant 0.000000e+00 : f32
    %12 = vector.broadcast %cst_11 : f32 to vector<256x128xf32>
    %13 = arith.minimumf %9, %12 : vector<256x128xf32>
    %cst_12 = arith.constant 0.00999999977 : f32
    %14 = vector.broadcast %cst_12 : f32 to vector<256x128xf32>
    %15 = arith.mulf %14, %13 : vector<256x128xf32>
    %16 = arith.addf %11, %15 : vector<256x128xf32>
    %17 = arith.truncf %16 : vector<256x128xf32> to vector<256x128xbf16>
    %c0_13 = arith.constant 0 : index
    %c0_14 = arith.constant 0 : index
    %18 = vector.load %arg6[%c0_13, %c0_14] : memref<256x128xbf16, #tpu.memory_space<vmem>>, vector<256x128xbf16>
    tpu.vector_store %arg6[%c0_13, %c0_14], %17 {strides = array<i32>} : memref<256x128xbf16, #tpu.memory_space<vmem>>, vector<256x128xbf16>,
    return
  }
  func.func @transform_0(%arg0: i32) -> (i32, i32) {
    %c0_i32 = arith.constant 0 : i32
    %c0_i32_0 = arith.constant 0 : i32
    return %arg0, %c0_i32 : i32, i32
  }
  func.func @transform_1(%arg0: i32) -> (i32, i32) {
    %c0_i32 = arith.constant 0 : i32
    %c0_i32_0 = arith.constant 0 : i32
    return %arg0, %c0_i32 : i32, i32
  }
  func.func @transform_2(%arg0: i32) -> (i32, i32) {
    %c0_i32 = arith.constant 0 : i32
    %c0_i32_0 = arith.constant 0 : i32
    %c0_i32_1 = arith.constant 0 : i32
    return %c0_i32, %c0_i32_0 : i32, i32
  }
  func.func @transform_3(%arg0: i32) -> (i32, i32) {
    %c0_i32 = arith.constant 0 : i32
    %c0_i32_0 = arith.constant 0 : i32
    %c0_i32_1 = arith.constant 0 : i32
    return %c0_i32, %c0_i32_0 : i32, i32
  }
  func.func @transform_4(%arg0: i32) -> (i32, i32) {
    %c0_i32 = arith.constant 0 : i32
    %c0_i32_0 = arith.constant 0 : i32
    %c0_i32_1 = arith.constant 0 : i32
    return %c0_i32, %c0_i32_0 : i32, i32
  }
  func.func @transform_5(%arg0: i32) -> (i32, i32) {
    %c0_i32 = arith.constant 0 : i32
    %c0_i32_0 = arith.constant 0 : i32
    return %arg0, %c0_i32 : i32, i32
  }
}

module attributes {stable_mosaic.version = 11 : i64} {
  func.func @_dw3x3_band_kernel(%arg0: i32, %arg1: i32, %arg2: memref<1x16x18x128xbf16, #tpu.memory_space<vmem>>, %arg3: memref<1x16x18x128xbf16, #tpu.memory_space<vmem>>, %arg4: memref<9x128xf32, #tpu.memory_space<vmem>>, %arg5: memref<1x128xf32, #tpu.memory_space<vmem>>, %arg6: memref<1x16x16x128xbf16, #tpu.memory_space<vmem>>) attributes {dimension_semantics = [#tpu.dimension_semantics<parallel>, #tpu.dimension_semantics<parallel>], iteration_bounds = array<i64: 2, 1>, scalar_prefetch = 0 : i64, scratch_operands = 0 : i64, tpu.core_type = #tpu.core_type<tc>, window_params = [{transform_indices = @transform_0, window_bounds = array<i64: 1, 16, 18, 128>}, {transform_indices = @transform_1, window_bounds = array<i64: 1, 16, 18, 128>}, {pipeline_mode = #tpu.pipeline_mode<synchronous>, transform_indices = @transform_2, window_bounds = array<i64: 9, 128>}, {pipeline_mode = #tpu.pipeline_mode<synchronous>, transform_indices = @transform_3, window_bounds = array<i64: 1, 128>}, {transform_indices = @transform_4, window_bounds = array<i64: 1, 16, 16, 128>}]} {
    %c0 = arith.constant 0 : index
    %c0_0 = arith.constant 0 : index
    %c0_1 = arith.constant 0 : index
    %c0_2 = arith.constant 0 : index
    %0 = vector.load %arg2[%c0, %c0_0, %c0_1, %c0_2] : memref<1x16x18x128xbf16, #tpu.memory_space<vmem>>, vector<1x16x18x128xbf16>
    %1 = vector.shape_cast %0 : vector<1x16x18x128xbf16> to vector<16x18x128xbf16>
    %c0_3 = arith.constant 0 : index
    %c0_4 = arith.constant 0 : index
    %c0_5 = arith.constant 0 : index
    %c0_6 = arith.constant 0 : index
    %2 = vector.load %arg3[%c0_3, %c0_4, %c0_5, %c0_6] : memref<1x16x18x128xbf16, #tpu.memory_space<vmem>>, vector<1x16x18x128xbf16>
    %3 = vector.shape_cast %2 : vector<1x16x18x128xbf16> to vector<16x18x128xbf16>
    %4 = tpu.concatenate %1, %3 in 0 : vector<16x18x128xbf16>, vector<16x18x128xbf16> -> vector<32x18x128xbf16>
    %5 = arith.extf %4 : vector<32x18x128xbf16> to vector<32x18x128xf32>
    %cst = arith.constant 0.000000e+00 : f32
    %6 = vector.broadcast %cst : f32 to vector<16x16x128xf32>
    %7 = vector.extract_strided_slice %5 {offsets = [0, 0, 0], sizes = [16, 18, 128], strides = [1, 1, 1]} : vector<32x18x128xf32> to vector<16x18x128xf32>
    %8 = vector.extract_strided_slice %7 {offsets = [0, 0, 0], sizes = [16, 16, 128], strides = [1, 1, 1]} : vector<16x18x128xf32> to vector<16x16x128xf32>
    %c0_7 = arith.constant 0 : index
    %c0_8 = arith.constant 0 : index
    %9 = vector.load %arg4[%c0_7, %c0_8] : memref<9x128xf32, #tpu.memory_space<vmem>>, vector<1x128xf32>
    %10 = vector.shape_cast %9 : vector<1x128xf32> to vector<128xf32>
    %11 = vector.shape_cast %10 : vector<128xf32> to vector<1x1x128xf32>
    %12 = vector.broadcast %11 : vector<1x1x128xf32> to vector<16x16x128xf32>
    %13 = arith.mulf %8, %12 : vector<16x16x128xf32>
    %14 = arith.addf %6, %13 : vector<16x16x128xf32>
    %15 = vector.extract_strided_slice %7 {offsets = [0, 1, 0], sizes = [16, 16, 128], strides = [1, 1, 1]} : vector<16x18x128xf32> to vector<16x16x128xf32>
    %c1 = arith.constant 1 : index
    %c0_9 = arith.constant 0 : index
    %16 = vector.load %arg4[%c1, %c0_9] : memref<9x128xf32, #tpu.memory_space<vmem>>, vector<1x128xf32>
    %17 = vector.shape_cast %16 : vector<1x128xf32> to vector<128xf32>
    %18 = vector.shape_cast %17 : vector<128xf32> to vector<1x1x128xf32>
    %19 = vector.broadcast %18 : vector<1x1x128xf32> to vector<16x16x128xf32>
    %20 = arith.mulf %15, %19 : vector<16x16x128xf32>
    %21 = arith.addf %14, %20 : vector<16x16x128xf32>
    %22 = vector.extract_strided_slice %7 {offsets = [0, 2, 0], sizes = [16, 16, 128], strides = [1, 1, 1]} : vector<16x18x128xf32> to vector<16x16x128xf32>
    %c2 = arith.constant 2 : index
    %c0_10 = arith.constant 0 : index
    %23 = vector.load %arg4[%c2, %c0_10] : memref<9x128xf32, #tpu.memory_space<vmem>>, vector<1x128xf32>
    %24 = vector.shape_cast %23 : vector<1x128xf32> to vector<128xf32>
    %25 = vector.shape_cast %24 : vector<128xf32> to vector<1x1x128xf32>
    %26 = vector.broadcast %25 : vector<1x1x128xf32> to vector<16x16x128xf32>
    %27 = arith.mulf %22, %26 : vector<16x16x128xf32>
    %28 = arith.addf %21, %27 : vector<16x16x128xf32>
    %29 = vector.extract_strided_slice %5 {offsets = [1, 0, 0], sizes = [16, 18, 128], strides = [1, 1, 1]} : vector<32x18x128xf32> to vector<16x18x128xf32>
    %30 = vector.extract_strided_slice %29 {offsets = [0, 0, 0], sizes = [16, 16, 128], strides = [1, 1, 1]} : vector<16x18x128xf32> to vector<16x16x128xf32>
    %c3 = arith.constant 3 : index
    %c0_11 = arith.constant 0 : index
    %31 = vector.load %arg4[%c3, %c0_11] : memref<9x128xf32, #tpu.memory_space<vmem>>, vector<1x128xf32>
    %32 = vector.shape_cast %31 : vector<1x128xf32> to vector<128xf32>
    %33 = vector.shape_cast %32 : vector<128xf32> to vector<1x1x128xf32>
    %34 = vector.broadcast %33 : vector<1x1x128xf32> to vector<16x16x128xf32>
    %35 = arith.mulf %30, %34 : vector<16x16x128xf32>
    %36 = arith.addf %28, %35 : vector<16x16x128xf32>
    %37 = vector.extract_strided_slice %29 {offsets = [0, 1, 0], sizes = [16, 16, 128], strides = [1, 1, 1]} : vector<16x18x128xf32> to vector<16x16x128xf32>
    %c4 = arith.constant 4 : index
    %c0_12 = arith.constant 0 : index
    %38 = vector.load %arg4[%c4, %c0_12] : memref<9x128xf32, #tpu.memory_space<vmem>>, vector<1x128xf32>
    %39 = vector.shape_cast %38 : vector<1x128xf32> to vector<128xf32>
    %40 = vector.shape_cast %39 : vector<128xf32> to vector<1x1x128xf32>
    %41 = vector.broadcast %40 : vector<1x1x128xf32> to vector<16x16x128xf32>
    %42 = arith.mulf %37, %41 : vector<16x16x128xf32>
    %43 = arith.addf %36, %42 : vector<16x16x128xf32>
    %44 = vector.extract_strided_slice %29 {offsets = [0, 2, 0], sizes = [16, 16, 128], strides = [1, 1, 1]} : vector<16x18x128xf32> to vector<16x16x128xf32>
    %c5 = arith.constant 5 : index
    %c0_13 = arith.constant 0 : index
    %45 = vector.load %arg4[%c5, %c0_13] : memref<9x128xf32, #tpu.memory_space<vmem>>, vector<1x128xf32>
    %46 = vector.shape_cast %45 : vector<1x128xf32> to vector<128xf32>
    %47 = vector.shape_cast %46 : vector<128xf32> to vector<1x1x128xf32>
    %48 = vector.broadcast %47 : vector<1x1x128xf32> to vector<16x16x128xf32>
    %49 = arith.mulf %44, %48 : vector<16x16x128xf32>
    %50 = arith.addf %43, %49 : vector<16x16x128xf32>
    %51 = vector.extract_strided_slice %5 {offsets = [2, 0, 0], sizes = [16, 18, 128], strides = [1, 1, 1]} : vector<32x18x128xf32> to vector<16x18x128xf32>
    %52 = vector.extract_strided_slice %51 {offsets = [0, 0, 0], sizes = [16, 16, 128], strides = [1, 1, 1]} : vector<16x18x128xf32> to vector<16x16x128xf32>
    %c6 = arith.constant 6 : index
    %c0_14 = arith.constant 0 : index
    %53 = vector.load %arg4[%c6, %c0_14] : memref<9x128xf32, #tpu.memory_space<vmem>>, vector<1x128xf32>
    %54 = vector.shape_cast %53 : vector<1x128xf32> to vector<128xf32>
    %55 = vector.shape_cast %54 : vector<128xf32> to vector<1x1x128xf32>
    %56 = vector.broadcast %55 : vector<1x1x128xf32> to vector<16x16x128xf32>
    %57 = arith.mulf %52, %56 : vector<16x16x128xf32>
    %58 = arith.addf %50, %57 : vector<16x16x128xf32>
    %59 = vector.extract_strided_slice %51 {offsets = [0, 1, 0], sizes = [16, 16, 128], strides = [1, 1, 1]} : vector<16x18x128xf32> to vector<16x16x128xf32>
    %c7 = arith.constant 7 : index
    %c0_15 = arith.constant 0 : index
    %60 = vector.load %arg4[%c7, %c0_15] : memref<9x128xf32, #tpu.memory_space<vmem>>, vector<1x128xf32>
    %61 = vector.shape_cast %60 : vector<1x128xf32> to vector<128xf32>
    %62 = vector.shape_cast %61 : vector<128xf32> to vector<1x1x128xf32>
    %63 = vector.broadcast %62 : vector<1x1x128xf32> to vector<16x16x128xf32>
    %64 = arith.mulf %59, %63 : vector<16x16x128xf32>
    %65 = arith.addf %58, %64 : vector<16x16x128xf32>
    %66 = vector.extract_strided_slice %51 {offsets = [0, 2, 0], sizes = [16, 16, 128], strides = [1, 1, 1]} : vector<16x18x128xf32> to vector<16x16x128xf32>
    %c8 = arith.constant 8 : index
    %c0_16 = arith.constant 0 : index
    %67 = vector.load %arg4[%c8, %c0_16] : memref<9x128xf32, #tpu.memory_space<vmem>>, vector<1x128xf32>
    %68 = vector.shape_cast %67 : vector<1x128xf32> to vector<128xf32>
    %69 = vector.shape_cast %68 : vector<128xf32> to vector<1x1x128xf32>
    %70 = vector.broadcast %69 : vector<1x1x128xf32> to vector<16x16x128xf32>
    %71 = arith.mulf %66, %70 : vector<16x16x128xf32>
    %72 = arith.addf %65, %71 : vector<16x16x128xf32>
    %c0_17 = arith.constant 0 : index
    %c0_18 = arith.constant 0 : index
    %73 = vector.load %arg5[%c0_17, %c0_18] : memref<1x128xf32, #tpu.memory_space<vmem>>, vector<1x128xf32>
    %74 = vector.shape_cast %73 : vector<1x128xf32> to vector<1x1x128xf32>
    %75 = vector.broadcast %74 : vector<1x1x128xf32> to vector<16x16x128xf32>
    %76 = arith.addf %72, %75 : vector<16x16x128xf32>
    %77 = arith.truncf %76 : vector<16x16x128xf32> to vector<16x16x128xbf16>
    %c0_19 = arith.constant 0 : index
    %c0_20 = arith.constant 0 : index
    %c0_21 = arith.constant 0 : index
    %c0_22 = arith.constant 0 : index
    %78 = vector.load %arg6[%c0_19, %c0_20, %c0_21, %c0_22] : memref<1x16x16x128xbf16, #tpu.memory_space<vmem>>, vector<1x16x16x128xbf16>
    %79 = vector.shape_cast %78 : vector<1x16x16x128xbf16> to vector<16x16x128xbf16>
    %80 = vector.shape_cast %77 : vector<16x16x128xbf16> to vector<1x16x16x128xbf16>
    tpu.vector_store %arg6[%c0_19, %c0_20, %c0_21, %c0_22], %80 {strides = array<i32>} : memref<1x16x16x128xbf16, #tpu.memory_space<vmem>>, vector<1x16x16x128xbf16>,
    return
  }
  func.func @transform_0(%arg0: i32, %arg1: i32) -> (i32, i32, i32, i32) {
    %c0_i32 = arith.constant 0 : i32
    %c0_i32_0 = arith.constant 0 : i32
    %c0_i32_1 = arith.constant 0 : i32
    return %arg0, %arg1, %c0_i32, %c0_i32_0 : i32, i32, i32, i32
  }
  func.func @transform_1(%arg0: i32, %arg1: i32) -> (i32, i32, i32, i32) {
    %c1_i32 = arith.constant 1 : i32
    %0 = arith.addi %arg1, %c1_i32 : i32
    %c0_i32 = arith.constant 0 : i32
    %c0_i32_0 = arith.constant 0 : i32
    %c0_i32_1 = arith.constant 0 : i32
    return %arg0, %0, %c0_i32, %c0_i32_0 : i32, i32, i32, i32
  }
  func.func @transform_2(%arg0: i32, %arg1: i32) -> (i32, i32) {
    %c0_i32 = arith.constant 0 : i32
    %c0_i32_0 = arith.constant 0 : i32
    %c0_i32_1 = arith.constant 0 : i32
    return %c0_i32, %c0_i32_0 : i32, i32
  }
  func.func @transform_3(%arg0: i32, %arg1: i32) -> (i32, i32) {
    %c0_i32 = arith.constant 0 : i32
    %c0_i32_0 = arith.constant 0 : i32
    %c0_i32_1 = arith.constant 0 : i32
    return %c0_i32, %c0_i32_0 : i32, i32
  }
  func.func @transform_4(%arg0: i32, %arg1: i32) -> (i32, i32, i32, i32) {
    %c0_i32 = arith.constant 0 : i32
    %c0_i32_0 = arith.constant 0 : i32
    %c0_i32_1 = arith.constant 0 : i32
    return %arg0, %arg1, %c0_i32, %c0_i32_0 : i32, i32, i32, i32
  }
}

module attributes {stable_mosaic.version = 11 : i64} {
  func.func @_mm_kernel(%arg0: i32, %arg1: memref<256x128xbf16, #tpu.memory_space<vmem>>, %arg2: memref<256x128xbf16, #tpu.memory_space<vmem>>, %arg3: memref<128x128xbf16, #tpu.memory_space<vmem>>, %arg4: memref<128x128xbf16, #tpu.memory_space<vmem>>, %arg5: memref<1x128xf32, #tpu.memory_space<vmem>>, %arg6: memref<256x128xbf16, #tpu.memory_space<vmem>>) attributes {dimension_semantics = [#tpu.dimension_semantics<parallel>], iteration_bounds = array<i64: 2>, scalar_prefetch = 0 : i64, scratch_operands = 0 : i64, tpu.core_type = #tpu.core_type<tc>, window_params = [{transform_indices = @transform_0, window_bounds = array<i64: 256, 128>}, {transform_indices = @transform_1, window_bounds = array<i64: 256, 128>}, {pipeline_mode = #tpu.pipeline_mode<synchronous>, transform_indices = @transform_2, window_bounds = array<i64: 128, 128>}, {pipeline_mode = #tpu.pipeline_mode<synchronous>, transform_indices = @transform_3, window_bounds = array<i64: 128, 128>}, {pipeline_mode = #tpu.pipeline_mode<synchronous>, transform_indices = @transform_4, window_bounds = array<i64: 1, 128>}, {transform_indices = @transform_5, window_bounds = array<i64: 256, 128>}]} {
    %c0 = arith.constant 0 : index
    %c0_0 = arith.constant 0 : index
    %0 = vector.load %arg1[%c0, %c0_0] : memref<256x128xbf16, #tpu.memory_space<vmem>>, vector<256x128xbf16>
    %c0_1 = arith.constant 0 : index
    %c0_2 = arith.constant 0 : index
    %1 = vector.load %arg3[%c0_1, %c0_2] : memref<128x128xbf16, #tpu.memory_space<vmem>>, vector<128x128xbf16>
    %cst = arith.constant dense<0.000000e+00> : vector<256x128xf32>
    %2 = tpu.matmul %0, %1, %cst {dimension_numbers = #tpu.dot_dimension_numbers<[1], [0], [0], [1], [0, 0, 1, 1], [], []>} : vector<256x128xbf16>, vector<128x128xbf16>, vector<256x128xf32> -> vector<256x128xf32>
    %c0_3 = arith.constant 0 : index
    %c0_4 = arith.constant 0 : index
    %3 = vector.load %arg2[%c0_3, %c0_4] : memref<256x128xbf16, #tpu.memory_space<vmem>>, vector<256x128xbf16>
    %c0_5 = arith.constant 0 : index
    %c0_6 = arith.constant 0 : index
    %4 = vector.load %arg4[%c0_5, %c0_6] : memref<128x128xbf16, #tpu.memory_space<vmem>>, vector<128x128xbf16>
    %cst_7 = arith.constant dense<0.000000e+00> : vector<256x128xf32>
    %5 = tpu.matmul %3, %4, %cst_7 {dimension_numbers = #tpu.dot_dimension_numbers<[1], [0], [0], [1], [0, 0, 1, 1], [], []>} : vector<256x128xbf16>, vector<128x128xbf16>, vector<256x128xf32> -> vector<256x128xf32>
    %6 = arith.addf %2, %5 : vector<256x128xf32>
    %c0_8 = arith.constant 0 : index
    %c0_9 = arith.constant 0 : index
    %7 = vector.load %arg5[%c0_8, %c0_9] : memref<1x128xf32, #tpu.memory_space<vmem>>, vector<1x128xf32>
    %8 = vector.broadcast %7 : vector<1x128xf32> to vector<256x128xf32>
    %9 = arith.addf %6, %8 : vector<256x128xf32>
    %10 = arith.truncf %9 : vector<256x128xf32> to vector<256x128xbf16>
    %c0_10 = arith.constant 0 : index
    %c0_11 = arith.constant 0 : index
    %11 = vector.load %arg6[%c0_10, %c0_11] : memref<256x128xbf16, #tpu.memory_space<vmem>>, vector<256x128xbf16>
    tpu.vector_store %arg6[%c0_10, %c0_11], %10 {strides = array<i32>} : memref<256x128xbf16, #tpu.memory_space<vmem>>, vector<256x128xbf16>,
    return
  }
  func.func @transform_0(%arg0: i32) -> (i32, i32) {
    %c0_i32 = arith.constant 0 : i32
    %c0_i32_0 = arith.constant 0 : i32
    return %arg0, %c0_i32 : i32, i32
  }
  func.func @transform_1(%arg0: i32) -> (i32, i32) {
    %c0_i32 = arith.constant 0 : i32
    %c0_i32_0 = arith.constant 0 : i32
    return %arg0, %c0_i32 : i32, i32
  }
  func.func @transform_2(%arg0: i32) -> (i32, i32) {
    %c0_i32 = arith.constant 0 : i32
    %c0_i32_0 = arith.constant 0 : i32
    %c0_i32_1 = arith.constant 0 : i32
    return %c0_i32, %c0_i32_0 : i32, i32
  }
  func.func @transform_3(%arg0: i32) -> (i32, i32) {
    %c0_i32 = arith.constant 0 : i32
    %c0_i32_0 = arith.constant 0 : i32
    %c0_i32_1 = arith.constant 0 : i32
    return %c0_i32, %c0_i32_0 : i32, i32
  }
  func.func @transform_4(%arg0: i32) -> (i32, i32) {
    %c0_i32 = arith.constant 0 : i32
    %c0_i32_0 = arith.constant 0 : i32
    %c0_i32_1 = arith.constant 0 : i32
    return %c0_i32, %c0_i32_0 : i32, i32
  }
  func.func @transform_5(%arg0: i32) -> (i32, i32) {
    %c0_i32 = arith.constant 0 : i32
    %c0_i32_0 = arith.constant 0 : i32
    return %arg0, %c0_i32 : i32, i32
  }
}

module attributes {stable_mosaic.version = 11 : i64} {
  func.func @_dc2_ffn_kernel(%arg0: i32, %arg1: memref<256x128xbf16, #tpu.memory_space<vmem>>, %arg2: memref<256x128xbf16, #tpu.memory_space<vmem>>, %arg3: memref<128x128xbf16, #tpu.memory_space<vmem>>, %arg4: memref<1x128xf32, #tpu.memory_space<vmem>>, %arg5: memref<128x256xbf16, #tpu.memory_space<vmem>>, %arg6: memref<1x256xf32, #tpu.memory_space<vmem>>, %arg7: memref<256x128xbf16, #tpu.memory_space<vmem>>, %arg8: memref<1x128xf32, #tpu.memory_space<vmem>>, %arg9: memref<256x128xbf16, #tpu.memory_space<vmem>>) attributes {dimension_semantics = [#tpu.dimension_semantics<parallel>], iteration_bounds = array<i64: 2>, scalar_prefetch = 0 : i64, scratch_operands = 0 : i64, tpu.core_type = #tpu.core_type<tc>, window_params = [{transform_indices = @transform_0, window_bounds = array<i64: 256, 128>}, {transform_indices = @transform_1, window_bounds = array<i64: 256, 128>}, {pipeline_mode = #tpu.pipeline_mode<synchronous>, transform_indices = @transform_2, window_bounds = array<i64: 128, 128>}, {pipeline_mode = #tpu.pipeline_mode<synchronous>, transform_indices = @transform_3, window_bounds = array<i64: 1, 128>}, {pipeline_mode = #tpu.pipeline_mode<synchronous>, transform_indices = @transform_4, window_bounds = array<i64: 128, 256>}, {pipeline_mode = #tpu.pipeline_mode<synchronous>, transform_indices = @transform_5, window_bounds = array<i64: 1, 256>}, {pipeline_mode = #tpu.pipeline_mode<synchronous>, transform_indices = @transform_6, window_bounds = array<i64: 256, 128>}, {pipeline_mode = #tpu.pipeline_mode<synchronous>, transform_indices = @transform_7, window_bounds = array<i64: 1, 128>}, {transform_indices = @transform_8, window_bounds = array<i64: 256, 128>}]} {
    %c0 = arith.constant 0 : index
    %c0_0 = arith.constant 0 : index
    %0 = vector.load %arg1[%c0, %c0_0] : memref<256x128xbf16, #tpu.memory_space<vmem>>, vector<256x128xbf16>
    %c0_1 = arith.constant 0 : index
    %c0_2 = arith.constant 0 : index
    %1 = vector.load %arg3[%c0_1, %c0_2] : memref<128x128xbf16, #tpu.memory_space<vmem>>, vector<128x128xbf16>
    %cst = arith.constant dense<0.000000e+00> : vector<256x128xf32>
    %2 = tpu.matmul %0, %1, %cst {dimension_numbers = #tpu.dot_dimension_numbers<[1], [0], [0], [1], [0, 0, 1, 1], [], []>} : vector<256x128xbf16>, vector<128x128xbf16>, vector<256x128xf32> -> vector<256x128xf32>
    %c0_3 = arith.constant 0 : index
    %c0_4 = arith.constant 0 : index
    %3 = vector.load %arg4[%c0_3, %c0_4] : memref<1x128xf32, #tpu.memory_space<vmem>>, vector<1x128xf32>
    %4 = vector.broadcast %3 : vector<1x128xf32> to vector<256x128xf32>
    %5 = arith.addf %2, %4 : vector<256x128xf32>
    %c0_5 = arith.constant 0 : index
    %c0_6 = arith.constant 0 : index
    %6 = vector.load %arg2[%c0_5, %c0_6] : memref<256x128xbf16, #tpu.memory_space<vmem>>, vector<256x128xbf16>
    %7 = arith.extf %6 : vector<256x128xbf16> to vector<256x128xf32>
    %8 = arith.addf %5, %7 : vector<256x128xf32>
    %9 = arith.truncf %8 : vector<256x128xf32> to vector<256x128xbf16>
    %c0_7 = arith.constant 0 : index
    %c0_8 = arith.constant 0 : index
    %10 = vector.load %arg5[%c0_7, %c0_8] : memref<128x256xbf16, #tpu.memory_space<vmem>>, vector<128x256xbf16>
    %cst_9 = arith.constant dense<0.000000e+00> : vector<256x256xf32>
    %11 = tpu.matmul %9, %10, %cst_9 {dimension_numbers = #tpu.dot_dimension_numbers<[1], [0], [0], [1], [0, 0, 1, 1], [], []>} : vector<256x128xbf16>, vector<128x256xbf16>, vector<256x256xf32> -> vector<256x256xf32>
    %c0_10 = arith.constant 0 : index
    %c0_11 = arith.constant 0 : index
    %12 = vector.load %arg6[%c0_10, %c0_11] : memref<1x256xf32, #tpu.memory_space<vmem>>, vector<1x256xf32>
    %13 = vector.broadcast %12 : vector<1x256xf32> to vector<256x256xf32>
    %14 = arith.addf %11, %13 : vector<256x256xf32>
    %cst_12 = arith.constant 0.000000e+00 : f32
    %15 = vector.broadcast %cst_12 : f32 to vector<256x256xf32>
    %16 = arith.maximumf %14, %15 : vector<256x256xf32>
    %cst_13 = arith.constant 0.000000e+00 : f32
    %17 = vector.broadcast %cst_13 : f32 to vector<256x256xf32>
    %18 = arith.minimumf %14, %17 : vector<256x256xf32>
    %cst_14 = arith.constant 0.00999999977 : f32
    %19 = vector.broadcast %cst_14 : f32 to vector<256x256xf32>
    %20 = arith.mulf %19, %18 : vector<256x256xf32>
    %21 = arith.addf %16, %20 : vector<256x256xf32>
    %22 = arith.truncf %21 : vector<256x256xf32> to vector<256x256xbf16>
    %c0_15 = arith.constant 0 : index
    %c0_16 = arith.constant 0 : index
    %23 = vector.load %arg7[%c0_15, %c0_16] : memref<256x128xbf16, #tpu.memory_space<vmem>>, vector<256x128xbf16>
    %cst_17 = arith.constant dense<0.000000e+00> : vector<256x128xf32>
    %24 = tpu.matmul %22, %23, %cst_17 {dimension_numbers = #tpu.dot_dimension_numbers<[1], [0], [0], [1], [0, 0, 1, 1], [], []>} : vector<256x256xbf16>, vector<256x128xbf16>, vector<256x128xf32> -> vector<256x128xf32>
    %c0_18 = arith.constant 0 : index
    %c0_19 = arith.constant 0 : index
    %25 = vector.load %arg8[%c0_18, %c0_19] : memref<1x128xf32, #tpu.memory_space<vmem>>, vector<1x128xf32>
    %26 = vector.broadcast %25 : vector<1x128xf32> to vector<256x128xf32>
    %27 = arith.addf %24, %26 : vector<256x128xf32>
    %28 = arith.addf %27, %8 : vector<256x128xf32>
    %29 = arith.truncf %28 : vector<256x128xf32> to vector<256x128xbf16>
    %c0_20 = arith.constant 0 : index
    %c0_21 = arith.constant 0 : index
    %30 = vector.load %arg9[%c0_20, %c0_21] : memref<256x128xbf16, #tpu.memory_space<vmem>>, vector<256x128xbf16>
    tpu.vector_store %arg9[%c0_20, %c0_21], %29 {strides = array<i32>} : memref<256x128xbf16, #tpu.memory_space<vmem>>, vector<256x128xbf16>,
    return
  }
  func.func @transform_0(%arg0: i32) -> (i32, i32) {
    %c0_i32 = arith.constant 0 : i32
    %c0_i32_0 = arith.constant 0 : i32
    return %arg0, %c0_i32 : i32, i32
  }
  func.func @transform_1(%arg0: i32) -> (i32, i32) {
    %c0_i32 = arith.constant 0 : i32
    %c0_i32_0 = arith.constant 0 : i32
    return %arg0, %c0_i32 : i32, i32
  }
  func.func @transform_2(%arg0: i32) -> (i32, i32) {
    %c0_i32 = arith.constant 0 : i32
    %c0_i32_0 = arith.constant 0 : i32
    %c0_i32_1 = arith.constant 0 : i32
    return %c0_i32, %c0_i32_0 : i32, i32
  }
  func.func @transform_3(%arg0: i32) -> (i32, i32) {
    %c0_i32 = arith.constant 0 : i32
    %c0_i32_0 = arith.constant 0 : i32
    %c0_i32_1 = arith.constant 0 : i32
    return %c0_i32, %c0_i32_0 : i32, i32
  }
  func.func @transform_4(%arg0: i32) -> (i32, i32) {
    %c0_i32 = arith.constant 0 : i32
    %c0_i32_0 = arith.constant 0 : i32
    %c0_i32_1 = arith.constant 0 : i32
    return %c0_i32, %c0_i32_0 : i32, i32
  }
  func.func @transform_5(%arg0: i32) -> (i32, i32) {
    %c0_i32 = arith.constant 0 : i32
    %c0_i32_0 = arith.constant 0 : i32
    %c0_i32_1 = arith.constant 0 : i32
    return %c0_i32, %c0_i32_0 : i32, i32
  }
  func.func @transform_6(%arg0: i32) -> (i32, i32) {
    %c0_i32 = arith.constant 0 : i32
    %c0_i32_0 = arith.constant 0 : i32
    %c0_i32_1 = arith.constant 0 : i32
    return %c0_i32, %c0_i32_0 : i32, i32
  }
  func.func @transform_7(%arg0: i32) -> (i32, i32) {
    %c0_i32 = arith.constant 0 : i32
    %c0_i32_0 = arith.constant 0 : i32
    %c0_i32_1 = arith.constant 0 : i32
    return %c0_i32, %c0_i32_0 : i32, i32
  }
  func.func @transform_8(%arg0: i32) -> (i32, i32) {
    %c0_i32 = arith.constant 0 : i32
    %c0_i32_0 = arith.constant 0 : i32
    return %arg0, %c0_i32 : i32, i32
  }
}

module attributes {stable_mosaic.version = 11 : i64} {
  func.func @_mm_kernel(%arg0: i32, %arg1: memref<256x128xbf16, #tpu.memory_space<vmem>>, %arg2: memref<128x128xbf16, #tpu.memory_space<vmem>>, %arg3: memref<1x128xf32, #tpu.memory_space<vmem>>, %arg4: memref<256x128xbf16, #tpu.memory_space<vmem>>) attributes {dimension_semantics = [#tpu.dimension_semantics<parallel>], iteration_bounds = array<i64: 2>, scalar_prefetch = 0 : i64, scratch_operands = 0 : i64, tpu.core_type = #tpu.core_type<tc>, window_params = [{transform_indices = @transform_0, window_bounds = array<i64: 256, 128>}, {pipeline_mode = #tpu.pipeline_mode<synchronous>, transform_indices = @transform_1, window_bounds = array<i64: 128, 128>}, {pipeline_mode = #tpu.pipeline_mode<synchronous>, transform_indices = @transform_2, window_bounds = array<i64: 1, 128>}, {transform_indices = @transform_3, window_bounds = array<i64: 256, 128>}]} {
    %c0 = arith.constant 0 : index
    %c0_0 = arith.constant 0 : index
    %0 = vector.load %arg1[%c0, %c0_0] : memref<256x128xbf16, #tpu.memory_space<vmem>>, vector<256x128xbf16>
    %c0_1 = arith.constant 0 : index
    %c0_2 = arith.constant 0 : index
    %1 = vector.load %arg2[%c0_1, %c0_2] : memref<128x128xbf16, #tpu.memory_space<vmem>>, vector<128x128xbf16>
    %cst = arith.constant dense<0.000000e+00> : vector<256x128xf32>
    %2 = tpu.matmul %0, %1, %cst {dimension_numbers = #tpu.dot_dimension_numbers<[1], [0], [0], [1], [0, 0, 1, 1], [], []>} : vector<256x128xbf16>, vector<128x128xbf16>, vector<256x128xf32> -> vector<256x128xf32>
    %c0_3 = arith.constant 0 : index
    %c0_4 = arith.constant 0 : index
    %3 = vector.load %arg3[%c0_3, %c0_4] : memref<1x128xf32, #tpu.memory_space<vmem>>, vector<1x128xf32>
    %4 = vector.broadcast %3 : vector<1x128xf32> to vector<256x128xf32>
    %5 = arith.addf %2, %4 : vector<256x128xf32>
    %cst_5 = arith.constant 0.000000e+00 : f32
    %6 = vector.broadcast %cst_5 : f32 to vector<256x128xf32>
    %7 = arith.maximumf %5, %6 : vector<256x128xf32>
    %cst_6 = arith.constant 0.000000e+00 : f32
    %8 = vector.broadcast %cst_6 : f32 to vector<256x128xf32>
    %9 = arith.minimumf %5, %8 : vector<256x128xf32>
    %cst_7 = arith.constant 0.00999999977 : f32
    %10 = vector.broadcast %cst_7 : f32 to vector<256x128xf32>
    %11 = arith.mulf %10, %9 : vector<256x128xf32>
    %12 = arith.addf %7, %11 : vector<256x128xf32>
    %13 = arith.truncf %12 : vector<256x128xf32> to vector<256x128xbf16>
    %c0_8 = arith.constant 0 : index
    %c0_9 = arith.constant 0 : index
    %14 = vector.load %arg4[%c0_8, %c0_9] : memref<256x128xbf16, #tpu.memory_space<vmem>>, vector<256x128xbf16>
    tpu.vector_store %arg4[%c0_8, %c0_9], %13 {strides = array<i32>} : memref<256x128xbf16, #tpu.memory_space<vmem>>, vector<256x128xbf16>,
    return
  }
  func.func @transform_0(%arg0: i32) -> (i32, i32) {
    %c0_i32 = arith.constant 0 : i32
    %c0_i32_0 = arith.constant 0 : i32
    return %arg0, %c0_i32 : i32, i32
  }
  func.func @transform_1(%arg0: i32) -> (i32, i32) {
    %c0_i32 = arith.constant 0 : i32
    %c0_i32_0 = arith.constant 0 : i32
    %c0_i32_1 = arith.constant 0 : i32
    return %c0_i32, %c0_i32_0 : i32, i32
  }
  func.func @transform_2(%arg0: i32) -> (i32, i32) {
    %c0_i32 = arith.constant 0 : i32
    %c0_i32_0 = arith.constant 0 : i32
    %c0_i32_1 = arith.constant 0 : i32
    return %c0_i32, %c0_i32_0 : i32, i32
  }
  func.func @transform_3(%arg0: i32) -> (i32, i32) {
    %c0_i32 = arith.constant 0 : i32
    %c0_i32_0 = arith.constant 0 : i32
    return %arg0, %c0_i32 : i32, i32
  }
}

module attributes {stable_mosaic.version = 11 : i64} {
  func.func @_mm_kernel(%arg0: i32, %arg1: memref<256x128xbf16, #tpu.memory_space<vmem>>, %arg2: memref<128x128xbf16, #tpu.memory_space<vmem>>, %arg3: memref<1x128xf32, #tpu.memory_space<vmem>>, %arg4: memref<256x128xf32, #tpu.memory_space<vmem>>) attributes {dimension_semantics = [#tpu.dimension_semantics<parallel>], iteration_bounds = array<i64: 2>, scalar_prefetch = 0 : i64, scratch_operands = 0 : i64, tpu.core_type = #tpu.core_type<tc>, window_params = [{transform_indices = @transform_0, window_bounds = array<i64: 256, 128>}, {pipeline_mode = #tpu.pipeline_mode<synchronous>, transform_indices = @transform_1, window_bounds = array<i64: 128, 128>}, {pipeline_mode = #tpu.pipeline_mode<synchronous>, transform_indices = @transform_2, window_bounds = array<i64: 1, 128>}, {transform_indices = @transform_3, window_bounds = array<i64: 256, 128>}]} {
    %c0 = arith.constant 0 : index
    %c0_0 = arith.constant 0 : index
    %0 = vector.load %arg1[%c0, %c0_0] : memref<256x128xbf16, #tpu.memory_space<vmem>>, vector<256x128xbf16>
    %c0_1 = arith.constant 0 : index
    %c0_2 = arith.constant 0 : index
    %1 = vector.load %arg2[%c0_1, %c0_2] : memref<128x128xbf16, #tpu.memory_space<vmem>>, vector<128x128xbf16>
    %cst = arith.constant dense<0.000000e+00> : vector<256x128xf32>
    %2 = tpu.matmul %0, %1, %cst {dimension_numbers = #tpu.dot_dimension_numbers<[1], [0], [0], [1], [0, 0, 1, 1], [], []>} : vector<256x128xbf16>, vector<128x128xbf16>, vector<256x128xf32> -> vector<256x128xf32>
    %c0_3 = arith.constant 0 : index
    %c0_4 = arith.constant 0 : index
    %3 = vector.load %arg3[%c0_3, %c0_4] : memref<1x128xf32, #tpu.memory_space<vmem>>, vector<1x128xf32>
    %4 = vector.broadcast %3 : vector<1x128xf32> to vector<256x128xf32>
    %5 = arith.addf %2, %4 : vector<256x128xf32>
    %c0_5 = arith.constant 0 : index
    %c0_6 = arith.constant 0 : index
    %6 = vector.load %arg4[%c0_5, %c0_6] : memref<256x128xf32, #tpu.memory_space<vmem>>, vector<256x128xf32>
    tpu.vector_store %arg4[%c0_5, %c0_6], %5 {strides = array<i32>} : memref<256x128xf32, #tpu.memory_space<vmem>>, vector<256x128xf32>,
    return
  }
  func.func @transform_0(%arg0: i32) -> (i32, i32) {
    %c0_i32 = arith.constant 0 : i32
    %c0_i32_0 = arith.constant 0 : i32
    return %arg0, %c0_i32 : i32, i32
  }
  func.func @transform_1(%arg0: i32) -> (i32, i32) {
    %c0_i32 = arith.constant 0 : i32
    %c0_i32_0 = arith.constant 0 : i32
    %c0_i32_1 = arith.constant 0 : i32
    return %c0_i32, %c0_i32_0 : i32, i32
  }
  func.func @transform_2(%arg0: i32) -> (i32, i32) {
    %c0_i32 = arith.constant 0 : i32
    %c0_i32_0 = arith.constant 0 : i32
    %c0_i32_1 = arith.constant 0 : i32
    return %c0_i32, %c0_i32_0 : i32, i32
  }
  func.func @transform_3(%arg0: i32) -> (i32, i32) {
    %c0_i32 = arith.constant 0 : i32
    %c0_i32_0 = arith.constant 0 : i32
    return %arg0, %c0_i32 : i32, i32
  }
}

</mosaic_0001>

<bundles_post_ra>
// kernel: _decoder_forward.14
= control target key start
LH: loop header
LB: loop body
LE: loop exit
PB: predicated region body
PF: predicated region fallthrough
CT: control target
= control target key end

     0   :  { %s1843_s18 = smov 0   ;;  %s2007_s0 = inlined_call_operand.vmem [shape: bf16[512,128], index: 0, kind: input, shape index: {}]   ;;  %s2008_s1 = inlined_call_operand.vmem [shape: bf16[512,128], index: 1, kind: input, shape index: {}]   ;;  %s2009_s2 = inlined_call_operand.vmem [shape: bf16[128,128], index: 2, kind: input, shape index: {}]   ;;  %s2010_s3 = inlined_call_operand.vmem [shape: bf16[128,128], index: 3, kind: input, shape index: {}]   ;;  %s2011_s4 = inlined_call_operand.vmem [shape: f32[1,128], index: 4, kind: input, shape index: {}]   ;;  %s2012_s5 = inlined_call_operand.vmem [shape: bf16[512,128], index: 5, kind: output, shape index: {}]  }
   0x1 LB: > { %s1352_s19 = sadd.s32 4294967295, %s1811_s18   ;;  %p1356_p0 = scmp.ge.s32.totalorder %s1811_s18, 1  ;;  %s1811_s18 = sphi %s1843_s18, %s15_s18  }
   0x2   : > { %p199_p1 = scmp.lt.s32.totalorder %s1811_s18, 3 }
   0x4   : > { %p200_p2 = pnand %p1356_p0, %p199_p1 }
   0x5   : > { %v1757_v0 = vld [vmem:[%s2010_s3] sm:$0xff] (!%p200_p2)   ;;  %s1357_s22 = sshll.u32 (!%p200_p2), %s1352_s19, 5  ;;  %v1759_v2 = vld [vmem:[%s2010_s3 + $0x8] sm:$0xff] (!%p200_p2)   ;;  %v1761_v4 = vld [vmem:[%s2010_s3 + $0x10] sm:$0xff] (!%p200_p2)  }
   0x6   : > { %203 = sbr.rel (%p200_p2) target bundleno = 323 (0x143), region = 40  ;;  %v1758_v1 = vld [vmem:[%s2009_s2] sm:$0xff] (!%p200_p2)   ;;  %1621 = vmatprep.subr.bf16.mxu1 (!%p200_p2), %v1757_v0  ;;  %p233_p3 = scmp.lt.s32.totalorder (!%p200_p2), %s1357_s22, 63  ;;  %v1760_v3 = vld [vmem:[%s2009_s2 + $0x8] sm:$0xff] (!%p200_p2)   ;;  %v1762_v5 = vld [vmem:[%s2009_s2 + $0x10] sm:$0xff] (!%p200_p2)  }
   0x7   : > { %1669 = vmatprep.subr.bf16.mxu0 (!%p200_p2), %v1758_v1  ;;  %1622 = vmatpush3.bf16.msra.mxu1 (!%p200_p2), %v1757_v0  ;;  %v1763_v6 = vld [vmem:[%s2010_s3 + $0x18] sm:$0xff] (!%p200_p2)   ;;  %v1765_v8 = vld [vmem:[%s2010_s3 + $0x20] sm:$0xff] (!%p200_p2)   ;;  %v1767_v10 = vld [vmem:[%s2010_s3 + $0x28] sm:$0xff] (!%p200_p2)  }
   0x8   : > { %1670 = vmatpush3.bf16.msra.mxu0 (!%p200_p2), %v1758_v1  ;;  %1623 = vmatprep.subr.bf16.mxu1 (!%p200_p2), %v1759_v2  ;;  %v1764_v7 = vld [vmem:[%s2009_s2 + $0x18] sm:$0xff] (!%p200_p2)   ;;  %v1766_v9 = vld [vmem:[%s2009_s2 + $0x20] sm:$0xff] (!%p200_p2)   ;;  %v1768_v11 = vld [vmem:[%s2009_s2 + $0x28] sm:$0xff] (!%p200_p2)  }
   0x9   : > { %1671 = vmatprep.subr.bf16.mxu0 (!%p200_p2), %v1760_v3  ;;  %v1769_v14 = vld [vmem:[%s2010_s3 + $0x30] sm:$0xff] (!%p200_p2)   ;;  %v1771_v16 = vld [vmem:[%s2010_s3 + $0x38] sm:$0xff] (!%p200_p2)   ;;  %v1948_v50 = vld [vmem:[%s2011_s4] ss:$0 sm:$0xff] (!%p200_p2) }
   0xa   : > { %v1770_v15 = vld [vmem:[%s2009_s2 + $0x30] sm:$0xff] (!%p200_p2)   ;;  %v1772_v17 = vld [vmem:[%s2009_s2 + $0x38] sm:$0xff] (!%p200_p2)  }
   0xb   : > { %1624 = vmatpush3.bf16.msra.mxu1 (!%p200_p2), %v1759_v2 }
   0xc   : > { %1672 = vmatpush3.bf16.msra.mxu0 (!%p200_p2), %v1760_v3  ;;  %1625 = vmatprep.subr.bf16.mxu1 (!%p200_p2), %v1761_v4 }
   0xd   : > { %s2014_s22 = smov (!%p233_p3, %s1357_s22), 63  ;;  %1673 = vmatprep.subr.bf16.mxu0 %v1762_v5 }
   0xe   : > { %s1875_s12 = sshll.u32 %s2014_s22, 2 }
   0xf   : > { %1626 = vmatpush3.bf16.msra.mxu1 %v1761_v4  ;;  %s1887_s20 = scalar_lea.vmem %s2008_s1, %s1875_s12  ;;  %s1896_s25 = scalar_lea.vmem %s2007_s0, %s1875_s12 }
  0x10   : > { %1674 = vmatpush3.bf16.msra.mxu0 %v1762_v5  ;;  %1627 = vmatprep.subr.bf16.mxu1 %v1763_v6  ;;  %v1773_v12 = vld [vmem:[%s1887_s20] sm:$0xff]   ;;  %v1775_v18 = vld [vmem:[%s1887_s20 + $0x8] sm:$0xff]   ;;  %v1777_v20 = vld [vmem:[%s1887_s20 + $0x10] sm:$0xff]   ;;  %s1959_s16 = scalar_lea.vmem %s2012_s5, %s1875_s12 }
  0x11   : > { %1675 = vmatprep.subr.bf16.mxu0 %v1764_v7  ;;  %v1774_v13 = vld [vmem:[%s1896_s25] sm:$0xff]   ;;  %1637 = vmatprep.mubr.bf16.mxu1 %v1773_v12  ;;  %v1776_v19 = vld [vmem:[%s1896_s25 + $0x8] sm:$0xff]   ;;  %v1778_v21 = vld [vmem:[%s1896_s25 + $0x10] sm:$0xff]  }
  0x12   : > { %1685 = vmatprep.mubr.bf16.mxu0 %v1774_v13  ;;  %v1779_v22 = vld [vmem:[%s1887_s20 + $0x18] sm:$0xff]   ;;  %v1781_v24 = vld [vmem:[%s1887_s20 + $0x20] sm:$0xff]   ;;  %v1783_v26 = vld [vmem:[%s1887_s20 + $0x28] sm:$0xff]  }
  0x13   : > { %1628 = vmatpush3.bf16.msra.mxu1 %v1763_v6  ;;  %v1780_v23 = vld [vmem:[%s1896_s25 + $0x18] sm:$0xff]   ;;  %v1782_v25 = vld [vmem:[%s1896_s25 + $0x20] sm:$0xff]   ;;  %v1784_v27 = vld [vmem:[%s1896_s25 + $0x28] sm:$0xff]  }
  0x14   : > { %1676 = vmatpush3.bf16.msra.mxu0 %v1764_v7  ;;  %1629 = vmatprep.subr.bf16.mxu1 %v1765_v8  ;;  %v1785_v28 = vld [vmem:[%s1887_s20 + $0x30] sm:$0xff]   ;;  %v1787_v30 = vld [vmem:[%s1887_s20 + $0x38] sm:$0xff]   ;;  %v1789_v32 = vld [vmem:[%s1887_s20 + $0x40] sm:$0xff]  }
  0x15   : > { %1677 = vmatprep.subr.bf16.mxu0 %v1766_v9  ;;  %v1786_v29 = vld [vmem:[%s1896_s25 + $0x30] sm:$0xff]   ;;  %v1788_v31 = vld [vmem:[%s1896_s25 + $0x38] sm:$0xff]   ;;  %v1790_v33 = vld [vmem:[%s1896_s25 + $0x40] sm:$0xff]  }
  0x16   : > { %v1791_v34 = vld [vmem:[%s1887_s20 + $0x48] sm:$0xff]   ;;  %v1793_v36 = vld [vmem:[%s1887_s20 + $0x50] sm:$0xff]   ;;  %v1795_v38 = vld [vmem:[%s1887_s20 + $0x58] sm:$0xff]  }
  0x17   : > { %1630 = vmatpush3.bf16.msra.mxu1 %v1765_v8  ;;  %v1792_v35 = vld [vmem:[%s1896_s25 + $0x48] sm:$0xff]   ;;  %v1794_v37 = vld [vmem:[%s1896_s25 + $0x50] sm:$0xff]   ;;  %v1796_v39 = vld [vmem:[%s1896_s25 + $0x58] sm:$0xff]  }
  0x18   : > { %1678 = vmatpush3.bf16.msra.mxu0 %v1766_v9  ;;  %1631 = vmatprep.subr.bf16.mxu1 %v1767_v10  ;;  %v1797_v40 = vld [vmem:[%s1887_s20 + $0x60] sm:$0xff]   ;;  %v1799_v42 = vld [vmem:[%s1887_s20 + $0x68] sm:$0xff]   ;;  %v1801_v44 = vld [vmem:[%s1887_s20 + $0x70] sm:$0xff]  }
  0x19   : > { %1679 = vmatprep.subr.bf16.mxu0 %v1768_v11  ;;  %v1798_v41 = vld [vmem:[%s1896_s25 + $0x60] sm:$0xff]   ;;  %v1800_v43 = vld [vmem:[%s1896_s25 + $0x68] sm:$0xff]   ;;  %v1802_v45 = vld [vmem:[%s1896_s25 + $0x70] sm:$0xff]  }
  0x1a   : > { %v1803_v46 = vld [vmem:[%s1887_s20 + $0x78] sm:$0xff]  }
  0x1b   : > { %1632 = vmatpush3.bf16.msra.mxu1 %v1767_v10  ;;  %v1804_v47 = vld [vmem:[%s1896_s25 + $0x78] sm:$0xff]  }
  0x1c   : > { %1680 = vmatpush3.bf16.msra.mxu0 %v1768_v11  ;;  %1633 = vmatprep.subr.bf16.mxu1 %v1769_v14 }
  0x1d   : > { %1681 = vmatprep.subr.bf16.mxu0 %v1770_v15 }
  0x1f   : > { %1634 = vmatpush3.bf16.msra.mxu1 %v1769_v14 }
  0x20   : > { %1682 = vmatpush3.bf16.msra.mxu0 %v1770_v15  ;;  %1635 = vmatprep.subr.bf16.mxu1 %v1771_v16 }
  0x21   : > { %1683 = vmatprep.subr.bf16.mxu0 %v1772_v17 }
  0x23   : > { %1636 = vmatpush3.bf16.msra.mxu1 %v1771_v16 }
  0x24   : > { %1684 = vmatpush3.bf16.msra.mxu0 %v1772_v17 }
  0x26   : > { %1638 = vmatmul.mubr.bf16.vlgmr.msra.gmra.mrb[0].mxu1 %v1775_v18 }
  0x27   : > { %1686 = vmatmul.mubr.bf16.vlgmr.msra.gmra.mrb[0].mxu0 %v1776_v19  ;;  %1641 = vmatprep.mubr.bf16.mxu1 %v1777_v20 }
  0x28   : > { %1689 = vmatprep.mubr.bf16.mxu0 %v1778_v21 }
  0x2e   : > { %1642 = vmatmul.mubr.bf16.gmra.mrb[4].mxu1 %v1779_v22 }
  0x2f   : > { %1690 = vmatmul.mubr.bf16.gmra.mrb[4].mxu0 %v1780_v23  ;;  %1645 = vmatprep.mubr.bf16.mxu1 %v1781_v24 }
  0x30   : > { %1693 = vmatprep.mubr.bf16.mxu0 %v1782_v25 }
  0x36   : > { %1646 = vmatmul.mubr.bf16.gmra.mrb[8].mxu1 %v1783_v26 }
  0x37   : > { %1694 = vmatmul.mubr.bf16.gmra.mrb[8].mxu0 %v1784_v27  ;;  %1649 = vmatprep.mubr.bf16.mxu1 %v1785_v28 }
  0x38   : > { %1697 = vmatprep.mubr.bf16.mxu0 %v1786_v29 }
  0x3e   : > { %1650 = vmatmul.mubr.bf16.gmra.mrb[12].mxu1 %v1787_v30 }
  0x3f   : > { %1698 = vmatmul.mubr.bf16.gmra.mrb[12].mxu0 %v1788_v31  ;;  %1653 = vmatprep.mubr.bf16.mxu1 %v1789_v32 }
  0x40   : > { %1701 = vmatprep.mubr.bf16.mxu0 %v1790_v33 }
  0x46   : > { %1654 = vmatmul.mubr.bf16.gmra.mrb[16].mxu1 %v1791_v34 }
  0x47   : > { %1702 = vmatmul.mubr.bf16.gmra.mrb[16].mxu0 %v1792_v35  ;;  %1657 = vmatprep.mubr.bf16.mxu1 %v1793_v36 }
  0x48   : > { %1705 = vmatprep.mubr.bf16.mxu0 %v1794_v37 }
  0x4e   : > { %1658 = vmatmul.mubr.bf16.gmra.mrb[20].mxu1 %v1795_v38 }
  0x4f   : > { %1706 = vmatmul.mubr.bf16.gmra.mrb[20].mxu0 %v1796_v39  ;;  %1661 = vmatprep.mubr.bf16.mxu1 %v1797_v40 }
  0x50   : > { %1709 = vmatprep.mubr.bf16.mxu0 %v1798_v41 }
  0x56   : > { %1662 = vmatmul.mubr.bf16.gmra.mrb[24].mxu1 %v1799_v42 }
  0x57   : > { %1710 = vmatmul.mubr.bf16.gmra.mrb[24].mxu0 %v1800_v43  ;;  %1665 = vmatprep.mubr.bf16.mxu1 %v1801_v44 }
  0x58   : > { %1713 = vmatprep.mubr.bf16.mxu0 %v1802_v45 }
  0x5e   : > { %1666 = vmatmul.mubr.bf16.gmra.mrb[28].mxu1 %v1803_v46 }
  0x5f   : > { %1714 = vmatmul.mubr.bf16.gmra.mrb[28].mxu0 %v1804_v47 }
  0xf9   : > { %v1639_v48 = vpop.f32.mrb[0].mxu1 }
  0xfa   : > { %v1687_v49 = vpop.f32.mrb[0].mxu0  ;;  %v525_v51 = vpop.f32.mrb[1].mxu1 }
  0xfb   : > { %v839_v52 = vadd.f32 %v1687_v49, %v1639_v48  ;;  %v830_v53 = vpop.f32.mrb[1].mxu0  ;;  %v1640_v54 = vpop.f32.mrb[2].mxu1 }
  0xfc   : > { %v831_v55 = vadd.f32 %v830_v53, %v525_v51  ;;  %v1688_v56 = vpop.f32.mrb[2].mxu0  ;;  %v528_v57 = vpop.f32.mrb[3].mxu1 }
  0xfd   : > { %v966_v58 = vadd.f32 %v1948_v50, %v839_v52  ;;  %v842_v59 = vadd.f32 %v1688_v56, %v1640_v54  ;;  %v833_v60 = vpop.f32.mrb[3].mxu0 }
  0xfe   : > { %v964_v61 = vadd.f32 %v1948_v50, %v831_v55  ;;  %v834_v62 = vadd.f32 %v833_v60, %v528_v57 }
  0xff   : > { %v1030_v63 = vmin.f32 %v966_v58, 0.0  ;;  %v967_v0 = vadd.f32 %v1948_v50, %v842_v59  ;;  %v998_v10 = vmax.f32 %v966_v58, 0.0 }
 0x100   : > { %v1028_v1 = vmin.f32 %v964_v61, 0.0  ;;  %v965_v2 = vadd.f32 %v1948_v50, %v834_v62  ;;  %v996_v16 = vmax.f32 %v964_v61, 0.0 }
 0x101   : > { %v1062_v3 = vmul.f32 0.01, %v1030_v63  ;;  %v1031_v4 = vmin.f32 %v967_v0, 0.0  ;;  %v1643_v5 = vpop.f32.mrb[4].mxu1  ;;  %v999_v11 = vmax.f32 %v967_v0, 0.0 }
 0x102   : > { %v1060_v6 = vmul.f32 0.01, %v1028_v1  ;;  %v1029_v7 = vmin.f32 %v965_v2, 0.0  ;;  %v1691_v8 = vpop.f32.mrb[4].mxu0  ;;  %v541_v9 = vpop.f32.mrb[5].mxu1  ;;  %v997_v17 = vmax.f32 %v965_v2, 0.0 }
 0x103   : > { %v1063_v12 = vmul.f32 0.01, %v1031_v4  ;;  %v855_v13 = vadd.f32 %v1691_v8, %v1643_v5  ;;  %v846_v14 = vpop.f32.mrb[5].mxu0  ;;  %v1644_v15 = vpop.f32.mrb[6].mxu1  ;;  %v1094_v22 = vadd.f32 %v1062_v3, %v998_v10 }
 0x104   : > { %v1061_v18 = vmul.f32 0.01, %v1029_v7  ;;  %v847_v19 = vadd.f32 %v846_v14, %v541_v9  ;;  %v1692_v20 = vpop.f32.mrb[6].mxu0  ;;  %v544_v21 = vpop.f32.mrb[7].mxu1  ;;  %v1092_v27 = vadd.f32 %v1060_v6, %v996_v16 }
 0x105   : > { %v1095_v23 = vadd.f32 %v1063_v12, %v999_v11  ;;  %v970_v24 = vadd.f32 %v1948_v50, %v855_v13  ;;  %v858_v25 = vadd.f32 %v1692_v20, %v1644_v15  ;;  %v849_v26 = vpop.f32.mrb[7].mxu0 }
 0x106   : > { %v1093_v28 = vadd.f32 %v1061_v18, %v997_v17  ;;  %v968_v29 = vadd.f32 %v1948_v50, %v847_v19  ;;  %v850_v30 = vadd.f32 %v849_v26, %v544_v21 }
 0x107   : > { %v1486_v31 = vpack.c.bf16 %v1095_v23, %v1094_v22  ;;  %v1034_v32 = vmin.f32 %v970_v24, 0.0  ;;  %v971_v33 = vadd.f32 %v1948_v50, %v858_v25  ;;  %v1002_v44 = vmax.f32 %v970_v24, 0.0 }
 0x108   : > { %v1481_v34 = vpack.c.bf16 %v1093_v28, %v1092_v27  ;;  %v1032_v35 = vmin.f32 %v968_v29, 0.0  ;;  %v969_v36 = vadd.f32 %v1948_v50, %v850_v30  ;;  %v1000_v51 = vmax.f32 %v968_v29, 0.0 }
 0x109   : > { %1558 = vst [vmem:[%s1959_s16 + $0x8] sm:$0xff] %v1486_v31   ;;  %v1066_v37 = vmul.f32 0.01, %v1034_v32  ;;  %v1035_v38 = vmin.f32 %v971_v33, 0.0  ;;  %v1647_v39 = vpop.f32.mrb[8].mxu1  ;;  %v1003_v45 = vmax.f32 %v971_v33, 0.0 }
 0x10a   : > { %1482 = vst [vmem:[%s1959_s16] sm:$0xff] %v1481_v34   ;;  %v1064_v40 = vmul.f32 0.01, %v1032_v35  ;;  %v1033_v41 = vmin.f32 %v969_v36, 0.0  ;;  %v1695_v42 = vpop.f32.mrb[8].mxu0  ;;  %v557_v43 = vpop.f32.mrb[9].mxu1  ;;  %v1001_v52 = vmax.f32 %v969_v36, 0.0 }
 0x10b   : > { %v1067_v46 = vmul.f32 0.01, %v1035_v38  ;;  %v871_v47 = vadd.f32 %v1695_v42, %v1647_v39  ;;  %v862_v48 = vpop.f32.mrb[9].mxu0  ;;  %v1648_v49 = vpop.f32.mrb[10].mxu1  ;;  %v1098_v57 = vadd.f32 %v1066_v37, %v1002_v44 }
 0x10c   : > { %v1065_v53 = vmul.f32 0.01, %v1033_v41  ;;  %v863_v54 = vadd.f32 %v862_v48, %v557_v43  ;;  %v1696_v55 = vpop.f32.mrb[10].mxu0  ;;  %v560_v56 = vpop.f32.mrb[11].mxu1  ;;  %v1096_v62 = vadd.f32 %v1064_v40, %v1000_v51 }
 0x10d   : > { %v1099_v58 = vadd.f32 %v1067_v46, %v1003_v45  ;;  %v974_v59 = vadd.f32 %v1948_v50, %v871_v47  ;;  %v874_v60 = vadd.f32 %v1696_v55, %v1648_v49  ;;  %v865_v61 = vpop.f32.mrb[11].mxu0 }
 0x10e   : > { %v1097_v63 = vadd.f32 %v1065_v53, %v1001_v52  ;;  %v972_v0 = vadd.f32 %v1948_v50, %v863_v54  ;;  %v866_v1 = vadd.f32 %v865_v61, %v560_v56 }
 0x10f   : > { %v1496_v2 = vpack.c.bf16 %v1099_v58, %v1098_v57  ;;  %v1038_v3 = vmin.f32 %v974_v59, 0.0  ;;  %v975_v4 = vadd.f32 %v1948_v50, %v874_v60  ;;  %v1006_v15 = vmax.f32 %v974_v59, 0.0 }
 0x110   : > { %v1491_v5 = vpack.c.bf16 %v1097_v63, %v1096_v62  ;;  %v1036_v6 = vmin.f32 %v972_v0, 0.0  ;;  %v973_v7 = vadd.f32 %v1948_v50, %v866_v1  ;;  %v1004_v21 = vmax.f32 %v972_v0, 0.0 }
 0x111   : > { %1560 = vst [vmem:[%s1959_s16 + $0x18] sm:$0xff] %v1496_v2   ;;  %v1070_v8 = vmul.f32 0.01, %v1038_v3  ;;  %v1039_v9 = vmin.f32 %v975_v4, 0.0  ;;  %v1651_v10 = vpop.f32.mrb[12].mxu1  ;;  %v1007_v16 = vmax.f32 %v975_v4, 0.0 }
 0x112   : > { %1559 = vst [vmem:[%s1959_s16 + $0x10] sm:$0xff] %v1491_v5   ;;  %v1068_v11 = vmul.f32 0.01, %v1036_v6  ;;  %v1037_v12 = vmin.f32 %v973_v7, 0.0  ;;  %v1699_v13 = vpop.f32.mrb[12].mxu0  ;;  %v573_v14 = vpop.f32.mrb[13].mxu1 }
 0x113   : > { %v1071_v17 = vmul.f32 0.01, %v1039_v9  ;;  %v887_v18 = vadd.f32 %v1699_v13, %v1651_v10  ;;  %v878_v19 = vpop.f32.mrb[13].mxu0  ;;  %v1652_v20 = vpop.f32.mrb[14].mxu1  ;;  %v1005_v22 = vmax.f32 %v973_v7, 0.0  ;;  %v1102_v27 = vadd.f32 %v1070_v8, %v1006_v15 }
 0x114   : > { %v1069_v23 = vmul.f32 0.01, %v1037_v12  ;;  %v879_v24 = vadd.f32 %v878_v19, %v573_v14  ;;  %v1700_v25 = vpop.f32.mrb[14].mxu0  ;;  %v576_v26 = vpop.f32.mrb[15].mxu1  ;;  %v1100_v32 = vadd.f32 %v1068_v11, %v1004_v21 }
 0x115   : > { %v1103_v28 = vadd.f32 %v1071_v17, %v1007_v16  ;;  %v978_v29 = vadd.f32 %v1948_v50, %v887_v18  ;;  %v890_v30 = vadd.f32 %v1700_v25, %v1652_v20  ;;  %v881_v31 = vpop.f32.mrb[15].mxu0 }
 0x116   : > { %v1101_v33 = vadd.f32 %v1069_v23, %v1005_v22  ;;  %v976_v34 = vadd.f32 %v1948_v50, %v879_v24  ;;  %v882_v35 = vadd.f32 %v881_v31, %v576_v26 }
 0x117   : > { %v1506_v36 = vpack.c.bf16 %v1103_v28, %v1102_v27  ;;  %v1042_v37 = vmin.f32 %v978_v29, 0.0  ;;  %v979_v38 = vadd.f32 %v1948_v50, %v890_v30  ;;  %v1010_v49 = vmax.f32 %v978_v29, 0.0 }
 0x118   : > { %v1501_v39 = vpack.c.bf16 %v1101_v33, %v1100_v32  ;;  %v1040_v40 = vmin.f32 %v976_v34, 0.0  ;;  %v977_v41 = vadd.f32 %v1948_v50, %v882_v35  ;;  %v1008_v56 = vmax.f32 %v976_v34, 0.0 }
 0x119   : > { %1562 = vst [vmem:[%s1959_s16 + $0x28] sm:$0xff] %v1506_v36   ;;  %v1074_v42 = vmul.f32 0.01, %v1042_v37  ;;  %v1043_v43 = vmin.f32 %v979_v38, 0.0  ;;  %v1655_v44 = vpop.f32.mrb[16].mxu1  ;;  %v1011_v51 = vmax.f32 %v979_v38, 0.0 }
 0x11a   : > { %1561 = vst [vmem:[%s1959_s16 + $0x20] sm:$0xff] %v1501_v39   ;;  %v1072_v45 = vmul.f32 0.01, %v1040_v40  ;;  %v1041_v46 = vmin.f32 %v977_v41, 0.0  ;;  %v1703_v47 = vpop.f32.mrb[16].mxu0  ;;  %v589_v48 = vpop.f32.mrb[17].mxu1 }
 0x11b   : > { %v1075_v52 = vmul.f32 0.01, %v1043_v43  ;;  %v903_v53 = vadd.f32 %v1703_v47, %v1655_v44  ;;  %v894_v54 = vpop.f32.mrb[17].mxu0  ;;  %v1656_v55 = vpop.f32.mrb[18].mxu1  ;;  %v1009_v57 = vmax.f32 %v977_v41, 0.0  ;;  %v1106_v62 = vadd.f32 %v1074_v42, %v1010_v49 }
 0x11c   : > { %v1073_v58 = vmul.f32 0.01, %v1041_v46  ;;  %v895_v59 = vadd.f32 %v894_v54, %v589_v48  ;;  %v1704_v60 = vpop.f32.mrb[18].mxu0  ;;  %v592_v61 = vpop.f32.mrb[19].mxu1  ;;  %v1104_v3 = vadd.f32 %v1072_v45, %v1008_v56 }
 0x11d   : > { %v1107_v63 = vadd.f32 %v1075_v52, %v1011_v51  ;;  %v982_v0 = vadd.f32 %v1948_v50, %v903_v53  ;;  %v906_v1 = vadd.f32 %v1704_v60, %v1656_v55  ;;  %v897_v2 = vpop.f32.mrb[19].mxu0 }
 0x11e   : > { %v1105_v4 = vadd.f32 %v1073_v58, %v1009_v57  ;;  %v980_v5 = vadd.f32 %v1948_v50, %v895_v59  ;;  %v898_v6 = vadd.f32 %v897_v2, %v592_v61 }
 0x11f   : > { %v1516_v7 = vpack.c.bf16 %v1107_v63, %v1106_v62  ;;  %v1046_v8 = vmin.f32 %v982_v0, 0.0  ;;  %v983_v9 = vadd.f32 %v1948_v50, %v906_v1  ;;  %v1014_v20 = vmax.f32 %v982_v0, 0.0 }
 0x120   : > { %v1511_v10 = vpack.c.bf16 %v1105_v4, %v1104_v3  ;;  %v1044_v11 = vmin.f32 %v980_v5, 0.0  ;;  %v981_v12 = vadd.f32 %v1948_v50, %v898_v6  ;;  %v1012_v26 = vmax.f32 %v980_v5, 0.0 }
 0x121   : > { %1564 = vst [vmem:[%s1959_s16 + $0x38] sm:$0xff] %v1516_v7   ;;  %v1078_v13 = vmul.f32 0.01, %v1046_v8  ;;  %v1047_v14 = vmin.f32 %v983_v9, 0.0  ;;  %v1659_v15 = vpop.f32.mrb[20].mxu1  ;;  %v1015_v21 = vmax.f32 %v983_v9, 0.0 }
 0x122   : > { %1563 = vst [vmem:[%s1959_s16 + $0x30] sm:$0xff] %v1511_v10   ;;  %v1076_v16 = vmul.f32 0.01, %v1044_v11  ;;  %v1045_v17 = vmin.f32 %v981_v12, 0.0  ;;  %v1707_v18 = vpop.f32.mrb[20].mxu0  ;;  %v605_v19 = vpop.f32.mrb[21].mxu1 }
 0x123   : > { %v1079_v22 = vmul.f32 0.01, %v1047_v14  ;;  %v919_v23 = vadd.f32 %v1707_v18, %v1659_v15  ;;  %v910_v24 = vpop.f32.mrb[21].mxu0  ;;  %v1660_v25 = vpop.f32.mrb[22].mxu1  ;;  %v1013_v27 = vmax.f32 %v981_v12, 0.0  ;;  %v1110_v32 = vadd.f32 %v1078_v13, %v1014_v20 }
 0x124   : > { %v1077_v28 = vmul.f32 0.01, %v1045_v17  ;;  %v911_v29 = vadd.f32 %v910_v24, %v605_v19  ;;  %v1708_v30 = vpop.f32.mrb[22].mxu0  ;;  %v608_v31 = vpop.f32.mrb[23].mxu1  ;;  %v1108_v37 = vadd.f32 %v1076_v16, %v1012_v26 }
 0x125   : > { %v1111_v33 = vadd.f32 %v1079_v22, %v1015_v21  ;;  %v986_v34 = vadd.f32 %v1948_v50, %v919_v23  ;;  %v922_v35 = vadd.f32 %v1708_v30, %v1660_v25  ;;  %v913_v36 = vpop.f32.mrb[23].mxu0 }
 0x126   : > { %v1109_v38 = vadd.f32 %v1077_v28, %v1013_v27  ;;  %v984_v39 = vadd.f32 %v1948_v50, %v911_v29  ;;  %v914_v40 = vadd.f32 %v913_v36, %v608_v31 }
 0x127   : > { %v1526_v41 = vpack.c.bf16 %v1111_v33, %v1110_v32  ;;  %v1050_v42 = vmin.f32 %v986_v34, 0.0  ;;  %v987_v43 = vadd.f32 %v1948_v50, %v922_v35  ;;  %v1018_v55 = vmax.f32 %v986_v34, 0.0 }
 0x128   : > { %v1521_v44 = vpack.c.bf16 %v1109_v38, %v1108_v37  ;;  %v1048_v45 = vmin.f32 %v984_v39, 0.0  ;;  %v985_v46 = vadd.f32 %v1948_v50, %v914_v40  ;;  %v1016_v61 = vmax.f32 %v984_v39, 0.0 }
 0x129   : > { %1566 = vst [vmem:[%s1959_s16 + $0x48] sm:$0xff] %v1526_v41   ;;  %v1082_v47 = vmul.f32 0.01, %v1050_v42  ;;  %v1051_v48 = vmin.f32 %v987_v43, 0.0  ;;  %v1663_v49 = vpop.f32.mrb[24].mxu1  ;;  %v1019_v56 = vmax.f32 %v987_v43, 0.0 }
 0x12a   : > { %1565 = vst [vmem:[%s1959_s16 + $0x40] sm:$0xff] %v1521_v44   ;;  %v1080_v51 = vmul.f32 0.01, %v1048_v45  ;;  %v1049_v52 = vmin.f32 %v985_v46, 0.0  ;;  %v1711_v53 = vpop.f32.mrb[24].mxu0  ;;  %v621_v54 = vpop.f32.mrb[25].mxu1 }
 0x12b   : > { %v1083_v57 = vmul.f32 0.01, %v1051_v48  ;;  %v935_v58 = vadd.f32 %v1711_v53, %v1663_v49  ;;  %v926_v59 = vpop.f32.mrb[25].mxu0  ;;  %v1664_v60 = vpop.f32.mrb[26].mxu1  ;;  %v1017_v62 = vmax.f32 %v985_v46, 0.0  ;;  %v1114_v3 = vadd.f32 %v1082_v47, %v1018_v55 }
 0x12c   : > { %v1081_v63 = vmul.f32 0.01, %v1049_v52  ;;  %v927_v0 = vadd.f32 %v926_v59, %v621_v54  ;;  %v1712_v1 = vpop.f32.mrb[26].mxu0  ;;  %v624_v2 = vpop.f32.mrb[27].mxu1  ;;  %v1112_v8 = vadd.f32 %v1080_v51, %v1016_v61 }
 0x12d   : > { %v1115_v4 = vadd.f32 %v1083_v57, %v1019_v56  ;;  %v990_v5 = vadd.f32 %v1948_v50, %v935_v58  ;;  %v938_v6 = vadd.f32 %v1712_v1, %v1664_v60  ;;  %v929_v7 = vpop.f32.mrb[27].mxu0 }
 0x12e   : > { %v1113_v9 = vadd.f32 %v1081_v63, %v1017_v62  ;;  %v988_v10 = vadd.f32 %v1948_v50, %v927_v0  ;;  %v930_v11 = vadd.f32 %v929_v7, %v624_v2 }
 0x12f   : > { %v1536_v12 = vpack.c.bf16 %v1115_v4, %v1114_v3  ;;  %v1054_v13 = vmin.f32 %v990_v5, 0.0  ;;  %v991_v14 = vadd.f32 %v1948_v50, %v938_v6  ;;  %v1022_v25 = vmax.f32 %v990_v5, 0.0 }
 0x130   : > { %v1531_v15 = vpack.c.bf16 %v1113_v9, %v1112_v8  ;;  %v1052_v16 = vmin.f32 %v988_v10, 0.0  ;;  %v989_v17 = vadd.f32 %v1948_v50, %v930_v11  ;;  %v1020_v31 = vmax.f32 %v988_v10, 0.0 }
 0x131   : > { %1568 = vst [vmem:[%s1959_s16 + $0x58] sm:$0xff] %v1536_v12   ;;  %v1086_v18 = vmul.f32 0.01, %v1054_v13  ;;  %v1055_v19 = vmin.f32 %v991_v14, 0.0  ;;  %v1667_v20 = vpop.f32.mrb[28].mxu1  ;;  %v1023_v26 = vmax.f32 %v991_v14, 0.0 }
 0x132   : > { %1567 = vst [vmem:[%s1959_s16 + $0x50] sm:$0xff] %v1531_v15   ;;  %v1084_v21 = vmul.f32 0.01, %v1052_v16  ;;  %v1053_v22 = vmin.f32 %v989_v17, 0.0  ;;  %v1715_v23 = vpop.f32.mrb[28].mxu0  ;;  %v637_v24 = vpop.f32.mrb[29].mxu1 }
 0x133   : > { %v1087_v27 = vmul.f32 0.01, %v1055_v19  ;;  %v951_v28 = vadd.f32 %v1715_v23, %v1667_v20  ;;  %v942_v29 = vpop.f32.mrb[29].mxu0  ;;  %v1668_v30 = vpop.f32.mrb[30].mxu1  ;;  %v1021_v32 = vmax.f32 %v989_v17, 0.0  ;;  %v1118_v37 = vadd.f32 %v1086_v18, %v1022_v25 }
 0x134   : > { %v1085_v33 = vmul.f32 0.01, %v1053_v22  ;;  %v943_v34 = vadd.f32 %v942_v29, %v637_v24  ;;  %v1716_v35 = vpop.f32.mrb[30].mxu0  ;;  %v640_v36 = vpop.f32.mrb[31].mxu1  ;;  %v1116_v42 = vadd.f32 %v1084_v21, %v1020_v31 }
 0x135   : > { %v1119_v38 = vadd.f32 %v1087_v27, %v1023_v26  ;;  %v994_v39 = vadd.f32 %v1948_v50, %v951_v28  ;;  %v954_v40 = vadd.f32 %v1716_v35, %v1668_v30  ;;  %v945_v41 = vpop.f32.mrb[31].mxu0 }
 0x136   : > { %v1117_v43 = vadd.f32 %v1085_v33, %v1021_v32  ;;  %v992_v44 = vadd.f32 %v1948_v50, %v943_v34  ;;  %v946_v45 = vadd.f32 %v945_v41, %v640_v36 }
 0x137   : > { %v1546_v46 = vpack.c.bf16 %v1119_v38, %v1118_v37  ;;  %v1058_v47 = vmin.f32 %v994_v39, 0.0  ;;  %v995_v48 = vadd.f32 %v1948_v50, %v954_v40  ;;  %v1026_v57 = vmax.f32 %v994_v39, 0.0 }
 0x138   : > { %v1541_v49 = vpack.c.bf16 %v1117_v43, %v1116_v42  ;;  %v1056_v51 = vmin.f32 %v992_v44, 0.0  ;;  %v993_v52 = vadd.f32 %v1948_v50, %v946_v45  ;;  %v1024_v60 = vmax.f32 %v992_v44, 0.0 }
 0x139   : > { %1570 = vst [vmem:[%s1959_s16 + $0x68] sm:$0xff] %v1546_v46   ;;  %v1090_v53 = vmul.f32 0.01, %v1058_v47  ;;  %v1059_v54 = vmin.f32 %v995_v48, 0.0  ;;  %v1027_v58 = vmax.f32 %v995_v48, 0.0 }
 0x13a   : > { %1569 = vst [vmem:[%s1959_s16 + $0x60] sm:$0xff] %v1541_v49   ;;  %v1088_v55 = vmul.f32 0.01, %v1056_v51  ;;  %v1057_v56 = vmin.f32 %v993_v52, 0.0  ;;  %v1025_v61 = vmax.f32 %v993_v52, 0.0 }
 0x13b   : > { %v1091_v59 = vmul.f32 0.01, %v1059_v54  ;;  %v1122_v63 = vadd.f32 %v1090_v53, %v1026_v57 }
 0x13c   : > { %v1089_v62 = vmul.f32 0.01, %v1057_v56  ;;  %v1120_v1 = vadd.f32 %v1088_v55, %v1024_v60 }
 0x13d   : > { %v1123_v0 = vadd.f32 %v1091_v59, %v1027_v58 }
 0x13e   : > { %v1121_v2 = vadd.f32 %v1089_v62, %v1025_v61 }
 0x13f   : > { %v1556_v3 = vpack.c.bf16 %v1123_v0, %v1122_v63 }
 0x140   : > { %v1551_v50 = vpack.c.bf16 %v1121_v2, %v1120_v1 }
 0x141   : > { %1572 = vst [vmem:[%s1959_s16 + $0x78] sm:$0xff] %v1556_v3  }
 0x142   : > { %1571 = vst [vmem:[%s1959_s16 + $0x70] sm:$0xff] %v1551_v50  }
 0x143 PF: > { %s15_s18 = sadd.s32 1, %s1811_s18  }
 0x144   : > { %p12_p4 = scmp.ge.s32.totalorder %s15_s18, 4  }
 0x146   :  { %14 = sbr.rel (!%p12_p4) target bundleno = 1 (0x1), region = 73 }

// kernel: _decoder_forward.12
= control target key start
LH: loop header
LB: loop body
LE: loop exit
PB: predicated region body
PF: predicated region fallthrough
CT: control target
= control target key end

     0   :  { %9 = vsyncpa [#allocation3], 0  ;;  %s4995_s0 = inlined_call_operand.vmem [shape: bf16[2,16,10,64], index: 0, kind: input, shape index: {}, may-alias: {0,1}]   ;;  %s4996_s1 = inlined_call_operand.vmem [shape: bf16[2,16,10,64], index: 1, kind: input, shape index: {}, may-alias: {0,1}]   ;;  %s4997_s2 = inlined_call_operand.hbm [shape: bf16[9,64,512], index: 2, kind: input, shape index: {}]   ;;  %s4998_s3 = inlined_call_operand.hbm [shape: f32[1,512], index: 3, kind: input, shape index: {}]   ;;  %s4999_s4 = inlined_call_operand.vmem [shape: bf16[2,8,8,512], index: 4, kind: output, shape index: {}]  }
   0x1   :  { %10 = vsyncpa [#allocation5], 0  ;;  %s4382_s15 = smov 0   ;;  %s4384_s16 = smov 0  }
   0x2   :  { %s4386_s17 = smov 0  }
   0x3 LB: > { %s3429_s18 = sadd.s32 4294967295, %s4350_s17   ;;  %s28_s19 = sadd.s32 1, %s4346_s16  ;;  %s4350_s17 = sphi %s4386_s17, %s16_s17   ;;  %s4346_s16 = sphi %s4384_s16, %s5013_s16   ;;  %s4342_s15 = sphi %s4382_s15, %s5012_s15  }
   0x4   : > { %p30_p0 = scmp.ge.s32.totalorder %s28_s19, 2  ;;  %p3431_p1 = scmp.ge.s32.totalorder %s4350_s17, 1 }
   0x5   : > { %p161_p2 = scmp.lt.s32.totalorder %s4350_s17, 3  ;;  %p4407_p4 = scmp.eq.s32.totalorder %s3429_s18, 0 }
   0x6   : > { %s5015_s19 = smov (%p30_p0, %s28_s19), 0  ;;  %s4352_s22 = smov [#allocation2]  }
   0x7   : > { %p4403_p3 = pnand %p3431_p1, %p161_p2  ;;  %s173_s23 = sshll.u32 %s4352_s22, 4  ;;  %s174_s23 = int_to_ptr.vmem [resolvable:$true] %s173_s23 }
   0x8   : > { %s5004_s21 = scalar_select %p4407_p4, 1, 0 }
   0x9   : > { %s5003_s20 = scalar_select %p4403_p3, 1, 0 }
   0xa   : > { %p4000_p5 = pneg %p4403_p3  ;;  %s4353_s25 = smov [#allocation4]  }
   0xb   : > { %s187_s26 = sshll.u32 %s4353_s25, 4  ;;  %s4264_s29 = scalar_lea.hbm %s4997_s2, 18432  ;;  %s4419_s26 = int_to_ptr.vmem [resolvable:$true] %s187_s26 }
   0xc   : > { %p4415_p6 = pnand %p4407_p4, %p4000_p5  ;;  %p4265_p7 = scmp.ne.s32.totalorder %s4997_s2, %s4264_s29 }
   0xd   : > { %p4271_p11 = scmp.lt.u32.totalorder %s4264_s29, %s4997_s2 }
   0xe   : > { %p4266_p8 = pneg %p4415_p6 }
  0x10   : > { %p4267_p9 = pnand %p4266_p8, %p4265_p7 }
  0x12   : > { %p4268_p10 = pneg %p4267_p9 }
  0x14   : > { %p4273_p12 = pnand %p4271_p11, %p4268_p10 }
  0x16   : > { %4276 = shalt.err (!%p4273_p12)
}
  0x17   : > { %s4277_s8 = scalar_lea.vmem %s174_s23, 18432  ;;  %p4285_p2 = scmp.lt.s32.totalorder %s174_s23, %s174_s23 }
  0x18   : > { %p4278_p13 = scmp.ne.s32.totalorder %s174_s23, %s4277_s8  ;;  %p4286_p5 = scmp.lt.s32.totalorder %s4277_s8, %s4277_s8 }
  0x1a   : > { %p4280_p0 = pnand %p4278_p13, %p4266_p8  ;;  %p4287_p4 = por %p4286_p5, %p4285_p2 }
  0x1c   : > { %p4281_p1 = pneg %p4280_p0 }
  0x1e   : > { %p4288_p3 = pnand %p4287_p4, %p4281_p1 }
  0x20   : > { %4291 = shalt.err (!%p4288_p3)
}
  0x21   : > { %s4354_s9 = smov 256   ;;  %s4355_s10 = smov 16  }
  0x22   : > { %4003 = dma.hbm_to_vmem [thread:$0]  (!%p4415_p6), %s4997_s2, 18432, %s174_s23, [#allocation3], %s4354_s9, %s4354_s9, %s4355_s10  }
  0x23   : > { %s4292_s18 = scalar_lea.hbm %s4998_s3, 64 }
  0x24   : > { %p4293_p7 = scmp.ne.s32.totalorder %s4998_s3, %s4292_s18  ;;  %p4299_p9 = scmp.lt.u32.totalorder %s4292_s18, %s4998_s3 }
  0x26   : > { %p4295_p3 = pnand %p4293_p7, %p4266_p8 }
  0x28   : > { %p4296_p4 = pneg %p4295_p3 }
  0x2a   : > { %p4301_p10 = pnand %p4299_p9, %p4296_p4 }
  0x2c   : > { %4304 = shalt.err (!%p4301_p10)
}
  0x2d   : > { %s4305_s23 = scalar_lea.vmem %s4419_s26, 64  ;;  %p4313_p0 = scmp.lt.s32.totalorder %s4419_s26, %s4419_s26 }
  0x2e   : > { %p4306_p11 = scmp.ne.s32.totalorder %s4419_s26, %s4305_s23  ;;  %p4314_p1 = scmp.lt.s32.totalorder %s4305_s23, %s4305_s23 }
  0x30   : > { %p4308_p12 = pnand %p4306_p11, %p4266_p8  ;;  %p4315_p2 = por %p4314_p1, %p4313_p0 }
  0x32   : > { %p4309_p13 = pneg %p4308_p12 }
  0x34   : > { %p4316_p5 = pnand %p4315_p2, %p4309_p13 }
  0x36   : > { %4319 = shalt.err (!%p4316_p5)
}
  0x37   : > { %4006 = dma.hbm_to_vmem [thread:$0]  (!%p4415_p6), %s4998_s3, 64, %s4419_s26, [#allocation5]  }
  0x38   : > { %p5006_p7 = scmp.ne.s32.totalorder %s5003_s20, 0 }
  0x39   : > { %p5007_p3 = scmp.ne.s32.totalorder (!%p5006_p7), %s5004_s21, 0 }
  0x3a   : > { %230 = sbr.rel (%p5006_p7) target bundleno = 588 (0x24c), region = 36 }
  0x41   : > { %4333 = dma.done.wait (%p5007_p3), [#allocation3], 18432  }
  0x42   : > { %4335 = vsyncadd (%p5007_p3), [#allocation3], 4294948864 }
  0x43   : > { %4337 = dma.done.wait (%p5007_p3), [#allocation5], 64  }
  0x44   : > { %4339 = vsyncadd (%p5007_p3), [#allocation5], 4294967232  ;;  %v4356_v0 = vmov 0   ;;  %p282_p6 = scmp.lt.s32.totalorder %s4342_s15, 1  ;;  %v4040_v1 = vld [vmem:[#allocation2 + $0x84] ss:$16 sps:$4 sm:$0xff]  }
  0x45   : > { %622 = vmatprep.mubr.bf16.mxu0 %v4356_v0  ;;  %695 = vmatprep.mubr.bf16.mxu1 %v4356_v0  ;;  %v4042_v2 = vld [vmem:[#allocation2 + $0x8c] ss:$16 sps:$4 sm:$0xff]   ;;  %v4044_v3 = vld [vmem:[#allocation2 + $0x80] ss:$16 sps:$4 sm:$0xff]   ;;  %v4045_v4 = vld [vmem:[#allocation2 + $0x88] ss:$16 sps:$4 sm:$0xff]  }
  0x46   : > { %s5017_s15 = smov (!%p282_p6, %s4342_s15), 1  ;;  %590 = vmatprep.subr.bf16.mxu0 %v4040_v1  ;;  %663 = vmatprep.subr.bf16.mxu1 %v4042_v2  ;;  %v4046_v5 = vld [vmem:[#allocation2 + $0xa4] ss:$16 sps:$4 sm:$0xff]   ;;  %v4048_v6 = vld [vmem:[#allocation2 + $0xac] ss:$16 sps:$4 sm:$0xff]   ;;  %vm577_vm2 = vcmask 523264  }
  0x47   : > { %591 = vmatpush1.bf16.msra.mxu0 %v4044_v3  ;;  %664 = vmatpush1.bf16.msra.mxu1 %v4045_v4  ;;  %v4050_v7 = vld [vmem:[#allocation2 + $0xa0] ss:$16 sps:$4 sm:$0xff]   ;;  %s4482_s20 = sshll.u32 %s5017_s15, 7  ;;  %v4051_v8 = vld [vmem:[#allocation2 + $0xa8] ss:$16 sps:$4 sm:$0xff]   ;;  %vm1002_vm4 = vcmask 1042432  }
  0x48   : > { %592 = vmatprep.subr.bf16.mxu0 %v4046_v5  ;;  %665 = vmatprep.subr.bf16.mxu1 %v4048_v6  ;;  %v4052_v9 = vld [vmem:[#allocation2 + $0xc4] ss:$16 sps:$4 sm:$0xff]   ;;  %v4054_v10 = vld [vmem:[#allocation2 + $0xcc] ss:$16 sps:$4 sm:$0xff]   ;;  %v4056_v11 = vld [vmem:[#allocation2 + $0xc0] ss:$16 sps:$4 sm:$0xff]   ;;  %s4488_s26 = scalar_lea.vmem %s4995_s0, %s4482_s20  ;;  %s4940_s10 = scalar_lea.vmem %s4999_s4, %s4482_s20 }
  0x49   : > { %v4057_v12 = vld [vmem:[#allocation2 + $0xc8] ss:$16 sps:$4 sm:$0xff]   ;;  %v4058_v13 = vld [vmem:[#allocation2 + $0xe4] ss:$16 sps:$4 sm:$0xff]   ;;  %v4060_v14 = vld [vmem:[#allocation2 + $0xec] ss:$16 sps:$4 sm:$0xff]  }
  0x4a   : > { %v4062_v15 = vld [vmem:[#allocation2 + $0xe0] ss:$16 sps:$4 sm:$0xff]   ;;  %v4063_v16 = vld [vmem:[#allocation2 + $0xe8] ss:$16 sps:$4 sm:$0xff]   ;;  %v4494_v18 = vld [vmem:[%s4488_s26 + $0x4] sm:$0x1] }
  0x4b   : > { %593 = vmatpush1.bf16.msra.mxu0 %v4050_v7  ;;  %666 = vmatpush1.bf16.msra.mxu1 %v4051_v8  ;;  %v4491_v17 = vld [vmem:[%s4488_s26] sm:$0xf]  ;;  %v4497_v19 = vld [vmem:[%s4488_s26 + $0x8] sm:$0xf]  ;;  %v4500_v20 = vld [vmem:[%s4488_s26 + $0xc] sm:$0x1] }
  0x4c   : > { %594 = vmatprep.subr.bf16.mxu0 %v4052_v9  ;;  %667 = vmatprep.subr.bf16.mxu1 %v4054_v10  ;;  %v357_v21 = vshrl.u32 %v4491_v17, 16  ;;  %v360_v22 = vshll.u32 %v4491_v17, 16  ;;  %v366_v23 = vshll.u32 %v4494_v18, 16  ;;  %v371_v24 = vshrl.u32 %v4497_v19, 16  ;;  %v4066_v30 = vld [vmem:[#allocation2 + $0x4] ss:$16 sps:$4 sm:$0xff]  }
  0x4d   : > { %vm353_vm0 = vsmask.f32 3328  ;;  %vm354_vm1 = vsmask.f32 7440  ;;  %v374_v25 = vshll.u32 %v4497_v19, 16  ;;  %v380_v26 = vshll.u32 %v4500_v20, 16 }
  0x4e   : > { %v359_v27 = vrot.slane %v357_v21, 4  ;;  %v362_v28 = vrot.slane %v360_v22, 5  ;;  %v373_v29 = vrot.slane %v371_v24, 4  ;;  %v368_v31 = vrot.slane %v366_v23, 5  ;;  %v4069_v35 = vld [vmem:[#allocation2 + $0xc] ss:$16 sps:$4 sm:$0xff]   ;;  %vm4516_vm3 = vmor %vm353_vm0, %vm354_vm1 }
  0x4f   : > { %595 = vmatpush1.bf16.msra.mxu0 %v4056_v11  ;;  %668 = vmatpush1.bf16.msra.mxu1 %v4057_v12  ;;  %v376_v32 = vrot.slane %v374_v25, 5  ;;  %v382_v33 = vrot.slane %v380_v26, 5  ;;  %v4509_v36 = vld [vmem:[%s4488_s26 + $0x10] sm:$0xf]  ;;  %v4512_v37 = vld [vmem:[%s4488_s26 + $0x14] sm:$0x1] }
  0x50   : > { %596 = vmatprep.subr.bf16.mxu0 %v4058_v13  ;;  %669 = vmatprep.subr.bf16.mxu1 %v4060_v14  ;;  %v363_v34 = vor.u32 %v362_v28, %v359_v27  ;;  %v4521_v40 = vld [vmem:[%s4488_s26 + $0x18] sm:$0xf]  ;;  %v4524_v41 = vld [vmem:[%s4488_s26 + $0x1c] sm:$0x1]  ;;  %v385_v42 = vshrl.u32 %v4509_v36, 16  ;;  %v388_v43 = vshll.u32 %v4509_v36, 16  ;;  %v4530_v44 = vcombine.low %v4497_v19, %v4509_v36 }
  0x51   : > { %v377_v39 = vor.u32 %v376_v32, %v373_v29  ;;  %v394_v46 = vshll.u32 %v4512_v37, 16  ;;  %v399_v47 = vshrl.u32 %v4521_v40, 16  ;;  %v402_v48 = vshll.u32 %v4521_v40, 16  ;;  %v4064_v50 = vld [vmem:[#allocation2] ss:$16 sps:$4 sm:$0xff]   ;;  %s3717_s15 = sadd.s32 64, %s4482_s20 }
  0x52   : > { %v364_v45 = vrot.slane %v363_v34, 4  ;;  %v387_v51 = vrot.slane %v385_v42, 4  ;;  %v390_v52 = vrot.slane %v388_v43, 5  ;;  %v408_v53 = vshll.u32 %v4524_v41, 16  ;;  %v4067_v55 = vld [vmem:[#allocation2 + $0x8] ss:$16 sps:$4 sm:$0xff]   ;;  %s4764_s7 = scalar_lea.vmem %s4996_s1, %s3717_s15 }
  0x53   : > { %597 = vmatpush1.bf16.msra.mxu0 %v4062_v15  ;;  %670 = vmatpush1.bf16.msra.mxu1 %v4063_v16  ;;  %v378_v49 = vrot.slane %v377_v39, 4  ;;  %v396_v56 = vrot.slane %v394_v46, 5  ;;  %v401_v57 = vrot.slane %v399_v47, 4  ;;  %v404_v58 = vrot.slane %v402_v48, 5  ;;  %v4072_v62 = vld [vmem:[#allocation2 + $0x24] ss:$16 sps:$4 sm:$0xff]  }
  0x54   : > { %848 = vmatprep.subr.bf16.mxu0 %v4066_v30  ;;  %921 = vmatprep.subr.bf16.mxu1 %v4069_v35  ;;  %v369_v54 = vsel %vm4516_vm3, %v364_v45, %v368_v31  ;;  %v391_v60 = vor.u32 %v390_v52, %v387_v51  ;;  %v410_v61 = vrot.slane %v408_v53, 5  ;;  %v4075_v63 = vld [vmem:[#allocation2 + $0x2c] ss:$16 sps:$4 sm:$0xff]   ;;  %v4541_v3 = vld [vmem:[%s4488_s26 + $0x20] sm:$0xf]  ;;  %vm1003_vm5 = vcmask 1046532  }
  0x55   : > { %v383_v59 = vsel %vm4516_vm3, %v378_v49, %v382_v33  ;;  %v405_v2 = vor.u32 %v404_v58, %v401_v57  ;;  %v4544_v4 = vld [vmem:[%s4488_s26 + $0x24] sm:$0x1]  ;;  %v4547_v5 = vld [vmem:[%s4488_s26 + $0x28] sm:$0xf]  ;;  %v4070_v7 = vld [vmem:[#allocation2 + $0x20] ss:$16 sps:$4 sm:$0xff]  }
  0x56   : > { %v3444_v1 = vcombine.low %v369_v54, %v383_v59  ;;  %v392_v6 = vrot.slane %v391_v60, 4  ;;  %v4550_v8 = vld [vmem:[%s4488_s26 + $0x2c] sm:$0x1]  ;;  %v413_v9 = vshrl.u32 %v4541_v3, 16  ;;  %v416_v10 = vshll.u32 %v4541_v3, 16  ;;  %vm4602_vm6 = vmor %vm1002_vm4, %vm1003_vm5 }
  0x57   : > { %v422_v11 = vshll.u32 %v4544_v4, 16  ;;  %v406_v12 = vrot.slane %v405_v2, 4  ;;  %v427_v13 = vshrl.u32 %v4547_v5, 16  ;;  %v430_v14 = vshll.u32 %v4547_v5, 16  ;;  %v4073_v21 = vld [vmem:[#allocation2 + $0x28] ss:$16 sps:$4 sm:$0xff]  }
  0x58   : > { %3464 = vmatmul.mubr.msk.bf16.vlgmr.msra.gmra.mrb[0].mxu0 %vm577_vm2, %v3444_v1  ;;  %3468 = vmatmul.mubr.msk.bf16.vlgmr.msra.gmra.mrb[0].mxu1 %vm577_vm2, %v3444_v1  ;;  %v436_v15 = vshll.u32 %v4550_v8, 16  ;;  %v397_v16 = vsel %vm4516_vm3, %v392_v6, %v396_v56  ;;  %v415_v22 = vrot.slane %v413_v9, 4  ;;  %v418_v23 = vrot.slane %v416_v10, 5  ;;  %v4078_v28 = vld [vmem:[#allocation2 + $0x44] ss:$16 sps:$4 sm:$0xff]  }
  0x59   : > { %849 = vmatpush1.bf16.msra.mxu0 %v4064_v50  ;;  %922 = vmatpush1.bf16.msra.mxu1 %v4067_v55  ;;  %v411_v24 = vsel %vm4516_vm3, %v406_v12, %v410_v61  ;;  %v4566_v25 = vcombine.low %v383_v59, %v397_v16  ;;  %v429_v26 = vrot.slane %v427_v13, 4  ;;  %v432_v27 = vrot.slane %v430_v14, 5  ;;  %v4081_v33 = vld [vmem:[#allocation2 + $0x4c] ss:$16 sps:$4 sm:$0xff]   ;;  %v4076_v39 = vld [vmem:[#allocation2 + $0x40] ss:$16 sps:$4 sm:$0xff]  }
  0x5a   : > { %632 = vmatprep.mubr.bf16.mxu0 %v4356_v0  ;;  %705 = vmatprep.mubr.bf16.mxu1 %v4356_v0  ;;  %v1007_v29 = vrot.slane %v4494_v18, 5  ;;  %v419_v30 = vor.u32 %v418_v23, %v415_v22  ;;  %v424_v31 = vrot.slane %v422_v11, 5  ;;  %v438_v32 = vrot.slane %v436_v15, 5  ;;  %v4572_v42 = vld [vmem:[%s4488_s26 + $0x30] sm:$0xf] }
  0x5b   : > { %850 = vmatprep.subr.bf16.mxu0 %v4072_v62  ;;  %923 = vmatprep.subr.bf16.mxu1 %v4075_v63  ;;  %v4569_v34 = vcombine.low %v397_v16, %v411_v24  ;;  %v433_v35 = vor.u32 %v432_v27, %v429_v26  ;;  %v4575_v43 = vld [vmem:[%s4488_s26 + $0x34] sm:$0x1]  ;;  %v4578_v45 = vld [vmem:[%s4488_s26 + $0x38] sm:$0xf]  ;;  %v4582_v18 = vcombine.low %v4521_v40, %v4541_v3  ;;  %v4585_v47 = vld [vmem:[%s4488_s26 + $0x3c] sm:$0x1] }
  0x5c   : > { %v420_v46 = vrot.slane %v419_v30, 4  ;;  %v441_v48 = vshrl.u32 %v4572_v42, 16  ;;  %v444_v49 = vshll.u32 %v4572_v42, 16  ;;  %v450_v50 = vshll.u32 %v4575_v43, 16  ;;  %v4079_v52 = vld [vmem:[#allocation2 + $0x48] ss:$16 sps:$4 sm:$0xff]  }
  0x5d   : > { %851 = vmatpush1.bf16.msra.mxu0 %v4070_v7  ;;  %924 = vmatpush1.bf16.msra.mxu1 %v4073_v21  ;;  %v434_v51 = vrot.slane %v433_v35, 4  ;;  %v455_v53 = vshrl.u32 %v4578_v45, 16  ;;  %v458_v54 = vshll.u32 %v4578_v45, 16  ;;  %v464_v55 = vshll.u32 %v4585_v47, 16  ;;  %v4084_v59 = vld [vmem:[#allocation2 + $0x64] ss:$16 sps:$4 sm:$0xff]  }
  0x5e   : > { %852 = vmatprep.subr.bf16.mxu0 %v4078_v28  ;;  %925 = vmatprep.subr.bf16.mxu1 %v4081_v33  ;;  %v1011_v56 = vrot.slane %v4500_v20, 5  ;;  %v443_v57 = vrot.slane %v441_v48, 4  ;;  %v446_v58 = vrot.slane %v444_v49, 5  ;;  %v425_v60 = vsel %vm4516_vm3, %v420_v46, %v424_v31  ;;  %v4087_v7 = vld [vmem:[#allocation2 + $0x6c] ss:$16 sps:$4 sm:$0xff]  }
  0x5f   : > { %v452_v61 = vrot.slane %v450_v50, 5  ;;  %v457_v62 = vrot.slane %v455_v53, 4  ;;  %v460_v63 = vrot.slane %v458_v54, 5  ;;  %v439_v20 = vsel %vm4516_vm3, %v434_v51, %v438_v32  ;;  %v4082_v11 = vld [vmem:[#allocation2 + $0x60] ss:$16 sps:$4 sm:$0xff]  }
  0x60   : > { %3465 = vmatmul.mubr.msk.bf16.gmra.mrb[4].mxu0 %vm577_vm2, %v4569_v34  ;;  %3469 = vmatmul.mubr.msk.bf16.gmra.mrb[4].mxu1 %vm577_vm2, %v4569_v34  ;;  %v447_v2 = vor.u32 %v446_v58, %v443_v57  ;;  %v466_v6 = vrot.slane %v464_v55, 5  ;;  %v3500_v9 = vrot.slane %v4491_v17, 9  ;;  %v4085_v12 = vld [vmem:[#allocation2 + $0x68] ss:$16 sps:$4 sm:$0xff]   ;;  %v3501_v13 = vrot.slane %v4497_v19, 9 }
  0x61   : > { %642 = vmatprep.mubr.bf16.mxu0 %v4356_v0  ;;  %715 = vmatprep.mubr.bf16.mxu1 %v4356_v0  ;;  %v461_v10 = vor.u32 %v460_v63, %v457_v62  ;;  %v4614_v14 = vcombine.low %v4547_v5, %v4572_v42  ;;  %v4616_v15 = vcombine.low %v411_v24, %v425_v60  ;;  %v4091_v21 = vld [vmem:[#allocation2 + $0x104] ss:$16 sps:$4 sm:$0xff]   ;;  %v4094_v22 = vld [vmem:[#allocation2 + $0x10c] ss:$16 sps:$4 sm:$0xff]   ;;  %v3502_v30 = vrot.slane %v4509_v36, 9 }
  0x62   : > { %853 = vmatpush1.bf16.msra.mxu0 %v4076_v39  ;;  %926 = vmatpush1.bf16.msra.mxu1 %v4079_v52  ;;  %v448_v16 = vrot.slane %v447_v2, 4  ;;  %v1008_v23 = vsel %vm4602_vm6, %v3500_v9, %v1007_v29  ;;  %v4620_v26 = vcombine.low %v425_v60, %v439_v20  ;;  %v1012_v28 = vsel %vm4602_vm6, %v3501_v13, %v1011_v56  ;;  %v4092_v62 = vld [vmem:[#allocation2 + $0x108] ss:$16 sps:$4 sm:$0xff]   ;;  %v4098_v63 = vld [vmem:[#allocation2 + $0x124] ss:$16 sps:$4 sm:$0xff]  }
  0x63   : > { %854 = vmatprep.subr.bf16.mxu0 %v4084_v59  ;;  %927 = vmatprep.subr.bf16.mxu1 %v4087_v7  ;;  %v462_v27 = vrot.slane %v461_v10, 4  ;;  %v4627_v31 = vcombine.low %v1008_v23, %v1012_v28  ;;  %v1015_v32 = vrot.slane %v4512_v37, 5  ;;  %v3503_v33 = vrot.slane %v4521_v40, 9  ;;  %v4096_v2 = vld [vmem:[#allocation2 + $0x120] ss:$16 sps:$4 sm:$0xff]  }
  0x64   : > { %v453_v24 = vsel %vm4516_vm3, %v448_v16, %v452_v61  ;;  %v1019_v29 = vrot.slane %v4524_v41, 5  ;;  %v3504_v46 = vrot.slane %v4541_v3, 9  ;;  %v1023_v41 = vrot.slane %v4544_v4, 5  ;;  %v4089_v61 = vld [vmem:[#allocation2 + $0x100] ss:$16 sps:$4 sm:$0xff]  }
  0x65   : > { %v4632_v35 = vcombine.low %v439_v20, %v453_v24  ;;  %v1016_v39 = vsel %vm4602_vm6, %v3502_v30, %v1015_v32  ;;  %v3505_v49 = vrot.slane %v4547_v5, 9  ;;  %v4651_v50 = vsel %vm4516_vm3, %v462_v27, %v466_v6  ;;  %v4101_v20 = vld [vmem:[#allocation2 + $0x12c] ss:$16 sps:$4 sm:$0xff]   ;;  %v4099_v6 = vld [vmem:[#allocation2 + $0x128] ss:$16 sps:$4 sm:$0xff]  }
  0x66   : > { %855 = vmatpush1.bf16.msra.mxu0 %v4082_v11  ;;  %928 = vmatpush1.bf16.msra.mxu1 %v4085_v12  ;;  %v1020_v37 = vsel %vm4602_vm6, %v3503_v33, %v1019_v29  ;;  %v4643_v48 = vcombine.low %v1012_v28, %v1016_v39  ;;  %v1027_v52 = vrot.slane %v4550_v8, 5  ;;  %v3506_v53 = vrot.slane %v4572_v42, 9  ;;  %v4105_v7 = vld [vmem:[#allocation2 + $0x144] ss:$16 sps:$4 sm:$0xff]   ;;  %v4108_v9 = vld [vmem:[#allocation2 + $0x14c] ss:$16 sps:$4 sm:$0xff]  }
  0x67   : > { %1158 = vmatprep.subr.bf16.mxu0 %v4091_v21  ;;  %1231 = vmatprep.subr.bf16.mxu1 %v4094_v22  ;;  %v4653_v51 = vcombine.low %v1016_v39, %v1020_v37  ;;  %v1024_v54 = vsel %vm4602_vm6, %v3504_v46, %v1023_v41  ;;  %v1031_v4 = vrot.slane %v4575_v43, 5  ;;  %v3507_v56 = vrot.slane %v4578_v45, 9  ;;  %v4106_v11 = vld [vmem:[#allocation2 + $0x148] ss:$16 sps:$4 sm:$0xff]   ;;  %v4112_v12 = vld [vmem:[#allocation2 + $0x164] ss:$16 sps:$4 sm:$0xff]  }
  0x68   : > { %3466 = vmatmul.mubr.msk.bf16.gmra.mrb[8].mxu0 %vm577_vm2, %v4620_v26  ;;  %3470 = vmatmul.mubr.msk.bf16.gmra.mrb[8].mxu1 %vm577_vm2, %v4620_v26  ;;  %v1028_v55 = vsel %vm4602_vm6, %v3505_v49, %v1027_v52  ;;  %v4664_v57 = vcombine.low %v453_v24, %v4651_v50  ;;  %v1035_v59 = vrot.slane %v4585_v47, 5  ;;  %v3472_v47 = vcombine.low %v4491_v17, %v4497_v19  ;;  %v4103_v19 = vld [vmem:[#allocation2 + $0x140] ss:$16 sps:$4 sm:$0xff]   ;;  %v4115_v13 = vld [vmem:[#allocation2 + $0x16c] ss:$16 sps:$4 sm:$0xff]  }
  0x69   : > { %652 = vmatprep.mubr.bf16.mxu0 %v4356_v0  ;;  %725 = vmatprep.mubr.bf16.mxu1 %v4356_v0  ;;  %v4666_v58 = vcombine.low %v1024_v54, %v1028_v55  ;;  %v1032_v8 = vsel %vm4602_vm6, %v3506_v53, %v1031_v4  ;;  %v4690_v10 = vcombine.low %v1020_v37, %v1024_v54  ;;  %v4113_v16 = vld [vmem:[#allocation2 + $0x168] ss:$16 sps:$4 sm:$0xff]   ;;  %v4118_v21 = vld [vmem:[#allocation2 + $0x184] ss:$16 sps:$4 sm:$0xff]   ;;  %v4121_v22 = vld [vmem:[#allocation2 + $0x18c] ss:$16 sps:$4 sm:$0xff]  }
  0x6a   : > { %v4673_v60 = vsel %vm4602_vm6, %v3507_v56, %v1035_v59  ;;  %v4694_v17 = vcombine.low %v4509_v36, %v4521_v40  ;;  %v4110_v36 = vld [vmem:[#allocation2 + $0x160] ss:$16 sps:$4 sm:$0xff]   ;;  %v4702_v40 = vcombine.low %v1028_v55, %v1032_v8  ;;  %v4706_v23 = vcombine.low %v4541_v3, %v4547_v5  ;;  %v4119_v5 = vld [vmem:[#allocation2 + $0x188] ss:$16 sps:$4 sm:$0xff]   ;;  %v4124_v28 = vld [vmem:[#allocation2 + $0x1a4] ss:$16 sps:$4 sm:$0xff]  }
  0x6b   : > { %v4676_v43 = vcombine.low %v1032_v8, %v4673_v60  ;;  %v4716_v27 = vcombine.low %v4572_v42, %v4578_v45  ;;  %v4116_v3 = vld [vmem:[#allocation2 + $0x180] ss:$16 sps:$4 sm:$0xff]   ;;  %v4127_v30 = vld [vmem:[#allocation2 + $0x1ac] ss:$16 sps:$4 sm:$0xff]   ;;  %v4125_v24 = vld [vmem:[#allocation2 + $0x1a8] ss:$16 sps:$4 sm:$0xff]  }
  0x6c   : > { %v4122_v42 = vld [vmem:[#allocation2 + $0x1a0] ss:$16 sps:$4 sm:$0xff]   ;;  %v4130_v32 = vld [vmem:[#allocation2 + $0x1c4] ss:$16 sps:$4 sm:$0xff]   ;;  %v4133_v33 = vld [vmem:[#allocation2 + $0x1cc] ss:$16 sps:$4 sm:$0xff]  }
  0x6d   : > { %v4128_v29 = vld [vmem:[#allocation2 + $0x1c0] ss:$16 sps:$4 sm:$0xff]   ;;  %v4131_v39 = vld [vmem:[#allocation2 + $0x1c8] ss:$16 sps:$4 sm:$0xff]   ;;  %v4136_v46 = vld [vmem:[#allocation2 + $0x1e4] ss:$16 sps:$4 sm:$0xff]  }
  0x6e   : > { %v4139_v37 = vld [vmem:[#allocation2 + $0x1ec] ss:$16 sps:$4 sm:$0xff]   ;;  %v4137_v41 = vld [vmem:[#allocation2 + $0x1e8] ss:$16 sps:$4 sm:$0xff]   ;;  %v4143_v49 = vld [vmem:[#allocation2 + $0x204] ss:$16 sps:$4 sm:$0xff]  }
  0x6f   : > { %v4146_v52 = vld [vmem:[#allocation2 + $0x20c] ss:$16 sps:$4 sm:$0xff]   ;;  %v4141_v53 = vld [vmem:[#allocation2 + $0x200] ss:$16 sps:$4 sm:$0xff]   ;;  %v4144_v54 = vld [vmem:[#allocation2 + $0x208] ss:$16 sps:$4 sm:$0xff]  }
  0x70   : > { %3467 = vmatmul.mubr.msk.bf16.gmra.mrb[12].mxu0 %vm577_vm2, %v4664_v57  ;;  %3471 = vmatmul.mubr.msk.bf16.gmra.mrb[12].mxu1 %vm577_vm2, %v4664_v57  ;;  %v4150_v4 = vld [vmem:[#allocation2 + $0x224] ss:$16 sps:$4 sm:$0xff]   ;;  %v4153_v55 = vld [vmem:[#allocation2 + $0x22c] ss:$16 sps:$4 sm:$0xff]   ;;  %v4148_v56 = vld [vmem:[#allocation2 + $0x220] ss:$16 sps:$4 sm:$0xff]  }
  0x71   : > { %880 = vmatprep.mubr.bf16.mxu0 %v4356_v0  ;;  %953 = vmatprep.mubr.bf16.mxu1 %v4356_v0  ;;  %v4151_v8 = vld [vmem:[#allocation2 + $0x228] ss:$16 sps:$4 sm:$0xff]   ;;  %v4157_v59 = vld [vmem:[#allocation2 + $0x244] ss:$16 sps:$4 sm:$0xff]  }
  0x78   : > { %3492 = vmatmul.mubr.msk.bf16.vlgmr.msra.gmra.mrb[0].mxu0 %vm577_vm2, %v3472_v47  ;;  %3496 = vmatmul.mubr.msk.bf16.vlgmr.msra.gmra.mrb[0].mxu1 %vm577_vm2, %v3472_v47  ;;  %v4160_v47 = vld [vmem:[#allocation2 + $0x24c] ss:$16 sps:$4 sm:$0xff]  }
  0x79   : > { %1159 = vmatpush1.bf16.msra.mxu0 %v4089_v61  ;;  %1232 = vmatpush1.bf16.msra.mxu1 %v4092_v62  ;;  %v4155_v61 = vld [vmem:[#allocation2 + $0x240] ss:$16 sps:$4 sm:$0xff]   ;;  %v4158_v62 = vld [vmem:[#allocation2 + $0x248] ss:$16 sps:$4 sm:$0xff]  }
  0x7a   : > { %890 = vmatprep.mubr.bf16.mxu0 %v4356_v0  ;;  %963 = vmatprep.mubr.bf16.mxu1 %v4356_v0 }
  0x7b   : > { %1160 = vmatprep.subr.bf16.mxu0 %v4098_v63  ;;  %1233 = vmatprep.subr.bf16.mxu1 %v4101_v20  ;;  %v4166_v63 = vld [vmem:[#allocation2 + $0x26c] ss:$16 sps:$4 sm:$0xff]   ;;  %v4161_v20 = vld [vmem:[#allocation2 + $0x260] ss:$16 sps:$4 sm:$0xff]  }
  0x7d   : > { %1161 = vmatpush1.bf16.msra.mxu0 %v4096_v2  ;;  %1234 = vmatpush1.bf16.msra.mxu1 %v4099_v6  ;;  %v4164_v2 = vld [vmem:[#allocation2 + $0x268] ss:$16 sps:$4 sm:$0xff]   ;;  %v4169_v6 = vld [vmem:[#allocation2 + $0x284] ss:$16 sps:$4 sm:$0xff]  }
  0x7e   : > { %1162 = vmatprep.subr.bf16.mxu0 %v4105_v7  ;;  %1235 = vmatprep.subr.bf16.mxu1 %v4108_v9  ;;  %v4172_v7 = vld [vmem:[#allocation2 + $0x28c] ss:$16 sps:$4 sm:$0xff]  }
  0x80   : > { %3493 = vmatmul.mubr.msk.bf16.gmra.mrb[4].mxu0 %vm577_vm2, %v4694_v17  ;;  %3497 = vmatmul.mubr.msk.bf16.gmra.mrb[4].mxu1 %vm577_vm2, %v4694_v17 }
  0x81   : > { %900 = vmatprep.mubr.bf16.mxu0 %v4356_v0  ;;  %973 = vmatprep.mubr.bf16.mxu1 %v4356_v0 }
  0x82   : > { %1163 = vmatpush1.bf16.msra.mxu0 %v4103_v19  ;;  %1236 = vmatpush1.bf16.msra.mxu1 %v4106_v11  ;;  %v4167_v19 = vld [vmem:[#allocation2 + $0x280] ss:$16 sps:$4 sm:$0xff]   ;;  %v4170_v11 = vld [vmem:[#allocation2 + $0x288] ss:$16 sps:$4 sm:$0xff]  }
  0x83   : > { %1164 = vmatprep.subr.bf16.mxu0 %v4112_v12  ;;  %1237 = vmatprep.subr.bf16.mxu1 %v4115_v13  ;;  %v4178_v12 = vld [vmem:[#allocation2 + $0x2ac] ss:$16 sps:$4 sm:$0xff]   ;;  %v4176_v13 = vld [vmem:[#allocation2 + $0x2a8] ss:$16 sps:$4 sm:$0xff]  }
  0x86   : > { %1165 = vmatpush1.bf16.msra.mxu0 %v4110_v36  ;;  %1238 = vmatpush1.bf16.msra.mxu1 %v4113_v16 }
  0x87   : > { %1451 = vmatprep.subr.bf16.mxu0 %v4118_v21  ;;  %1524 = vmatprep.subr.bf16.mxu1 %v4121_v22  ;;  %v4181_v21 = vld [vmem:[#allocation2 + $0x2c4] ss:$16 sps:$4 sm:$0xff]   ;;  %v4184_v22 = vld [vmem:[#allocation2 + $0x2cc] ss:$16 sps:$4 sm:$0xff]  }
  0x88   : > { %3494 = vmatmul.mubr.msk.bf16.gmra.mrb[8].mxu0 %vm577_vm2, %v4706_v23  ;;  %3498 = vmatmul.mubr.msk.bf16.gmra.mrb[8].mxu1 %vm577_vm2, %v4706_v23 }
  0x89   : > { %910 = vmatprep.mubr.bf16.mxu0 %v4356_v0  ;;  %983 = vmatprep.mubr.bf16.mxu1 %v4356_v0 }
  0x90   : > { %3495 = vmatmul.mubr.msk.bf16.gmra.mrb[12].mxu0 %vm577_vm2, %v4716_v27  ;;  %3499 = vmatmul.mubr.msk.bf16.gmra.mrb[12].mxu1 %vm577_vm2, %v4716_v27 }
  0x91   : > { %1190 = vmatprep.mubr.bf16.mxu0 %v4356_v0  ;;  %1263 = vmatprep.mubr.bf16.mxu1 %v4356_v0 }
  0x98   : > { %3528 = vmatmul.mubr.msk.bf16.vlgmr.msra.gmra.mrb[0].mxu0 %vm577_vm2, %v4627_v31  ;;  %3532 = vmatmul.mubr.msk.bf16.vlgmr.msra.gmra.mrb[0].mxu1 %vm577_vm2, %v4627_v31  ;;  %v4134_v31 = vld [vmem:[#allocation2 + $0x1e0] ss:$16 sps:$4 sm:$0xff]  }
  0x99   : > { %1452 = vmatpush1.bf16.msra.mxu0 %v4116_v3  ;;  %1525 = vmatpush1.bf16.msra.mxu1 %v4119_v5  ;;  %v4179_v5 = vld [vmem:[#allocation2 + $0x2c0] ss:$16 sps:$4 sm:$0xff]  }
  0x9a   : > { %1200 = vmatprep.mubr.bf16.mxu0 %v4356_v0  ;;  %1273 = vmatprep.mubr.bf16.mxu1 %v4356_v0 }
  0x9b   : > { %1453 = vmatprep.subr.bf16.mxu0 %v4124_v28  ;;  %1526 = vmatprep.subr.bf16.mxu1 %v4127_v30  ;;  %v4182_v28 = vld [vmem:[#allocation2 + $0x2c8] ss:$16 sps:$4 sm:$0xff]   ;;  %v4790_v30 = vld [vmem:[%s4764_s7 + $0x4] sm:$0x1] }
  0x9d   : > { %1454 = vmatpush1.bf16.msra.mxu0 %v4122_v42  ;;  %1527 = vmatpush1.bf16.msra.mxu1 %v4125_v24  ;;  %v4187_v42 = vld [vmem:[#allocation2 + $0x2e4] ss:$16 sps:$4 sm:$0xff]   ;;  %v4190_v24 = vld [vmem:[#allocation2 + $0x2ec] ss:$16 sps:$4 sm:$0xff]  }
  0x9e   : > { %1455 = vmatprep.subr.bf16.mxu0 %v4130_v32  ;;  %1528 = vmatprep.subr.bf16.mxu1 %v4133_v33  ;;  %v1639_v33 = vshll.u32 %v4790_v30, 16 }
  0xa0   : > { %3529 = vmatmul.mubr.msk.bf16.gmra.mrb[4].mxu0 %vm577_vm2, %v4653_v51  ;;  %3533 = vmatmul.mubr.msk.bf16.gmra.mrb[4].mxu1 %vm577_vm2, %v4653_v51 }
  0xa1   : > { %1210 = vmatprep.mubr.bf16.mxu0 %v4356_v0  ;;  %1283 = vmatprep.mubr.bf16.mxu1 %v4356_v0 }
  0xa2   : > { %1456 = vmatpush1.bf16.msra.mxu0 %v4128_v29  ;;  %1529 = vmatpush1.bf16.msra.mxu1 %v4131_v39  ;;  %v4185_v29 = vld [vmem:[#allocation2 + $0x2e0] ss:$16 sps:$4 sm:$0xff]   ;;  %v4188_v39 = vld [vmem:[#allocation2 + $0x2e8] ss:$16 sps:$4 sm:$0xff]  }
  0xa3   : > { %1457 = vmatprep.subr.bf16.mxu0 %v4136_v46  ;;  %1530 = vmatprep.subr.bf16.mxu1 %v4139_v37  ;;  %v4193_v46 = vld [vmem:[#allocation2 + $0x304] ss:$16 sps:$4 sm:$0xff]   ;;  %v4196_v37 = vld [vmem:[#allocation2 + $0x30c] ss:$16 sps:$4 sm:$0xff]  }
  0xa6   : > { %1458 = vmatpush1.bf16.msra.mxu0 %v4134_v31  ;;  %1531 = vmatpush1.bf16.msra.mxu1 %v4137_v41  ;;  %v1641_v41 = vrot.slane %v1639_v33, 5  ;;  %v4254_v33 = vld [vmem:[#allocation2 + $0x444] ss:$16 sps:$4 sm:$0xff]  }
  0xa7   : > { %1757 = vmatprep.subr.bf16.mxu0 %v4143_v49  ;;  %1830 = vmatprep.subr.bf16.mxu1 %v4146_v52  ;;  %v4194_v52 = vld [vmem:[#allocation2 + $0x308] ss:$16 sps:$4 sm:$0xff]  }
  0xa8   : > { %3530 = vmatmul.mubr.msk.bf16.gmra.mrb[8].mxu0 %vm577_vm2, %v4666_v58  ;;  %3534 = vmatmul.mubr.msk.bf16.gmra.mrb[8].mxu1 %vm577_vm2, %v4666_v58 }
  0xa9   : > { %1220 = vmatprep.mubr.bf16.mxu0 %v4356_v0  ;;  %1293 = vmatprep.mubr.bf16.mxu1 %v4356_v0 }
  0xb0   : > { %3531 = vmatmul.mubr.msk.bf16.gmra.mrb[12].mxu0 %vm577_vm2, %v4676_v43  ;;  %3535 = vmatmul.mubr.msk.bf16.gmra.mrb[12].mxu1 %vm577_vm2, %v4676_v43 }
  0xb1   : > { %1483 = vmatprep.mubr.bf16.mxu0 %v4356_v0  ;;  %1556 = vmatprep.mubr.bf16.mxu1 %v4356_v0 }
  0xb8   : > { %3556 = vmatmul.mubr.msk.bf16.vlgmr.msra.gmra.mrb[0].mxu0 %vm577_vm2, %v4530_v44  ;;  %3560 = vmatmul.mubr.msk.bf16.vlgmr.msra.gmra.mrb[0].mxu1 %vm577_vm2, %v4530_v44  ;;  %v4163_v44 = vld [vmem:[#allocation2 + $0x264] ss:$16 sps:$4 sm:$0xff]  }
  0xb9   : > { %1758 = vmatpush1.bf16.msra.mxu0 %v4141_v53  ;;  %1831 = vmatpush1.bf16.msra.mxu1 %v4144_v54  ;;  %v4199_v53 = vld [vmem:[#allocation2 + $0x324] ss:$16 sps:$4 sm:$0xff]   ;;  %v4202_v54 = vld [vmem:[#allocation2 + $0x32c] ss:$16 sps:$4 sm:$0xff]  }
  0xba   : > { %1493 = vmatprep.mubr.bf16.mxu0 %v4356_v0  ;;  %1566 = vmatprep.mubr.bf16.mxu1 %v4356_v0 }
  0xbb   : > { %1759 = vmatprep.subr.bf16.mxu0 %v4150_v4  ;;  %1832 = vmatprep.subr.bf16.mxu1 %v4153_v55  ;;  %v4200_v4 = vld [vmem:[#allocation2 + $0x328] ss:$16 sps:$4 sm:$0xff]   ;;  %v4205_v55 = vld [vmem:[#allocation2 + $0x344] ss:$16 sps:$4 sm:$0xff]  }
  0xbd   : > { %1760 = vmatpush1.bf16.msra.mxu0 %v4148_v56  ;;  %1833 = vmatpush1.bf16.msra.mxu1 %v4151_v8  ;;  %v4208_v56 = vld [vmem:[#allocation2 + $0x34c] ss:$16 sps:$4 sm:$0xff]   ;;  %v4203_v8 = vld [vmem:[#allocation2 + $0x340] ss:$16 sps:$4 sm:$0xff]  }
  0xbe   : > { %1761 = vmatprep.subr.bf16.mxu0 %v4157_v59  ;;  %1834 = vmatprep.subr.bf16.mxu1 %v4160_v47  ;;  %v4206_v59 = vld [vmem:[#allocation2 + $0x348] ss:$16 sps:$4 sm:$0xff]   ;;  %v4211_v47 = vld [vmem:[#allocation2 + $0x364] ss:$16 sps:$4 sm:$0xff]  }
  0xc0   : > { %3557 = vmatmul.mubr.msk.bf16.gmra.mrb[4].mxu0 %vm577_vm2, %v4582_v18  ;;  %3561 = vmatmul.mubr.msk.bf16.gmra.mrb[4].mxu1 %vm577_vm2, %v4582_v18  ;;  %v4773_v18 = vld [vmem:[%s4764_s7] sm:$0xf] }
  0xc1   : > { %1503 = vmatprep.mubr.bf16.mxu0 %v4356_v0  ;;  %1576 = vmatprep.mubr.bf16.mxu1 %v4356_v0  ;;  %v3539_v9 = vcombine.low %v4578_v45, %v4773_v18  ;;  %v4173_v45 = vld [vmem:[#allocation2 + $0x2a0] ss:$16 sps:$4 sm:$0xff]   ;;  %v1630_v36 = vshrl.u32 %v4773_v18, 16  ;;  %v1633_v16 = vshll.u32 %v4773_v18, 16 }
  0xc2   : > { %1762 = vmatpush1.bf16.msra.mxu0 %v4155_v61  ;;  %1835 = vmatpush1.bf16.msra.mxu1 %v4158_v62  ;;  %v4209_v61 = vld [vmem:[#allocation2 + $0x360] ss:$16 sps:$4 sm:$0xff]   ;;  %v4212_v62 = vld [vmem:[#allocation2 + $0x368] ss:$16 sps:$4 sm:$0xff]  }
  0xc3   : > { %1763 = vmatprep.subr.bf16.mxu0 %v4163_v44  ;;  %1836 = vmatprep.subr.bf16.mxu1 %v4166_v63  ;;  %v1635_v3 = vrot.slane %v1633_v16, 5  ;;  %v4217_v44 = vld [vmem:[#allocation2 + $0x384] ss:$16 sps:$4 sm:$0xff]   ;;  %v4220_v63 = vld [vmem:[#allocation2 + $0x38c] ss:$16 sps:$4 sm:$0xff]  }
  0xc4   : > { %v4234_v16 = vld [vmem:[#allocation2 + $0x3e0] ss:$16 sps:$4 sm:$0xff]  }
  0xc6   : > { %1764 = vmatpush1.bf16.msra.mxu0 %v4161_v20  ;;  %1837 = vmatpush1.bf16.msra.mxu1 %v4164_v2  ;;  %v3592_v20 = vrot.slane %v4773_v18, 9  ;;  %v1938_v2 = vrot.slane %v4790_v30, 5  ;;  %v4251_v30 = vld [vmem:[#allocation2 + $0x42c] ss:$16 sps:$4 sm:$0xff]  }
  0xc7   : > { %2054 = vmatprep.subr.bf16.mxu0 %v4169_v6  ;;  %2127 = vmatprep.subr.bf16.mxu1 %v4172_v7  ;;  %v4218_v7 = vld [vmem:[#allocation2 + $0x388] ss:$16 sps:$4 sm:$0xff]  }
  0xc8   : > { %3558 = vmatmul.mubr.msk.bf16.gmra.mrb[8].mxu0 %vm577_vm2, %v4614_v14  ;;  %3562 = vmatmul.mubr.msk.bf16.gmra.mrb[8].mxu1 %vm577_vm2, %v4614_v14  ;;  %v4175_v14 = vld [vmem:[#allocation2 + $0x2a4] ss:$16 sps:$4 sm:$0xff]  }
  0xc9   : > { %1513 = vmatprep.mubr.bf16.mxu0 %v4356_v0  ;;  %1586 = vmatprep.mubr.bf16.mxu1 %v4356_v0 }
  0xd0   : > { %3559 = vmatmul.mubr.msk.bf16.gmra.mrb[12].mxu0 %vm577_vm2, %v3539_v9  ;;  %3563 = vmatmul.mubr.msk.bf16.gmra.mrb[12].mxu1 %vm577_vm2, %v3539_v9  ;;  %v4223_v9 = vld [vmem:[#allocation2 + $0x3a4] ss:$16 sps:$4 sm:$0xff]  }
  0xd1   : > { %1789 = vmatprep.mubr.bf16.mxu0 %v4356_v0  ;;  %1862 = vmatprep.mubr.bf16.mxu1 %v4356_v0 }
  0xd8   : > { %3584 = vmatmul.mubr.msk.bf16.vlgmr.msra.gmra.mrb[0].mxu0 %vm577_vm2, %v4566_v25  ;;  %3588 = vmatmul.mubr.msk.bf16.vlgmr.msra.gmra.mrb[0].mxu1 %vm577_vm2, %v4566_v25  ;;  %v1632_v25 = vrot.slane %v1630_v36, 4  ;;  %v4236_v36 = vld [vmem:[#allocation2 + $0x3e4] ss:$16 sps:$4 sm:$0xff]  }
  0xd9   : > { %2055 = vmatpush1.bf16.msra.mxu0 %v4167_v19  ;;  %2128 = vmatpush1.bf16.msra.mxu1 %v4170_v11  ;;  %v4226_v19 = vld [vmem:[#allocation2 + $0x3ac] ss:$16 sps:$4 sm:$0xff]   ;;  %v4224_v11 = vld [vmem:[#allocation2 + $0x3a8] ss:$16 sps:$4 sm:$0xff]  }
  0xda   : > { %1799 = vmatprep.mubr.bf16.mxu0 %v4356_v0  ;;  %1872 = vmatprep.mubr.bf16.mxu1 %v4356_v0  ;;  %v1636_v32 = vor.u32 %v1635_v3, %v1632_v25  ;;  %v4245_v25 = vld [vmem:[#allocation2 + $0x40c] ss:$16 sps:$4 sm:$0xff]  }
  0xdb   : > { %2056 = vmatprep.subr.bf16.mxu0 %v4175_v14  ;;  %2129 = vmatprep.subr.bf16.mxu1 %v4178_v12  ;;  %v4229_v14 = vld [vmem:[#allocation2 + $0x3c4] ss:$16 sps:$4 sm:$0xff]   ;;  %v4232_v12 = vld [vmem:[#allocation2 + $0x3cc] ss:$16 sps:$4 sm:$0xff]  }
  0xdc   : > { %v1637_v31 = vrot.slane %v1636_v32, 4  ;;  %v4249_v32 = vld [vmem:[#allocation2 + $0x428] ss:$16 sps:$4 sm:$0xff]  }
  0xdd   : > { %2057 = vmatpush1.bf16.msra.mxu0 %v4173_v45  ;;  %2130 = vmatpush1.bf16.msra.mxu1 %v4176_v13  ;;  %v4227_v45 = vld [vmem:[#allocation2 + $0x3c0] ss:$16 sps:$4 sm:$0xff]   ;;  %v4230_v13 = vld [vmem:[#allocation2 + $0x3c8] ss:$16 sps:$4 sm:$0xff]  }
  0xde   : > { %2058 = vmatprep.subr.bf16.mxu0 %v4181_v21  ;;  %2131 = vmatprep.subr.bf16.mxu1 %v4184_v22  ;;  %v4237_v21 = vld [vmem:[#allocation2 + $0x3e8] ss:$16 sps:$4 sm:$0xff]   ;;  %v4242_v22 = vld [vmem:[#allocation2 + $0x404] ss:$16 sps:$4 sm:$0xff]  }
  0xe0   : > { %3585 = vmatmul.mubr.msk.bf16.gmra.mrb[4].mxu0 %vm577_vm2, %v4616_v15  ;;  %3589 = vmatmul.mubr.msk.bf16.gmra.mrb[4].mxu1 %vm577_vm2, %v4616_v15  ;;  %v4807_v15 = vsel %vm4516_vm3, %v1637_v31, %v1641_v41  ;;  %v336_v31 = vld [vmem:[%s4764_s7 + $0xc] sm:$0x1]  ;;  %v4260_v41 = vld [vmem:[#allocation2 + $0x464] ss:$16 sps:$4 sm:$0xff]  }
  0xe1   : > { %1809 = vmatprep.mubr.bf16.mxu0 %v4356_v0  ;;  %1882 = vmatprep.mubr.bf16.mxu1 %v4356_v0  ;;  %v3567_v49 = vcombine.low %v4651_v50, %v4807_v15  ;;  %v4197_v50 = vld [vmem:[#allocation2 + $0x320] ss:$16 sps:$4 sm:$0xff]  }
  0xe2   : > { %2059 = vmatpush1.bf16.msra.mxu0 %v4179_v5  ;;  %2132 = vmatpush1.bf16.msra.mxu1 %v4182_v28  ;;  %v4240_v5 = vld [vmem:[#allocation2 + $0x400] ss:$16 sps:$4 sm:$0xff]   ;;  %v4243_v28 = vld [vmem:[#allocation2 + $0x408] ss:$16 sps:$4 sm:$0xff]  }
  0xe3   : > { %2060 = vmatprep.subr.bf16.mxu0 %v4187_v42  ;;  %2133 = vmatprep.subr.bf16.mxu1 %v4190_v24  ;;  %v4246_v24 = vld [vmem:[#allocation2 + $0x420] ss:$16 sps:$4 sm:$0xff]  }
  0xe6   : > { %2061 = vmatpush1.bf16.msra.mxu0 %v4185_v29  ;;  %2134 = vmatpush1.bf16.msra.mxu1 %v4188_v39  ;;  %v4257_v29 = vld [vmem:[#allocation2 + $0x44c] ss:$16 sps:$4 sm:$0xff]  }
  0xe7   : > { %2335 = vmatprep.subr.bf16.mxu0 %v4193_v46  ;;  %2408 = vmatprep.subr.bf16.mxu1 %v4196_v37  ;;  %v4252_v46 = vld [vmem:[#allocation2 + $0x440] ss:$16 sps:$4 sm:$0xff]   ;;  %v4255_v37 = vld [vmem:[#allocation2 + $0x448] ss:$16 sps:$4 sm:$0xff]  }
  0xe8   : > { %3586 = vmatmul.mubr.msk.bf16.gmra.mrb[8].mxu0 %vm577_vm2, %v4632_v35  ;;  %3590 = vmatmul.mubr.msk.bf16.gmra.mrb[8].mxu1 %vm577_vm2, %v4632_v35  ;;  %v4191_v35 = vld [vmem:[#allocation2 + $0x300] ss:$16 sps:$4 sm:$0xff]  }
  0xe9   : > { %1819 = vmatprep.mubr.bf16.mxu0 %v4356_v0  ;;  %1892 = vmatprep.mubr.bf16.mxu1 %v4356_v0 }
  0xf0   : > { %3587 = vmatmul.mubr.msk.bf16.gmra.mrb[12].mxu0 %vm577_vm2, %v3567_v49  ;;  %3591 = vmatmul.mubr.msk.bf16.gmra.mrb[12].mxu1 %vm577_vm2, %v3567_v49  ;;  %v4263_v49 = vld [vmem:[#allocation2 + $0x46c] ss:$16 sps:$4 sm:$0xff]  }
  0xf1   : > { %2086 = vmatprep.mubr.bf16.mxu0 %v4356_v0  ;;  %2159 = vmatprep.mubr.bf16.mxu1 %v4356_v0 }
  0xf8   : > { %3613 = vmatmul.mubr.msk.bf16.vlgmr.msra.gmra.mrb[0].mxu0 %vm577_vm2, %v4643_v48  ;;  %3617 = vmatmul.mubr.msk.bf16.vlgmr.msra.gmra.mrb[0].mxu1 %vm577_vm2, %v4643_v48  ;;  %v4214_v48 = vld [vmem:[#allocation2 + $0x36c] ss:$16 sps:$4 sm:$0xff]  }
  0xf9   : > { %2336 = vmatpush1.bf16.msra.mxu0 %v4191_v35  ;;  %2409 = vmatpush1.bf16.msra.mxu1 %v4194_v52  ;;  %v2523_v52 = vshll.u32 %v336_v31, 16 }
  0xfa   : > { %2096 = vmatprep.mubr.bf16.mxu0 %v4356_v0  ;;  %2169 = vmatprep.mubr.bf16.mxu1 %v4356_v0 }
  0xfb   : > { %2337 = vmatprep.subr.bf16.mxu0 %v4199_v53  ;;  %2410 = vmatprep.subr.bf16.mxu1 %v4202_v54  ;;  %v4258_v53 = vld [vmem:[#allocation2 + $0x460] ss:$16 sps:$4 sm:$0xff]   ;;  %v4261_v54 = vld [vmem:[#allocation2 + $0x468] ss:$16 sps:$4 sm:$0xff]  }
  0xfd   : > { %2338 = vmatpush1.bf16.msra.mxu0 %v4197_v50  ;;  %2411 = vmatpush1.bf16.msra.mxu1 %v4200_v4  ;;  %v2525_v4 = vrot.slane %v2523_v52, 5 }
  0xfe   : > { %2339 = vmatprep.subr.bf16.mxu0 %v4205_v55  ;;  %2412 = vmatprep.subr.bf16.mxu1 %v4208_v56 }
 0x100   : > { %3614 = vmatmul.mubr.msk.bf16.gmra.mrb[4].mxu0 %vm577_vm2, %v4690_v10  ;;  %3618 = vmatmul.mubr.msk.bf16.gmra.mrb[4].mxu1 %vm577_vm2, %v4690_v10  ;;  %v4837_v10 = vsel %vm4602_vm6, %v3592_v20, %v1938_v2 }
 0x101   : > { %2106 = vmatprep.mubr.bf16.mxu0 %v4356_v0  ;;  %2179 = vmatprep.mubr.bf16.mxu1 %v4356_v0  ;;  %v3596_v6 = vcombine.low %v4673_v60, %v4837_v10  ;;  %v4221_v60 = vld [vmem:[#allocation2 + $0x3a0] ss:$16 sps:$4 sm:$0xff]  }
 0x102   : > { %2340 = vmatpush1.bf16.msra.mxu0 %v4203_v8  ;;  %2413 = vmatpush1.bf16.msra.mxu1 %v4206_v59 }
 0x103   : > { %2341 = vmatprep.subr.bf16.mxu0 %v4211_v47  ;;  %2414 = vmatprep.subr.bf16.mxu1 %v4214_v48  ;;  %v3092_v47 = vld [vmem:[#allocation4] sm:$0xf] }
 0x106   : > { %2342 = vmatpush1.bf16.msra.mxu0 %v4209_v61  ;;  %2415 = vmatpush1.bf16.msra.mxu1 %v4212_v62 }
 0x107   : > { %2629 = vmatprep.subr.bf16.mxu0 %v4217_v44  ;;  %2702 = vmatprep.subr.bf16.mxu1 %v4220_v63 }
 0x108   : > { %3615 = vmatmul.mubr.msk.bf16.gmra.mrb[8].mxu0 %vm577_vm2, %v4702_v40  ;;  %3619 = vmatmul.mubr.msk.bf16.gmra.mrb[8].mxu1 %vm577_vm2, %v4702_v40  ;;  %v4215_v40 = vld [vmem:[#allocation2 + $0x380] ss:$16 sps:$4 sm:$0xff]  }
 0x109   : > { %2116 = vmatprep.mubr.bf16.mxu0 %v4356_v0  ;;  %2189 = vmatprep.mubr.bf16.mxu1 %v4356_v0 }
 0x110   : > { %3616 = vmatmul.mubr.msk.bf16.gmra.mrb[12].mxu0 %vm577_vm2, %v3596_v6  ;;  %3620 = vmatmul.mubr.msk.bf16.gmra.mrb[12].mxu1 %vm577_vm2, %v3596_v6 }
 0x111   : > { %2367 = vmatprep.mubr.bf16.mxu0 %v4356_v0  ;;  %2440 = vmatprep.mubr.bf16.mxu1 %v4356_v0 }
 0x118   : > { %3638 = vmatmul.mubr.msk.bf16.vlgmr.msra.gmra.mrb[0].mxu0 %vm577_vm2, %v4694_v17  ;;  %3642 = vmatmul.mubr.msk.bf16.vlgmr.msra.gmra.mrb[0].mxu1 %vm577_vm2, %v4694_v17  ;;  %v4239_v17 = vld [vmem:[#allocation2 + $0x3ec] ss:$16 sps:$4 sm:$0xff]  }
 0x119   : > { %2630 = vmatpush1.bf16.msra.mxu0 %v4215_v40  ;;  %2703 = vmatpush1.bf16.msra.mxu1 %v4218_v7 }
 0x11a   : > { %2377 = vmatprep.mubr.bf16.mxu0 %v4356_v0  ;;  %2450 = vmatprep.mubr.bf16.mxu1 %v4356_v0 }
 0x11b   : > { %2631 = vmatprep.subr.bf16.mxu0 %v4223_v9  ;;  %2704 = vmatprep.subr.bf16.mxu1 %v4226_v19 }
 0x11d   : > { %2632 = vmatpush1.bf16.msra.mxu0 %v4221_v60  ;;  %2705 = vmatpush1.bf16.msra.mxu1 %v4224_v11 }
 0x11e   : > { %2633 = vmatprep.subr.bf16.mxu0 %v4229_v14  ;;  %2706 = vmatprep.subr.bf16.mxu1 %v4232_v12 }
 0x120   : > { %3639 = vmatmul.mubr.msk.bf16.gmra.mrb[4].mxu0 %vm577_vm2, %v4706_v23  ;;  %3643 = vmatmul.mubr.msk.bf16.gmra.mrb[4].mxu1 %vm577_vm2, %v4706_v23  ;;  %v4864_v23 = vld [vmem:[%s4764_s7 + $0x8] sm:$0xf] }
 0x121   : > { %2387 = vmatprep.mubr.bf16.mxu0 %v4356_v0  ;;  %2460 = vmatprep.mubr.bf16.mxu1 %v4356_v0  ;;  %v3621_v3 = vcombine.low %v4773_v18, %v4864_v23  ;;  %v2514_v18 = vshrl.u32 %v4864_v23, 16  ;;  %v2517_v42 = vshll.u32 %v4864_v23, 16  ;;  %v3671_v38 = vrot.slane %v4864_v23, 9 }
 0x122   : > { %2634 = vmatpush1.bf16.msra.mxu0 %v4227_v45  ;;  %2707 = vmatpush1.bf16.msra.mxu1 %v4230_v13 }
 0x123   : > { %2635 = vmatprep.subr.bf16.mxu0 %v4236_v36  ;;  %2708 = vmatprep.subr.bf16.mxu1 %v4239_v17  ;;  %v2519_v39 = vrot.slane %v2517_v42, 5 }
 0x126   : > { %2636 = vmatpush1.bf16.msra.mxu0 %v4234_v16  ;;  %2709 = vmatpush1.bf16.msra.mxu1 %v4237_v21 }
 0x127   : > { %2914 = vmatprep.subr.bf16.mxu0 %v4242_v22  ;;  %2987 = vmatprep.subr.bf16.mxu1 %v4245_v25 }
 0x128   : > { %3640 = vmatmul.mubr.msk.bf16.gmra.mrb[8].mxu0 %vm577_vm2, %v4716_v27  ;;  %3644 = vmatmul.mubr.msk.bf16.gmra.mrb[8].mxu1 %vm577_vm2, %v4716_v27  ;;  %v4248_v27 = vld [vmem:[#allocation2 + $0x424] ss:$16 sps:$4 sm:$0xff]  }
 0x129   : > { %2397 = vmatprep.mubr.bf16.mxu0 %v4356_v0  ;;  %2470 = vmatprep.mubr.bf16.mxu1 %v4356_v0 }
 0x130   : > { %3641 = vmatmul.mubr.msk.bf16.gmra.mrb[12].mxu0 %vm577_vm2, %v3621_v3  ;;  %3645 = vmatmul.mubr.msk.bf16.gmra.mrb[12].mxu1 %vm577_vm2, %v3621_v3 }
 0x131   : > { %2661 = vmatprep.mubr.bf16.mxu0 %v4356_v0  ;;  %2734 = vmatprep.mubr.bf16.mxu1 %v4356_v0 }
 0x138   : > { %3663 = vmatmul.mubr.msk.bf16.vlgmr.msra.gmra.mrb[0].mxu0 %vm577_vm2, %v4569_v34  ;;  %3667 = vmatmul.mubr.msk.bf16.vlgmr.msra.gmra.mrb[0].mxu1 %vm577_vm2, %v4569_v34  ;;  %v2516_v34 = vrot.slane %v2514_v18, 4 }
 0x139   : > { %2915 = vmatpush1.bf16.msra.mxu0 %v4240_v5  ;;  %2988 = vmatpush1.bf16.msra.mxu1 %v4243_v28 }
 0x13a   : > { %2671 = vmatprep.mubr.bf16.mxu0 %v4356_v0  ;;  %2744 = vmatprep.mubr.bf16.mxu1 %v4356_v0  ;;  %v2520_v35 = vor.u32 %v2519_v39, %v2516_v34 }
 0x13b   : > { %2916 = vmatprep.subr.bf16.mxu0 %v4248_v27  ;;  %2989 = vmatprep.subr.bf16.mxu1 %v4251_v30 }
 0x13c   : > { %v2521_v50 = vrot.slane %v2520_v35, 4 }
 0x13d   : > { %2917 = vmatpush1.bf16.msra.mxu0 %v4246_v24  ;;  %2990 = vmatpush1.bf16.msra.mxu1 %v4249_v32 }
 0x13e   : > { %2918 = vmatprep.subr.bf16.mxu0 %v4254_v33  ;;  %2991 = vmatprep.subr.bf16.mxu1 %v4257_v29 }
 0x140   : > { %3664 = vmatmul.mubr.msk.bf16.gmra.mrb[4].mxu0 %vm577_vm2, %v4620_v26  ;;  %3668 = vmatmul.mubr.msk.bf16.gmra.mrb[4].mxu1 %vm577_vm2, %v4620_v26  ;;  %v2526_v26 = vsel %vm4516_vm3, %v2521_v50, %v2525_v4 }
 0x141   : > { %2681 = vmatprep.mubr.bf16.mxu0 %v4356_v0  ;;  %2754 = vmatprep.mubr.bf16.mxu1 %v4356_v0  ;;  %v3646_v55 = vcombine.low %v4807_v15, %v2526_v26  ;;  %v3094_v15 = vlaneseq }
 0x142   : > { %2919 = vmatpush1.bf16.msra.mxu0 %v4252_v46  ;;  %2992 = vmatpush1.bf16.msra.mxu1 %v4255_v37 }
 0x143   : > { %2920 = vmatprep.subr.bf16.mxu0 %v4260_v41  ;;  %2993 = vmatprep.subr.bf16.mxu1 %v4263_v49  ;;  %v3095_v56 = vshrl.u32 %v3094_v15, 7 }
 0x145   : > { %v3096_v8 = vsub.s32 0, %v3095_v56  ;;  %v3104_v59 = vsub.s32 2, %v3095_v56  ;;  %v3100_v48 = vsub.s32 1, %v3095_v56 }
 0x146   : > { %2921 = vmatpush1.bf16.msra.mxu0 %v4258_v53  ;;  %2994 = vmatpush1.bf16.msra.mxu1 %v4261_v54 }
 0x147   : > { %v4924_v61 = vrot.slane %v3092_v47, %v3096_v8  ;;  %v4928_v1 = vrot.slane %v3092_v47, %v3100_v48 }
 0x148   : > { %3665 = vmatmul.mubr.msk.bf16.gmra.mrb[8].mxu0 %vm577_vm2, %v4664_v57  ;;  %3669 = vmatmul.mubr.msk.bf16.gmra.mrb[8].mxu1 %vm577_vm2, %v4664_v57  ;;  %v2810_v57 = vrot.slane %v336_v31, 5 }
 0x149   : > { %2691 = vmatprep.mubr.bf16.mxu0 %v4356_v0  ;;  %2764 = vmatprep.mubr.bf16.mxu1 %v4356_v0 }
 0x150   : > { %3666 = vmatmul.mubr.msk.bf16.gmra.mrb[12].mxu0 %vm577_vm2, %v3646_v55  ;;  %3670 = vmatmul.mubr.msk.bf16.gmra.mrb[12].mxu1 %vm577_vm2, %v3646_v55 }
 0x151   : > { %2946 = vmatprep.mubr.bf16.mxu0 %v4356_v0  ;;  %3019 = vmatprep.mubr.bf16.mxu1 %v4356_v0 }
 0x158   : > { %3689 = vmatmul.mubr.msk.bf16.vlgmr.msra.gmra.mrb[0].mxu0 %vm577_vm2, %v4653_v51  ;;  %3693 = vmatmul.mubr.msk.bf16.vlgmr.msra.gmra.mrb[0].mxu1 %vm577_vm2, %v4653_v51  ;;  %v2811_v51 = vsel %vm4602_vm6, %v3671_v38, %v2810_v57 }
 0x159   : > { %2956 = vmatprep.mubr.bf16.mxu0 %v4356_v0  ;;  %3029 = vmatprep.mubr.bf16.mxu1 %v4356_v0 }
 0x160   : > { %3690 = vmatmul.mubr.msk.bf16.gmra.mrb[4].mxu0 %vm577_vm2, %v4666_v58  ;;  %3694 = vmatmul.mubr.msk.bf16.gmra.mrb[4].mxu1 %vm577_vm2, %v4666_v58  ;;  %v3672_v58 = vcombine.low %v4837_v10, %v2811_v51 }
 0x161   : > { %2966 = vmatprep.mubr.bf16.mxu0 %v4356_v0  ;;  %3039 = vmatprep.mubr.bf16.mxu1 %v4356_v0 }
 0x168   : > { %3691 = vmatmul.mubr.msk.bf16.gmra.mrb[8].mxu0 %vm577_vm2, %v4676_v43  ;;  %3695 = vmatmul.mubr.msk.bf16.gmra.mrb[8].mxu1 %vm577_vm2, %v4676_v43  ;;  %v3108_v43 = vsub.s32 3, %v3095_v56 }
 0x169   : > { %2976 = vmatprep.mubr.bf16.mxu0 %v4356_v0  ;;  %3049 = vmatprep.mubr.bf16.mxu1 %v4356_v0  ;;  %v4926_v0 = vrot.slane %v3092_v47, %v3104_v59 }
 0x16a   : > { %v4930_v62 = vrot.slane %v3092_v47, %v3108_v43 }
 0x170   : > { %3692 = vmatmul.mubr.msk.bf16.gmra.mrb[12].mxu0 %vm577_vm2, %v3672_v58  ;;  %3696 = vmatmul.mubr.msk.bf16.gmra.mrb[12].mxu1 %vm577_vm2, %v3672_v58 }
 0x22b   : > { %v2948_v44 = vpop.f32.mrb[0].mxu0  ;;  %v3021_v63 = vpop.f32.mrb[0].mxu1 }
 0x22c   : > { %v3114_v20 = vadd.f32 %v4924_v61, %v2948_v44  ;;  %v3116_v2 = vadd.f32 %v4926_v0, %v3021_v63  ;;  %v2950_v10 = vpop.f32.mrb[1].mxu0  ;;  %v3023_v6 = vpop.f32.mrb[1].mxu1 }
 0x22d   : > { %v3115_v40 = vadd.f32 %v4928_v1, %v2950_v10  ;;  %v3117_v7 = vadd.f32 %v4930_v62, %v3023_v6  ;;  %v2952_v9 = vpop.f32.mrb[2].mxu0  ;;  %v3025_v19 = vpop.f32.mrb[2].mxu1 }
 0x22e   : > { %v3118_v60 = vadd.f32 %v4924_v61, %v2952_v9  ;;  %v3120_v11 = vadd.f32 %v4926_v0, %v3025_v19  ;;  %v2954_v14 = vpop.f32.mrb[3].mxu0  ;;  %v3027_v12 = vpop.f32.mrb[3].mxu1 }
 0x22f   : > { %v3719_v45 = vpack.c.bf16 %v3115_v40, %v3114_v20  ;;  %v3720_v13 = vpack.c.bf16 %v3117_v7, %v3116_v2  ;;  %v3119_v36 = vadd.f32 %v4928_v1, %v2954_v14  ;;  %v3121_v17 = vadd.f32 %v4930_v62, %v3027_v12 }
 0x231   : > { %3274 = vst [vmem:[%s4940_s10] sm:$0xff] %v3719_v45  ;;  %3275 = vst [vmem:[%s4940_s10 + $0x8] sm:$0xff] %v3720_v13  ;;  %v3721_v16 = vpack.c.bf16 %v3119_v36, %v3118_v60  ;;  %v3722_v21 = vpack.c.bf16 %v3121_v17, %v3120_v11 }
 0x233   : > { %3276 = vst [vmem:[%s4940_s10 + $0x10] sm:$0xff] %v3721_v16  ;;  %3277 = vst [vmem:[%s4940_s10 + $0x18] sm:$0xff] %v3722_v21  ;;  %v2958_v22 = vpop.f32.mrb[4].mxu0  ;;  %v3031_v25 = vpop.f32.mrb[4].mxu1 }
 0x234   : > { %v3122_v23 = vadd.f32 %v4924_v61, %v2958_v22  ;;  %v3124_v3 = vadd.f32 %v4926_v0, %v3031_v25  ;;  %v2960_v5 = vpop.f32.mrb[5].mxu0  ;;  %v3033_v28 = vpop.f32.mrb[5].mxu1 }
 0x235   : > { %v3123_v27 = vadd.f32 %v4928_v1, %v2960_v5  ;;  %v3125_v30 = vadd.f32 %v4930_v62, %v3033_v28  ;;  %v2962_v18 = vpop.f32.mrb[6].mxu0  ;;  %v3035_v42 = vpop.f32.mrb[6].mxu1 }
 0x236   : > { %v3126_v24 = vadd.f32 %v4924_v61, %v2962_v18  ;;  %v3128_v32 = vadd.f32 %v4926_v0, %v3035_v42  ;;  %v2964_v33 = vpop.f32.mrb[7].mxu0  ;;  %v3037_v29 = vpop.f32.mrb[7].mxu1 }
 0x237   : > { %v3723_v34 = vpack.c.bf16 %v3123_v27, %v3122_v23  ;;  %v3724_v39 = vpack.c.bf16 %v3125_v30, %v3124_v3  ;;  %v3127_v46 = vadd.f32 %v4928_v1, %v2964_v33  ;;  %v3129_v37 = vadd.f32 %v4930_v62, %v3037_v29 }
 0x239   : > { %3278 = vst [vmem:[%s4940_s10 + $0x20] sm:$0xff] %v3723_v34  ;;  %3279 = vst [vmem:[%s4940_s10 + $0x28] sm:$0xff] %v3724_v39  ;;  %v3725_v31 = vpack.c.bf16 %v3127_v46, %v3126_v24  ;;  %v3726_v41 = vpack.c.bf16 %v3129_v37, %v3128_v32 }
 0x23b   : > { %3280 = vst [vmem:[%s4940_s10 + $0x30] sm:$0xff] %v3725_v31  ;;  %3281 = vst [vmem:[%s4940_s10 + $0x38] sm:$0xff] %v3726_v41  ;;  %v2968_v49 = vpop.f32.mrb[8].mxu0  ;;  %v3041_v35 = vpop.f32.mrb[8].mxu1 }
 0x23c   : > { %v3130_v52 = vadd.f32 %v4924_v61, %v2968_v49  ;;  %v3132_v53 = vadd.f32 %v4926_v0, %v3041_v35  ;;  %v2970_v54 = vpop.f32.mrb[9].mxu0  ;;  %v3043_v50 = vpop.f32.mrb[9].mxu1 }
 0x23d   : > { %v3131_v4 = vadd.f32 %v4928_v1, %v2970_v54  ;;  %v3133_v26 = vadd.f32 %v4930_v62, %v3043_v50  ;;  %v2972_v55 = vpop.f32.mrb[10].mxu0  ;;  %v3045_v38 = vpop.f32.mrb[10].mxu1 }
 0x23e   : > { %v3134_v57 = vadd.f32 %v4924_v61, %v2972_v55  ;;  %v3136_v51 = vadd.f32 %v4926_v0, %v3045_v38  ;;  %v2974_v58 = vpop.f32.mrb[11].mxu0  ;;  %v3047_v15 = vpop.f32.mrb[11].mxu1 }
 0x23f   : > { %v3727_v56 = vpack.c.bf16 %v3131_v4, %v3130_v52  ;;  %v3728_v8 = vpack.c.bf16 %v3133_v26, %v3132_v53  ;;  %v3135_v59 = vadd.f32 %v4928_v1, %v2974_v58  ;;  %v3137_v47 = vadd.f32 %v4930_v62, %v3047_v15 }
 0x241   : > { %3282 = vst [vmem:[%s4940_s10 + $0x40] sm:$0xff] %v3727_v56  ;;  %3283 = vst [vmem:[%s4940_s10 + $0x48] sm:$0xff] %v3728_v8  ;;  %v3729_v48 = vpack.c.bf16 %v3135_v59, %v3134_v57  ;;  %v3730_v43 = vpack.c.bf16 %v3137_v47, %v3136_v51 }
 0x243   : > { %3284 = vst [vmem:[%s4940_s10 + $0x50] sm:$0xff] %v3729_v48  ;;  %3285 = vst [vmem:[%s4940_s10 + $0x58] sm:$0xff] %v3730_v43  ;;  %v2978_v44 = vpop.f32.mrb[12].mxu0  ;;  %v3051_v63 = vpop.f32.mrb[12].mxu1 }
 0x244   : > { %v3138_v20 = vadd.f32 %v4924_v61, %v2978_v44  ;;  %v3140_v2 = vadd.f32 %v4926_v0, %v3051_v63  ;;  %v2980_v10 = vpop.f32.mrb[13].mxu0  ;;  %v3053_v6 = vpop.f32.mrb[13].mxu1 }
 0x245   : > { %v3139_v40 = vadd.f32 %v4928_v1, %v2980_v10  ;;  %v3141_v7 = vadd.f32 %v4930_v62, %v3053_v6  ;;  %v2982_v9 = vpop.f32.mrb[14].mxu0  ;;  %v3055_v19 = vpop.f32.mrb[14].mxu1 }
 0x246   : > { %v3142_v60 = vadd.f32 %v4924_v61, %v2982_v9  ;;  %v3144_v11 = vadd.f32 %v4926_v0, %v3055_v19  ;;  %v2984_v14 = vpop.f32.mrb[15].mxu0  ;;  %v3057_v12 = vpop.f32.mrb[15].mxu1 }
 0x247   : > { %v3731_v45 = vpack.c.bf16 %v3139_v40, %v3138_v20  ;;  %v3732_v13 = vpack.c.bf16 %v3141_v7, %v3140_v2  ;;  %v3143_v36 = vadd.f32 %v4928_v1, %v2984_v14  ;;  %v3145_v17 = vadd.f32 %v4930_v62, %v3057_v12 }
 0x249   : > { %3286 = vst [vmem:[%s4940_s10 + $0x60] sm:$0xff] %v3731_v45  ;;  %3287 = vst [vmem:[%s4940_s10 + $0x68] sm:$0xff] %v3732_v13  ;;  %v3733_v16 = vpack.c.bf16 %v3143_v36, %v3142_v60  ;;  %v3734_v21 = vpack.c.bf16 %v3145_v17, %v3144_v11 }
 0x24b   : > { %3288 = vst [vmem:[%s4940_s10 + $0x70] sm:$0xff] %v3733_v16  ;;  %3289 = vst [vmem:[%s4940_s10 + $0x78] sm:$0xff] %v3734_v21 }
 0x24c PF: > { %s16_s17 = sadd.s32 1, %s4350_s17   ;;  %s5012_s15 = smov %s4346_s16 }
 0x24d   : > { %p13_p8 = scmp.ge.s32.totalorder %s16_s17, 4   ;;  %s5013_s16 = smov %s5015_s19 }
 0x24f   :  { %15 = sbr.rel (!%p13_p8) target bundleno = 3 (0x3), region = 86 }
 0x256   :  { %3322 = vsyncpa [#allocation3], 1 }
 0x257   :  { %3324 = vsyncpa [#allocation3 + $0x1], 1 }
 0x258   :  { %3325 = vsyncpa [#allocation5], 1 }

// kernel: _decoder_forward.13
= control target key start
LH: loop header
LB: loop body
LE: loop exit
PB: predicated region body
PF: predicated region fallthrough
CT: control target
= control target key end

     0   :  { %s1715_s18 = smov 0   ;;  %s1879_s0 = inlined_call_operand.vmem [shape: bf16[512,128], index: 0, kind: input, shape index: {}]   ;;  %s1880_s1 = inlined_call_operand.vmem [shape: bf16[512,128], index: 1, kind: input, shape index: {}]   ;;  %s1881_s2 = inlined_call_operand.vmem [shape: bf16[128,128], index: 2, kind: input, shape index: {}]   ;;  %s1882_s3 = inlined_call_operand.vmem [shape: bf16[128,128], index: 3, kind: input, shape index: {}]   ;;  %s1883_s4 = inlined_call_operand.vmem [shape: f32[1,128], index: 4, kind: input, shape index: {}]   ;;  %s1884_s5 = inlined_call_operand.vmem [shape: bf16[512,128], index: 5, kind: output, shape index: {}]  }
   0x1 LB: > { %s1224_s19 = sadd.s32 4294967295, %s1683_s18   ;;  %p1228_p0 = scmp.ge.s32.totalorder %s1683_s18, 1  ;;  %s1683_s18 = sphi %s1715_s18, %s15_s18  }
   0x2   : > { %p199_p1 = scmp.lt.s32.totalorder %s1683_s18, 3 }
   0x4   : > { %p200_p2 = pnand %p1228_p0, %p199_p1 }
   0x5   : > { %v1629_v0 = vld [vmem:[%s1882_s3] sm:$0xff] (!%p200_p2)   ;;  %s1229_s22 = sshll.u32 (!%p200_p2), %s1224_s19, 5  ;;  %v1631_v2 = vld [vmem:[%s1882_s3 + $0x8] sm:$0xff] (!%p200_p2)   ;;  %v1633_v4 = vld [vmem:[%s1882_s3 + $0x10] sm:$0xff] (!%p200_p2)  }
   0x6   : > { %203 = sbr.rel (%p200_p2) target bundleno = 317 (0x13d), region = 40  ;;  %v1630_v1 = vld [vmem:[%s1881_s2] sm:$0xff] (!%p200_p2)   ;;  %1493 = vmatprep.subr.bf16.mxu1 (!%p200_p2), %v1629_v0  ;;  %p233_p3 = scmp.lt.s32.totalorder (!%p200_p2), %s1229_s22, 63  ;;  %v1632_v3 = vld [vmem:[%s1881_s2 + $0x8] sm:$0xff] (!%p200_p2)   ;;  %v1634_v5 = vld [vmem:[%s1881_s2 + $0x10] sm:$0xff] (!%p200_p2)  }
   0x7   : > { %1541 = vmatprep.subr.bf16.mxu0 (!%p200_p2), %v1630_v1  ;;  %1494 = vmatpush3.bf16.msra.mxu1 (!%p200_p2), %v1629_v0  ;;  %v1635_v6 = vld [vmem:[%s1882_s3 + $0x18] sm:$0xff] (!%p200_p2)   ;;  %v1637_v8 = vld [vmem:[%s1882_s3 + $0x20] sm:$0xff] (!%p200_p2)   ;;  %v1639_v10 = vld [vmem:[%s1882_s3 + $0x28] sm:$0xff] (!%p200_p2)  }
   0x8   : > { %1542 = vmatpush3.bf16.msra.mxu0 (!%p200_p2), %v1630_v1  ;;  %1495 = vmatprep.subr.bf16.mxu1 (!%p200_p2), %v1631_v2  ;;  %v1636_v7 = vld [vmem:[%s1881_s2 + $0x18] sm:$0xff] (!%p200_p2)   ;;  %v1638_v9 = vld [vmem:[%s1881_s2 + $0x20] sm:$0xff] (!%p200_p2)   ;;  %v1640_v11 = vld [vmem:[%s1881_s2 + $0x28] sm:$0xff] (!%p200_p2)  }
   0x9   : > { %1543 = vmatprep.subr.bf16.mxu0 (!%p200_p2), %v1632_v3  ;;  %v1641_v14 = vld [vmem:[%s1882_s3 + $0x30] sm:$0xff] (!%p200_p2)   ;;  %v1643_v16 = vld [vmem:[%s1882_s3 + $0x38] sm:$0xff] (!%p200_p2)   ;;  %v1820_v54 = vld [vmem:[%s1883_s4] ss:$0 sm:$0xff] (!%p200_p2) }
   0xa   : > { %v1642_v15 = vld [vmem:[%s1881_s2 + $0x30] sm:$0xff] (!%p200_p2)   ;;  %v1644_v17 = vld [vmem:[%s1881_s2 + $0x38] sm:$0xff] (!%p200_p2)  }
   0xb   : > { %1496 = vmatpush3.bf16.msra.mxu1 (!%p200_p2), %v1631_v2 }
   0xc   : > { %1544 = vmatpush3.bf16.msra.mxu0 (!%p200_p2), %v1632_v3  ;;  %1497 = vmatprep.subr.bf16.mxu1 (!%p200_p2), %v1633_v4 }
   0xd   : > { %s1886_s22 = smov (!%p233_p3, %s1229_s22), 63  ;;  %1545 = vmatprep.subr.bf16.mxu0 %v1634_v5 }
   0xe   : > { %s1747_s12 = sshll.u32 %s1886_s22, 2 }
   0xf   : > { %1498 = vmatpush3.bf16.msra.mxu1 %v1633_v4  ;;  %s1759_s20 = scalar_lea.vmem %s1880_s1, %s1747_s12  ;;  %s1768_s25 = scalar_lea.vmem %s1879_s0, %s1747_s12 }
  0x10   : > { %1546 = vmatpush3.bf16.msra.mxu0 %v1634_v5  ;;  %1499 = vmatprep.subr.bf16.mxu1 %v1635_v6  ;;  %v1645_v12 = vld [vmem:[%s1759_s20] sm:$0xff]   ;;  %v1647_v18 = vld [vmem:[%s1759_s20 + $0x8] sm:$0xff]   ;;  %v1649_v20 = vld [vmem:[%s1759_s20 + $0x10] sm:$0xff]   ;;  %s1829_s16 = scalar_lea.vmem %s1884_s5, %s1747_s12 }
  0x11   : > { %1547 = vmatprep.subr.bf16.mxu0 %v1636_v7  ;;  %v1646_v13 = vld [vmem:[%s1768_s25] sm:$0xff]   ;;  %1509 = vmatprep.mubr.bf16.mxu1 %v1645_v12  ;;  %v1648_v19 = vld [vmem:[%s1768_s25 + $0x8] sm:$0xff]   ;;  %v1650_v21 = vld [vmem:[%s1768_s25 + $0x10] sm:$0xff]  }
  0x12   : > { %1557 = vmatprep.mubr.bf16.mxu0 %v1646_v13  ;;  %v1651_v22 = vld [vmem:[%s1759_s20 + $0x18] sm:$0xff]   ;;  %v1653_v24 = vld [vmem:[%s1759_s20 + $0x20] sm:$0xff]   ;;  %v1655_v26 = vld [vmem:[%s1759_s20 + $0x28] sm:$0xff]  }
  0x13   : > { %1500 = vmatpush3.bf16.msra.mxu1 %v1635_v6  ;;  %v1652_v23 = vld [vmem:[%s1768_s25 + $0x18] sm:$0xff]   ;;  %v1654_v25 = vld [vmem:[%s1768_s25 + $0x20] sm:$0xff]   ;;  %v1656_v27 = vld [vmem:[%s1768_s25 + $0x28] sm:$0xff]  }
  0x14   : > { %1548 = vmatpush3.bf16.msra.mxu0 %v1636_v7  ;;  %1501 = vmatprep.subr.bf16.mxu1 %v1637_v8  ;;  %v1657_v28 = vld [vmem:[%s1759_s20 + $0x30] sm:$0xff]   ;;  %v1659_v30 = vld [vmem:[%s1759_s20 + $0x38] sm:$0xff]   ;;  %v1661_v32 = vld [vmem:[%s1759_s20 + $0x40] sm:$0xff]  }
  0x15   : > { %1549 = vmatprep.subr.bf16.mxu0 %v1638_v9  ;;  %v1658_v29 = vld [vmem:[%s1768_s25 + $0x30] sm:$0xff]   ;;  %v1660_v31 = vld [vmem:[%s1768_s25 + $0x38] sm:$0xff]   ;;  %v1662_v33 = vld [vmem:[%s1768_s25 + $0x40] sm:$0xff]  }
  0x16   : > { %v1663_v34 = vld [vmem:[%s1759_s20 + $0x48] sm:$0xff]   ;;  %v1665_v36 = vld [vmem:[%s1759_s20 + $0x50] sm:$0xff]   ;;  %v1667_v38 = vld [vmem:[%s1759_s20 + $0x58] sm:$0xff]  }
  0x17   : > { %1502 = vmatpush3.bf16.msra.mxu1 %v1637_v8  ;;  %v1664_v35 = vld [vmem:[%s1768_s25 + $0x48] sm:$0xff]   ;;  %v1666_v37 = vld [vmem:[%s1768_s25 + $0x50] sm:$0xff]   ;;  %v1668_v39 = vld [vmem:[%s1768_s25 + $0x58] sm:$0xff]  }
  0x18   : > { %1550 = vmatpush3.bf16.msra.mxu0 %v1638_v9  ;;  %1503 = vmatprep.subr.bf16.mxu1 %v1639_v10  ;;  %v1669_v40 = vld [vmem:[%s1759_s20 + $0x60] sm:$0xff]   ;;  %v1671_v42 = vld [vmem:[%s1759_s20 + $0x68] sm:$0xff]   ;;  %v1673_v44 = vld [vmem:[%s1759_s20 + $0x70] sm:$0xff]  }
  0x19   : > { %1551 = vmatprep.subr.bf16.mxu0 %v1640_v11  ;;  %v1670_v41 = vld [vmem:[%s1768_s25 + $0x60] sm:$0xff]   ;;  %v1672_v43 = vld [vmem:[%s1768_s25 + $0x68] sm:$0xff]   ;;  %v1674_v45 = vld [vmem:[%s1768_s25 + $0x70] sm:$0xff]  }
  0x1a   : > { %v1675_v46 = vld [vmem:[%s1759_s20 + $0x78] sm:$0xff]  }
  0x1b   : > { %1504 = vmatpush3.bf16.msra.mxu1 %v1639_v10  ;;  %v1676_v47 = vld [vmem:[%s1768_s25 + $0x78] sm:$0xff]  }
  0x1c   : > { %1552 = vmatpush3.bf16.msra.mxu0 %v1640_v11  ;;  %1505 = vmatprep.subr.bf16.mxu1 %v1641_v14 }
  0x1d   : > { %1553 = vmatprep.subr.bf16.mxu0 %v1642_v15 }
  0x1f   : > { %1506 = vmatpush3.bf16.msra.mxu1 %v1641_v14 }
  0x20   : > { %1554 = vmatpush3.bf16.msra.mxu0 %v1642_v15  ;;  %1507 = vmatprep.subr.bf16.mxu1 %v1643_v16 }
  0x21   : > { %1555 = vmatprep.subr.bf16.mxu0 %v1644_v17 }
  0x23   : > { %1508 = vmatpush3.bf16.msra.mxu1 %v1643_v16 }
  0x24   : > { %1556 = vmatpush3.bf16.msra.mxu0 %v1644_v17 }
  0x26   : > { %1510 = vmatmul.mubr.bf16.vlgmr.msra.gmra.mrb[0].mxu1 %v1647_v18 }
  0x27   : > { %1558 = vmatmul.mubr.bf16.vlgmr.msra.gmra.mrb[0].mxu0 %v1648_v19  ;;  %1513 = vmatprep.mubr.bf16.mxu1 %v1649_v20 }
  0x28   : > { %1561 = vmatprep.mubr.bf16.mxu0 %v1650_v21 }
  0x2e   : > { %1514 = vmatmul.mubr.bf16.gmra.mrb[4].mxu1 %v1651_v22 }
  0x2f   : > { %1562 = vmatmul.mubr.bf16.gmra.mrb[4].mxu0 %v1652_v23  ;;  %1517 = vmatprep.mubr.bf16.mxu1 %v1653_v24 }
  0x30   : > { %1565 = vmatprep.mubr.bf16.mxu0 %v1654_v25 }
  0x36   : > { %1518 = vmatmul.mubr.bf16.gmra.mrb[8].mxu1 %v1655_v26 }
  0x37   : > { %1566 = vmatmul.mubr.bf16.gmra.mrb[8].mxu0 %v1656_v27  ;;  %1521 = vmatprep.mubr.bf16.mxu1 %v1657_v28 }
  0x38   : > { %1569 = vmatprep.mubr.bf16.mxu0 %v1658_v29 }
  0x3e   : > { %1522 = vmatmul.mubr.bf16.gmra.mrb[12].mxu1 %v1659_v30 }
  0x3f   : > { %1570 = vmatmul.mubr.bf16.gmra.mrb[12].mxu0 %v1660_v31  ;;  %1525 = vmatprep.mubr.bf16.mxu1 %v1661_v32 }
  0x40   : > { %1573 = vmatprep.mubr.bf16.mxu0 %v1662_v33 }
  0x46   : > { %1526 = vmatmul.mubr.bf16.gmra.mrb[16].mxu1 %v1663_v34 }
  0x47   : > { %1574 = vmatmul.mubr.bf16.gmra.mrb[16].mxu0 %v1664_v35  ;;  %1529 = vmatprep.mubr.bf16.mxu1 %v1665_v36 }
  0x48   : > { %1577 = vmatprep.mubr.bf16.mxu0 %v1666_v37 }
  0x4e   : > { %1530 = vmatmul.mubr.bf16.gmra.mrb[20].mxu1 %v1667_v38 }
  0x4f   : > { %1578 = vmatmul.mubr.bf16.gmra.mrb[20].mxu0 %v1668_v39  ;;  %1533 = vmatprep.mubr.bf16.mxu1 %v1669_v40 }
  0x50   : > { %1581 = vmatprep.mubr.bf16.mxu0 %v1670_v41 }
  0x56   : > { %1534 = vmatmul.mubr.bf16.gmra.mrb[24].mxu1 %v1671_v42 }
  0x57   : > { %1582 = vmatmul.mubr.bf16.gmra.mrb[24].mxu0 %v1672_v43  ;;  %1537 = vmatprep.mubr.bf16.mxu1 %v1673_v44 }
  0x58   : > { %1585 = vmatprep.mubr.bf16.mxu0 %v1674_v45 }
  0x5e   : > { %1538 = vmatmul.mubr.bf16.gmra.mrb[28].mxu1 %v1675_v46 }
  0x5f   : > { %1586 = vmatmul.mubr.bf16.gmra.mrb[28].mxu0 %v1676_v47 }
  0xf9   : > { %v1511_v48 = vpop.f32.mrb[0].mxu1 }
  0xfa   : > { %v1559_v49 = vpop.f32.mrb[0].mxu0  ;;  %v525_v50 = vpop.f32.mrb[1].mxu1 }
  0xfb   : > { %v839_v51 = vadd.f32 %v1559_v49, %v1511_v48  ;;  %v830_v52 = vpop.f32.mrb[1].mxu0  ;;  %v1512_v53 = vpop.f32.mrb[2].mxu1 }
  0xfc   : > { %v831_v55 = vadd.f32 %v830_v52, %v525_v50  ;;  %v1560_v56 = vpop.f32.mrb[2].mxu0  ;;  %v528_v57 = vpop.f32.mrb[3].mxu1 }
  0xfd   : > { %v842_v58 = vadd.f32 %v1560_v56, %v1512_v53  ;;  %v833_v59 = vpop.f32.mrb[3].mxu0  ;;  %v966_v61 = vadd.f32 %v1820_v54, %v839_v51 }
  0xfe   : > { %v834_v60 = vadd.f32 %v833_v59, %v528_v57  ;;  %v964_v63 = vadd.f32 %v1820_v54, %v831_v55 }
  0xff   : > { %v967_v62 = vadd.f32 %v1820_v54, %v842_v58 }
 0x100   : > { %v965_v0 = vadd.f32 %v1820_v54, %v834_v60 }
 0x101   : > { %v1358_v1 = vpack.c.bf16 %v967_v62, %v966_v61  ;;  %v1515_v2 = vpop.f32.mrb[4].mxu1 }
 0x102   : > { %v1353_v3 = vpack.c.bf16 %v965_v0, %v964_v63  ;;  %v1563_v4 = vpop.f32.mrb[4].mxu0  ;;  %v541_v5 = vpop.f32.mrb[5].mxu1 }
 0x103   : > { %1430 = vst [vmem:[%s1829_s16 + $0x8] sm:$0xff] %v1358_v1   ;;  %v855_v6 = vadd.f32 %v1563_v4, %v1515_v2  ;;  %v846_v7 = vpop.f32.mrb[5].mxu0  ;;  %v1516_v8 = vpop.f32.mrb[6].mxu1 }
 0x104   : > { %1354 = vst [vmem:[%s1829_s16] sm:$0xff] %v1353_v3   ;;  %v847_v9 = vadd.f32 %v846_v7, %v541_v5  ;;  %v1564_v10 = vpop.f32.mrb[6].mxu0  ;;  %v544_v11 = vpop.f32.mrb[7].mxu1 }
 0x105   : > { %v858_v12 = vadd.f32 %v1564_v10, %v1516_v8  ;;  %v849_v13 = vpop.f32.mrb[7].mxu0  ;;  %v970_v15 = vadd.f32 %v1820_v54, %v855_v6 }
 0x106   : > { %v850_v14 = vadd.f32 %v849_v13, %v544_v11  ;;  %v968_v17 = vadd.f32 %v1820_v54, %v847_v9 }
 0x107   : > { %v971_v16 = vadd.f32 %v1820_v54, %v858_v12 }
 0x108   : > { %v969_v18 = vadd.f32 %v1820_v54, %v850_v14 }
 0x109   : > { %v1368_v19 = vpack.c.bf16 %v971_v16, %v970_v15  ;;  %v1519_v20 = vpop.f32.mrb[8].mxu1 }
 0x10a   : > { %v1363_v21 = vpack.c.bf16 %v969_v18, %v968_v17  ;;  %v1567_v22 = vpop.f32.mrb[8].mxu0  ;;  %v557_v23 = vpop.f32.mrb[9].mxu1 }
 0x10b   : > { %1432 = vst [vmem:[%s1829_s16 + $0x18] sm:$0xff] %v1368_v19   ;;  %v871_v24 = vadd.f32 %v1567_v22, %v1519_v20  ;;  %v862_v25 = vpop.f32.mrb[9].mxu0  ;;  %v1520_v26 = vpop.f32.mrb[10].mxu1 }
 0x10c   : > { %1431 = vst [vmem:[%s1829_s16 + $0x10] sm:$0xff] %v1363_v21   ;;  %v863_v27 = vadd.f32 %v862_v25, %v557_v23  ;;  %v1568_v28 = vpop.f32.mrb[10].mxu0  ;;  %v560_v29 = vpop.f32.mrb[11].mxu1 }
 0x10d   : > { %v874_v30 = vadd.f32 %v1568_v28, %v1520_v26  ;;  %v865_v31 = vpop.f32.mrb[11].mxu0  ;;  %v974_v33 = vadd.f32 %v1820_v54, %v871_v24 }
 0x10e   : > { %v866_v32 = vadd.f32 %v865_v31, %v560_v29  ;;  %v972_v35 = vadd.f32 %v1820_v54, %v863_v27 }
 0x10f   : > { %v975_v34 = vadd.f32 %v1820_v54, %v874_v30 }
 0x110   : > { %v973_v36 = vadd.f32 %v1820_v54, %v866_v32 }
 0x111   : > { %v1378_v37 = vpack.c.bf16 %v975_v34, %v974_v33  ;;  %v1523_v38 = vpop.f32.mrb[12].mxu1 }
 0x112   : > { %v1373_v39 = vpack.c.bf16 %v973_v36, %v972_v35  ;;  %v1571_v40 = vpop.f32.mrb[12].mxu0  ;;  %v573_v41 = vpop.f32.mrb[13].mxu1 }
 0x113   : > { %1434 = vst [vmem:[%s1829_s16 + $0x28] sm:$0xff] %v1378_v37   ;;  %v887_v42 = vadd.f32 %v1571_v40, %v1523_v38  ;;  %v878_v43 = vpop.f32.mrb[13].mxu0  ;;  %v1524_v44 = vpop.f32.mrb[14].mxu1 }
 0x114   : > { %1433 = vst [vmem:[%s1829_s16 + $0x20] sm:$0xff] %v1373_v39   ;;  %v879_v45 = vadd.f32 %v878_v43, %v573_v41  ;;  %v1572_v46 = vpop.f32.mrb[14].mxu0  ;;  %v576_v47 = vpop.f32.mrb[15].mxu1 }
 0x115   : > { %v890_v48 = vadd.f32 %v1572_v46, %v1524_v44  ;;  %v881_v49 = vpop.f32.mrb[15].mxu0  ;;  %v978_v51 = vadd.f32 %v1820_v54, %v887_v42 }
 0x116   : > { %v882_v50 = vadd.f32 %v881_v49, %v576_v47  ;;  %v976_v53 = vadd.f32 %v1820_v54, %v879_v45 }
 0x117   : > { %v979_v52 = vadd.f32 %v1820_v54, %v890_v48 }
 0x118   : > { %v977_v55 = vadd.f32 %v1820_v54, %v882_v50 }
 0x119   : > { %v1388_v56 = vpack.c.bf16 %v979_v52, %v978_v51  ;;  %v1527_v57 = vpop.f32.mrb[16].mxu1 }
 0x11a   : > { %v1383_v58 = vpack.c.bf16 %v977_v55, %v976_v53  ;;  %v1575_v59 = vpop.f32.mrb[16].mxu0  ;;  %v589_v60 = vpop.f32.mrb[17].mxu1 }
 0x11b   : > { %1436 = vst [vmem:[%s1829_s16 + $0x38] sm:$0xff] %v1388_v56   ;;  %v903_v61 = vadd.f32 %v1575_v59, %v1527_v57  ;;  %v894_v62 = vpop.f32.mrb[17].mxu0  ;;  %v1528_v63 = vpop.f32.mrb[18].mxu1 }
 0x11c   : > { %1435 = vst [vmem:[%s1829_s16 + $0x30] sm:$0xff] %v1383_v58   ;;  %v895_v0 = vadd.f32 %v894_v62, %v589_v60  ;;  %v1576_v1 = vpop.f32.mrb[18].mxu0  ;;  %v592_v2 = vpop.f32.mrb[19].mxu1 }
 0x11d   : > { %v906_v3 = vadd.f32 %v1576_v1, %v1528_v63  ;;  %v897_v4 = vpop.f32.mrb[19].mxu0  ;;  %v982_v6 = vadd.f32 %v1820_v54, %v903_v61 }
 0x11e   : > { %v898_v5 = vadd.f32 %v897_v4, %v592_v2  ;;  %v980_v8 = vadd.f32 %v1820_v54, %v895_v0 }
 0x11f   : > { %v983_v7 = vadd.f32 %v1820_v54, %v906_v3 }
 0x120   : > { %v981_v9 = vadd.f32 %v1820_v54, %v898_v5 }
 0x121   : > { %v1398_v10 = vpack.c.bf16 %v983_v7, %v982_v6  ;;  %v1531_v11 = vpop.f32.mrb[20].mxu1 }
 0x122   : > { %v1393_v12 = vpack.c.bf16 %v981_v9, %v980_v8  ;;  %v1579_v13 = vpop.f32.mrb[20].mxu0  ;;  %v605_v14 = vpop.f32.mrb[21].mxu1 }
 0x123   : > { %1438 = vst [vmem:[%s1829_s16 + $0x48] sm:$0xff] %v1398_v10   ;;  %v919_v15 = vadd.f32 %v1579_v13, %v1531_v11  ;;  %v910_v16 = vpop.f32.mrb[21].mxu0  ;;  %v1532_v17 = vpop.f32.mrb[22].mxu1 }
 0x124   : > { %1437 = vst [vmem:[%s1829_s16 + $0x40] sm:$0xff] %v1393_v12   ;;  %v911_v18 = vadd.f32 %v910_v16, %v605_v14  ;;  %v1580_v19 = vpop.f32.mrb[22].mxu0  ;;  %v608_v20 = vpop.f32.mrb[23].mxu1 }
 0x125   : > { %v922_v21 = vadd.f32 %v1580_v19, %v1532_v17  ;;  %v913_v22 = vpop.f32.mrb[23].mxu0  ;;  %v986_v24 = vadd.f32 %v1820_v54, %v919_v15 }
 0x126   : > { %v914_v23 = vadd.f32 %v913_v22, %v608_v20  ;;  %v984_v26 = vadd.f32 %v1820_v54, %v911_v18 }
 0x127   : > { %v987_v25 = vadd.f32 %v1820_v54, %v922_v21 }
 0x128   : > { %v985_v27 = vadd.f32 %v1820_v54, %v914_v23 }
 0x129   : > { %v1408_v28 = vpack.c.bf16 %v987_v25, %v986_v24  ;;  %v1535_v29 = vpop.f32.mrb[24].mxu1 }
 0x12a   : > { %v1403_v30 = vpack.c.bf16 %v985_v27, %v984_v26  ;;  %v1583_v31 = vpop.f32.mrb[24].mxu0  ;;  %v621_v32 = vpop.f32.mrb[25].mxu1 }
 0x12b   : > { %1440 = vst [vmem:[%s1829_s16 + $0x58] sm:$0xff] %v1408_v28   ;;  %v935_v33 = vadd.f32 %v1583_v31, %v1535_v29  ;;  %v926_v34 = vpop.f32.mrb[25].mxu0  ;;  %v1536_v35 = vpop.f32.mrb[26].mxu1 }
 0x12c   : > { %1439 = vst [vmem:[%s1829_s16 + $0x50] sm:$0xff] %v1403_v30   ;;  %v927_v36 = vadd.f32 %v926_v34, %v621_v32  ;;  %v1584_v37 = vpop.f32.mrb[26].mxu0  ;;  %v624_v38 = vpop.f32.mrb[27].mxu1 }
 0x12d   : > { %v938_v39 = vadd.f32 %v1584_v37, %v1536_v35  ;;  %v929_v40 = vpop.f32.mrb[27].mxu0  ;;  %v990_v42 = vadd.f32 %v1820_v54, %v935_v33 }
 0x12e   : > { %v930_v41 = vadd.f32 %v929_v40, %v624_v38  ;;  %v988_v44 = vadd.f32 %v1820_v54, %v927_v36 }
 0x12f   : > { %v991_v43 = vadd.f32 %v1820_v54, %v938_v39 }
 0x130   : > { %v989_v45 = vadd.f32 %v1820_v54, %v930_v41 }
 0x131   : > { %v1418_v46 = vpack.c.bf16 %v991_v43, %v990_v42  ;;  %v1539_v47 = vpop.f32.mrb[28].mxu1 }
 0x132   : > { %v1413_v48 = vpack.c.bf16 %v989_v45, %v988_v44  ;;  %v1587_v49 = vpop.f32.mrb[28].mxu0  ;;  %v637_v50 = vpop.f32.mrb[29].mxu1 }
 0x133   : > { %1442 = vst [vmem:[%s1829_s16 + $0x68] sm:$0xff] %v1418_v46   ;;  %v951_v51 = vadd.f32 %v1587_v49, %v1539_v47  ;;  %v942_v52 = vpop.f32.mrb[29].mxu0  ;;  %v1540_v53 = vpop.f32.mrb[30].mxu1 }
 0x134   : > { %1441 = vst [vmem:[%s1829_s16 + $0x60] sm:$0xff] %v1413_v48   ;;  %v943_v55 = vadd.f32 %v942_v52, %v637_v50  ;;  %v1588_v56 = vpop.f32.mrb[30].mxu0  ;;  %v640_v57 = vpop.f32.mrb[31].mxu1 }
 0x135   : > { %v954_v58 = vadd.f32 %v1588_v56, %v1540_v53  ;;  %v945_v59 = vpop.f32.mrb[31].mxu0  ;;  %v994_v61 = vadd.f32 %v1820_v54, %v951_v51 }
 0x136   : > { %v946_v60 = vadd.f32 %v945_v59, %v640_v57  ;;  %v992_v63 = vadd.f32 %v1820_v54, %v943_v55 }
 0x137   : > { %v995_v62 = vadd.f32 %v1820_v54, %v954_v58 }
 0x138   : > { %v993_v0 = vadd.f32 %v1820_v54, %v946_v60 }
 0x139   : > { %v1428_v1 = vpack.c.bf16 %v995_v62, %v994_v61 }
 0x13a   : > { %v1423_v2 = vpack.c.bf16 %v993_v0, %v992_v63 }
 0x13b   : > { %1444 = vst [vmem:[%s1829_s16 + $0x78] sm:$0xff] %v1428_v1  }
 0x13c   : > { %1443 = vst [vmem:[%s1829_s16 + $0x70] sm:$0xff] %v1423_v2  }
 0x13d PF: > { %s15_s18 = sadd.s32 1, %s1683_s18  }
 0x13e   : > { %p12_p4 = scmp.ge.s32.totalorder %s15_s18, 4  }
 0x140   :  { %14 = sbr.rel (!%p12_p4) target bundleno = 1 (0x1), region = 73 }

// kernel: _decoder_forward.15
= control target key start
LH: loop header
LB: loop body
LE: loop exit
PB: predicated region body
PF: predicated region fallthrough
CT: control target
= control target key end

     0   :  { %s2693_s15 = smov 0   ;;  %s2695_s16 = smov 0   ;;  %s5113_s0 = inlined_call_operand.vmem [shape: bf16[2,32,18,128], index: 0, kind: input, shape index: {}, may-alias: {0,1}]   ;;  %s5114_s1 = inlined_call_operand.vmem [shape: bf16[2,32,18,128], index: 1, kind: input, shape index: {}, may-alias: {0,1}]   ;;  %s5115_s2 = inlined_call_operand.vmem [shape: f32[9,128], index: 2, kind: input, shape index: {}]   ;;  %s5116_s3 = inlined_call_operand.vmem [shape: f32[1,128], index: 3, kind: input, shape index: {}]   ;;  %s5117_s4 = inlined_call_operand.vmem [shape: bf16[2,16,16,128], index: 4, kind: output, shape index: {}]  }
   0x1   :  { %s2697_s17 = smov 0  }
   0x2 LB: > { %s26_s18 = sadd.s32 1, %s2662_s16  ;;  %p2395_p0 = scmp.ge.s32.totalorder %s2666_s17, 1  ;;  %s2666_s17 = sphi %s2697_s17, %s14_s17   ;;  %s2662_s16 = sphi %s2695_s16, %s5987_s16   ;;  %s2658_s15 = sphi %s2693_s15, %s5986_s15  }
   0x3   : > { %p28_p1 = scmp.ge.s32.totalorder %s26_s18, 2  ;;  %p206_p2 = scmp.lt.s32.totalorder %s2666_s17, 3 }
   0x5   : > { %s5989_s18 = smov (%p28_p1, %s26_s18), 0  ;;  %p207_p3 = pnand %p2395_p0, %p206_p2 }
   0x7   : > { %210 = sbr.rel (%p207_p3) target bundleno = 384 (0x180), region = 36 }
   0xe   : > { %p254_p4 = scmp.lt.s32.totalorder %s2658_s15, 1  ;;  %vm566_vm0 = vcmask 1046528   ;;  %vm812_vm1 = vcmask 1045504  }
  0x10   : > { %s5991_s15 = smov (!%p254_p4, %s2658_s15), 1 }
  0x11   : > { %s2617_s19 = smul.u32 384, %s5991_s15  ;;  %s2446_s25 = sshll.u32 %s5991_s15, 7 }
  0x12   : > { %s5086_s28 = scalar_lea.vmem %s5117_s4, %s2446_s25 }
  0x13   : > { %s2717_s22 = scalar_lea.vmem %s5113_s0, %s2617_s19  ;;  %s2445_s23 = sadd.s32 192, %s2617_s19 }
  0x14   : > { %v2480_v0 = vld [vmem:[%s2717_s22] sm:$0xff]   ;;  %v2721_v1 = vld [vmem:[%s2717_s22 + $0x8] sm:$0x1]  ;;  %v291_v2 = vld [vmem:[%s2717_s22 + $0xc] sm:$0xff]   ;;  %s2792_s26 = scalar_lea.vmem %s5114_s1, %s2445_s23 }
  0x15   : > { %5227 = vst [vmem:[#allocation2_spill] sm:$0xff] %v2721_v1  ;;  %v2724_v3 = vunpack.c.l.bf16 %v2480_v0  ;;  %v2726_v4 = vunpack.c.h.bf16 %v2480_v0  ;;  %v293_v5 = vld [vmem:[%s2717_s22 + $0x14] sm:$0x1]  ;;  %v2595_v6 = vld [vmem:[%s2717_s22 + $0x18] sm:$0xff]   ;;  %v296_v7 = vld [vmem:[%s2717_s22 + $0x20] sm:$0x1]  ;;  %v2732_v9 = vunpack.c.l.bf16 %v291_v2  ;;  %v2741_v15 = vunpack.c.h.bf16 %v291_v2 }
  0x16   : > { %v2734_v10 = vunpack.c.l.bf16 %v2595_v6  ;;  %v2736_v11 = vunpack.c.h.bf16 %v2595_v6  ;;  %v297_v12 = vld [vmem:[%s2717_s22 + $0x24] sm:$0xff]   ;;  %v299_v13 = vld [vmem:[%s2717_s22 + $0x2c] sm:$0x1]  ;;  %v2596_v14 = vld [vmem:[%s2717_s22 + $0x30] sm:$0xff]   ;;  %v2743_v16 = vunpack.c.l.bf16 %v293_v5  ;;  %v2752_v22 = vunpack.c.l.bf16 %v296_v7 }
  0x17   : > { %5228 = vst [vmem:[#allocation3_spill] sm:$0xff] %v2724_v3  ;;  %5229 = vst [vmem:[#allocation4_spill] sm:$0xff] %v2726_v4  ;;  %v2745_v17 = vunpack.c.l.bf16 %v2596_v14  ;;  %v2747_v18 = vunpack.c.h.bf16 %v2596_v14  ;;  %v302_v19 = vld [vmem:[%s2717_s22 + $0x38] sm:$0x1]  ;;  %v303_v20 = vld [vmem:[%s2717_s22 + $0x3c] sm:$0xff]   ;;  %v2754_v23 = vunpack.c.l.bf16 %v297_v12  ;;  %v2759_v27 = vunpack.c.h.bf16 %v297_v12 }
  0x18   : > { %5230 = vst [vmem:[#allocation5_spill] sm:$0xff] %v2732_v9  ;;  %5231 = vst [vmem:[#allocation6_spill] sm:$0xff] %v2734_v10  ;;  %v305_v21 = vld [vmem:[%s2717_s22 + $0x44] sm:$0x1]  ;;  %v2597_v24 = vld [vmem:[%s2717_s22 + $0x48] sm:$0xff]   ;;  %v2761_v28 = vunpack.c.l.bf16 %v299_v13  ;;  %v2763_v29 = vunpack.c.l.bf16 %v302_v19  ;;  %v2765_v30 = vunpack.c.l.bf16 %v303_v20  ;;  %v2774_v36 = vunpack.c.h.bf16 %v303_v20 }
  0x19   : > { %5232 = vst [vmem:[#allocation7_spill] sm:$0xff] %v2736_v11  ;;  %5233 = vst [vmem:[#allocation8_spill] sm:$0xff] %v2741_v15  ;;  %v308_v25 = vld [vmem:[%s2717_s22 + $0x50] sm:$0x1]  ;;  %v309_v26 = vld [vmem:[%s2717_s22 + $0x54] sm:$0xff]   ;;  %v2767_v31 = vunpack.c.l.bf16 %v2597_v24  ;;  %v2769_v32 = vunpack.c.h.bf16 %v2597_v24  ;;  %v2776_v37 = vunpack.c.l.bf16 %v305_v21 }
  0x1a   : > { %5234 = vst [vmem:[#allocation9_spill] sm:$0xff] %v2743_v16  ;;  %5235 = vst [vmem:[#allocation10_spill] sm:$0xff] %v2745_v17  ;;  %v311_v33 = vld [vmem:[%s2717_s22 + $0x5c] sm:$0x1]  ;;  %v2598_v34 = vld [vmem:[%s2717_s22 + $0x60] sm:$0xff]   ;;  %v2785_v43 = vunpack.c.l.bf16 %v308_v25  ;;  %v2787_v44 = vunpack.c.l.bf16 %v309_v26  ;;  %v2801_v50 = vunpack.c.h.bf16 %v309_v26 }
  0x1b   : > { %5236 = vst [vmem:[#allocation11_spill] sm:$0xff] %v2747_v18  ;;  %5237 = vst [vmem:[#allocation12_spill] sm:$0xff] %v2752_v22  ;;  %v314_v35 = vld [vmem:[%s2717_s22 + $0x68] sm:$0x1]  ;;  %v2778_v38 = vunpack.c.l.bf16 %v2598_v34  ;;  %v2780_v39 = vunpack.c.h.bf16 %v2598_v34  ;;  %v315_v40 = vld [vmem:[%s2717_s22 + $0x6c] sm:$0xff]   ;;  %v2803_v51 = vunpack.c.l.bf16 %v311_v33 }
  0x1c   : > { %5238 = vst [vmem:[#allocation13_spill] sm:$0xff] %v2754_v23  ;;  %5239 = vst [vmem:[#allocation14_spill] sm:$0xff] %v2759_v27  ;;  %v317_v41 = vld [vmem:[%s2717_s22 + $0x74] sm:$0x1]  ;;  %v2599_v42 = vld [vmem:[%s2717_s22 + $0x78] sm:$0xff]   ;;  %v2808_v55 = vunpack.c.l.bf16 %v314_v35  ;;  %v2810_v56 = vunpack.c.l.bf16 %v315_v40  ;;  %v2812_v57 = vunpack.c.h.bf16 %v315_v40 }
  0x1d   : > { %5240 = vst [vmem:[#allocation15_spill] sm:$0xff] %v2761_v28  ;;  %5241 = vst [vmem:[#allocation16_spill] sm:$0xff] %v2763_v29  ;;  %v2794_v45 = vunpack.c.l.bf16 %v2599_v42  ;;  %v2796_v46 = vunpack.c.h.bf16 %v2599_v42  ;;  %v320_v47 = vld [vmem:[%s2717_s22 + $0x80] sm:$0x1]  ;;  %v321_v48 = vld [vmem:[%s2717_s22 + $0x84] sm:$0xff]   ;;  %v2814_v58 = vunpack.c.l.bf16 %v317_v41 }
  0x1e   : > { %5242 = vst [vmem:[#allocation17_spill] sm:$0xff] %v2765_v30  ;;  %5243 = vst [vmem:[#allocation18_spill] sm:$0xff] %v2767_v31  ;;  %v323_v49 = vld [vmem:[%s2717_s22 + $0x8c] sm:$0x1]  ;;  %v2600_v52 = vld [vmem:[%s2717_s22 + $0x90] sm:$0xff]   ;;  %v2823_v0 = vunpack.c.l.bf16 %v320_v47  ;;  %v2825_v2 = vunpack.c.l.bf16 %v321_v48  ;;  %v2837_v19 = vunpack.c.h.bf16 %v321_v48 }
  0x1f   : > { %5244 = vst [vmem:[#allocation19_spill] sm:$0xff] %v2769_v32  ;;  %5245 = vst [vmem:[#allocation20_spill] sm:$0xff] %v2774_v36  ;;  %v326_v53 = vld [vmem:[%s2717_s22 + $0x98] sm:$0x1]  ;;  %v327_v54 = vld [vmem:[%s2717_s22 + $0x9c] sm:$0xff]   ;;  %v2816_v59 = vunpack.c.l.bf16 %v2600_v52  ;;  %v2818_v60 = vunpack.c.h.bf16 %v2600_v52  ;;  %v2839_v20 = vunpack.c.l.bf16 %v323_v49 }
  0x20   : > { %5246 = vst [vmem:[#allocation21_spill] sm:$0xff] %v2776_v37  ;;  %5247 = vst [vmem:[#allocation22_spill] sm:$0xff] %v2778_v38  ;;  %v329_v61 = vld [vmem:[%s2717_s22 + $0xa4] sm:$0x1]  ;;  %v2601_v62 = vld [vmem:[%s2717_s22 + $0xa8] sm:$0xff]   ;;  %v2850_v34 = vunpack.c.l.bf16 %v326_v53  ;;  %v2852_v35 = vunpack.c.l.bf16 %v327_v54  ;;  %v2854_v40 = vunpack.c.h.bf16 %v327_v54 }
  0x21   : > { %5248 = vst [vmem:[#allocation23_spill] sm:$0xff] %v2780_v39  ;;  %5249 = vst [vmem:[#allocation24_spill] sm:$0xff] %v2785_v43  ;;  %v332_v63 = vld [vmem:[%s2717_s22 + $0xb0] sm:$0x1]  ;;  %v2400_v5 = vld [vmem:[%s5115_s2] ss:$0 sm:$0xff]  ;;  %v2830_v6 = vunpack.c.l.bf16 %v2601_v62  ;;  %v2832_v7 = vunpack.c.h.bf16 %v2601_v62  ;;  %v2856_v41 = vunpack.c.l.bf16 %v329_v61 }
  0x22   : > { %5250 = vst [vmem:[#allocation25_spill] sm:$0xff] %v2787_v44  ;;  %5251 = vst [vmem:[#allocation26_spill] sm:$0xff] %v2794_v45  ;;  %v333_v12 = vld [vmem:[%s2717_s22 + $0xb4] sm:$0xff]   ;;  %v335_v13 = vld [vmem:[%s2717_s22 + $0xbc] sm:$0x1]  ;;  %v2858_v42 = vunpack.c.l.bf16 %v332_v63  ;;  %v2874_v54 = vmul.f32 %v2724_v3, %v2400_v5  ;;  %v2877_v61 = vmul.f32 %v2726_v4, %v2400_v5  ;;  %v2880_v63 = vmul.f32 %v2400_v5, %v2732_v9 }
  0x23   : > { %5252 = vst [vmem:[#allocation27_spill] sm:$0xff] %v2796_v46  ;;  %5253 = vst [vmem:[#allocation28_spill] sm:$0xff] %v2801_v50  ;;  %v2512_v14 = vld [vmem:[%s2792_s26] sm:$0xff]   ;;  %v338_v25 = vld [vmem:[%s2792_s26 + $0x8] sm:$0x1]  ;;  %v2860_v47 = vunpack.c.l.bf16 %v333_v12  ;;  %v2862_v48 = vunpack.c.h.bf16 %v333_v12  ;;  %v2864_v49 = vunpack.c.l.bf16 %v335_v13  ;;  %v2883_v12 = vmul.f32 %v2400_v5, %v2741_v15 }
  0x24   : > { %5254 = vst [vmem:[#allocation29_spill] sm:$0xff] %v2803_v51  ;;  %5255 = vst [vmem:[#allocation30_spill] sm:$0xff] %v2808_v55  ;;  %v2841_v21 = vunpack.c.l.bf16 %v2512_v14  ;;  %v2843_v24 = vunpack.c.h.bf16 %v2512_v14  ;;  %v339_v26 = vld [vmem:[%s2792_s26 + $0xc] sm:$0xff]   ;;  %v2848_v33 = vld [vmem:[%s2792_s26 + $0x14] sm:$0x1]  ;;  %v2866_v52 = vunpack.c.l.bf16 %v338_v25  ;;  %v2886_v13 = vmul.f32 %v2734_v10, %v2400_v5 }
  0x25   : > { %5256 = vst [vmem:[#allocation31_spill] sm:$0xff] %v2810_v56  ;;  %5257 = vst [vmem:[#allocation32_spill] sm:$0xff] %v2812_v57  ;;  %v2868_v62 = vunpack.c.l.bf16 %v339_v26  ;;  %v2870_v53 = vunpack.c.h.bf16 %v339_v26  ;;  %v2889_v25 = vmul.f32 %v2736_v11, %v2400_v5  ;;  %v2892_v26 = vmul.f32 %v2400_v5, %v2754_v23 }
  0x26   : > { %5258 = vst [vmem:[#allocation33_spill] sm:$0xff] %v2814_v58  ;;  %5259 = vst [vmem:[#allocation34_spill] sm:$0xff] %v2816_v59  ;;  %v2895_v14 = vmul.f32 %v2400_v5, %v2759_v27  ;;  %v2898_v8 = vmul.f32 %v2745_v17, %v2400_v5 }
  0x27   : > { %5260 = vst [vmem:[#allocation35_spill] sm:$0xff] %v2818_v60  ;;  %5261 = vst [vmem:[#allocation36_spill] sm:$0xff] %v2823_v0 }
  0x28   : > { %5262 = vst [vmem:[#allocation37_spill] sm:$0xff] %v2825_v2  ;;  %5263 = vst [vmem:[#allocation38_spill] sm:$0xff] %v2830_v6 }
  0x29   : > { %5264 = vst [vmem:[#allocation39_spill] sm:$0xff] %v2832_v7  ;;  %5265 = vst [vmem:[#allocation40_spill] sm:$0xff] %v2837_v19 }
  0x2a   : > { %5266 = vst [vmem:[#allocation41_spill] sm:$0xff] %v2839_v20  ;;  %5267 = vst [vmem:[#allocation42_spill] sm:$0xff] %v2841_v21  ;;  %v2916_v21 = vmul.f32 %v2400_v5, %v2787_v44 }
  0x2b   : > { %5268 = vst [vmem:[#allocation43_spill] sm:$0xff] %v2843_v24  ;;  %5269 = vst [vmem:[#allocation44_spill] sm:$0xff] %v2848_v33  ;;  %v2901_v33 = vmul.f32 %v2747_v18, %v2400_v5  ;;  %v2913_v24 = vmul.f32 %v2769_v32, %v2400_v5 }
  0x2c   : > { %5270 = vst [vmem:[#allocation45_spill] sm:$0xff] %v2850_v34  ;;  %5271 = vst [vmem:[#allocation46_spill] sm:$0xff] %v2852_v35 }
  0x2d   : > { %5272 = vst [vmem:[#allocation47_spill] sm:$0xff] %v2854_v40  ;;  %5273 = vst [vmem:[#allocation48_spill] sm:$0xff] %v2856_v41 }
  0x2e   : > { %5274 = vst [vmem:[#allocation49_spill] sm:$0xff] %v2858_v42  ;;  %5275 = vst [vmem:[#allocation50_spill] sm:$0xff] %v2860_v47 }
  0x2f   : > { %5276 = vst [vmem:[#allocation51_spill] sm:$0xff] %v2862_v48  ;;  %5277 = vst [vmem:[#allocation52_spill] sm:$0xff] %v2864_v49 }
  0x30   : > { %5278 = vst [vmem:[#allocation53_spill] sm:$0xff] %v2866_v52  ;;  %5279 = vst [vmem:[#allocation54_spill] sm:$0xff] %v2868_v62  ;;  %v2907_v62 = vmul.f32 %v2400_v5, %v2774_v36  ;;  %v2910_v52 = vmul.f32 %v2767_v31, %v2400_v5 }
  0x31   : > { %5280 = vst [vmem:[#allocation55_spill] sm:$0xff] %v2870_v53  ;;  %5281 = vst [vmem:[#allocation56_spill] sm:$0xff] %v2880_v63  ;;  %v2904_v53 = vmul.f32 %v2400_v5, %v2765_v30 }
  0x32   : > { %5282 = vst [vmem:[#allocation57_spill] sm:$0xff] %v2883_v12  ;;  %5283 = vst [vmem:[#allocation58_spill] sm:$0xff] %v2886_v13 }
  0x33   : > { %5284 = vst [vmem:[#allocation59_spill] sm:$0xff] %v2889_v25  ;;  %5285 = vst [vmem:[#allocation60_spill] sm:$0xff] %v2892_v26 }
  0x34   : > { %5286 = vst [vmem:[#allocation61_spill] sm:$0xff] %v2895_v14  ;;  %5287 = vst [vmem:[#allocation62_spill] sm:$0xff] %v2898_v8  ;;  %v2919_v8 = vmul.f32 %v2400_v5, %v2801_v50  ;;  %v2961_v14 = vmul.f32 %v2830_v6, %v2400_v5 }
  0x35   : > { %5288 = vst [vmem:[#allocation63_spill] sm:$0xff] %v2901_v33  ;;  %5289 = vst [vmem:[#allocation64_spill] sm:$0xff] %v2904_v53  ;;  %v2922_v33 = vmul.f32 %v2778_v38, %v2400_v5  ;;  %v2925_v53 = vmul.f32 %v2780_v39, %v2400_v5 }
  0x36   : > { %5290 = vst [vmem:[#allocation65_spill] sm:$0xff] %v2907_v62  ;;  %5291 = vst [vmem:[#allocation66_spill] sm:$0xff] %v2910_v52  ;;  %v2928_v62 = vmul.f32 %v2400_v5, %v2810_v56  ;;  %v2931_v52 = vmul.f32 %v2400_v5, %v2812_v57 }
  0x37   : > { %5292 = vst [vmem:[#allocation67_spill] sm:$0xff] %v2913_v24  ;;  %5293 = vst [vmem:[#allocation68_spill] sm:$0xff] %v2916_v21  ;;  %v2934_v24 = vmul.f32 %v2794_v45, %v2400_v5  ;;  %v2937_v21 = vmul.f32 %v2796_v46, %v2400_v5 }
  0x38   : > { %5294 = vst [vmem:[#allocation69_spill] sm:$0xff] %v2919_v8  ;;  %5295 = vst [vmem:[#allocation70_spill] sm:$0xff] %v2922_v33  ;;  %v2401_v8 = vld [vmem:[%s5115_s2 + $0x1] ss:$0 sm:$0xff]  ;;  %v2943_v33 = vmul.f32 %v2400_v5, %v2825_v2 }
  0x39   : > { %5296 = vst [vmem:[#allocation71_spill] sm:$0xff] %v2925_v53  ;;  %5297 = vst [vmem:[#allocation72_spill] sm:$0xff] %v2928_v62  ;;  %v2946_v53 = vmul.f32 %v2400_v5, %v2837_v19  ;;  %v2949_v62 = vmul.f32 %v2816_v59, %v2400_v5  ;;  %v471_v26 = vmul.f32 %v2726_v4, %v2401_v8 }
  0x3a   : > { %5298 = vst [vmem:[#allocation73_spill] sm:$0xff] %v2931_v52  ;;  %5299 = vst [vmem:[#allocation74_spill] sm:$0xff] %v2934_v24  ;;  %v2952_v52 = vmul.f32 %v2818_v60, %v2400_v5  ;;  %v2955_v24 = vmul.f32 %v2400_v5, %v2852_v35  ;;  %v475_v13 = vmul.f32 %v2401_v8, %v2743_v16 }
  0x3b   : > { %5300 = vst [vmem:[#allocation75_spill] sm:$0xff] %v2937_v21  ;;  %5301 = vst [vmem:[#allocation76_spill] sm:$0xff] %v2943_v33  ;;  %v2958_v21 = vmul.f32 %v2400_v5, %v2854_v40  ;;  %v2964_v33 = vmul.f32 %v2832_v7, %v2400_v5  ;;  %v2986_v4 = vmul.f32 %v2401_v8, %v2759_v27 }
  0x3c   : > { %5302 = vst [vmem:[#allocation77_spill] sm:$0xff] %v2946_v53  ;;  %5303 = vst [vmem:[#allocation78_spill] sm:$0xff] %v2949_v62  ;;  %v2967_v53 = vmul.f32 %v2400_v5, %v2860_v47  ;;  %v2970_v62 = vmul.f32 %v2400_v5, %v2862_v48  ;;  %v478_v5 = vmul.f32 %v2401_v8, %v2752_v22 }
  0x3d   : > { %5304 = vst [vmem:[#allocation79_spill] sm:$0xff] %v2952_v52  ;;  %5305 = vst [vmem:[#allocation80_spill] sm:$0xff] %v2955_v24  ;;  %v470_v52 = vmul.f32 %v2724_v3, %v2401_v8  ;;  %v5311_v24 = vunpack.c.l.bf16 %v2721_v1  ;;  %v2995_v16 = vmul.f32 %v2747_v18, %v2401_v8  ;;  %v3001_v22 = vmul.f32 %v2401_v8, %v2765_v30 }
  0x3e   : > { %5306 = vst [vmem:[#allocation81_spill] sm:$0xff] %v2958_v21  ;;  %5307 = vst [vmem:[#allocation82_spill] sm:$0xff] %v2961_v14  ;;  %v473_v21 = vmul.f32 %v2401_v8, %v2732_v9  ;;  %v474_v14 = vmul.f32 %v2401_v8, %v2741_v15  ;;  %v2992_v9 = vmul.f32 %v2745_v17, %v2401_v8  ;;  %v575_v3 = vrot.slane %v475_v13, 1 }
  0x3f   : > { %5308 = vst [vmem:[#allocation83_spill] sm:$0xff] %v2964_v33  ;;  %5309 = vst [vmem:[#allocation84_spill] sm:$0xff] %v2967_v53  ;;  %v472_v25 = vmul.f32 %v2401_v8, %v5311_v24  ;;  %v476_v33 = vmul.f32 %v2734_v10, %v2401_v8  ;;  %v477_v53 = vmul.f32 %v2736_v11, %v2401_v8  ;;  %v568_v10 = vrot.slane %v471_v26, 1 }
  0x40   : > { %5310 = vst [vmem:[#allocation85_spill] sm:$0xff] %v2970_v62  ;;  %v2983_v62 = vmul.f32 %v2401_v8, %v2754_v23  ;;  %v2989_v24 = vmul.f32 %v2401_v8, %v2761_v28  ;;  %v2998_v11 = vmul.f32 %v2401_v8, %v2763_v29  ;;  %v3004_v23 = vmul.f32 %v2401_v8, %v2774_v36 }
  0x41   : > { %v3007_v27 = vmul.f32 %v2401_v8, %v2776_v37  ;;  %v3010_v28 = vmul.f32 %v2767_v31, %v2401_v8  ;;  %v3013_v17 = vmul.f32 %v2769_v32, %v2401_v8  ;;  %v3016_v18 = vmul.f32 %v2401_v8, %v2785_v43 }
  0x42   : > { %v3019_v29 = vmul.f32 %v2401_v8, %v2787_v44  ;;  %v3022_v30 = vmul.f32 %v2401_v8, %v2801_v50  ;;  %v3025_v36 = vmul.f32 %v2401_v8, %v2803_v51  ;;  %v3028_v37 = vmul.f32 %v2778_v38, %v2401_v8 }
  0x43   : > { %v3031_v31 = vmul.f32 %v2780_v39, %v2401_v8  ;;  %v3034_v32 = vmul.f32 %v2401_v8, %v2808_v55  ;;  %v3037_v43 = vmul.f32 %v2401_v8, %v2810_v56  ;;  %v3040_v44 = vmul.f32 %v2401_v8, %v2812_v57 }
  0x44   : > { %v3043_v50 = vmul.f32 %v2401_v8, %v2814_v58  ;;  %v3046_v51 = vmul.f32 %v2794_v45, %v2401_v8  ;;  %v3049_v38 = vmul.f32 %v2796_v46, %v2401_v8  ;;  %v3052_v39 = vmul.f32 %v2401_v8, %v2823_v0 }
  0x45   : > { %v3055_v55 = vmul.f32 %v2401_v8, %v2825_v2  ;;  %v3058_v56 = vmul.f32 %v2401_v8, %v2837_v19  ;;  %v3061_v57 = vmul.f32 %v2401_v8, %v2839_v20  ;;  %v3064_v58 = vmul.f32 %v2816_v59, %v2401_v8 }
  0x46   : > { %v3067_v45 = vmul.f32 %v2818_v60, %v2401_v8  ;;  %v3070_v46 = vmul.f32 %v2401_v8, %v2850_v34  ;;  %v3073_v0 = vmul.f32 %v2401_v8, %v2852_v35  ;;  %v3076_v2 = vmul.f32 %v2401_v8, %v2854_v40 }
  0x47   : > { %v3079_v19 = vmul.f32 %v2401_v8, %v2856_v41  ;;  %v3082_v20 = vmul.f32 %v2830_v6, %v2401_v8  ;;  %v3085_v59 = vmul.f32 %v2832_v7, %v2401_v8  ;;  %v3088_v60 = vmul.f32 %v2401_v8, %v2858_v42 }
  0x48   : > { %v3091_v34 = vmul.f32 %v2401_v8, %v2860_v47  ;;  %v3094_v35 = vmul.f32 %v2401_v8, %v2862_v48  ;;  %v3097_v40 = vmul.f32 %v2401_v8, %v2864_v49  ;;  %v567_v41 = vrot.slane %v470_v52, 1 }
  0x49   : > { %v570_v15 = vrot.slane %v472_v25, 1  ;;  %v572_v6 = vrot.slane %v473_v21, 1  ;;  %v573_v1 = vrot.slane %v474_v14, 1  ;;  %v577_v42 = vrot.slane %v476_v33, 1 }
  0x4a   : > { %v3100_v7 = vsel %vm566_vm0, %v567_v41, %v568_v10  ;;  %v578_v12 = vrot.slane %v477_v53, 1  ;;  %v580_v63 = vrot.slane %v478_v5, 1  ;;  %v582_v52 = vrot.slane %v2983_v62, 1 }
  0x4b   : > { %v3103_v47 = vsel %vm566_vm0, %v568_v10, %v570_v15  ;;  %v3106_v48 = vsel %vm566_vm0, %v572_v6, %v573_v1  ;;  %v3109_v8 = vsel %vm566_vm0, %v573_v1, %v575_v3  ;;  %v583_v33 = vrot.slane %v2986_v4, 1 }
  0x4c   : > { %v3113_v21 = vsel %vm566_vm0, %v577_v42, %v578_v12  ;;  %v3116_v41 = vsel %vm566_vm0, %v578_v12, %v580_v63  ;;  %v585_v53 = vrot.slane %v2989_v24, 1  ;;  %v587_v10 = vrot.slane %v2992_v9, 1 }
  0x4d   : > { %v588_v15 = vrot.slane %v2995_v16, 1  ;;  %v590_v6 = vrot.slane %v2998_v11, 1  ;;  %v592_v1 = vrot.slane %v3001_v22, 1  ;;  %v3125_v3 = vsel %vm566_vm0, %v582_v52, %v583_v33 }
  0x4e   : > { %v3128_v42 = vsel %vm566_vm0, %v583_v33, %v585_v53  ;;  %v593_v62 = vrot.slane %v3004_v23, 1  ;;  %v595_v4 = vrot.slane %v3007_v27, 1  ;;  %v597_v16 = vrot.slane %v3010_v28, 1 }
  0x4f   : > { %v589_v14 = vsel %vm566_vm0, %v587_v10, %v588_v15  ;;  %v591_v9 = vsel %vm566_vm0, %v588_v15, %v590_v6  ;;  %v598_v11 = vrot.slane %v3013_v17, 1  ;;  %v600_v12 = vrot.slane %v3016_v18, 1 }
  0x50   : > { %v594_v22 = vsel %vm566_vm0, %v592_v1, %v593_v62  ;;  %v596_v63 = vsel %vm566_vm0, %v593_v62, %v595_v4  ;;  %v602_v13 = vrot.slane %v3019_v29, 1  ;;  %v603_v27 = vrot.slane %v3022_v30, 1 }
  0x51   : > { %v599_v23 = vsel %vm566_vm0, %v597_v16, %v598_v11  ;;  %v605_v25 = vrot.slane %v3025_v36, 1  ;;  %v607_v26 = vrot.slane %v3028_v37, 1  ;;  %v601_v28 = vsel %vm566_vm0, %v598_v11, %v600_v12 }
  0x52   : > { %v608_v17 = vrot.slane %v3031_v31, 1  ;;  %v610_v5 = vrot.slane %v3034_v32, 1  ;;  %v612_v24 = vrot.slane %v3037_v43, 1  ;;  %v604_v18 = vsel %vm566_vm0, %v602_v13, %v603_v27 }
  0x53   : > { %v606_v29 = vsel %vm566_vm0, %v603_v27, %v605_v25  ;;  %v613_v52 = vrot.slane %v3040_v44, 1  ;;  %v615_v30 = vrot.slane %v3043_v50, 1  ;;  %v617_v33 = vrot.slane %v3046_v51, 1  ;;  %v5312_v25 = vld [vmem:[#allocation56_spill] sm:$0xff] }
  0x54   : > { %v609_v36 = vsel %vm566_vm0, %v607_v26, %v608_v17  ;;  %v611_v37 = vsel %vm566_vm0, %v608_v17, %v610_v5  ;;  %v618_v31 = vrot.slane %v3049_v38, 1  ;;  %v620_v53 = vrot.slane %v3052_v39, 1  ;;  %v5318_v17 = vld [vmem:[#allocation59_spill] sm:$0xff]  ;;  %v5322_v5 = vld [vmem:[#allocation61_spill] sm:$0xff] }
  0x55   : > { %v614_v32 = vsel %vm566_vm0, %v612_v24, %v613_v52  ;;  %v616_v43 = vsel %vm566_vm0, %v613_v52, %v615_v30  ;;  %v622_v10 = vrot.slane %v3055_v55, 1  ;;  %v623_v50 = vrot.slane %v3058_v56, 1  ;;  %v5324_v24 = vld [vmem:[#allocation62_spill] sm:$0xff]  ;;  %v5326_v30 = vld [vmem:[#allocation63_spill] sm:$0xff] }
  0x56   : > { %v619_v44 = vsel %vm566_vm0, %v617_v33, %v618_v31  ;;  %v625_v15 = vrot.slane %v3061_v57, 1  ;;  %v627_v6 = vrot.slane %v3064_v58, 1  ;;  %v621_v51 = vsel %vm566_vm0, %v618_v31, %v620_v53  ;;  %v5330_v53 = vld [vmem:[#allocation65_spill] sm:$0xff] }
  0x57   : > { %v628_v38 = vrot.slane %v3067_v45, 1  ;;  %v630_v1 = vrot.slane %v3070_v46, 1  ;;  %v632_v62 = vrot.slane %v3073_v0, 1  ;;  %v624_v39 = vsel %vm566_vm0, %v622_v10, %v623_v50  ;;  %v5332_v10 = vld [vmem:[#allocation66_spill] sm:$0xff] }
  0x58   : > { %v626_v55 = vsel %vm566_vm0, %v623_v50, %v625_v15  ;;  %v633_v4 = vrot.slane %v3076_v2, 1  ;;  %v635_v56 = vrot.slane %v3079_v19, 1  ;;  %v637_v16 = vrot.slane %v3082_v20, 1 }
  0x59   : > { %v629_v57 = vsel %vm566_vm0, %v627_v6, %v628_v38  ;;  %v631_v58 = vsel %vm566_vm0, %v628_v38, %v630_v1  ;;  %v638_v45 = vrot.slane %v3085_v59, 1  ;;  %v640_v11 = vrot.slane %v3088_v60, 1 }
  0x5a   : > { %v634_v46 = vsel %vm566_vm0, %v632_v62, %v633_v4  ;;  %v636_v0 = vsel %vm566_vm0, %v633_v4, %v635_v56  ;;  %v642_v12 = vrot.slane %v3091_v34, 1  ;;  %v643_v19 = vrot.slane %v3094_v35, 1  ;;  %v5314_v34 = vld [vmem:[#allocation57_spill] sm:$0xff] }
  0x5b   : > { %v639_v2 = vsel %vm566_vm0, %v637_v16, %v638_v45  ;;  %v645_v13 = vrot.slane %v3097_v40, 1  ;;  %v3185_v27 = vadd.f32 %v3100_v7, %v2874_v54  ;;  %v641_v59 = vsel %vm566_vm0, %v638_v45, %v640_v11  ;;  %v5316_v7 = vld [vmem:[#allocation58_spill] sm:$0xff] }
  0x5c   : > { %v3190_v20 = vadd.f32 %v3103_v47, %v2877_v61  ;;  %v3194_v60 = vadd.f32 %v3106_v48, %v5312_v25  ;;  %v3198_v26 = vadd.f32 %v3109_v8, %v5314_v34  ;;  %v644_v35 = vsel %vm566_vm0, %v642_v12, %v643_v19  ;;  %v5320_v61 = vld [vmem:[#allocation60_spill] sm:$0xff] }
  0x5d   : > { %v646_v40 = vsel %vm566_vm0, %v643_v19, %v645_v13  ;;  %v3204_v54 = vadd.f32 %v3113_v21, %v5316_v7  ;;  %v3208_v47 = vadd.f32 %v3116_v41, %v5318_v17  ;;  %v3212_v48 = vadd.f32 %v3125_v3, %v5320_v61  ;;  %v5328_v21 = vld [vmem:[#allocation64_spill] sm:$0xff]  ;;  %v5334_v3 = vld [vmem:[#allocation67_spill] sm:$0xff]  ;;  %v5364_v7 = vld [vmem:[#allocation82_spill] sm:$0xff] }
  0x5e   : > { %5313 = vst [vmem:[#allocation56_spill] sm:$0xff] %v3194_v60  ;;  %5315 = vst [vmem:[#allocation57_spill] sm:$0xff] %v3198_v26  ;;  %v3216_v8 = vadd.f32 %v3128_v42, %v5322_v5  ;;  %v3219_v52 = vadd.f32 %v589_v14, %v5324_v24  ;;  %v3222_v33 = vadd.f32 %v591_v9, %v5326_v30  ;;  %v5336_v42 = vld [vmem:[#allocation68_spill] sm:$0xff]  ;;  %v5338_v14 = vld [vmem:[#allocation69_spill] sm:$0xff] }
  0x5f   : > { %5317 = vst [vmem:[#allocation58_spill] sm:$0xff] %v3204_v54  ;;  %5319 = vst [vmem:[#allocation59_spill] sm:$0xff] %v3208_v47  ;;  %v3225_v31 = vadd.f32 %v594_v22, %v5328_v21  ;;  %v3228_v41 = vadd.f32 %v596_v63, %v5330_v53  ;;  %v3231_v50 = vadd.f32 %v599_v23, %v5332_v10  ;;  %v5340_v9 = vld [vmem:[#allocation70_spill] sm:$0xff]  ;;  %v5342_v22 = vld [vmem:[#allocation71_spill] sm:$0xff] }
  0x60   : > { %5321 = vst [vmem:[#allocation60_spill] sm:$0xff] %v3212_v48  ;;  %5323 = vst [vmem:[#allocation61_spill] sm:$0xff] %v3216_v8  ;;  %v3234_v15 = vadd.f32 %v601_v28, %v5334_v3  ;;  %v3237_v6 = vadd.f32 %v604_v18, %v5336_v42  ;;  %v3240_v38 = vadd.f32 %v606_v29, %v5338_v14  ;;  %v5344_v63 = vld [vmem:[#allocation72_spill] sm:$0xff]  ;;  %v5346_v23 = vld [vmem:[#allocation73_spill] sm:$0xff] }
  0x61   : > { %5325 = vst [vmem:[#allocation62_spill] sm:$0xff] %v3219_v52  ;;  %5327 = vst [vmem:[#allocation63_spill] sm:$0xff] %v3222_v33  ;;  %v3243_v1 = vadd.f32 %v609_v36, %v5340_v9  ;;  %v3246_v62 = vadd.f32 %v611_v37, %v5342_v22  ;;  %v3249_v4 = vadd.f32 %v614_v32, %v5344_v63  ;;  %v5348_v28 = vld [vmem:[#allocation74_spill] sm:$0xff]  ;;  %v5350_v18 = vld [vmem:[#allocation75_spill] sm:$0xff] }
  0x62   : > { %5329 = vst [vmem:[#allocation64_spill] sm:$0xff] %v3225_v31  ;;  %5331 = vst [vmem:[#allocation65_spill] sm:$0xff] %v3228_v41  ;;  %v3252_v56 = vadd.f32 %v616_v43, %v5346_v23  ;;  %v3255_v16 = vadd.f32 %v619_v44, %v5348_v28  ;;  %v3258_v45 = vadd.f32 %v621_v51, %v5350_v18  ;;  %v2402_v29 = vld [vmem:[%s5115_s2 + $0x2] ss:$0 sm:$0xff]  ;;  %v5352_v36 = vld [vmem:[#allocation76_spill] sm:$0xff] }
  0x63   : > { %5333 = vst [vmem:[#allocation66_spill] sm:$0xff] %v3231_v50  ;;  %5335 = vst [vmem:[#allocation67_spill] sm:$0xff] %v3234_v15  ;;  %v3264_v11 = vadd.f32 %v624_v39, %v5352_v36  ;;  %v5354_v37 = vld [vmem:[#allocation77_spill] sm:$0xff]  ;;  %v5356_v32 = vld [vmem:[#allocation78_spill] sm:$0xff]  ;;  %v3282_v17 = vadd.f32 %v639_v2, %v5364_v7 }
  0x64   : > { %5337 = vst [vmem:[#allocation68_spill] sm:$0xff] %v3237_v6  ;;  %5339 = vst [vmem:[#allocation69_spill] sm:$0xff] %v3240_v38  ;;  %v3267_v12 = vadd.f32 %v626_v55, %v5354_v37  ;;  %v3270_v19 = vadd.f32 %v629_v57, %v5356_v32  ;;  %v5358_v43 = vld [vmem:[#allocation79_spill] sm:$0xff]  ;;  %v5360_v44 = vld [vmem:[#allocation80_spill] sm:$0xff] }
  0x65   : > { %5341 = vst [vmem:[#allocation70_spill] sm:$0xff] %v3243_v1  ;;  %5343 = vst [vmem:[#allocation71_spill] sm:$0xff] %v3246_v62  ;;  %v3273_v13 = vadd.f32 %v631_v58, %v5358_v43  ;;  %v3276_v25 = vadd.f32 %v634_v46, %v5360_v44  ;;  %v5362_v51 = vld [vmem:[#allocation81_spill] sm:$0xff]  ;;  %v5366_v39 = vld [vmem:[#allocation83_spill] sm:$0xff] }
  0x66   : > { %5345 = vst [vmem:[#allocation72_spill] sm:$0xff] %v3249_v4  ;;  %5347 = vst [vmem:[#allocation73_spill] sm:$0xff] %v3252_v56  ;;  %v3279_v34 = vadd.f32 %v636_v0, %v5362_v51  ;;  %v3285_v61 = vadd.f32 %v641_v59, %v5366_v39  ;;  %v5368_v55 = vld [vmem:[#allocation84_spill] sm:$0xff]  ;;  %v5370_v57 = vld [vmem:[#allocation85_spill] sm:$0xff] }
  0x67   : > { %5349 = vst [vmem:[#allocation74_spill] sm:$0xff] %v3255_v16  ;;  %5351 = vst [vmem:[#allocation75_spill] sm:$0xff] %v3258_v45  ;;  %v3288_v5 = vadd.f32 %v644_v35, %v5368_v55  ;;  %v3291_v24 = vadd.f32 %v646_v40, %v5370_v57  ;;  %v5372_v58 = vld [vmem:[#allocation3_spill] sm:$0xff]  ;;  %v5373_v21 = vld [vmem:[#allocation4_spill] sm:$0xff] }
  0x68   : > { %5353 = vst [vmem:[#allocation76_spill] sm:$0xff] %v3264_v11  ;;  %5355 = vst [vmem:[#allocation77_spill] sm:$0xff] %v3267_v12  ;;  %v716_v30 = vmul.f32 %v5372_v58, %v2402_v29  ;;  %v717_v46 = vmul.f32 %v5373_v21, %v2402_v29  ;;  %v5374_v53 = vld [vmem:[#allocation2_spill] sm:$0xff]  ;;  %v5376_v3 = vld [vmem:[#allocation5_spill] sm:$0xff] }
  0x69   : > { %5357 = vst [vmem:[#allocation78_spill] sm:$0xff] %v3270_v19  ;;  %5359 = vst [vmem:[#allocation79_spill] sm:$0xff] %v3273_v13  ;;  %v5375_v10 = vunpack.c.l.bf16 %v5374_v53  ;;  %v719_v42 = vmul.f32 %v2402_v29, %v5376_v3  ;;  %v5377_v2 = vld [vmem:[#allocation8_spill] sm:$0xff]  ;;  %v5378_v9 = vld [vmem:[#allocation9_spill] sm:$0xff] }
  0x6a   : > { %5361 = vst [vmem:[#allocation80_spill] sm:$0xff] %v3276_v25  ;;  %5363 = vst [vmem:[#allocation81_spill] sm:$0xff] %v3279_v34  ;;  %v720_v14 = vmul.f32 %v2402_v29, %v5377_v2  ;;  %v721_v59 = vmul.f32 %v2402_v29, %v5378_v9  ;;  %v5379_v22 = vld [vmem:[#allocation6_spill] sm:$0xff]  ;;  %v5380_v35 = vld [vmem:[#allocation7_spill] sm:$0xff]  ;;  %v814_v8 = vrot.slane %v717_v46, 2 }
  0x6b   : > { %5365 = vst [vmem:[#allocation82_spill] sm:$0xff] %v3282_v17  ;;  %5367 = vst [vmem:[#allocation83_spill] sm:$0xff] %v3285_v61  ;;  %v718_v0 = vmul.f32 %v2402_v29, %v5375_v10  ;;  %v722_v63 = vmul.f32 %v5379_v22, %v2402_v29  ;;  %v723_v23 = vmul.f32 %v5380_v35, %v2402_v29  ;;  %v5381_v28 = vld [vmem:[#allocation12_spill] sm:$0xff]  ;;  %v5382_v18 = vld [vmem:[#allocation13_spill] sm:$0xff] }
  0x6c   : > { %5369 = vst [vmem:[#allocation84_spill] sm:$0xff] %v3288_v5  ;;  %5371 = vst [vmem:[#allocation85_spill] sm:$0xff] %v3291_v24  ;;  %v724_v40 = vmul.f32 %v2402_v29, %v5381_v28  ;;  %v3304_v36 = vmul.f32 %v2402_v29, %v5382_v18  ;;  %v5383_v37 = vld [vmem:[#allocation14_spill] sm:$0xff]  ;;  %v5384_v43 = vld [vmem:[#allocation15_spill] sm:$0xff]  ;;  %v819_v47 = vrot.slane %v720_v14, 2  ;;  %v821_v54 = vrot.slane %v721_v59, 2 }
  0x6d   : > { %v3307_v32 = vmul.f32 %v2402_v29, %v5383_v37  ;;  %v3310_v44 = vmul.f32 %v2402_v29, %v5384_v43  ;;  %v5385_v51 = vld [vmem:[#allocation10_spill] sm:$0xff]  ;;  %v5386_v39 = vld [vmem:[#allocation11_spill] sm:$0xff]  ;;  %v5387_v57 = vld [vmem:[#allocation16_spill] sm:$0xff]  ;;  %v816_v48 = vrot.slane %v718_v0, 2  ;;  %v824_v26 = vrot.slane %v723_v23, 2 }
  0x6e   : > { %v3313_v7 = vmul.f32 %v5385_v51, %v2402_v29  ;;  %v3316_v55 = vmul.f32 %v5386_v39, %v2402_v29  ;;  %v3319_v58 = vmul.f32 %v2402_v29, %v5387_v57  ;;  %v5388_v21 = vld [vmem:[#allocation17_spill] sm:$0xff]  ;;  %v5389_v10 = vld [vmem:[#allocation20_spill] sm:$0xff]  ;;  %v5391_v43 = vld [vmem:[#allocation18_spill] sm:$0xff]  ;;  %v826_v60 = vrot.slane %v724_v40, 2 }
  0x6f   : > { %v3322_v53 = vmul.f32 %v2402_v29, %v5388_v21  ;;  %v3325_v28 = vmul.f32 %v2402_v29, %v5389_v10  ;;  %v5390_v9 = vld [vmem:[#allocation21_spill] sm:$0xff]  ;;  %v3331_v18 = vmul.f32 %v5391_v43, %v2402_v29  ;;  %v5392_v51 = vld [vmem:[#allocation19_spill] sm:$0xff]  ;;  %v5393_v39 = vld [vmem:[#allocation24_spill] sm:$0xff]  ;;  %v831_v14 = vrot.slane %v3310_v44, 2 }
  0x70   : > { %v3328_v37 = vmul.f32 %v2402_v29, %v5390_v9  ;;  %v3334_v35 = vmul.f32 %v5392_v51, %v2402_v29  ;;  %v3337_v22 = vmul.f32 %v2402_v29, %v5393_v39  ;;  %v5394_v57 = vld [vmem:[#allocation25_spill] sm:$0xff]  ;;  %v5395_v21 = vld [vmem:[#allocation28_spill] sm:$0xff]  ;;  %v5397_v9 = vld [vmem:[#allocation22_spill] sm:$0xff]  ;;  %v3437_v0 = vsel %vm812_vm1, %v824_v26, %v826_v60 }
  0x71   : > { %v3340_v2 = vmul.f32 %v2402_v29, %v5394_v57  ;;  %v3343_v3 = vmul.f32 %v2402_v29, %v5395_v21  ;;  %v5396_v10 = vld [vmem:[#allocation29_spill] sm:$0xff]  ;;  %v3349_v5 = vmul.f32 %v5397_v9, %v2402_v29  ;;  %v5398_v43 = vld [vmem:[#allocation23_spill] sm:$0xff]  ;;  %v5399_v51 = vld [vmem:[#allocation30_spill] sm:$0xff]  ;;  %v836_v59 = vrot.slane %v3319_v58, 2 }
  0x72   : > { %v3346_v24 = vmul.f32 %v2402_v29, %v5396_v10  ;;  %v3352_v61 = vmul.f32 %v5398_v43, %v2402_v29  ;;  %v3355_v17 = vmul.f32 %v2402_v29, %v5399_v51  ;;  %v5400_v39 = vld [vmem:[#allocation31_spill] sm:$0xff]  ;;  %v5401_v57 = vld [vmem:[#allocation32_spill] sm:$0xff]  ;;  %v5402_v21 = vld [vmem:[#allocation33_spill] sm:$0xff]  ;;  %v839_v60 = vrot.slane %v3325_v28, 2 }
  0x73   : > { %v3358_v34 = vmul.f32 %v2402_v29, %v5400_v39  ;;  %v3361_v25 = vmul.f32 %v2402_v29, %v5401_v57  ;;  %v3364_v13 = vmul.f32 %v2402_v29, %v5402_v21  ;;  %v5403_v10 = vld [vmem:[#allocation26_spill] sm:$0xff]  ;;  %v5404_v9 = vld [vmem:[#allocation27_spill] sm:$0xff]  ;;  %v5405_v43 = vld [vmem:[#allocation36_spill] sm:$0xff]  ;;  %v853_v58 = vrot.slane %v3349_v5, 2 }
  0x74   : > { %v3367_v19 = vmul.f32 %v5403_v10, %v2402_v29  ;;  %v3370_v12 = vmul.f32 %v5404_v9, %v2402_v29  ;;  %v3373_v11 = vmul.f32 %v2402_v29, %v5405_v43  ;;  %v5406_v51 = vld [vmem:[#allocation37_spill] sm:$0xff]  ;;  %v5407_v39 = vld [vmem:[#allocation40_spill] sm:$0xff]  ;;  %v5409_v21 = vld [vmem:[#allocation34_spill] sm:$0xff] }
  0x75   : > { %v3376_v45 = vmul.f32 %v2402_v29, %v5406_v51  ;;  %v3379_v16 = vmul.f32 %v2402_v29, %v5407_v39  ;;  %v5408_v57 = vld [vmem:[#allocation41_spill] sm:$0xff]  ;;  %v3385_v4 = vmul.f32 %v5409_v21, %v2402_v29  ;;  %v5410_v10 = vld [vmem:[#allocation35_spill] sm:$0xff]  ;;  %v5412_v43 = vld [vmem:[#allocation46_spill] sm:$0xff] }
  0x76   : > { %v3382_v56 = vmul.f32 %v2402_v29, %v5408_v57  ;;  %v3388_v62 = vmul.f32 %v5410_v10, %v2402_v29  ;;  %v5411_v9 = vld [vmem:[#allocation45_spill] sm:$0xff]  ;;  %v3394_v38 = vmul.f32 %v2402_v29, %v5412_v43  ;;  %v5413_v51 = vld [vmem:[#allocation47_spill] sm:$0xff]  ;;  %v5414_v39 = vld [vmem:[#allocation48_spill] sm:$0xff] }
  0x77   : > { %v3391_v1 = vmul.f32 %v2402_v29, %v5411_v9  ;;  %v3397_v6 = vmul.f32 %v2402_v29, %v5413_v51  ;;  %v3400_v15 = vmul.f32 %v2402_v29, %v5414_v39  ;;  %v5415_v57 = vld [vmem:[#allocation38_spill] sm:$0xff]  ;;  %v5416_v21 = vld [vmem:[#allocation39_spill] sm:$0xff]  ;;  %v5417_v10 = vld [vmem:[#allocation49_spill] sm:$0xff]  ;;  %v3418_v51 = vmul.f32 %v2402_v29, %v2864_v49 }
  0x78   : > { %v3403_v50 = vmul.f32 %v5415_v57, %v2402_v29  ;;  %v3406_v41 = vmul.f32 %v5416_v21, %v2402_v29  ;;  %v3409_v31 = vmul.f32 %v2402_v29, %v5417_v10  ;;  %v5418_v9 = vld [vmem:[#allocation50_spill] sm:$0xff]  ;;  %v5419_v43 = vld [vmem:[#allocation51_spill] sm:$0xff]  ;;  %v813_v39 = vrot.slane %v716_v30, 2 }
  0x79   : > { %v3412_v33 = vmul.f32 %v2402_v29, %v5418_v9  ;;  %v3415_v52 = vmul.f32 %v2402_v29, %v5419_v43  ;;  %v818_v57 = vrot.slane %v719_v42, 2  ;;  %v823_v10 = vrot.slane %v722_v63, 2  ;;  %v5476_v49 = vld [vmem:[#allocation23_spill] sm:$0xff] }
  0x7a   : > { %v3421_v21 = vsel %vm812_vm1, %v813_v39, %v814_v8  ;;  %v3424_v9 = vsel %vm812_vm1, %v814_v8, %v816_v48  ;;  %v3430_v29 = vsel %vm812_vm1, %v819_v47, %v821_v54  ;;  %v828_v30 = vrot.slane %v3304_v36, 2 }
  0x7b   : > { %v3427_v43 = vsel %vm812_vm1, %v818_v57, %v819_v47  ;;  %v3434_v46 = vsel %vm812_vm1, %v823_v10, %v824_v26  ;;  %v829_v42 = vrot.slane %v3307_v32, 2  ;;  %v833_v48 = vrot.slane %v3313_v7, 2 }
  0x7c   : > { %v834_v8 = vrot.slane %v3316_v55, 2  ;;  %v838_v54 = vrot.slane %v3322_v53, 2  ;;  %v841_v26 = vrot.slane %v3328_v37, 2  ;;  %v843_v36 = vrot.slane %v3331_v18, 2 }
  0x7d   : > { %v3446_v47 = vsel %vm812_vm1, %v828_v30, %v829_v42  ;;  %v3449_v63 = vsel %vm812_vm1, %v829_v42, %v831_v14  ;;  %v844_v32 = vrot.slane %v3334_v35, 2  ;;  %v846_v39 = vrot.slane %v3337_v22, 2 }
  0x7e   : > { %v835_v23 = vsel %vm812_vm1, %v833_v48, %v834_v8  ;;  %v837_v40 = vsel %vm812_vm1, %v834_v8, %v836_v59  ;;  %v840_v44 = vsel %vm812_vm1, %v838_v54, %v839_v60  ;;  %v842_v7 = vsel %vm812_vm1, %v839_v60, %v841_v26 }
  0x7f   : > { %v848_v55 = vrot.slane %v3340_v2, 2  ;;  %v845_v28 = vsel %vm812_vm1, %v843_v36, %v844_v32  ;;  %v849_v37 = vrot.slane %v3343_v3, 2  ;;  %v851_v57 = vrot.slane %v3346_v24, 2 }
  0x80   : > { %v847_v18 = vsel %vm812_vm1, %v844_v32, %v846_v39  ;;  %v854_v35 = vrot.slane %v3352_v61, 2  ;;  %v856_v53 = vrot.slane %v3355_v17, 2  ;;  %v858_v10 = vrot.slane %v3358_v34, 2 }
  0x81   : > { %v850_v22 = vsel %vm812_vm1, %v848_v55, %v849_v37  ;;  %v852_v2 = vsel %vm812_vm1, %v849_v37, %v851_v57  ;;  %v859_v30 = vrot.slane %v3361_v25, 2  ;;  %v861_v3 = vrot.slane %v3364_v13, 2  ;;  %v5420_v57 = vld [vmem:[#allocation56_spill] sm:$0xff] }
  0x82   : > { %v855_v24 = vsel %vm812_vm1, %v853_v58, %v854_v35  ;;  %v857_v5 = vsel %vm812_vm1, %v854_v35, %v856_v53  ;;  %v863_v42 = vrot.slane %v3367_v19, 2  ;;  %v864_v61 = vrot.slane %v3370_v12, 2  ;;  %v5423_v35 = vld [vmem:[#allocation59_spill] sm:$0xff]  ;;  %v5425_v53 = vld [vmem:[#allocation61_spill] sm:$0xff] }
  0x83   : > { %v860_v17 = vsel %vm812_vm1, %v858_v10, %v859_v30  ;;  %v862_v34 = vsel %vm812_vm1, %v859_v30, %v861_v3  ;;  %v866_v14 = vrot.slane %v3373_v11, 2  ;;  %v868_v48 = vrot.slane %v3376_v45, 2  ;;  %v5426_v10 = vld [vmem:[#allocation62_spill] sm:$0xff]  ;;  %v5427_v3 = vld [vmem:[#allocation63_spill] sm:$0xff] }
  0x84   : > { %v865_v25 = vsel %vm812_vm1, %v863_v42, %v864_v61  ;;  %v869_v13 = vrot.slane %v3379_v16, 2  ;;  %v871_v8 = vrot.slane %v3382_v56, 2  ;;  %v873_v59 = vrot.slane %v3385_v4, 2 }
  0x85   : > { %v867_v19 = vsel %vm812_vm1, %v864_v61, %v866_v14  ;;  %v874_v12 = vrot.slane %v3388_v62, 2  ;;  %v876_v54 = vrot.slane %v3391_v1, 2  ;;  %v878_v60 = vrot.slane %v3394_v38, 2  ;;  %v5429_v14 = vld [vmem:[#allocation65_spill] sm:$0xff] }
  0x86   : > { %v870_v11 = vsel %vm812_vm1, %v868_v48, %v869_v13  ;;  %v872_v45 = vsel %vm812_vm1, %v869_v13, %v871_v8  ;;  %v879_v26 = vrot.slane %v3397_v6, 2  ;;  %v881_v16 = vrot.slane %v3400_v15, 2  ;;  %v5430_v48 = vld [vmem:[#allocation66_spill] sm:$0xff] }
  0x87   : > { %v875_v56 = vsel %vm812_vm1, %v873_v59, %v874_v12  ;;  %v877_v4 = vsel %vm812_vm1, %v874_v12, %v876_v54  ;;  %v883_v36 = vrot.slane %v3403_v50, 2  ;;  %v884_v62 = vrot.slane %v3406_v41, 2 }
  0x88   : > { %v880_v1 = vsel %vm812_vm1, %v878_v60, %v879_v26  ;;  %v882_v38 = vsel %vm812_vm1, %v879_v26, %v881_v16  ;;  %v886_v32 = vrot.slane %v3409_v31, 2  ;;  %v888_v39 = vrot.slane %v3412_v33, 2  ;;  %v5421_v33 = vld [vmem:[#allocation57_spill] sm:$0xff] }
  0x89   : > { %v885_v6 = vsel %vm812_vm1, %v883_v36, %v884_v62  ;;  %v889_v15 = vrot.slane %v3415_v52, 2  ;;  %v891_v55 = vrot.slane %v3418_v51, 2  ;;  %v3506_v37 = vadd.f32 %v3421_v21, %v3185_v27  ;;  %v5422_v27 = vld [vmem:[#allocation58_spill] sm:$0xff] }
  0x8a   : > { %v887_v41 = vsel %vm812_vm1, %v884_v62, %v886_v32  ;;  %v3511_v50 = vadd.f32 %v3424_v9, %v3190_v20  ;;  %v3515_v31 = vadd.f32 %v3427_v43, %v5420_v57  ;;  %v3519_v58 = vadd.f32 %v3430_v29, %v5421_v33  ;;  %v5424_v9 = vld [vmem:[#allocation60_spill] sm:$0xff] }
  0x8b   : > { %v890_v52 = vsel %vm812_vm1, %v888_v39, %v889_v15  ;;  %v892_v51 = vsel %vm812_vm1, %v889_v15, %v891_v55  ;;  %v3525_v21 = vadd.f32 %v3434_v46, %v5422_v27  ;;  %v3529_v20 = vadd.f32 %v3437_v0, %v5423_v35  ;;  %v5428_v46 = vld [vmem:[#allocation64_spill] sm:$0xff]  ;;  %v5453_v27 = vld [vmem:[#allocation82_spill] sm:$0xff] }
  0x8c   : > { %v3533_v43 = vadd.f32 %v3446_v47, %v5424_v9  ;;  %v3537_v29 = vadd.f32 %v3449_v63, %v5425_v53  ;;  %v3540_v30 = vadd.f32 %v835_v23, %v5426_v10  ;;  %v3543_v42 = vadd.f32 %v837_v40, %v5427_v3  ;;  %v5431_v47 = vld [vmem:[#allocation67_spill] sm:$0xff]  ;;  %v5432_v63 = vld [vmem:[#allocation68_spill] sm:$0xff]  ;;  %v5433_v23 = vld [vmem:[#allocation69_spill] sm:$0xff] }
  0x8d   : > { %v3546_v61 = vadd.f32 %v840_v44, %v5428_v46  ;;  %v3549_v0 = vadd.f32 %v842_v7, %v5429_v14  ;;  %v3552_v13 = vadd.f32 %v845_v28, %v5430_v48  ;;  %v3555_v8 = vadd.f32 %v847_v18, %v5431_v47  ;;  %v5434_v40 = vld [vmem:[#allocation70_spill] sm:$0xff]  ;;  %v5435_v44 = vld [vmem:[#allocation71_spill] sm:$0xff]  ;;  %v5436_v7 = vld [vmem:[#allocation72_spill] sm:$0xff] }
  0x8e   : > { %v3558_v59 = vadd.f32 %v850_v22, %v5432_v63  ;;  %v3561_v12 = vadd.f32 %v852_v2, %v5433_v23  ;;  %v3564_v54 = vadd.f32 %v855_v24, %v5434_v40  ;;  %v3567_v60 = vadd.f32 %v857_v5, %v5435_v44  ;;  %v5437_v28 = vld [vmem:[#allocation73_spill] sm:$0xff]  ;;  %v5438_v18 = vld [vmem:[#allocation74_spill] sm:$0xff]  ;;  %v5439_v22 = vld [vmem:[#allocation75_spill] sm:$0xff] }
  0x8f   : > { %v3570_v26 = vadd.f32 %v860_v17, %v5436_v7  ;;  %v3573_v16 = vadd.f32 %v862_v34, %v5437_v28  ;;  %v3576_v36 = vadd.f32 %v865_v25, %v5438_v18  ;;  %v3579_v62 = vadd.f32 %v867_v19, %v5439_v22  ;;  %v2403_v2 = vld [vmem:[%s5115_s2 + $0x3] ss:$0 sm:$0xff]  ;;  %v5441_v24 = vld [vmem:[#allocation76_spill] sm:$0xff]  ;;  %v5443_v5 = vld [vmem:[#allocation77_spill] sm:$0xff] }
  0x90   : > { %v3585_v32 = vadd.f32 %v870_v11, %v5441_v24  ;;  %v3588_v39 = vadd.f32 %v872_v45, %v5443_v5  ;;  %v5445_v17 = vld [vmem:[#allocation78_spill] sm:$0xff]  ;;  %v5447_v34 = vld [vmem:[#allocation79_spill] sm:$0xff]  ;;  %v5449_v25 = vld [vmem:[#allocation80_spill] sm:$0xff]  ;;  %v3603_v35 = vadd.f32 %v885_v6, %v5453_v27 }
  0x91   : > { %5440 = vst [vmem:[#allocation3_spill] sm:$0xff] %v3579_v62  ;;  %v3591_v15 = vadd.f32 %v875_v56, %v5445_v17  ;;  %v3594_v55 = vadd.f32 %v877_v4, %v5447_v34  ;;  %v3597_v57 = vadd.f32 %v880_v1, %v5449_v25  ;;  %v5451_v19 = vld [vmem:[#allocation81_spill] sm:$0xff]  ;;  %v5455_v11 = vld [vmem:[#allocation83_spill] sm:$0xff]  ;;  %v5457_v45 = vld [vmem:[#allocation84_spill] sm:$0xff] }
  0x92   : > { %5442 = vst [vmem:[#allocation4_spill] sm:$0xff] %v3585_v32  ;;  %5444 = vst [vmem:[#allocation2_spill] sm:$0xff] %v3588_v39  ;;  %v3600_v33 = vadd.f32 %v882_v38, %v5451_v19  ;;  %v3606_v9 = vadd.f32 %v887_v41, %v5455_v11  ;;  %v3609_v53 = vadd.f32 %v890_v52, %v5457_v45  ;;  %v5459_v56 = vld [vmem:[#allocation85_spill] sm:$0xff]  ;;  %v5462_v46 = vld [vmem:[#allocation8_spill] sm:$0xff] }
  0x93   : > { %5446 = vst [vmem:[#allocation56_spill] sm:$0xff] %v3591_v15  ;;  %5448 = vst [vmem:[#allocation57_spill] sm:$0xff] %v3594_v55  ;;  %v3612_v10 = vadd.f32 %v892_v51, %v5459_v56  ;;  %v5461_v4 = vld [vmem:[#allocation5_spill] sm:$0xff]  ;;  %v963_v1 = vmul.f32 %v2403_v2, %v5462_v46  ;;  %v5463_v14 = vld [vmem:[#allocation6_spill] sm:$0xff] }
  0x94   : > { %5450 = vst [vmem:[#allocation58_spill] sm:$0xff] %v3597_v57  ;;  %5452 = vst [vmem:[#allocation59_spill] sm:$0xff] %v3600_v33  ;;  %v962_v3 = vmul.f32 %v2403_v2, %v5461_v4  ;;  %v964_v48 = vmul.f32 %v5463_v14, %v2403_v2  ;;  %v5464_v38 = vld [vmem:[#allocation7_spill] sm:$0xff]  ;;  %v5465_v63 = vld [vmem:[#allocation13_spill] sm:$0xff] }
  0x95   : > { %5454 = vst [vmem:[#allocation60_spill] sm:$0xff] %v3603_v35  ;;  %5456 = vst [vmem:[#allocation61_spill] sm:$0xff] %v3606_v9  ;;  %v965_v47 = vmul.f32 %v5464_v38, %v2403_v2  ;;  %v966_v6 = vmul.f32 %v2403_v2, %v5465_v63  ;;  %v5466_v23 = vld [vmem:[#allocation14_spill] sm:$0xff]  ;;  %v5468_v7 = vld [vmem:[#allocation11_spill] sm:$0xff] }
  0x96   : > { %5458 = vst [vmem:[#allocation62_spill] sm:$0xff] %v3609_v53  ;;  %5460 = vst [vmem:[#allocation63_spill] sm:$0xff] %v3612_v10  ;;  %v967_v40 = vmul.f32 %v2403_v2, %v5466_v23  ;;  %v5467_v41 = vld [vmem:[#allocation10_spill] sm:$0xff]  ;;  %v969_v52 = vmul.f32 %v5468_v7, %v2403_v2  ;;  %v5469_v28 = vld [vmem:[#allocation17_spill] sm:$0xff]  ;;  %v977_v23 = vmul.f32 %v5476_v49, %v2403_v2 }
  0x97   : > { %v968_v44 = vmul.f32 %v5467_v41, %v2403_v2  ;;  %v970_v18 = vmul.f32 %v2403_v2, %v5469_v28  ;;  %v5470_v51 = vld [vmem:[#allocation20_spill] sm:$0xff]  ;;  %v5471_v24 = vld [vmem:[#allocation18_spill] sm:$0xff]  ;;  %v5472_v17 = vld [vmem:[#allocation19_spill] sm:$0xff] }
  0x98   : > { %v971_v22 = vmul.f32 %v2403_v2, %v5470_v51  ;;  %v972_v5 = vmul.f32 %v5471_v24, %v2403_v2  ;;  %v973_v34 = vmul.f32 %v5472_v17, %v2403_v2  ;;  %v5473_v25 = vld [vmem:[#allocation25_spill] sm:$0xff]  ;;  %v5474_v27 = vld [vmem:[#allocation28_spill] sm:$0xff]  ;;  %v5475_v45 = vld [vmem:[#allocation22_spill] sm:$0xff] }
  0x99   : > { %v974_v19 = vmul.f32 %v2403_v2, %v5473_v25  ;;  %v975_v11 = vmul.f32 %v2403_v2, %v5474_v27  ;;  %v976_v56 = vmul.f32 %v5475_v45, %v2403_v2  ;;  %v5477_v63 = vld [vmem:[#allocation31_spill] sm:$0xff]  ;;  %v5478_v38 = vld [vmem:[#allocation32_spill] sm:$0xff]  ;;  %v5479_v14 = vld [vmem:[#allocation26_spill] sm:$0xff] }
  0x9a   : > { %v978_v41 = vmul.f32 %v2403_v2, %v5477_v63  ;;  %v979_v7 = vmul.f32 %v2403_v2, %v5478_v38  ;;  %v980_v28 = vmul.f32 %v5479_v14, %v2403_v2  ;;  %v5480_v46 = vld [vmem:[#allocation27_spill] sm:$0xff]  ;;  %v5481_v4 = vld [vmem:[#allocation37_spill] sm:$0xff]  ;;  %v5482_v10 = vld [vmem:[#allocation40_spill] sm:$0xff] }
  0x9b   : > { %v981_v51 = vmul.f32 %v5480_v46, %v2403_v2  ;;  %v982_v24 = vmul.f32 %v2403_v2, %v5481_v4  ;;  %v983_v17 = vmul.f32 %v2403_v2, %v5482_v10  ;;  %v5483_v53 = vld [vmem:[#allocation34_spill] sm:$0xff]  ;;  %v5484_v9 = vld [vmem:[#allocation35_spill] sm:$0xff] }
  0x9c   : > { %v984_v25 = vmul.f32 %v5483_v53, %v2403_v2  ;;  %v985_v27 = vmul.f32 %v5484_v9, %v2403_v2  ;;  %v5485_v35 = vld [vmem:[#allocation46_spill] sm:$0xff]  ;;  %v5486_v33 = vld [vmem:[#allocation47_spill] sm:$0xff]  ;;  %v3647_v53 = vadd.f32 %v962_v3, %v3506_v37  ;;  %v3650_v9 = vadd.f32 %v963_v1, %v3511_v50 }
  0x9d   : > { %v986_v45 = vmul.f32 %v2403_v2, %v5485_v35  ;;  %v987_v49 = vmul.f32 %v2403_v2, %v5486_v33  ;;  %v5487_v57 = vld [vmem:[#allocation38_spill] sm:$0xff]  ;;  %v5488_v55 = vld [vmem:[#allocation39_spill] sm:$0xff]  ;;  %v3653_v33 = vadd.f32 %v964_v48, %v3515_v31  ;;  %v3668_v37 = vadd.f32 %v969_v52, %v3537_v29  ;;  %v5528_v52 = vld [vmem:[#allocation61_spill] sm:$0xff] }
  0x9e   : > { %v988_v63 = vmul.f32 %v5487_v57, %v2403_v2  ;;  %v989_v38 = vmul.f32 %v5488_v55, %v2403_v2  ;;  %v5489_v15 = vld [vmem:[#allocation50_spill] sm:$0xff]  ;;  %v5490_v39 = vld [vmem:[#allocation51_spill] sm:$0xff]  ;;  %v3656_v57 = vadd.f32 %v965_v47, %v3519_v58  ;;  %v3671_v50 = vadd.f32 %v970_v18, %v3540_v30 }
  0x9f   : > { %v990_v14 = vmul.f32 %v2403_v2, %v5489_v15  ;;  %v991_v46 = vmul.f32 %v2403_v2, %v5490_v39  ;;  %v5491_v32 = vld [vmem:[#allocation42_spill] sm:$0xff]  ;;  %v5492_v62 = vld [vmem:[#allocation43_spill] sm:$0xff]  ;;  %5493 = vst [vmem:[#allocation64_spill] sm:$0xff] %v3653_v33  ;;  %v3659_v15 = vadd.f32 %v966_v6, %v3525_v21  ;;  %v3662_v39 = vadd.f32 %v967_v40, %v3529_v20 }
  0xa0   : > { %v992_v4 = vmul.f32 %v5491_v32, %v2403_v2  ;;  %v993_v10 = vmul.f32 %v5492_v62, %v2403_v2  ;;  %5494 = vst [vmem:[#allocation65_spill] sm:$0xff] %v3656_v57  ;;  %v3665_v2 = vadd.f32 %v968_v44, %v3533_v43  ;;  %5498 = vst [vmem:[#allocation69_spill] sm:$0xff] %v3668_v37  ;;  %v5524_v40 = vld [vmem:[#allocation59_spill] sm:$0xff]  ;;  %v5526_v44 = vld [vmem:[#allocation60_spill] sm:$0xff] }
  0xa1   : > { %5495 = vst [vmem:[#allocation66_spill] sm:$0xff] %v3659_v15  ;;  %5496 = vst [vmem:[#allocation67_spill] sm:$0xff] %v3662_v39  ;;  %v3674_v31 = vadd.f32 %v971_v22, %v3543_v42  ;;  %v3677_v58 = vadd.f32 %v972_v5, %v3546_v61  ;;  %v3680_v21 = vadd.f32 %v973_v34, %v3549_v0  ;;  %v5530_v18 = vld [vmem:[#allocation62_spill] sm:$0xff]  ;;  %v5532_v22 = vld [vmem:[#allocation63_spill] sm:$0xff] }
  0xa2   : > { %5497 = vst [vmem:[#allocation68_spill] sm:$0xff] %v3665_v2  ;;  %5499 = vst [vmem:[#allocation70_spill] sm:$0xff] %v3671_v50  ;;  %v3683_v20 = vadd.f32 %v974_v19, %v3552_v13  ;;  %v3686_v43 = vadd.f32 %v975_v11, %v3555_v8  ;;  %v3689_v29 = vadd.f32 %v976_v56, %v3558_v59  ;;  %v5512_v59 = vld [vmem:[#allocation3_spill] sm:$0xff]  ;;  %v5536_v34 = vld [vmem:[#allocation9_spill] sm:$0xff] }
  0xa3   : > { %5500 = vst [vmem:[#allocation71_spill] sm:$0xff] %v3674_v31  ;;  %5501 = vst [vmem:[#allocation72_spill] sm:$0xff] %v3677_v58  ;;  %v3692_v30 = vadd.f32 %v977_v23, %v3561_v12  ;;  %v3695_v42 = vadd.f32 %v978_v41, %v3564_v54  ;;  %v3698_v61 = vadd.f32 %v979_v7, %v3567_v60  ;;  %v2404_v12 = vld [vmem:[%s5115_s2 + $0x4] ss:$0 sm:$0xff]  ;;  %v5514_v54 = vld [vmem:[#allocation4_spill] sm:$0xff] }
  0xa4   : > { %5502 = vst [vmem:[#allocation73_spill] sm:$0xff] %v3680_v21  ;;  %5503 = vst [vmem:[#allocation74_spill] sm:$0xff] %v3683_v20  ;;  %v3701_v0 = vadd.f32 %v980_v28, %v3570_v26  ;;  %v3704_v13 = vadd.f32 %v981_v51, %v3573_v16  ;;  %v3707_v8 = vadd.f32 %v982_v24, %v3576_v36  ;;  %v5516_v60 = vld [vmem:[#allocation2_spill] sm:$0xff]  ;;  %v5518_v26 = vld [vmem:[#allocation56_spill] sm:$0xff] }
  0xa5   : > { %5504 = vst [vmem:[#allocation75_spill] sm:$0xff] %v3686_v43  ;;  %5505 = vst [vmem:[#allocation76_spill] sm:$0xff] %v3689_v29  ;;  %v3710_v3 = vadd.f32 %v983_v17, %v5512_v59  ;;  %v3716_v1 = vadd.f32 %v984_v25, %v5514_v54  ;;  %v3719_v48 = vadd.f32 %v985_v27, %v5516_v60  ;;  %v5520_v16 = vld [vmem:[#allocation57_spill] sm:$0xff]  ;;  %v5522_v36 = vld [vmem:[#allocation58_spill] sm:$0xff] }
  0xa6   : > { %5506 = vst [vmem:[#allocation77_spill] sm:$0xff] %v3692_v30  ;;  %5507 = vst [vmem:[#allocation78_spill] sm:$0xff] %v3695_v42  ;;  %v3722_v47 = vadd.f32 %v986_v45, %v5518_v26  ;;  %v3725_v6 = vadd.f32 %v987_v49, %v5520_v16  ;;  %v3728_v23 = vadd.f32 %v988_v63, %v5522_v36  ;;  %v5534_v49 = vld [vmem:[#allocation5_spill] sm:$0xff]  ;;  %v5535_v17 = vld [vmem:[#allocation8_spill] sm:$0xff] }
  0xa7   : > { %5508 = vst [vmem:[#allocation79_spill] sm:$0xff] %v3698_v61  ;;  %5509 = vst [vmem:[#allocation80_spill] sm:$0xff] %v3701_v0  ;;  %v3731_v41 = vadd.f32 %v989_v38, %v5524_v40  ;;  %v3734_v7 = vadd.f32 %v990_v14, %v5526_v44  ;;  %v3737_v28 = vadd.f32 %v991_v46, %v5528_v52  ;;  %v5537_v38 = vld [vmem:[#allocation6_spill] sm:$0xff]  ;;  %v5538_v27 = vld [vmem:[#allocation7_spill] sm:$0xff] }
  0xa8   : > { %5510 = vst [vmem:[#allocation81_spill] sm:$0xff] %v3704_v13  ;;  %5511 = vst [vmem:[#allocation82_spill] sm:$0xff] %v3707_v8  ;;  %v3740_v51 = vadd.f32 %v992_v4, %v5530_v18  ;;  %v3743_v24 = vadd.f32 %v993_v10, %v5532_v22  ;;  %v1031_v5 = vmul.f32 %v2404_v12, %v5534_v49  ;;  %v5539_v11 = vld [vmem:[#allocation12_spill] sm:$0xff]  ;;  %v5540_v46 = vld [vmem:[#allocation13_spill] sm:$0xff] }
  0xa9   : > { %5513 = vst [vmem:[#allocation83_spill] sm:$0xff] %v3710_v3  ;;  %5515 = vst [vmem:[#allocation84_spill] sm:$0xff] %v3716_v1  ;;  %v1032_v63 = vmul.f32 %v2404_v12, %v5535_v17  ;;  %v1033_v25 = vmul.f32 %v2404_v12, %v5536_v34  ;;  %v1034_v19 = vmul.f32 %v5537_v38, %v2404_v12  ;;  %v5541_v59 = vld [vmem:[#allocation14_spill] sm:$0xff]  ;;  %v5542_v54 = vld [vmem:[#allocation15_spill] sm:$0xff] }
  0xaa   : > { %5517 = vst [vmem:[#allocation85_spill] sm:$0xff] %v3719_v48  ;;  %5519 = vst [vmem:[#allocation3_spill] sm:$0xff] %v3722_v47  ;;  %v1035_v14 = vmul.f32 %v5538_v27, %v2404_v12  ;;  %v1036_v45 = vmul.f32 %v2404_v12, %v5539_v11  ;;  %v1037_v56 = vmul.f32 %v2404_v12, %v5540_v46  ;;  %v5543_v10 = vld [vmem:[#allocation10_spill] sm:$0xff]  ;;  %v5544_v16 = vld [vmem:[#allocation11_spill] sm:$0xff] }
  0xab   : > { %5521 = vst [vmem:[#allocation4_spill] sm:$0xff] %v3725_v6  ;;  %5523 = vst [vmem:[#allocation2_spill] sm:$0xff] %v3728_v23  ;;  %v1038_v4 = vmul.f32 %v2404_v12, %v5541_v59  ;;  %v1039_v60 = vmul.f32 %v2404_v12, %v5542_v54  ;;  %v3755_v26 = vmul.f32 %v5543_v10, %v2404_v12  ;;  %v5545_v40 = vld [vmem:[#allocation16_spill] sm:$0xff]  ;;  %v5546_v52 = vld [vmem:[#allocation17_spill] sm:$0xff]  ;;  %v1128_v37 = vrot.slane %v1032_v63, 1 }
  0xac   : > { %5525 = vst [vmem:[#allocation56_spill] sm:$0xff] %v3731_v41  ;;  %5527 = vst [vmem:[#allocation57_spill] sm:$0xff] %v3734_v7  ;;  %v3758_v36 = vmul.f32 %v5544_v16, %v2404_v12  ;;  %v1042_v44 = vmul.f32 %v2404_v12, %v5545_v40  ;;  %v3762_v18 = vmul.f32 %v2404_v12, %v5546_v52  ;;  %v5547_v22 = vld [vmem:[#allocation20_spill] sm:$0xff]  ;;  %v5548_v11 = vld [vmem:[#allocation21_spill] sm:$0xff]  ;;  %v1130_v2 = vrot.slane %v1033_v25, 1 }
  0xad   : > { %5529 = vst [vmem:[#allocation58_spill] sm:$0xff] %v3737_v28  ;;  %5531 = vst [vmem:[#allocation59_spill] sm:$0xff] %v3740_v51  ;;  %v3765_v27 = vmul.f32 %v2404_v12, %v5547_v22  ;;  %v3768_v46 = vmul.f32 %v2404_v12, %v5548_v11  ;;  %v5549_v59 = vld [vmem:[#allocation18_spill] sm:$0xff]  ;;  %v5550_v54 = vld [vmem:[#allocation19_spill] sm:$0xff]  ;;  %v1133_v39 = vrot.slane %v1035_v14, 1  ;;  %v1135_v15 = vrot.slane %v1036_v45, 1 }
  0xae   : > { %5533 = vst [vmem:[#allocation60_spill] sm:$0xff] %v3743_v24  ;;  %v3771_v38 = vmul.f32 %v5549_v59, %v2404_v12  ;;  %v3774_v10 = vmul.f32 %v5550_v54, %v2404_v12  ;;  %v5551_v34 = vld [vmem:[#allocation24_spill] sm:$0xff]  ;;  %v5552_v17 = vld [vmem:[#allocation25_spill] sm:$0xff]  ;;  %v5555_v11 = vld [vmem:[#allocation22_spill] sm:$0xff]  ;;  %v1138_v57 = vrot.slane %v1038_v4, 1  ;;  %v1140_v33 = vrot.slane %v1039_v60, 1 }
  0xaf   : > { %v3777_v16 = vmul.f32 %v2404_v12, %v5551_v34  ;;  %v3780_v40 = vmul.f32 %v2404_v12, %v5552_v17  ;;  %v5553_v52 = vld [vmem:[#allocation28_spill] sm:$0xff]  ;;  %v5554_v22 = vld [vmem:[#allocation29_spill] sm:$0xff]  ;;  %v3789_v51 = vmul.f32 %v5555_v11, %v2404_v12  ;;  %v5556_v59 = vld [vmem:[#allocation23_spill] sm:$0xff]  ;;  %v1145_v14 = vrot.slane %v1042_v44, 1 }
  0xb0   : > { %v3783_v49 = vmul.f32 %v2404_v12, %v5553_v52  ;;  %v3786_v24 = vmul.f32 %v2404_v12, %v5554_v22  ;;  %v3792_v28 = vmul.f32 %v5556_v59, %v2404_v12  ;;  %v5557_v54 = vld [vmem:[#allocation30_spill] sm:$0xff]  ;;  %v5558_v34 = vld [vmem:[#allocation31_spill] sm:$0xff]  ;;  %v5559_v17 = vld [vmem:[#allocation32_spill] sm:$0xff]  ;;  %v3886_v25 = vsel %vm566_vm0, %v1138_v57, %v1140_v33 }
  0xb1   : > { %v3795_v7 = vmul.f32 %v2404_v12, %v5557_v54  ;;  %v3798_v41 = vmul.f32 %v2404_v12, %v5558_v34  ;;  %v3801_v23 = vmul.f32 %v2404_v12, %v5559_v17  ;;  %v5560_v52 = vld [vmem:[#allocation33_spill] sm:$0xff]  ;;  %v5561_v22 = vld [vmem:[#allocation26_spill] sm:$0xff]  ;;  %v5562_v11 = vld [vmem:[#allocation27_spill] sm:$0xff]  ;;  %v1155_v33 = vrot.slane %v3777_v16, 1 }
  0xb2   : > { %v3804_v6 = vmul.f32 %v2404_v12, %v5560_v52  ;;  %v3807_v47 = vmul.f32 %v5561_v22, %v2404_v12  ;;  %v3810_v48 = vmul.f32 %v5562_v11, %v2404_v12  ;;  %v5563_v59 = vld [vmem:[#allocation36_spill] sm:$0xff]  ;;  %v5564_v54 = vld [vmem:[#allocation37_spill] sm:$0xff]  ;;  %v5567_v52 = vld [vmem:[#allocation34_spill] sm:$0xff]  ;;  %v1160_v60 = vrot.slane %v3786_v24, 1 }
  0xb3   : > { %v3813_v1 = vmul.f32 %v2404_v12, %v5563_v59  ;;  %v3816_v3 = vmul.f32 %v2404_v12, %v5564_v54  ;;  %v5565_v34 = vld [vmem:[#allocation40_spill] sm:$0xff]  ;;  %v5566_v17 = vld [vmem:[#allocation41_spill] sm:$0xff]  ;;  %v3825_v0 = vmul.f32 %v5567_v52, %v2404_v12  ;;  %v5568_v22 = vld [vmem:[#allocation35_spill] sm:$0xff]  ;;  %v3834_v59 = vmul.f32 %v2404_v12, %v5485_v35 }
  0xb4   : > { %v3819_v8 = vmul.f32 %v2404_v12, %v5565_v34  ;;  %v3822_v13 = vmul.f32 %v2404_v12, %v5566_v17  ;;  %v3828_v61 = vmul.f32 %v5568_v22, %v2404_v12  ;;  %v5569_v11 = vld [vmem:[#allocation45_spill] sm:$0xff]  ;;  %v5570_v54 = vld [vmem:[#allocation47_spill] sm:$0xff]  ;;  %v5571_v34 = vld [vmem:[#allocation48_spill] sm:$0xff]  ;;  %v3846_v52 = vmul.f32 %v5488_v55, %v2404_v12 }
  0xb5   : > { %v3831_v42 = vmul.f32 %v2404_v12, %v5569_v11  ;;  %v3837_v30 = vmul.f32 %v2404_v12, %v5570_v54  ;;  %v3840_v29 = vmul.f32 %v2404_v12, %v5571_v34  ;;  %v5572_v17 = vld [vmem:[#allocation38_spill] sm:$0xff]  ;;  %v5573_v22 = vld [vmem:[#allocation49_spill] sm:$0xff]  ;;  %v5575_v35 = vld [vmem:[#allocation51_spill] sm:$0xff]  ;;  %v3861_v34 = vmul.f32 %v5491_v32, %v2404_v12 }
  0xb6   : > { %v3843_v43 = vmul.f32 %v5572_v17, %v2404_v12  ;;  %v3849_v20 = vmul.f32 %v2404_v12, %v5573_v22  ;;  %v5574_v11 = vld [vmem:[#allocation50_spill] sm:$0xff]  ;;  %v3855_v58 = vmul.f32 %v2404_v12, %v5575_v35  ;;  %v5576_v54 = vld [vmem:[#allocation52_spill] sm:$0xff]  ;;  %v3864_v17 = vmul.f32 %v5492_v62, %v2404_v12  ;;  %v5577_v55 = vld [vmem:[#allocation53_spill] sm:$0xff] }
  0xb7   : > { %v3852_v21 = vmul.f32 %v2404_v12, %v5574_v11  ;;  %v3858_v31 = vmul.f32 %v2404_v12, %v5576_v54  ;;  %v3867_v50 = vmul.f32 %v2404_v12, %v5577_v55  ;;  %v1127_v22 = vrot.slane %v1031_v5, 1 }
  0xb8   : > { %v1132_v11 = vrot.slane %v1034_v19, 1  ;;  %v1137_v54 = vrot.slane %v1037_v56, 1  ;;  %v3873_v32 = vsel %vm566_vm0, %v1128_v37, %v1130_v2  ;;  %v3879_v12 = vsel %vm566_vm0, %v1133_v39, %v1135_v15 }
  0xb9   : > { %v3870_v35 = vsel %vm566_vm0, %v1127_v22, %v1128_v37  ;;  %v1142_v5 = vrot.slane %v3755_v26, 1  ;;  %v1143_v19 = vrot.slane %v3758_v36, 1  ;;  %v1147_v2 = vrot.slane %v3762_v18, 1 }
  0xba   : > { %v3876_v62 = vsel %vm566_vm0, %v1132_v11, %v1133_v39  ;;  %v3883_v63 = vsel %vm566_vm0, %v1137_v54, %v1138_v57  ;;  %v1148_v37 = vrot.slane %v3765_v27, 1  ;;  %v1150_v11 = vrot.slane %v3768_v46, 1 }
  0xbb   : > { %v1152_v39 = vrot.slane %v3771_v38, 1  ;;  %v3894_v15 = vsel %vm566_vm0, %v1142_v5, %v1143_v19  ;;  %v3897_v45 = vsel %vm566_vm0, %v1143_v19, %v1145_v14  ;;  %v1153_v57 = vrot.slane %v3774_v10, 1 }
  0xbc   : > { %v1149_v56 = vsel %vm566_vm0, %v1147_v2, %v1148_v37  ;;  %v1151_v4 = vsel %vm566_vm0, %v1148_v37, %v1150_v11  ;;  %v1157_v27 = vrot.slane %v3780_v40, 1  ;;  %v1158_v46 = vrot.slane %v3783_v49, 1 }
  0xbd   : > { %v1154_v38 = vsel %vm566_vm0, %v1152_v39, %v1153_v57  ;;  %v1156_v54 = vsel %vm566_vm0, %v1153_v57, %v1155_v33  ;;  %v1162_v26 = vrot.slane %v3789_v51, 1  ;;  %v1163_v16 = vrot.slane %v3792_v28, 1 }
  0xbe   : > { %v1159_v10 = vsel %vm566_vm0, %v1157_v27, %v1158_v46  ;;  %v1165_v36 = vrot.slane %v3795_v7, 1  ;;  %v1167_v44 = vrot.slane %v3798_v41, 1  ;;  %v1161_v40 = vsel %vm566_vm0, %v1158_v46, %v1160_v60 }
  0xbf   : > { %v1168_v49 = vrot.slane %v3801_v23, 1  ;;  %v1170_v18 = vrot.slane %v3804_v6, 1  ;;  %v1172_v22 = vrot.slane %v3807_v47, 1  ;;  %v1164_v24 = vsel %vm566_vm0, %v1162_v26, %v1163_v16 }
  0xc0   : > { %v1166_v51 = vsel %vm566_vm0, %v1163_v16, %v1165_v36  ;;  %v1173_v5 = vrot.slane %v3810_v48, 1  ;;  %v1175_v28 = vrot.slane %v3813_v1, 1  ;;  %v1177_v19 = vrot.slane %v3816_v3, 1  ;;  %v5578_v36 = vld [vmem:[#allocation64_spill] sm:$0xff] }
  0xc1   : > { %v1169_v7 = vsel %vm566_vm0, %v1167_v44, %v1168_v49  ;;  %v1171_v41 = vsel %vm566_vm0, %v1168_v49, %v1170_v18  ;;  %v1178_v23 = vrot.slane %v3819_v8, 1  ;;  %v1180_v14 = vrot.slane %v3822_v13, 1  ;;  %v5584_v49 = vld [vmem:[#allocation67_spill] sm:$0xff]  ;;  %v5588_v18 = vld [vmem:[#allocation69_spill] sm:$0xff] }
  0xc2   : > { %v1174_v6 = vsel %vm566_vm0, %v1172_v22, %v1173_v5  ;;  %v1176_v47 = vsel %vm566_vm0, %v1173_v5, %v1175_v28  ;;  %v1182_v2 = vrot.slane %v3825_v0, 1  ;;  %v1183_v1 = vrot.slane %v3828_v61, 1  ;;  %v5590_v22 = vld [vmem:[#allocation70_spill] sm:$0xff]  ;;  %v5592_v28 = vld [vmem:[#allocation71_spill] sm:$0xff] }
  0xc3   : > { %v1179_v48 = vsel %vm566_vm0, %v1177_v19, %v1178_v23  ;;  %v1185_v37 = vrot.slane %v3831_v42, 1  ;;  %v1187_v11 = vrot.slane %v3834_v59, 1  ;;  %v1181_v3 = vsel %vm566_vm0, %v1178_v23, %v1180_v14  ;;  %v5596_v14 = vld [vmem:[#allocation73_spill] sm:$0xff] }
  0xc4   : > { %v1188_v8 = vrot.slane %v3837_v30, 1  ;;  %v1190_v39 = vrot.slane %v3840_v29, 1  ;;  %v1192_v57 = vrot.slane %v3843_v43, 1  ;;  %v1184_v13 = vsel %vm566_vm0, %v1182_v2, %v1183_v1  ;;  %v5598_v2 = vld [vmem:[#allocation74_spill] sm:$0xff] }
  0xc5   : > { %v1186_v0 = vsel %vm566_vm0, %v1183_v1, %v1185_v37  ;;  %v1193_v33 = vrot.slane %v3846_v52, 1  ;;  %v1195_v61 = vrot.slane %v3849_v20, 1  ;;  %v1197_v27 = vrot.slane %v3852_v21, 1 }
  0xc6   : > { %v1189_v42 = vsel %vm566_vm0, %v1187_v11, %v1188_v8  ;;  %v1191_v59 = vsel %vm566_vm0, %v1188_v8, %v1190_v39  ;;  %v1198_v30 = vrot.slane %v3855_v58, 1  ;;  %v1200_v46 = vrot.slane %v3858_v31, 1 }
  0xc7   : > { %v1194_v29 = vsel %vm566_vm0, %v1192_v57, %v1193_v33  ;;  %v1196_v43 = vsel %vm566_vm0, %v1193_v33, %v1195_v61  ;;  %v1202_v60 = vrot.slane %v3861_v34, 1  ;;  %v1203_v20 = vrot.slane %v3864_v17, 1  ;;  %v5580_v34 = vld [vmem:[#allocation65_spill] sm:$0xff] }
  0xc8   : > { %v1199_v52 = vsel %vm566_vm0, %v1197_v27, %v1198_v30  ;;  %v1205_v26 = vrot.slane %v3867_v50, 1  ;;  %v3954_v16 = vadd.f32 %v3870_v35, %v3647_v53  ;;  %v1201_v58 = vsel %vm566_vm0, %v1198_v30, %v1200_v46  ;;  %v5582_v35 = vld [vmem:[#allocation66_spill] sm:$0xff] }
  0xc9   : > { %v3959_v21 = vadd.f32 %v3873_v32, %v3650_v9  ;;  %v3963_v31 = vadd.f32 %v3876_v62, %v5578_v36  ;;  %v3967_v44 = vadd.f32 %v3879_v12, %v5580_v34  ;;  %v1204_v50 = vsel %vm566_vm0, %v1202_v60, %v1203_v20  ;;  %v5586_v9 = vld [vmem:[#allocation68_spill] sm:$0xff] }
  0xca   : > { %v1206_v17 = vsel %vm566_vm0, %v1203_v20, %v1205_v26  ;;  %v3973_v53 = vadd.f32 %v3883_v63, %v5582_v35  ;;  %v3977_v32 = vadd.f32 %v3886_v25, %v5584_v49  ;;  %v3981_v62 = vadd.f32 %v3894_v15, %v5586_v9  ;;  %v5594_v63 = vld [vmem:[#allocation72_spill] sm:$0xff]  ;;  %v5600_v15 = vld [vmem:[#allocation75_spill] sm:$0xff]  ;;  %v5630_v35 = vld [vmem:[#allocation57_spill] sm:$0xff] }
  0xcb   : > { %5579 = vst [vmem:[#allocation61_spill] sm:$0xff] %v3963_v31  ;;  %5581 = vst [vmem:[#allocation62_spill] sm:$0xff] %v3967_v44  ;;  %v3985_v12 = vadd.f32 %v3897_v45, %v5588_v18  ;;  %v3988_v5 = vadd.f32 %v1149_v56, %v5590_v22  ;;  %v3991_v19 = vadd.f32 %v1151_v4, %v5592_v28  ;;  %v5602_v45 = vld [vmem:[#allocation76_spill] sm:$0xff]  ;;  %v5604_v56 = vld [vmem:[#allocation77_spill] sm:$0xff] }
  0xcc   : > { %5583 = vst [vmem:[#allocation63_spill] sm:$0xff] %v3973_v53  ;;  %5585 = vst [vmem:[#allocation64_spill] sm:$0xff] %v3977_v32  ;;  %v3994_v23 = vadd.f32 %v1154_v38, %v5594_v63  ;;  %v3997_v25 = vadd.f32 %v1156_v54, %v5596_v14  ;;  %v4000_v1 = vadd.f32 %v1159_v10, %v5598_v2  ;;  %v5606_v4 = vld [vmem:[#allocation78_spill] sm:$0xff]  ;;  %v5608_v38 = vld [vmem:[#allocation79_spill] sm:$0xff] }
  0xcd   : > { %5587 = vst [vmem:[#allocation65_spill] sm:$0xff] %v3981_v62  ;;  %5589 = vst [vmem:[#allocation66_spill] sm:$0xff] %v3985_v12  ;;  %v4003_v37 = vadd.f32 %v1161_v40, %v5600_v15  ;;  %v4006_v11 = vadd.f32 %v1164_v24, %v5602_v45  ;;  %v4009_v8 = vadd.f32 %v1166_v51, %v5604_v56  ;;  %v5610_v54 = vld [vmem:[#allocation80_spill] sm:$0xff]  ;;  %v5612_v10 = vld [vmem:[#allocation81_spill] sm:$0xff] }
  0xce   : > { %5591 = vst [vmem:[#allocation67_spill] sm:$0xff] %v3988_v5  ;;  %5593 = vst [vmem:[#allocation68_spill] sm:$0xff] %v3991_v19  ;;  %v4012_v39 = vadd.f32 %v1169_v7, %v5606_v4  ;;  %v4015_v57 = vadd.f32 %v1171_v41, %v5608_v38  ;;  %v4018_v33 = vadd.f32 %v1174_v6, %v5610_v54  ;;  %v5614_v40 = vld [vmem:[#allocation82_spill] sm:$0xff]  ;;  %v5616_v24 = vld [vmem:[#allocation83_spill] sm:$0xff] }
  0xcf   : > { %5595 = vst [vmem:[#allocation69_spill] sm:$0xff] %v3994_v23  ;;  %5597 = vst [vmem:[#allocation70_spill] sm:$0xff] %v3997_v25  ;;  %v4021_v61 = vadd.f32 %v1176_v47, %v5612_v10  ;;  %v4024_v27 = vadd.f32 %v1179_v48, %v5614_v40  ;;  %v4027_v30 = vadd.f32 %v1181_v3, %v5616_v24  ;;  %v2405_v51 = vld [vmem:[%s5115_s2 + $0x5] ss:$0 sm:$0xff]  ;;  %v5618_v7 = vld [vmem:[#allocation84_spill] sm:$0xff] }
  0xd0   : > { %5599 = vst [vmem:[#allocation71_spill] sm:$0xff] %v4000_v1  ;;  %5601 = vst [vmem:[#allocation72_spill] sm:$0xff] %v4003_v37  ;;  %v4033_v46 = vadd.f32 %v1184_v13, %v5618_v7  ;;  %v5620_v41 = vld [vmem:[#allocation85_spill] sm:$0xff]  ;;  %v5622_v6 = vld [vmem:[#allocation3_spill] sm:$0xff]  ;;  %v4051_v49 = vadd.f32 %v1199_v52, %v5630_v35 }
  0xd1   : > { %5603 = vst [vmem:[#allocation73_spill] sm:$0xff] %v4006_v11  ;;  %5605 = vst [vmem:[#allocation74_spill] sm:$0xff] %v4009_v8  ;;  %v4036_v60 = vadd.f32 %v1186_v0, %v5620_v41  ;;  %v4039_v20 = vadd.f32 %v1189_v42, %v5622_v6  ;;  %v5624_v47 = vld [vmem:[#allocation4_spill] sm:$0xff]  ;;  %v5626_v48 = vld [vmem:[#allocation2_spill] sm:$0xff] }
  0xd2   : > { %5607 = vst [vmem:[#allocation75_spill] sm:$0xff] %v4012_v39  ;;  %5609 = vst [vmem:[#allocation76_spill] sm:$0xff] %v4015_v57  ;;  %v4042_v26 = vadd.f32 %v1191_v59, %v5624_v47  ;;  %v4045_v36 = vadd.f32 %v1194_v29, %v5626_v48  ;;  %v5628_v3 = vld [vmem:[#allocation56_spill] sm:$0xff]  ;;  %v5632_v13 = vld [vmem:[#allocation58_spill] sm:$0xff] }
  0xd3   : > { %5611 = vst [vmem:[#allocation77_spill] sm:$0xff] %v4018_v33  ;;  %5613 = vst [vmem:[#allocation78_spill] sm:$0xff] %v4021_v61  ;;  %v4048_v34 = vadd.f32 %v1196_v43, %v5628_v3  ;;  %v4054_v9 = vadd.f32 %v1201_v58, %v5632_v13  ;;  %v5634_v0 = vld [vmem:[#allocation59_spill] sm:$0xff]  ;;  %v5636_v42 = vld [vmem:[#allocation60_spill] sm:$0xff] }
  0xd4   : > { %5615 = vst [vmem:[#allocation79_spill] sm:$0xff] %v4024_v27  ;;  %5617 = vst [vmem:[#allocation80_spill] sm:$0xff] %v4027_v30  ;;  %v4057_v18 = vadd.f32 %v1204_v50, %v5634_v0  ;;  %v4060_v22 = vadd.f32 %v1206_v17, %v5636_v42  ;;  %v5638_v59 = vld [vmem:[#allocation5_spill] sm:$0xff]  ;;  %v5639_v63 = vld [vmem:[#allocation8_spill] sm:$0xff] }
  0xd5   : > { %5619 = vst [vmem:[#allocation81_spill] sm:$0xff] %v4033_v46  ;;  %5621 = vst [vmem:[#allocation82_spill] sm:$0xff] %v4036_v60  ;;  %v1276_v28 = vmul.f32 %v2405_v51, %v5638_v59  ;;  %v1277_v29 = vmul.f32 %v2405_v51, %v5639_v63  ;;  %v5640_v14 = vld [vmem:[#allocation9_spill] sm:$0xff]  ;;  %v5641_v43 = vld [vmem:[#allocation6_spill] sm:$0xff] }
  0xd6   : > { %5623 = vst [vmem:[#allocation83_spill] sm:$0xff] %v4039_v20  ;;  %5625 = vst [vmem:[#allocation84_spill] sm:$0xff] %v4042_v26  ;;  %v1278_v2 = vmul.f32 %v2405_v51, %v5640_v14  ;;  %v1279_v15 = vmul.f32 %v5641_v43, %v2405_v51  ;;  %v5642_v45 = vld [vmem:[#allocation7_spill] sm:$0xff]  ;;  %v5643_v56 = vld [vmem:[#allocation12_spill] sm:$0xff] }
  0xd7   : > { %5627 = vst [vmem:[#allocation85_spill] sm:$0xff] %v4045_v36  ;;  %5629 = vst [vmem:[#allocation3_spill] sm:$0xff] %v4048_v34  ;;  %v1280_v52 = vmul.f32 %v5642_v45, %v2405_v51  ;;  %v1281_v4 = vmul.f32 %v2405_v51, %v5643_v56  ;;  %v5644_v58 = vld [vmem:[#allocation13_spill] sm:$0xff]  ;;  %v5645_v54 = vld [vmem:[#allocation14_spill] sm:$0xff]  ;;  %v1373_v12 = vrot.slane %v1277_v29, 2 }
  0xd8   : > { %5631 = vst [vmem:[#allocation4_spill] sm:$0xff] %v4051_v49  ;;  %5633 = vst [vmem:[#allocation2_spill] sm:$0xff] %v4054_v9  ;;  %v1282_v38 = vmul.f32 %v2405_v51, %v5644_v58  ;;  %v1283_v50 = vmul.f32 %v2405_v51, %v5645_v54  ;;  %v5646_v10 = vld [vmem:[#allocation15_spill] sm:$0xff]  ;;  %v5647_v17 = vld [vmem:[#allocation10_spill] sm:$0xff]  ;;  %v1375_v62 = vrot.slane %v1278_v2, 2 }
  0xd9   : > { %5635 = vst [vmem:[#allocation56_spill] sm:$0xff] %v4057_v18  ;;  %5637 = vst [vmem:[#allocation57_spill] sm:$0xff] %v4060_v22  ;;  %v1284_v40 = vmul.f32 %v2405_v51, %v5646_v10  ;;  %v4072_v24 = vmul.f32 %v5647_v17, %v2405_v51  ;;  %v5648_v7 = vld [vmem:[#allocation11_spill] sm:$0xff]  ;;  %v5649_v6 = vld [vmem:[#allocation16_spill] sm:$0xff]  ;;  %v1378_v32 = vrot.slane %v1280_v52, 2  ;;  %v1380_v53 = vrot.slane %v1281_v4, 2 }
  0xda   : > { %v4075_v41 = vmul.f32 %v5648_v7, %v2405_v51  ;;  %v1287_v47 = vmul.f32 %v2405_v51, %v5649_v6  ;;  %v5650_v48 = vld [vmem:[#allocation17_spill] sm:$0xff]  ;;  %v5651_v35 = vld [vmem:[#allocation20_spill] sm:$0xff]  ;;  %v5653_v59 = vld [vmem:[#allocation18_spill] sm:$0xff]  ;;  %v1383_v44 = vrot.slane %v1283_v50, 2 }
  0xdb   : > { %v4079_v3 = vmul.f32 %v2405_v51, %v5650_v48  ;;  %v4082_v13 = vmul.f32 %v2405_v51, %v5651_v35  ;;  %v5652_v0 = vld [vmem:[#allocation21_spill] sm:$0xff]  ;;  %v4088_v63 = vmul.f32 %v5653_v59, %v2405_v51  ;;  %v5654_v14 = vld [vmem:[#allocation19_spill] sm:$0xff]  ;;  %v5655_v56 = vld [vmem:[#allocation24_spill] sm:$0xff]  ;;  %v1385_v31 = vrot.slane %v1284_v40, 2 }
  0xdc   : > { %v4085_v42 = vmul.f32 %v2405_v51, %v5652_v0  ;;  %v4091_v10 = vmul.f32 %v5654_v14, %v2405_v51  ;;  %v4094_v7 = vmul.f32 %v2405_v51, %v5655_v56  ;;  %v5656_v17 = vld [vmem:[#allocation25_spill] sm:$0xff]  ;;  %v5657_v48 = vld [vmem:[#allocation28_spill] sm:$0xff]  ;;  %v5659_v0 = vld [vmem:[#allocation22_spill] sm:$0xff]  ;;  %v1390_v52 = vrot.slane %v1287_v47, 2 }
  0xdd   : > { %v4097_v6 = vmul.f32 %v2405_v51, %v5656_v17  ;;  %v4100_v54 = vmul.f32 %v2405_v51, %v5657_v48  ;;  %v5658_v35 = vld [vmem:[#allocation29_spill] sm:$0xff]  ;;  %v4106_v45 = vmul.f32 %v5659_v0, %v2405_v51  ;;  %v5660_v59 = vld [vmem:[#allocation23_spill] sm:$0xff]  ;;  %v5661_v14 = vld [vmem:[#allocation30_spill] sm:$0xff]  ;;  %v4203_v2 = vsel %vm812_vm1, %v1383_v44, %v1385_v31 }
  0xde   : > { %v4103_v58 = vmul.f32 %v2405_v51, %v5658_v35  ;;  %v4109_v43 = vmul.f32 %v5660_v59, %v2405_v51  ;;  %v4112_v22 = vmul.f32 %v2405_v51, %v5661_v14  ;;  %v5662_v56 = vld [vmem:[#allocation31_spill] sm:$0xff]  ;;  %v5663_v17 = vld [vmem:[#allocation32_spill] sm:$0xff]  ;;  %v5664_v48 = vld [vmem:[#allocation33_spill] sm:$0xff]  ;;  %v1395_v4 = vrot.slane %v4085_v42, 2 }
  0xdf   : > { %v4115_v18 = vmul.f32 %v2405_v51, %v5662_v56  ;;  %v4118_v9 = vmul.f32 %v2405_v51, %v5663_v17  ;;  %v4121_v49 = vmul.f32 %v2405_v51, %v5664_v48  ;;  %v5665_v35 = vld [vmem:[#allocation26_spill] sm:$0xff]  ;;  %v5666_v0 = vld [vmem:[#allocation27_spill] sm:$0xff]  ;;  %v5667_v59 = vld [vmem:[#allocation36_spill] sm:$0xff]  ;;  %v1398_v31 = vrot.slane %v4091_v10, 2 }
  0xe0   : > { %v4124_v34 = vmul.f32 %v5665_v35, %v2405_v51  ;;  %v4127_v36 = vmul.f32 %v5666_v0, %v2405_v51  ;;  %v4130_v26 = vmul.f32 %v2405_v51, %v5667_v59  ;;  %v5668_v14 = vld [vmem:[#allocation37_spill] sm:$0xff]  ;;  %v5669_v56 = vld [vmem:[#allocation40_spill] sm:$0xff]  ;;  %v5671_v48 = vld [vmem:[#allocation34_spill] sm:$0xff] }
  0xe1   : > { %v4133_v20 = vmul.f32 %v2405_v51, %v5668_v14  ;;  %v4136_v60 = vmul.f32 %v2405_v51, %v5669_v56  ;;  %v5670_v17 = vld [vmem:[#allocation41_spill] sm:$0xff]  ;;  %v4142_v30 = vmul.f32 %v5671_v48, %v2405_v51  ;;  %v5672_v35 = vld [vmem:[#allocation35_spill] sm:$0xff]  ;;  %v5674_v59 = vld [vmem:[#allocation46_spill] sm:$0xff]  ;;  %v1412_v42 = vrot.slane %v4115_v18, 2 }
  0xe2   : > { %v4139_v46 = vmul.f32 %v2405_v51, %v5670_v17  ;;  %v4145_v27 = vmul.f32 %v5672_v35, %v2405_v51  ;;  %v5673_v0 = vld [vmem:[#allocation45_spill] sm:$0xff]  ;;  %v4151_v33 = vmul.f32 %v2405_v51, %v5674_v59  ;;  %v5675_v14 = vld [vmem:[#allocation47_spill] sm:$0xff]  ;;  %v5676_v56 = vld [vmem:[#allocation48_spill] sm:$0xff] }
  0xe3   : > { %v4148_v61 = vmul.f32 %v2405_v51, %v5673_v0  ;;  %v4154_v57 = vmul.f32 %v2405_v51, %v5675_v14  ;;  %v4157_v39 = vmul.f32 %v2405_v51, %v5676_v56  ;;  %v5677_v17 = vld [vmem:[#allocation38_spill] sm:$0xff]  ;;  %v5678_v48 = vld [vmem:[#allocation39_spill] sm:$0xff]  ;;  %v5679_v35 = vld [vmem:[#allocation49_spill] sm:$0xff] }
  0xe4   : > { %v4160_v8 = vmul.f32 %v5677_v17, %v2405_v51  ;;  %v4163_v11 = vmul.f32 %v5678_v48, %v2405_v51  ;;  %v4166_v37 = vmul.f32 %v2405_v51, %v5679_v35  ;;  %v5680_v0 = vld [vmem:[#allocation50_spill] sm:$0xff]  ;;  %v5681_v59 = vld [vmem:[#allocation51_spill] sm:$0xff]  ;;  %v5682_v14 = vld [vmem:[#allocation52_spill] sm:$0xff]  ;;  %v4184_v48 = vmul.f32 %v2405_v51, %v5577_v55 }
  0xe5   : > { %v4169_v1 = vmul.f32 %v2405_v51, %v5680_v0  ;;  %v4172_v25 = vmul.f32 %v2405_v51, %v5681_v59  ;;  %v4175_v23 = vmul.f32 %v2405_v51, %v5682_v14  ;;  %v5683_v56 = vld [vmem:[#allocation42_spill] sm:$0xff]  ;;  %v5684_v17 = vld [vmem:[#allocation43_spill] sm:$0xff]  ;;  %v1372_v35 = vrot.slane %v1276_v28, 2  ;;  %v5741_v55 = vld [vmem:[#allocation32_spill] sm:$0xff] }
  0xe6   : > { %v4178_v19 = vmul.f32 %v5683_v56, %v2405_v51  ;;  %v4181_v5 = vmul.f32 %v5684_v17, %v2405_v51  ;;  %v1377_v0 = vrot.slane %v1279_v15, 2  ;;  %v1382_v14 = vrot.slane %v1282_v38, 2 }
  0xe7   : > { %v4187_v59 = vsel %vm812_vm1, %v1372_v35, %v1373_v12  ;;  %v4190_v56 = vsel %vm812_vm1, %v1373_v12, %v1375_v62  ;;  %v4196_v51 = vsel %vm812_vm1, %v1378_v32, %v1380_v53  ;;  %v1387_v28 = vrot.slane %v4072_v24, 2 }
  0xe8   : > { %v4193_v17 = vsel %vm812_vm1, %v1377_v0, %v1378_v32  ;;  %v4200_v29 = vsel %vm812_vm1, %v1382_v14, %v1383_v44  ;;  %v1388_v15 = vrot.slane %v4075_v41, 2  ;;  %v1392_v62 = vrot.slane %v4079_v3, 2 }
  0xe9   : > { %v1393_v12 = vrot.slane %v4082_v13, 2  ;;  %v1397_v53 = vrot.slane %v4088_v63, 2  ;;  %v1400_v44 = vrot.slane %v4094_v7, 2  ;;  %v1402_v24 = vrot.slane %v4097_v6, 2 }
  0xea   : > { %v4211_v32 = vsel %vm812_vm1, %v1387_v28, %v1388_v15  ;;  %v4214_v38 = vsel %vm812_vm1, %v1388_v15, %v1390_v52  ;;  %v1403_v41 = vrot.slane %v4100_v54, 2  ;;  %v1405_v35 = vrot.slane %v4103_v58, 2 }
  0xeb   : > { %v1394_v50 = vsel %vm812_vm1, %v1392_v62, %v1393_v12  ;;  %v1396_v40 = vsel %vm812_vm1, %v1393_v12, %v1395_v4  ;;  %v1399_v47 = vsel %vm812_vm1, %v1397_v53, %v1398_v31  ;;  %v1401_v3 = vsel %vm812_vm1, %v1398_v31, %v1400_v44 }
  0xec   : > { %v1407_v13 = vrot.slane %v4106_v45, 2  ;;  %v1404_v10 = vsel %vm812_vm1, %v1402_v24, %v1403_v41  ;;  %v1408_v7 = vrot.slane %v4109_v43, 2  ;;  %v1410_v0 = vrot.slane %v4112_v22, 2 }
  0xed   : > { %v1406_v6 = vsel %vm812_vm1, %v1403_v41, %v1405_v35  ;;  %v1413_v54 = vrot.slane %v4118_v9, 2  ;;  %v1415_v63 = vrot.slane %v4121_v49, 2  ;;  %v1417_v14 = vrot.slane %v4124_v34, 2 }
  0xee   : > { %v1409_v58 = vsel %vm812_vm1, %v1407_v13, %v1408_v7  ;;  %v1411_v45 = vsel %vm812_vm1, %v1408_v7, %v1410_v0  ;;  %v1418_v28 = vrot.slane %v4127_v36, 2  ;;  %v1420_v43 = vrot.slane %v4130_v26, 2  ;;  %v5685_v0 = vld [vmem:[#allocation61_spill] sm:$0xff] }
  0xef   : > { %v1414_v22 = vsel %vm812_vm1, %v1412_v42, %v1413_v54  ;;  %v1416_v18 = vsel %vm812_vm1, %v1413_v54, %v1415_v63  ;;  %v1422_v15 = vrot.slane %v4133_v20, 2  ;;  %v1423_v9 = vrot.slane %v4136_v60, 2  ;;  %v5688_v54 = vld [vmem:[#allocation64_spill] sm:$0xff]  ;;  %v5690_v63 = vld [vmem:[#allocation66_spill] sm:$0xff] }
  0xf0   : > { %v1419_v49 = vsel %vm812_vm1, %v1417_v14, %v1418_v28  ;;  %v1421_v34 = vsel %vm812_vm1, %v1418_v28, %v1420_v43  ;;  %v1425_v52 = vrot.slane %v4139_v46, 2  ;;  %v1427_v62 = vrot.slane %v4142_v30, 2  ;;  %v5691_v14 = vld [vmem:[#allocation67_spill] sm:$0xff]  ;;  %v5692_v43 = vld [vmem:[#allocation68_spill] sm:$0xff] }
  0xf1   : > { %v1424_v36 = vsel %vm812_vm1, %v1422_v15, %v1423_v9  ;;  %v1428_v26 = vrot.slane %v4145_v27, 2  ;;  %v1430_v12 = vrot.slane %v4148_v61, 2  ;;  %v1432_v4 = vrot.slane %v4151_v33, 2 }
  0xf2   : > { %v1426_v20 = vsel %vm812_vm1, %v1423_v9, %v1425_v52  ;;  %v1433_v60 = vrot.slane %v4154_v57, 2  ;;  %v1435_v53 = vrot.slane %v4157_v39, 2  ;;  %v1437_v31 = vrot.slane %v4160_v8, 2  ;;  %v5694_v52 = vld [vmem:[#allocation70_spill] sm:$0xff] }
  0xf3   : > { %v1429_v46 = vsel %vm812_vm1, %v1427_v62, %v1428_v26  ;;  %v1431_v30 = vsel %vm812_vm1, %v1428_v26, %v1430_v12  ;;  %v1438_v44 = vrot.slane %v4163_v11, 2  ;;  %v1440_v27 = vrot.slane %v4166_v37, 2  ;;  %v5695_v62 = vld [vmem:[#allocation71_spill] sm:$0xff] }
  0xf4   : > { %v1434_v61 = vsel %vm812_vm1, %v1432_v4, %v1433_v60  ;;  %v1436_v33 = vsel %vm812_vm1, %v1433_v60, %v1435_v53  ;;  %v1442_v24 = vrot.slane %v4169_v1, 2  ;;  %v1443_v57 = vrot.slane %v4172_v25, 2 }
  0xf5   : > { %v1439_v39 = vsel %vm812_vm1, %v1437_v31, %v1438_v44  ;;  %v1441_v8 = vsel %vm812_vm1, %v1438_v44, %v1440_v27  ;;  %v1445_v41 = vrot.slane %v4175_v23, 2  ;;  %v1447_v35 = vrot.slane %v4178_v19, 2  ;;  %v5686_v19 = vld [vmem:[#allocation62_spill] sm:$0xff] }
  0xf6   : > { %v1444_v11 = vsel %vm812_vm1, %v1442_v24, %v1443_v57  ;;  %v1448_v37 = vrot.slane %v4181_v5, 2  ;;  %v1450_v13 = vrot.slane %v4184_v48, 2  ;;  %v4271_v7 = vadd.f32 %v4187_v59, %v3954_v16  ;;  %v5687_v16 = vld [vmem:[#allocation63_spill] sm:$0xff] }
  0xf7   : > { %v1446_v25 = vsel %vm812_vm1, %v1443_v57, %v1445_v41  ;;  %v4276_v1 = vadd.f32 %v4190_v56, %v3959_v21  ;;  %v4280_v23 = vadd.f32 %v4193_v17, %v5685_v0  ;;  %v4284_v42 = vadd.f32 %v4196_v51, %v5686_v19  ;;  %v5689_v56 = vld [vmem:[#allocation65_spill] sm:$0xff] }
  0xf8   : > { %v1449_v5 = vsel %vm812_vm1, %v1447_v35, %v1448_v37  ;;  %v1451_v48 = vsel %vm812_vm1, %v1448_v37, %v1450_v13  ;;  %v4290_v59 = vadd.f32 %v4200_v29, %v5687_v16  ;;  %v4294_v21 = vadd.f32 %v4203_v2, %v5688_v54  ;;  %v5693_v29 = vld [vmem:[#allocation69_spill] sm:$0xff]  ;;  %v5718_v16 = vld [vmem:[#allocation4_spill] sm:$0xff] }
  0xf9   : > { %v4298_v17 = vadd.f32 %v4211_v32, %v5689_v56  ;;  %v4302_v51 = vadd.f32 %v4214_v38, %v5690_v63  ;;  %v4305_v28 = vadd.f32 %v1394_v50, %v5691_v14  ;;  %v4308_v15 = vadd.f32 %v1396_v40, %v5692_v43  ;;  %v5696_v32 = vld [vmem:[#allocation72_spill] sm:$0xff]  ;;  %v5697_v38 = vld [vmem:[#allocation73_spill] sm:$0xff]  ;;  %v5698_v50 = vld [vmem:[#allocation74_spill] sm:$0xff] }
  0xfa   : > { %v4311_v9 = vadd.f32 %v1399_v47, %v5693_v29  ;;  %v4314_v2 = vadd.f32 %v1401_v3, %v5694_v52  ;;  %v4317_v26 = vadd.f32 %v1404_v10, %v5695_v62  ;;  %v4320_v12 = vadd.f32 %v1406_v6, %v5696_v32  ;;  %v5699_v40 = vld [vmem:[#allocation75_spill] sm:$0xff]  ;;  %v5700_v47 = vld [vmem:[#allocation76_spill] sm:$0xff]  ;;  %v5701_v3 = vld [vmem:[#allocation77_spill] sm:$0xff] }
  0xfb   : > { %v4323_v4 = vadd.f32 %v1409_v58, %v5697_v38  ;;  %v4326_v60 = vadd.f32 %v1411_v45, %v5698_v50  ;;  %v4329_v53 = vadd.f32 %v1414_v22, %v5699_v40  ;;  %v4332_v31 = vadd.f32 %v1416_v18, %v5700_v47  ;;  %v5702_v10 = vld [vmem:[#allocation78_spill] sm:$0xff]  ;;  %v5703_v6 = vld [vmem:[#allocation79_spill] sm:$0xff]  ;;  %v5704_v58 = vld [vmem:[#allocation80_spill] sm:$0xff] }
  0xfc   : > { %v4335_v44 = vadd.f32 %v1419_v49, %v5701_v3  ;;  %v4338_v27 = vadd.f32 %v1421_v34, %v5702_v10  ;;  %v4341_v24 = vadd.f32 %v1424_v36, %v5703_v6  ;;  %v4344_v57 = vadd.f32 %v1426_v20, %v5704_v58  ;;  %v2406_v45 = vld [vmem:[%s5115_s2 + $0x6] ss:$0 sm:$0xff]  ;;  %v5706_v22 = vld [vmem:[#allocation81_spill] sm:$0xff]  ;;  %v5710_v49 = vld [vmem:[#allocation83_spill] sm:$0xff] }
  0xfd   : > { %v4350_v41 = vadd.f32 %v1429_v46, %v5706_v22  ;;  %v5708_v18 = vld [vmem:[#allocation82_spill] sm:$0xff]  ;;  %v4356_v37 = vadd.f32 %v1434_v61, %v5710_v49  ;;  %v5712_v34 = vld [vmem:[#allocation84_spill] sm:$0xff]  ;;  %v5714_v36 = vld [vmem:[#allocation85_spill] sm:$0xff]  ;;  %v4368_v54 = vadd.f32 %v1444_v11, %v5718_v16 }
  0xfe   : > { %5705 = vst [vmem:[#allocation58_spill] sm:$0xff] %v4344_v57  ;;  %v4353_v35 = vadd.f32 %v1431_v30, %v5708_v18  ;;  %v4359_v13 = vadd.f32 %v1436_v33, %v5712_v34  ;;  %v4362_v0 = vadd.f32 %v1439_v39, %v5714_v36  ;;  %v5716_v20 = vld [vmem:[#allocation3_spill] sm:$0xff]  ;;  %v5720_v46 = vld [vmem:[#allocation2_spill] sm:$0xff]  ;;  %v5722_v30 = vld [vmem:[#allocation56_spill] sm:$0xff] }
  0xff   : > { %5707 = vst [vmem:[#allocation59_spill] sm:$0xff] %v4350_v41  ;;  %5711 = vst [vmem:[#allocation5_spill] sm:$0xff] %v4356_v37  ;;  %v4365_v19 = vadd.f32 %v1441_v8, %v5716_v20  ;;  %v4371_v56 = vadd.f32 %v1446_v25, %v5720_v46  ;;  %v4374_v63 = vadd.f32 %v1449_v5, %v5722_v30  ;;  %v5724_v61 = vld [vmem:[#allocation57_spill] sm:$0xff]  ;;  %v5726_v33 = vld [vmem:[#allocation6_spill] sm:$0xff] }
 0x100   : > { %5709 = vst [vmem:[#allocation60_spill] sm:$0xff] %v4353_v35  ;;  %5713 = vst [vmem:[#allocation8_spill] sm:$0xff] %v4359_v13  ;;  %v4377_v14 = vadd.f32 %v1451_v48, %v5724_v61  ;;  %v1521_v43 = vmul.f32 %v5726_v33, %v2406_v45  ;;  %v5727_v29 = vld [vmem:[#allocation7_spill] sm:$0xff]  ;;  %v5728_v52 = vld [vmem:[#allocation13_spill] sm:$0xff] }
 0x101   : > { %5715 = vst [vmem:[#allocation9_spill] sm:$0xff] %v4362_v0  ;;  %5717 = vst [vmem:[#allocation61_spill] sm:$0xff] %v4365_v19  ;;  %v1522_v39 = vmul.f32 %v5727_v29, %v2406_v45  ;;  %v1523_v62 = vmul.f32 %v2406_v45, %v5728_v52  ;;  %v5729_v8 = vld [vmem:[#allocation14_spill] sm:$0xff]  ;;  %v5731_v50 = vld [vmem:[#allocation11_spill] sm:$0xff] }
 0x102   : > { %5719 = vst [vmem:[#allocation62_spill] sm:$0xff] %v4368_v54  ;;  %5721 = vst [vmem:[#allocation63_spill] sm:$0xff] %v4371_v56  ;;  %v1524_v32 = vmul.f32 %v2406_v45, %v5729_v8  ;;  %v5730_v38 = vld [vmem:[#allocation10_spill] sm:$0xff]  ;;  %v1526_v40 = vmul.f32 %v5731_v50, %v2406_v45  ;;  %v5732_v25 = vld [vmem:[#allocation17_spill] sm:$0xff]  ;;  %v1536_v50 = vmul.f32 %v2406_v45, %v5741_v55 }
 0x103   : > { %5723 = vst [vmem:[#allocation64_spill] sm:$0xff] %v4374_v63  ;;  %5725 = vst [vmem:[#allocation65_spill] sm:$0xff] %v4377_v14  ;;  %v1525_v11 = vmul.f32 %v5730_v38, %v2406_v45  ;;  %v1527_v47 = vmul.f32 %v2406_v45, %v5732_v25  ;;  %v5733_v3 = vld [vmem:[#allocation20_spill] sm:$0xff]  ;;  %v5734_v10 = vld [vmem:[#allocation18_spill] sm:$0xff] }
 0x104   : > { %v1528_v5 = vmul.f32 %v2406_v45, %v5733_v3  ;;  %v1529_v6 = vmul.f32 %v5734_v10, %v2406_v45  ;;  %v5735_v48 = vld [vmem:[#allocation19_spill] sm:$0xff]  ;;  %v5736_v22 = vld [vmem:[#allocation25_spill] sm:$0xff]  ;;  %v5737_v49 = vld [vmem:[#allocation28_spill] sm:$0xff] }
 0x105   : > { %v1530_v58 = vmul.f32 %v5735_v48, %v2406_v45  ;;  %v1531_v18 = vmul.f32 %v2406_v45, %v5736_v22  ;;  %v1532_v34 = vmul.f32 %v2406_v45, %v5737_v49  ;;  %v5738_v36 = vld [vmem:[#allocation22_spill] sm:$0xff]  ;;  %v5739_v16 = vld [vmem:[#allocation23_spill] sm:$0xff]  ;;  %v5744_v52 = vld [vmem:[#allocation37_spill] sm:$0xff] }
 0x106   : > { %v1533_v20 = vmul.f32 %v5738_v36, %v2406_v45  ;;  %v1534_v46 = vmul.f32 %v5739_v16, %v2406_v45  ;;  %v5740_v30 = vld [vmem:[#allocation31_spill] sm:$0xff]  ;;  %v5742_v38 = vld [vmem:[#allocation26_spill] sm:$0xff]  ;;  %v1539_v10 = vmul.f32 %v2406_v45, %v5744_v52  ;;  %v5745_v29 = vld [vmem:[#allocation40_spill] sm:$0xff] }
 0x107   : > { %v1535_v61 = vmul.f32 %v2406_v45, %v5740_v30  ;;  %v1537_v25 = vmul.f32 %v5742_v38, %v2406_v45  ;;  %v5743_v8 = vld [vmem:[#allocation27_spill] sm:$0xff]  ;;  %v1540_v48 = vmul.f32 %v2406_v45, %v5745_v29  ;;  %v5746_v33 = vld [vmem:[#allocation34_spill] sm:$0xff] }
 0x108   : > { %v1538_v3 = vmul.f32 %v5743_v8, %v2406_v45  ;;  %v1541_v22 = vmul.f32 %v5746_v33, %v2406_v45  ;;  %v5747_v14 = vld [vmem:[#allocation35_spill] sm:$0xff]  ;;  %v5748_v63 = vld [vmem:[#allocation46_spill] sm:$0xff] }
 0x109   : > { %v1542_v49 = vmul.f32 %v5747_v14, %v2406_v45  ;;  %v1543_v36 = vmul.f32 %v2406_v45, %v5748_v63  ;;  %v5749_v56 = vld [vmem:[#allocation47_spill] sm:$0xff]  ;;  %v5750_v54 = vld [vmem:[#allocation38_spill] sm:$0xff]  ;;  %v4412_v63 = vadd.f32 %v1521_v43, %v4271_v7  ;;  %v4433_v7 = vadd.f32 %v1528_v5, %v4302_v51 }
 0x10a   : > { %v1544_v16 = vmul.f32 %v2406_v45, %v5749_v56  ;;  %v1545_v30 = vmul.f32 %v5750_v54, %v2406_v45  ;;  %v5751_v19 = vld [vmem:[#allocation39_spill] sm:$0xff]  ;;  %v5752_v0 = vld [vmem:[#allocation50_spill] sm:$0xff]  ;;  %v4415_v56 = vadd.f32 %v1522_v39, %v4276_v1  ;;  %v4436_v1 = vadd.f32 %v1529_v6, %v4305_v28  ;;  %v5796_v6 = vld [vmem:[#allocation64_spill] sm:$0xff] }
 0x10b   : > { %v1546_v55 = vmul.f32 %v5751_v19, %v2406_v45  ;;  %v1547_v38 = vmul.f32 %v2406_v45, %v5752_v0  ;;  %v5753_v13 = vld [vmem:[#allocation51_spill] sm:$0xff]  ;;  %v5754_v37 = vld [vmem:[#allocation42_spill] sm:$0xff]  ;;  %v4418_v19 = vadd.f32 %v1523_v62, %v4280_v23  ;;  %v4421_v0 = vadd.f32 %v1524_v32, %v4284_v42  ;;  %5764 = vst [vmem:[#allocation72_spill] sm:$0xff] %v4433_v7 }
 0x10c   : > { %v1548_v8 = vmul.f32 %v2406_v45, %v5753_v13  ;;  %v1549_v52 = vmul.f32 %v5754_v37, %v2406_v45  ;;  %v5755_v35 = vld [vmem:[#allocation43_spill] sm:$0xff]  ;;  %v5756_v41 = vld [vmem:[#allocation54_spill] sm:$0xff]  ;;  %5758 = vst [vmem:[#allocation66_spill] sm:$0xff] %v4415_v56  ;;  %v4424_v37 = vadd.f32 %v1525_v11, %v4290_v59  ;;  %5765 = vst [vmem:[#allocation73_spill] sm:$0xff] %v4436_v1 }
 0x10d   : > { %v1550_v29 = vmul.f32 %v5755_v35, %v2406_v45  ;;  %v1551_v33 = vmul.f32 %v2406_v45, %v5756_v41  ;;  %v5757_v57 = vld [vmem:[#allocation55_spill] sm:$0xff]  ;;  %5759 = vst [vmem:[#allocation67_spill] sm:$0xff] %v4418_v19  ;;  %5760 = vst [vmem:[#allocation68_spill] sm:$0xff] %v4421_v0  ;;  %v4427_v35 = vadd.f32 %v1526_v40, %v4294_v21  ;;  %v5790_v40 = vld [vmem:[#allocation61_spill] sm:$0xff] }
 0x10e   : > { %v1552_v14 = vmul.f32 %v2406_v45, %v5757_v57  ;;  %5761 = vst [vmem:[#allocation69_spill] sm:$0xff] %v4424_v37  ;;  %v4430_v45 = vadd.f32 %v1527_v47, %v4298_v17  ;;  %v4439_v23 = vadd.f32 %v1530_v58, %v4308_v15  ;;  %v4442_v42 = vadd.f32 %v1531_v18, %v4311_v9  ;;  %v5792_v47 = vld [vmem:[#allocation62_spill] sm:$0xff]  ;;  %v5794_v5 = vld [vmem:[#allocation63_spill] sm:$0xff]  ;;  %v5798_v58 = vld [vmem:[#allocation65_spill] sm:$0xff] }
 0x10f   : > { %5762 = vst [vmem:[#allocation70_spill] sm:$0xff] %v4427_v35  ;;  %v4445_v59 = vadd.f32 %v1532_v34, %v4314_v2  ;;  %v4448_v21 = vadd.f32 %v1533_v20, %v4317_v26  ;;  %v4451_v17 = vadd.f32 %v1534_v46, %v4320_v12  ;;  %v4454_v51 = vadd.f32 %v1535_v61, %v4323_v4  ;;  %v5778_v4 = vld [vmem:[#allocation58_spill] sm:$0xff]  ;;  %v5802_v34 = vld [vmem:[#allocation12_spill] sm:$0xff]  ;;  %v5805_v46 = vld [vmem:[#allocation15_spill] sm:$0xff] }
 0x110   : > { %5763 = vst [vmem:[#allocation71_spill] sm:$0xff] %v4430_v45  ;;  %5766 = vst [vmem:[#allocation74_spill] sm:$0xff] %v4439_v23  ;;  %v4457_v28 = vadd.f32 %v1536_v50, %v4326_v60  ;;  %v4460_v15 = vadd.f32 %v1537_v25, %v4329_v53  ;;  %v4463_v9 = vadd.f32 %v1538_v3, %v4332_v31  ;;  %v2407_v60 = vld [vmem:[%s5115_s2 + $0x7] ss:$0 sm:$0xff]  ;;  %v5780_v53 = vld [vmem:[#allocation59_spill] sm:$0xff] }
 0x111   : > { %5767 = vst [vmem:[#allocation75_spill] sm:$0xff] %v4442_v42  ;;  %5768 = vst [vmem:[#allocation76_spill] sm:$0xff] %v4445_v59  ;;  %v4466_v2 = vadd.f32 %v1539_v10, %v4335_v44  ;;  %v4469_v26 = vadd.f32 %v1540_v48, %v4338_v27  ;;  %v4472_v12 = vadd.f32 %v1541_v22, %v4341_v24  ;;  %v5782_v31 = vld [vmem:[#allocation60_spill] sm:$0xff]  ;;  %v5784_v44 = vld [vmem:[#allocation5_spill] sm:$0xff] }
 0x112   : > { %5769 = vst [vmem:[#allocation77_spill] sm:$0xff] %v4448_v21  ;;  %5770 = vst [vmem:[#allocation78_spill] sm:$0xff] %v4451_v17  ;;  %v4475_v43 = vadd.f32 %v1542_v49, %v5778_v4  ;;  %v4481_v39 = vadd.f32 %v1543_v36, %v5780_v53  ;;  %v4484_v62 = vadd.f32 %v1544_v16, %v5782_v31  ;;  %v5786_v27 = vld [vmem:[#allocation8_spill] sm:$0xff]  ;;  %v5788_v24 = vld [vmem:[#allocation9_spill] sm:$0xff] }
 0x113   : > { %5771 = vst [vmem:[#allocation79_spill] sm:$0xff] %v4454_v51  ;;  %5772 = vst [vmem:[#allocation80_spill] sm:$0xff] %v4457_v28  ;;  %v4487_v32 = vadd.f32 %v1545_v30, %v5784_v44  ;;  %v4490_v11 = vadd.f32 %v1546_v55, %v5786_v27  ;;  %v4493_v50 = vadd.f32 %v1547_v38, %v5788_v24  ;;  %v5800_v55 = vld [vmem:[#allocation6_spill] sm:$0xff]  ;;  %v5801_v49 = vld [vmem:[#allocation7_spill] sm:$0xff] }
 0x114   : > { %5773 = vst [vmem:[#allocation81_spill] sm:$0xff] %v4460_v15  ;;  %5774 = vst [vmem:[#allocation82_spill] sm:$0xff] %v4463_v9  ;;  %v4496_v25 = vadd.f32 %v1548_v8, %v5790_v40  ;;  %v4499_v3 = vadd.f32 %v1549_v52, %v5792_v47  ;;  %v4502_v10 = vadd.f32 %v1550_v29, %v5794_v5  ;;  %v5803_v8 = vld [vmem:[#allocation13_spill] sm:$0xff]  ;;  %v5804_v16 = vld [vmem:[#allocation14_spill] sm:$0xff] }
 0x115   : > { %5775 = vst [vmem:[#allocation83_spill] sm:$0xff] %v4466_v2  ;;  %5776 = vst [vmem:[#allocation84_spill] sm:$0xff] %v4469_v26  ;;  %v4505_v48 = vadd.f32 %v1551_v33, %v5796_v6  ;;  %v4508_v22 = vadd.f32 %v1552_v14, %v5798_v58  ;;  %v1590_v18 = vmul.f32 %v5800_v55, %v2407_v60  ;;  %v5806_v29 = vld [vmem:[#allocation10_spill] sm:$0xff]  ;;  %v5807_v4 = vld [vmem:[#allocation11_spill] sm:$0xff] }
 0x116   : > { %5777 = vst [vmem:[#allocation85_spill] sm:$0xff] %v4472_v12  ;;  %5779 = vst [vmem:[#allocation3_spill] sm:$0xff] %v4475_v43  ;;  %v1591_v38 = vmul.f32 %v5801_v49, %v2407_v60  ;;  %v1592_v36 = vmul.f32 %v2407_v60, %v5802_v34  ;;  %v1593_v20 = vmul.f32 %v2407_v60, %v5803_v8  ;;  %v5808_v53 = vld [vmem:[#allocation16_spill] sm:$0xff]  ;;  %v5809_v14 = vld [vmem:[#allocation17_spill] sm:$0xff] }
 0x117   : > { %5781 = vst [vmem:[#allocation4_spill] sm:$0xff] %v4481_v39  ;;  %5783 = vst [vmem:[#allocation2_spill] sm:$0xff] %v4484_v62  ;;  %v1594_v52 = vmul.f32 %v2407_v60, %v5804_v16  ;;  %v1595_v30 = vmul.f32 %v2407_v60, %v5805_v46  ;;  %v1596_v61 = vmul.f32 %v5806_v29, %v2407_v60  ;;  %v5810_v27 = vld [vmem:[#allocation20_spill] sm:$0xff]  ;;  %v5811_v40 = vld [vmem:[#allocation21_spill] sm:$0xff] }
 0x118   : > { %5785 = vst [vmem:[#allocation56_spill] sm:$0xff] %v4487_v32  ;;  %5787 = vst [vmem:[#allocation57_spill] sm:$0xff] %v4490_v11  ;;  %v1597_v33 = vmul.f32 %v5807_v4, %v2407_v60  ;;  %v1598_v31 = vmul.f32 %v2407_v60, %v5808_v53  ;;  %v4520_v44 = vmul.f32 %v2407_v60, %v5809_v14  ;;  %v5812_v5 = vld [vmem:[#allocation18_spill] sm:$0xff]  ;;  %v5813_v58 = vld [vmem:[#allocation19_spill] sm:$0xff]  ;;  %v1687_v45 = vrot.slane %v1591_v38, 1 }
 0x119   : > { %5789 = vst [vmem:[#allocation58_spill] sm:$0xff] %v4493_v50  ;;  %5791 = vst [vmem:[#allocation59_spill] sm:$0xff] %v4496_v25  ;;  %v4523_v24 = vmul.f32 %v2407_v60, %v5810_v27  ;;  %v1601_v47 = vmul.f32 %v2407_v60, %v5811_v40  ;;  %v4527_v6 = vmul.f32 %v5812_v5, %v2407_v60  ;;  %v5814_v46 = vld [vmem:[#allocation24_spill] sm:$0xff]  ;;  %v5815_v4 = vld [vmem:[#allocation25_spill] sm:$0xff]  ;;  %v1691_v35 = vrot.slane %v1593_v20, 1 }
 0x11a   : > { %5793 = vst [vmem:[#allocation60_spill] sm:$0xff] %v4499_v3  ;;  %5795 = vst [vmem:[#allocation5_spill] sm:$0xff] %v4502_v10  ;;  %v4530_v16 = vmul.f32 %v5813_v58, %v2407_v60  ;;  %v4533_v29 = vmul.f32 %v2407_v60, %v5814_v46  ;;  %v4536_v8 = vmul.f32 %v2407_v60, %v5815_v4  ;;  %v5816_v53 = vld [vmem:[#allocation28_spill] sm:$0xff]  ;;  %v5817_v34 = vld [vmem:[#allocation29_spill] sm:$0xff]  ;;  %v1692_v37 = vrot.slane %v1594_v52, 1 }
 0x11b   : > { %5797 = vst [vmem:[#allocation8_spill] sm:$0xff] %v4505_v48  ;;  %5799 = vst [vmem:[#allocation9_spill] sm:$0xff] %v4508_v22  ;;  %v4539_v14 = vmul.f32 %v2407_v60, %v5816_v53  ;;  %v4542_v27 = vmul.f32 %v2407_v60, %v5817_v34  ;;  %v5818_v49 = vld [vmem:[#allocation22_spill] sm:$0xff]  ;;  %v5819_v5 = vld [vmem:[#allocation23_spill] sm:$0xff]  ;;  %v1697_v19 = vrot.slane %v1597_v33, 1  ;;  %v1704_v20 = vrot.slane %v1601_v47, 1 }
 0x11c   : > { %v4545_v40 = vmul.f32 %v5818_v49, %v2407_v60  ;;  %v4548_v55 = vmul.f32 %v5819_v5, %v2407_v60  ;;  %v5820_v58 = vld [vmem:[#allocation30_spill] sm:$0xff]  ;;  %v5821_v46 = vld [vmem:[#allocation31_spill] sm:$0xff]  ;;  %v5822_v4 = vld [vmem:[#allocation32_spill] sm:$0xff]  ;;  %v1707_v52 = vrot.slane %v4530_v16, 1 }
 0x11d   : > { %v4551_v22 = vmul.f32 %v2407_v60, %v5820_v58  ;;  %v4554_v48 = vmul.f32 %v2407_v60, %v5821_v46  ;;  %v4557_v10 = vmul.f32 %v2407_v60, %v5822_v4  ;;  %v5823_v53 = vld [vmem:[#allocation33_spill] sm:$0xff]  ;;  %v5824_v34 = vld [vmem:[#allocation26_spill] sm:$0xff]  ;;  %v5825_v49 = vld [vmem:[#allocation27_spill] sm:$0xff] }
 0x11e   : > { %v4560_v3 = vmul.f32 %v2407_v60, %v5823_v53  ;;  %v4563_v25 = vmul.f32 %v5824_v34, %v2407_v60  ;;  %v4566_v50 = vmul.f32 %v5825_v49, %v2407_v60  ;;  %v5826_v5 = vld [vmem:[#allocation36_spill] sm:$0xff]  ;;  %v5827_v58 = vld [vmem:[#allocation37_spill] sm:$0xff]  ;;  %v5830_v53 = vld [vmem:[#allocation34_spill] sm:$0xff]  ;;  %v1716_v16 = vrot.slane %v4545_v40, 1 }
 0x11f   : > { %v4569_v11 = vmul.f32 %v2407_v60, %v5826_v5  ;;  %v4572_v32 = vmul.f32 %v2407_v60, %v5827_v58  ;;  %v5828_v46 = vld [vmem:[#allocation40_spill] sm:$0xff]  ;;  %v5829_v4 = vld [vmem:[#allocation41_spill] sm:$0xff]  ;;  %v4581_v43 = vmul.f32 %v5830_v53, %v2407_v60  ;;  %v5831_v34 = vld [vmem:[#allocation35_spill] sm:$0xff] }
 0x120   : > { %v4575_v62 = vmul.f32 %v2407_v60, %v5828_v46  ;;  %v4578_v39 = vmul.f32 %v2407_v60, %v5829_v4  ;;  %v4584_v12 = vmul.f32 %v5831_v34, %v2407_v60  ;;  %v5832_v49 = vld [vmem:[#allocation45_spill] sm:$0xff]  ;;  %v5833_v5 = vld [vmem:[#allocation46_spill] sm:$0xff]  ;;  %v5834_v58 = vld [vmem:[#allocation47_spill] sm:$0xff]  ;;  %v4599_v4 = vmul.f32 %v5750_v54, %v2407_v60 }
 0x121   : > { %v4587_v26 = vmul.f32 %v2407_v60, %v5832_v49  ;;  %v4590_v2 = vmul.f32 %v2407_v60, %v5833_v5  ;;  %v4593_v9 = vmul.f32 %v2407_v60, %v5834_v58  ;;  %v5835_v46 = vld [vmem:[#allocation48_spill] sm:$0xff]  ;;  %v5836_v53 = vld [vmem:[#allocation39_spill] sm:$0xff]  ;;  %v5837_v34 = vld [vmem:[#allocation49_spill] sm:$0xff]  ;;  %v4611_v5 = vmul.f32 %v2407_v60, %v5753_v13 }
 0x122   : > { %v4596_v15 = vmul.f32 %v2407_v60, %v5835_v46  ;;  %v4602_v28 = vmul.f32 %v5836_v53, %v2407_v60  ;;  %v4605_v51 = vmul.f32 %v2407_v60, %v5837_v34  ;;  %v5838_v49 = vld [vmem:[#allocation50_spill] sm:$0xff]  ;;  %v5839_v58 = vld [vmem:[#allocation52_spill] sm:$0xff]  ;;  %v5841_v54 = vld [vmem:[#allocation43_spill] sm:$0xff]  ;;  %v4626_v34 = vmul.f32 %v2407_v60, %v5756_v41 }
 0x123   : > { %v4608_v17 = vmul.f32 %v2407_v60, %v5838_v49  ;;  %v4614_v21 = vmul.f32 %v2407_v60, %v5839_v58  ;;  %v5840_v46 = vld [vmem:[#allocation42_spill] sm:$0xff]  ;;  %v4620_v42 = vmul.f32 %v5841_v54, %v2407_v60  ;;  %v5842_v53 = vld [vmem:[#allocation53_spill] sm:$0xff]  ;;  %v4629_v49 = vmul.f32 %v2407_v60, %v5757_v57  ;;  %v5843_v13 = vld [vmem:[#allocation44_spill] sm:$0xff] }
 0x124   : > { %v4617_v59 = vmul.f32 %v5840_v46, %v2407_v60  ;;  %v4623_v23 = vmul.f32 %v2407_v60, %v5842_v53  ;;  %v5844_v1 = vunpack.c.l.bf16 %v5843_v13  ;;  %v1686_v58 = vrot.slane %v1590_v18, 1 }
 0x125   : > { %v1689_v46 = vrot.slane %v1592_v36, 1  ;;  %v1694_v54 = vrot.slane %v1595_v30, 1  ;;  %v1696_v53 = vrot.slane %v1596_v61, 1  ;;  %v1699_v41 = vrot.slane %v1598_v31, 1 }
 0x126   : > { %v4633_v7 = vmul.f32 %v2407_v60, %v5844_v1  ;;  %v4636_v0 = vsel %vm566_vm0, %v1686_v58, %v1687_v45  ;;  %v4642_v57 = vsel %vm566_vm0, %v1691_v35, %v1692_v37  ;;  %v1701_v60 = vrot.slane %v4520_v44, 1 }
 0x127   : > { %v4639_v56 = vsel %vm566_vm0, %v1687_v45, %v1689_v46  ;;  %v4645_v1 = vsel %vm566_vm0, %v1692_v37, %v1694_v54  ;;  %v4649_v18 = vsel %vm566_vm0, %v1696_v53, %v1697_v19  ;;  %v4652_v38 = vsel %vm566_vm0, %v1697_v19, %v1699_v41 }
 0x128   : > { %v1702_v36 = vrot.slane %v4523_v24, 1  ;;  %v1706_v45 = vrot.slane %v4527_v6, 1  ;;  %v1709_v35 = vrot.slane %v4533_v29, 1  ;;  %v1711_v37 = vrot.slane %v4536_v8, 1 }
 0x129   : > { %v1712_v41 = vrot.slane %v4539_v14, 1  ;;  %v1714_v19 = vrot.slane %v4542_v27, 1  ;;  %v1717_v29 = vrot.slane %v4548_v55, 1  ;;  %v1719_v53 = vrot.slane %v4551_v22, 1 }
 0x12a   : > { %v4660_v54 = vsel %vm566_vm0, %v1701_v60, %v1702_v36  ;;  %v4663_v46 = vsel %vm566_vm0, %v1702_v36, %v1704_v20  ;;  %v1708_v30 = vsel %vm566_vm0, %v1706_v45, %v1707_v52  ;;  %v1710_v61 = vsel %vm566_vm0, %v1707_v52, %v1709_v35 }
 0x12b   : > { %v1713_v8 = vsel %vm566_vm0, %v1711_v37, %v1712_v41  ;;  %v1715_v33 = vsel %vm566_vm0, %v1712_v41, %v1714_v19  ;;  %v1721_v31 = vrot.slane %v4554_v48, 1  ;;  %v1718_v14 = vsel %vm566_vm0, %v1716_v16, %v1717_v29 }
 0x12c   : > { %v1722_v44 = vrot.slane %v4557_v10, 1  ;;  %v1724_v27 = vrot.slane %v4560_v3, 1  ;;  %v1726_v24 = vrot.slane %v4563_v25, 1  ;;  %v1720_v40 = vsel %vm566_vm0, %v1717_v29, %v1719_v53 }
 0x12d   : > { %v1727_v55 = vrot.slane %v4566_v50, 1  ;;  %v1729_v47 = vrot.slane %v4569_v11, 1  ;;  %v1731_v6 = vrot.slane %v4572_v32, 1  ;;  %v1732_v58 = vrot.slane %v4575_v62, 1 }
 0x12e   : > { %v1723_v22 = vsel %vm566_vm0, %v1721_v31, %v1722_v44  ;;  %v1725_v48 = vsel %vm566_vm0, %v1722_v44, %v1724_v27  ;;  %v1734_v10 = vrot.slane %v4578_v39, 1  ;;  %v1736_v60 = vrot.slane %v4581_v43, 1  ;;  %v5847_v27 = vld [vmem:[#allocation67_spill] sm:$0xff] }
 0x12f   : > { %v1728_v3 = vsel %vm566_vm0, %v1726_v24, %v1727_v55  ;;  %v1730_v25 = vsel %vm566_vm0, %v1727_v55, %v1729_v47  ;;  %v1737_v50 = vrot.slane %v4584_v12, 1  ;;  %v1733_v11 = vsel %vm566_vm0, %v1731_v6, %v1732_v58  ;;  %v5853_v55 = vld [vmem:[#allocation70_spill] sm:$0xff]  ;;  %v5855_v47 = vld [vmem:[#allocation71_spill] sm:$0xff]  ;;  %v5857_v6 = vld [vmem:[#allocation72_spill] sm:$0xff] }
 0x130   : > { %v1735_v32 = vsel %vm566_vm0, %v1732_v58, %v1734_v10  ;;  %v1739_v36 = vrot.slane %v4587_v26, 1  ;;  %v1741_v20 = vrot.slane %v4590_v2, 1  ;;  %v1742_v39 = vrot.slane %v4593_v9, 1  ;;  %v5859_v58 = vld [vmem:[#allocation73_spill] sm:$0xff] }
 0x131   : > { %v1738_v62 = vsel %vm566_vm0, %v1736_v60, %v1737_v50  ;;  %v1744_v45 = vrot.slane %v4596_v15, 1  ;;  %v1746_v52 = vrot.slane %v4599_v4, 1  ;;  %v1747_v12 = vrot.slane %v4602_v28, 1  ;;  %v5861_v60 = vld [vmem:[#allocation74_spill] sm:$0xff] }
 0x132   : > { %v1740_v43 = vsel %vm566_vm0, %v1737_v50, %v1739_v36  ;;  %v1749_v35 = vrot.slane %v4605_v51, 1  ;;  %v1751_v37 = vrot.slane %v4608_v17, 1  ;;  %v1743_v26 = vsel %vm566_vm0, %v1741_v20, %v1742_v39  ;;  %v5865_v20 = vld [vmem:[#allocation76_spill] sm:$0xff] }
 0x133   : > { %v1745_v2 = vsel %vm566_vm0, %v1742_v39, %v1744_v45  ;;  %v1752_v41 = vrot.slane %v4611_v5, 1  ;;  %v1754_v9 = vrot.slane %v4614_v21, 1  ;;  %v1748_v15 = vsel %vm566_vm0, %v1746_v52, %v1747_v12  ;;  %v5867_v39 = vld [vmem:[#allocation77_spill] sm:$0xff] }
 0x134   : > { %v1750_v4 = vsel %vm566_vm0, %v1747_v12, %v1749_v35  ;;  %v1756_v19 = vrot.slane %v4617_v59, 1  ;;  %v1757_v28 = vrot.slane %v4620_v42, 1  ;;  %v1759_v16 = vrot.slane %v4623_v23, 1  ;;  %v5845_v59 = vld [vmem:[#allocation66_spill] sm:$0xff] }
 0x135   : > { %v1753_v51 = vsel %vm566_vm0, %v1751_v37, %v1752_v41  ;;  %v1755_v17 = vsel %vm566_vm0, %v1752_v41, %v1754_v9  ;;  %v1761_v29 = vrot.slane %v4626_v34, 1  ;;  %v1762_v21 = vrot.slane %v4629_v49, 1  ;;  %v5849_v34 = vld [vmem:[#allocation68_spill] sm:$0xff] }
 0x136   : > { %v1758_v5 = vsel %vm566_vm0, %v1756_v19, %v1757_v28  ;;  %v1764_v53 = vrot.slane %v4633_v7, 1  ;;  %v4720_v31 = vadd.f32 %v4636_v0, %v4412_v63  ;;  %v1760_v42 = vsel %vm566_vm0, %v1757_v28, %v1759_v16  ;;  %v5851_v0 = vld [vmem:[#allocation69_spill] sm:$0xff] }
 0x137   : > { %v4725_v44 = vadd.f32 %v4639_v56, %v5845_v59  ;;  %v4729_v23 = vadd.f32 %v4642_v57, %v5847_v27  ;;  %v4733_v24 = vadd.f32 %v4645_v1, %v5849_v34  ;;  %v1763_v7 = vsel %vm566_vm0, %v1761_v29, %v1762_v21 }
 0x138   : > { %v1765_v49 = vsel %vm566_vm0, %v1762_v21, %v1764_v53  ;;  %v4739_v63 = vadd.f32 %v4649_v18, %v5851_v0  ;;  %v4743_v56 = vadd.f32 %v4652_v38, %v5853_v55  ;;  %v4747_v57 = vadd.f32 %v4660_v54, %v5855_v47  ;;  %v5863_v18 = vld [vmem:[#allocation75_spill] sm:$0xff]  ;;  %v5869_v54 = vld [vmem:[#allocation78_spill] sm:$0xff]  ;;  %v5899_v0 = vld [vmem:[#allocation60_spill] sm:$0xff] }
 0x139   : > { %5846 = vst [vmem:[#allocation61_spill] sm:$0xff] %v4725_v44  ;;  %5848 = vst [vmem:[#allocation62_spill] sm:$0xff] %v4729_v23  ;;  %v4751_v1 = vadd.f32 %v4663_v46, %v5857_v6  ;;  %v4754_v10 = vadd.f32 %v1708_v30, %v5859_v58  ;;  %v4757_v50 = vadd.f32 %v1710_v61, %v5861_v60  ;;  %v5871_v46 = vld [vmem:[#allocation79_spill] sm:$0xff]  ;;  %v5873_v30 = vld [vmem:[#allocation80_spill] sm:$0xff] }
 0x13a   : > { %5850 = vst [vmem:[#allocation63_spill] sm:$0xff] %v4733_v24  ;;  %5852 = vst [vmem:[#allocation64_spill] sm:$0xff] %v4739_v63  ;;  %v4760_v36 = vadd.f32 %v1713_v8, %v5863_v18  ;;  %v4763_v38 = vadd.f32 %v1715_v33, %v5865_v20  ;;  %v4766_v45 = vadd.f32 %v1718_v14, %v5867_v39  ;;  %v5875_v61 = vld [vmem:[#allocation81_spill] sm:$0xff]  ;;  %v5877_v8 = vld [vmem:[#allocation82_spill] sm:$0xff] }
 0x13b   : > { %5854 = vst [vmem:[#allocation65_spill] sm:$0xff] %v4743_v56  ;;  %5856 = vst [vmem:[#allocation44_spill] sm:$0xff] %v4747_v57  ;;  %v4769_v52 = vadd.f32 %v1720_v40, %v5869_v54  ;;  %v4772_v12 = vadd.f32 %v1723_v22, %v5871_v46  ;;  %v4775_v35 = vadd.f32 %v1725_v48, %v5873_v30  ;;  %v5879_v33 = vld [vmem:[#allocation83_spill] sm:$0xff]  ;;  %v5881_v14 = vld [vmem:[#allocation84_spill] sm:$0xff] }
 0x13c   : > { %5858 = vst [vmem:[#allocation66_spill] sm:$0xff] %v4751_v1  ;;  %5860 = vst [vmem:[#allocation67_spill] sm:$0xff] %v4754_v10  ;;  %v4778_v37 = vadd.f32 %v1728_v3, %v5875_v61  ;;  %v4781_v41 = vadd.f32 %v1730_v25, %v5877_v8  ;;  %v4784_v9 = vadd.f32 %v1733_v11, %v5879_v33  ;;  %v5883_v40 = vld [vmem:[#allocation85_spill] sm:$0xff]  ;;  %v5885_v22 = vld [vmem:[#allocation3_spill] sm:$0xff] }
 0x13d   : > { %5862 = vst [vmem:[#allocation68_spill] sm:$0xff] %v4757_v50  ;;  %5864 = vst [vmem:[#allocation69_spill] sm:$0xff] %v4760_v36  ;;  %v4787_v19 = vadd.f32 %v1735_v32, %v5881_v14  ;;  %v4790_v28 = vadd.f32 %v1738_v62, %v5883_v40  ;;  %v4793_v16 = vadd.f32 %v1740_v43, %v5885_v22  ;;  %v2408_v48 = vld [vmem:[%s5115_s2 + $0x8] ss:$0 sm:$0xff]  ;;  %v5887_v3 = vld [vmem:[#allocation4_spill] sm:$0xff] }
 0x13e   : > { %5866 = vst [vmem:[#allocation70_spill] sm:$0xff] %v4763_v38  ;;  %5868 = vst [vmem:[#allocation71_spill] sm:$0xff] %v4766_v45  ;;  %v4799_v29 = vadd.f32 %v1743_v26, %v5887_v3  ;;  %v5889_v25 = vld [vmem:[#allocation2_spill] sm:$0xff]  ;;  %v5891_v11 = vld [vmem:[#allocation56_spill] sm:$0xff]  ;;  %v4817_v55 = vadd.f32 %v1758_v5, %v5899_v0 }
 0x13f   : > { %5870 = vst [vmem:[#allocation72_spill] sm:$0xff] %v4769_v52  ;;  %5872 = vst [vmem:[#allocation73_spill] sm:$0xff] %v4772_v12  ;;  %v4802_v21 = vadd.f32 %v1745_v2, %v5889_v25  ;;  %v4805_v53 = vadd.f32 %v1748_v15, %v5891_v11  ;;  %v5893_v32 = vld [vmem:[#allocation57_spill] sm:$0xff]  ;;  %v5895_v62 = vld [vmem:[#allocation58_spill] sm:$0xff] }
 0x140   : > { %5874 = vst [vmem:[#allocation74_spill] sm:$0xff] %v4775_v35  ;;  %5876 = vst [vmem:[#allocation75_spill] sm:$0xff] %v4778_v37  ;;  %v4808_v59 = vadd.f32 %v1750_v4, %v5893_v32  ;;  %v4811_v27 = vadd.f32 %v1753_v51, %v5895_v62  ;;  %v5897_v43 = vld [vmem:[#allocation59_spill] sm:$0xff]  ;;  %v5901_v26 = vld [vmem:[#allocation5_spill] sm:$0xff] }
 0x141   : > { %5878 = vst [vmem:[#allocation76_spill] sm:$0xff] %v4781_v41  ;;  %5880 = vst [vmem:[#allocation77_spill] sm:$0xff] %v4784_v9  ;;  %v4814_v34 = vadd.f32 %v1755_v17, %v5897_v43  ;;  %v4820_v47 = vadd.f32 %v1760_v42, %v5901_v26  ;;  %v5903_v2 = vld [vmem:[#allocation8_spill] sm:$0xff]  ;;  %v5905_v15 = vld [vmem:[#allocation9_spill] sm:$0xff] }
 0x142   : > { %5882 = vst [vmem:[#allocation78_spill] sm:$0xff] %v4787_v19  ;;  %5884 = vst [vmem:[#allocation79_spill] sm:$0xff] %v4790_v28  ;;  %v4823_v6 = vadd.f32 %v1763_v7, %v5903_v2  ;;  %v4826_v58 = vadd.f32 %v1765_v49, %v5905_v15  ;;  %v5907_v4 = vld [vmem:[#allocation6_spill] sm:$0xff]  ;;  %v5908_v18 = vld [vmem:[#allocation7_spill] sm:$0xff] }
 0x143   : > { %5886 = vst [vmem:[#allocation80_spill] sm:$0xff] %v4793_v16  ;;  %5888 = vst [vmem:[#allocation81_spill] sm:$0xff] %v4799_v29  ;;  %v1835_v60 = vmul.f32 %v5907_v4, %v2408_v48  ;;  %v1836_v51 = vmul.f32 %v5908_v18, %v2408_v48  ;;  %v5909_v20 = vld [vmem:[#allocation12_spill] sm:$0xff]  ;;  %v5910_v17 = vld [vmem:[#allocation13_spill] sm:$0xff] }
 0x144   : > { %5890 = vst [vmem:[#allocation82_spill] sm:$0xff] %v4802_v21  ;;  %5892 = vst [vmem:[#allocation83_spill] sm:$0xff] %v4805_v53  ;;  %v1837_v39 = vmul.f32 %v2408_v48, %v5909_v20  ;;  %v1838_v54 = vmul.f32 %v2408_v48, %v5910_v17  ;;  %v5911_v46 = vld [vmem:[#allocation14_spill] sm:$0xff]  ;;  %v5912_v30 = vld [vmem:[#allocation15_spill] sm:$0xff] }
 0x145   : > { %5894 = vst [vmem:[#allocation84_spill] sm:$0xff] %v4808_v59  ;;  %5896 = vst [vmem:[#allocation85_spill] sm:$0xff] %v4811_v27  ;;  %v1839_v5 = vmul.f32 %v2408_v48, %v5911_v46  ;;  %v1840_v61 = vmul.f32 %v2408_v48, %v5912_v30  ;;  %v5913_v42 = vld [vmem:[#allocation10_spill] sm:$0xff]  ;;  %v5914_v33 = vld [vmem:[#allocation11_spill] sm:$0xff]  ;;  %v1932_v57 = vrot.slane %v1836_v51, 2 }
 0x146   : > { %5898 = vst [vmem:[#allocation3_spill] sm:$0xff] %v4814_v34  ;;  %5900 = vst [vmem:[#allocation4_spill] sm:$0xff] %v4817_v55  ;;  %v1841_v8 = vmul.f32 %v5913_v42, %v2408_v48  ;;  %v1842_v7 = vmul.f32 %v5914_v33, %v2408_v48  ;;  %v5915_v14 = vld [vmem:[#allocation16_spill] sm:$0xff]  ;;  %v5916_v49 = vld [vmem:[#allocation17_spill] sm:$0xff]  ;;  %v1936_v56 = vrot.slane %v1838_v54, 2 }
 0x147   : > { %5902 = vst [vmem:[#allocation2_spill] sm:$0xff] %v4820_v47  ;;  %5904 = vst [vmem:[#allocation56_spill] sm:$0xff] %v4823_v6  ;;  %v1843_v40 = vmul.f32 %v2408_v48, %v5915_v14  ;;  %v4838_v22 = vmul.f32 %v2408_v48, %v5916_v49  ;;  %v5917_v3 = vld [vmem:[#allocation20_spill] sm:$0xff]  ;;  %v5918_v11 = vld [vmem:[#allocation21_spill] sm:$0xff]  ;;  %v1937_v63 = vrot.slane %v1839_v5, 2 }
 0x148   : > { %5906 = vst [vmem:[#allocation57_spill] sm:$0xff] %v4826_v58  ;;  %v4841_v25 = vmul.f32 %v2408_v48, %v5917_v3  ;;  %v1846_v32 = vmul.f32 %v2408_v48, %v5918_v11  ;;  %v5919_v62 = vld [vmem:[#allocation18_spill] sm:$0xff]  ;;  %v5920_v0 = vld [vmem:[#allocation19_spill] sm:$0xff]  ;;  %v5921_v2 = vld [vmem:[#allocation24_spill] sm:$0xff]  ;;  %v1942_v23 = vrot.slane %v1842_v7, 2 }
 0x149   : > { %v4845_v43 = vmul.f32 %v5919_v62, %v2408_v48  ;;  %v4848_v26 = vmul.f32 %v5920_v0, %v2408_v48  ;;  %v4851_v15 = vmul.f32 %v2408_v48, %v5921_v2  ;;  %v5922_v4 = vld [vmem:[#allocation25_spill] sm:$0xff]  ;;  %v5923_v20 = vld [vmem:[#allocation28_spill] sm:$0xff]  ;;  %v5925_v42 = vld [vmem:[#allocation22_spill] sm:$0xff] }
 0x14a   : > { %v4854_v18 = vmul.f32 %v2408_v48, %v5922_v4  ;;  %v4857_v17 = vmul.f32 %v2408_v48, %v5923_v20  ;;  %v5924_v46 = vld [vmem:[#allocation29_spill] sm:$0xff]  ;;  %v4863_v33 = vmul.f32 %v5925_v42, %v2408_v48  ;;  %v5926_v14 = vld [vmem:[#allocation23_spill] sm:$0xff]  ;;  %v5927_v3 = vld [vmem:[#allocation30_spill] sm:$0xff]  ;;  %v1949_v54 = vrot.slane %v1846_v32, 2 }
 0x14b   : > { %v4860_v30 = vmul.f32 %v2408_v48, %v5924_v46  ;;  %v4866_v49 = vmul.f32 %v5926_v14, %v2408_v48  ;;  %v4869_v11 = vmul.f32 %v2408_v48, %v5927_v3  ;;  %v5928_v62 = vld [vmem:[#allocation31_spill] sm:$0xff]  ;;  %v5929_v2 = vld [vmem:[#allocation32_spill] sm:$0xff]  ;;  %v5930_v20 = vld [vmem:[#allocation33_spill] sm:$0xff]  ;;  %v1952_v5 = vrot.slane %v4848_v26, 2 }
 0x14c   : > { %v4872_v0 = vmul.f32 %v2408_v48, %v5928_v62  ;;  %v4875_v4 = vmul.f32 %v2408_v48, %v5929_v2  ;;  %v4878_v58 = vmul.f32 %v2408_v48, %v5930_v20  ;;  %v5931_v46 = vld [vmem:[#allocation26_spill] sm:$0xff]  ;;  %v5932_v42 = vld [vmem:[#allocation27_spill] sm:$0xff]  ;;  %v5933_v14 = vld [vmem:[#allocation36_spill] sm:$0xff] }
 0x14d   : > { %v4881_v6 = vmul.f32 %v5931_v46, %v2408_v48  ;;  %v4884_v47 = vmul.f32 %v5932_v42, %v2408_v48  ;;  %v4887_v55 = vmul.f32 %v2408_v48, %v5933_v14  ;;  %v5934_v3 = vld [vmem:[#allocation37_spill] sm:$0xff]  ;;  %v5935_v62 = vld [vmem:[#allocation40_spill] sm:$0xff]  ;;  %v5937_v20 = vld [vmem:[#allocation34_spill] sm:$0xff]  ;;  %v1959_v7 = vrot.slane %v4860_v30, 2 }
 0x14e   : > { %v4890_v34 = vmul.f32 %v2408_v48, %v5934_v3  ;;  %v4893_v27 = vmul.f32 %v2408_v48, %v5935_v62  ;;  %v5936_v2 = vld [vmem:[#allocation41_spill] sm:$0xff]  ;;  %v4899_v53 = vmul.f32 %v5937_v20, %v2408_v48  ;;  %v5938_v46 = vld [vmem:[#allocation35_spill] sm:$0xff]  ;;  %v5940_v14 = vld [vmem:[#allocation46_spill] sm:$0xff]  ;;  %v1962_v32 = vrot.slane %v4866_v49, 2 }
 0x14f   : > { %v4896_v59 = vmul.f32 %v2408_v48, %v5936_v2  ;;  %v4902_v21 = vmul.f32 %v5938_v46, %v2408_v48  ;;  %v5939_v42 = vld [vmem:[#allocation45_spill] sm:$0xff]  ;;  %v4908_v16 = vmul.f32 %v2408_v48, %v5940_v14  ;;  %v5941_v3 = vld [vmem:[#allocation47_spill] sm:$0xff]  ;;  %v5942_v62 = vld [vmem:[#allocation48_spill] sm:$0xff]  ;;  %v1967_v30 = vrot.slane %v4875_v4, 2 }
 0x150   : > { %v4905_v29 = vmul.f32 %v2408_v48, %v5939_v42  ;;  %v4911_v28 = vmul.f32 %v2408_v48, %v5941_v3  ;;  %v4914_v19 = vmul.f32 %v2408_v48, %v5942_v62  ;;  %v5943_v2 = vld [vmem:[#allocation38_spill] sm:$0xff]  ;;  %v5944_v20 = vld [vmem:[#allocation39_spill] sm:$0xff]  ;;  %v5945_v46 = vld [vmem:[#allocation49_spill] sm:$0xff]  ;;  %v1972_v49 = vrot.slane %v4884_v47, 2 }
 0x151   : > { %v4917_v9 = vmul.f32 %v5943_v2, %v2408_v48  ;;  %v4920_v41 = vmul.f32 %v5944_v20, %v2408_v48  ;;  %v4923_v37 = vmul.f32 %v2408_v48, %v5945_v46  ;;  %v5946_v42 = vld [vmem:[#allocation50_spill] sm:$0xff]  ;;  %v5947_v14 = vld [vmem:[#allocation51_spill] sm:$0xff]  ;;  %v5948_v3 = vld [vmem:[#allocation52_spill] sm:$0xff]  ;;  %v1979_v4 = vrot.slane %v4896_v59, 2 }
 0x152   : > { %v4926_v35 = vmul.f32 %v2408_v48, %v5946_v42  ;;  %v4929_v12 = vmul.f32 %v2408_v48, %v5947_v14  ;;  %v4932_v52 = vmul.f32 %v2408_v48, %v5948_v3  ;;  %v5949_v62 = vld [vmem:[#allocation42_spill] sm:$0xff]  ;;  %v5950_v2 = vld [vmem:[#allocation43_spill] sm:$0xff]  ;;  %v5951_v20 = vld [vmem:[#allocation53_spill] sm:$0xff]  ;;  %v5954_v14 = vunpack.c.l.bf16 %v5843_v13 }
 0x153   : > { %v4935_v45 = vmul.f32 %v5949_v62, %v2408_v48  ;;  %v4938_v38 = vmul.f32 %v5950_v2, %v2408_v48  ;;  %v4941_v36 = vmul.f32 %v2408_v48, %v5951_v20  ;;  %v5952_v46 = vld [vmem:[#allocation54_spill] sm:$0xff]  ;;  %v5953_v42 = vld [vmem:[#allocation55_spill] sm:$0xff]  ;;  %v1931_v3 = vrot.slane %v1835_v60, 2 }
 0x154   : > { %v4944_v50 = vmul.f32 %v2408_v48, %v5952_v46  ;;  %v4947_v10 = vmul.f32 %v2408_v48, %v5953_v42  ;;  %v4951_v1 = vmul.f32 %v2408_v48, %v5954_v14  ;;  %v1934_v62 = vrot.slane %v1837_v39, 2 }
 0x155   : > { %v1939_v2 = vrot.slane %v1840_v61, 2  ;;  %v4954_v24 = vsel %vm812_vm1, %v1931_v3, %v1932_v57  ;;  %v1941_v20 = vrot.slane %v1841_v8, 2  ;;  %v1944_v46 = vrot.slane %v1843_v40, 2 }
 0x156   : > { %v4957_v44 = vsel %vm812_vm1, %v1932_v57, %v1934_v62  ;;  %v4960_v42 = vsel %vm812_vm1, %v1936_v56, %v1937_v63  ;;  %v1946_v48 = vrot.slane %v4838_v22, 2  ;;  %v1947_v39 = vrot.slane %v4841_v25, 2 }
 0x157   : > { %v4963_v13 = vsel %vm812_vm1, %v1937_v63, %v1939_v2  ;;  %v4967_v60 = vsel %vm812_vm1, %v1941_v20, %v1942_v23  ;;  %v4970_v51 = vsel %vm812_vm1, %v1942_v23, %v1944_v46  ;;  %v1951_v57 = vrot.slane %v4845_v43, 2 }
 0x158   : > { %v1954_v56 = vrot.slane %v4851_v15, 2  ;;  %v1956_v63 = vrot.slane %v4854_v18, 2  ;;  %v4978_v61 = vsel %vm812_vm1, %v1946_v48, %v1947_v39  ;;  %v4981_v8 = vsel %vm812_vm1, %v1947_v39, %v1949_v54 }
 0x159   : > { %v1957_v23 = vrot.slane %v4857_v17, 2  ;;  %v1953_v40 = vsel %vm812_vm1, %v1951_v57, %v1952_v5  ;;  %v1961_v25 = vrot.slane %v4863_v33, 2  ;;  %v1964_v15 = vrot.slane %v4869_v11, 2 }
 0x15a   : > { %v1955_v22 = vsel %vm812_vm1, %v1952_v5, %v1954_v56  ;;  %v1966_v18 = vrot.slane %v4872_v0, 2  ;;  %v1969_v14 = vrot.slane %v4878_v58, 2  ;;  %v1971_v3 = vrot.slane %v4881_v6, 2 }
 0x15b   : > { %v1958_v43 = vsel %vm812_vm1, %v1956_v63, %v1957_v23  ;;  %v1960_v26 = vsel %vm812_vm1, %v1957_v23, %v1959_v7  ;;  %v1963_v17 = vsel %vm812_vm1, %v1961_v25, %v1962_v32  ;;  %v1965_v33 = vsel %vm812_vm1, %v1962_v32, %v1964_v15 }
 0x15c   : > { %v1974_v62 = vrot.slane %v4887_v55, 2  ;;  %v1976_v2 = vrot.slane %v4890_v34, 2  ;;  %v1968_v11 = vsel %vm812_vm1, %v1966_v18, %v1967_v30  ;;  %v1970_v0 = vsel %vm812_vm1, %v1967_v30, %v1969_v14  ;;  %v5956_v30 = vld [vmem:[#allocation62_spill] sm:$0xff] }
 0x15d   : > { %v1977_v20 = vrot.slane %v4893_v27, 2  ;;  %v1973_v58 = vsel %vm812_vm1, %v1971_v3, %v1972_v49  ;;  %v1981_v46 = vrot.slane %v4899_v53, 2  ;;  %v1982_v47 = vrot.slane %v4902_v21, 2 }
 0x15e   : > { %v1975_v6 = vsel %vm812_vm1, %v1972_v49, %v1974_v62  ;;  %v1984_v48 = vrot.slane %v4905_v29, 2  ;;  %v1986_v39 = vrot.slane %v4908_v16, 2  ;;  %v1987_v59 = vrot.slane %v4911_v28, 2  ;;  %v5958_v49 = vld [vmem:[#allocation64_spill] sm:$0xff]  ;;  %v5959_v62 = vld [vmem:[#allocation65_spill] sm:$0xff] }
 0x15f   : > { %v1978_v55 = vsel %vm812_vm1, %v1976_v2, %v1977_v20  ;;  %v1980_v34 = vsel %vm812_vm1, %v1977_v20, %v1979_v4  ;;  %v1983_v27 = vsel %vm812_vm1, %v1981_v46, %v1982_v47  ;;  %v1989_v54 = vrot.slane %v4914_v19, 2  ;;  %v5963_v46 = vld [vmem:[#allocation68_spill] sm:$0xff] }
 0x160   : > { %v1991_v57 = vrot.slane %v4917_v9, 2  ;;  %v1985_v53 = vsel %vm812_vm1, %v1982_v47, %v1984_v48  ;;  %v1992_v21 = vrot.slane %v4920_v41, 2  ;;  %v1994_v5 = vrot.slane %v4923_v37, 2  ;;  %v5964_v47 = vld [vmem:[#allocation69_spill] sm:$0xff] }
 0x161   : > { %v1996_v56 = vrot.slane %v4926_v35, 2  ;;  %v1988_v29 = vsel %vm812_vm1, %v1986_v39, %v1987_v59  ;;  %v1990_v16 = vsel %vm812_vm1, %v1987_v59, %v1989_v54  ;;  %v1997_v63 = vrot.slane %v4929_v12, 2  ;;  %v5965_v39 = vld [vmem:[#allocation70_spill] sm:$0xff]  ;;  %v5966_v54 = vld [vmem:[#allocation71_spill] sm:$0xff] }
 0x162   : > { %v1999_v28 = vrot.slane %v4932_v52, 2  ;;  %v1993_v19 = vsel %vm812_vm1, %v1991_v57, %v1992_v21  ;;  %v1995_v9 = vsel %vm812_vm1, %v1992_v21, %v1994_v5  ;;  %v2001_v23 = vrot.slane %v4935_v45, 2  ;;  %v5968_v5 = vld [vmem:[#allocation73_spill] sm:$0xff] }
 0x163   : > { %v2002_v41 = vrot.slane %v4938_v38, 2  ;;  %v1998_v37 = vsel %vm812_vm1, %v1996_v56, %v1997_v63  ;;  %v2004_v7 = vrot.slane %v4941_v36, 2  ;;  %v2006_v25 = vrot.slane %v4944_v50, 2  ;;  %v5955_v38 = vld [vmem:[#allocation61_spill] sm:$0xff]  ;;  %v5957_v36 = vld [vmem:[#allocation63_spill] sm:$0xff]  ;;  %v5969_v56 = vld [vmem:[#allocation74_spill] sm:$0xff] }
 0x164   : > { %v2000_v35 = vsel %vm812_vm1, %v1997_v63, %v1999_v28  ;;  %v2007_v52 = vrot.slane %v4947_v10, 2  ;;  %v2009_v32 = vrot.slane %v4951_v1, 2  ;;  %v2043_v15 = vadd.f32 %v4954_v24, %v4720_v31  ;;  %v5960_v24 = vld [vmem:[#allocation44_spill] sm:$0xff] }
 0x165   : > { %v2003_v12 = vsel %vm812_vm1, %v2001_v23, %v2002_v41  ;;  %v2005_v45 = vsel %vm812_vm1, %v2002_v41, %v2004_v7  ;;  %v2044_v18 = vadd.f32 %v4957_v44, %v5955_v38  ;;  %v2045_v14 = vadd.f32 %v4960_v42, %v5956_v30  ;;  %v5961_v44 = vld [vmem:[#allocation66_spill] sm:$0xff]  ;;  %v5962_v42 = vld [vmem:[#allocation67_spill] sm:$0xff]  ;;  %v5971_v23 = vld [vmem:[#allocation76_spill] sm:$0xff] }
 0x166   : > { %v2046_v50 = vadd.f32 %v4963_v13, %v5957_v36  ;;  %v2008_v3 = vsel %vm812_vm1, %v2006_v25, %v2007_v52  ;;  %v2010_v10 = vsel %vm812_vm1, %v2007_v52, %v2009_v32  ;;  %v2047_v1 = vadd.f32 %v4967_v60, %v5958_v49  ;;  %v5967_v60 = vld [vmem:[#allocation72_spill] sm:$0xff]  ;;  %v5972_v41 = vld [vmem:[#allocation77_spill] sm:$0xff]  ;;  %v5973_v7 = vld [vmem:[#allocation78_spill] sm:$0xff] }
 0x167   : > { %v2048_v31 = vadd.f32 %v4970_v51, %v5959_v62  ;;  %v2049_v2 = vadd.f32 %v4978_v61, %v5960_v24  ;;  %v2050_v20 = vadd.f32 %v4981_v8, %v5961_v44  ;;  %v2051_v4 = vadd.f32 %v1953_v40, %v5962_v42  ;;  %v5970_v61 = vld [vmem:[#allocation75_spill] sm:$0xff]  ;;  %v5975_v52 = vld [vmem:[#allocation80_spill] sm:$0xff]  ;;  %v5977_v32 = vld [vmem:[#allocation82_spill] sm:$0xff] }
 0x168   : > { %v2052_v13 = vadd.f32 %v1955_v22, %v5963_v46  ;;  %v2053_v48 = vadd.f32 %v1958_v43, %v5964_v47  ;;  %v2054_v59 = vadd.f32 %v1960_v26, %v5965_v39  ;;  %v2055_v57 = vadd.f32 %v1963_v17, %v5966_v54  ;;  %v5974_v25 = vld [vmem:[#allocation79_spill] sm:$0xff]  ;;  %v2409_v17 = vld [vmem:[%s5116_s3] ss:$0 sm:$0xff]  ;;  %v5979_v30 = vld [vmem:[#allocation84_spill] sm:$0xff] }
 0x169   : > { %v2056_v21 = vadd.f32 %v1965_v33, %v5967_v60  ;;  %v2057_v51 = vadd.f32 %v1968_v11, %v5968_v5  ;;  %v2058_v63 = vadd.f32 %v1970_v0, %v5969_v56  ;;  %v2059_v28 = vadd.f32 %v1973_v58, %v5970_v61  ;;  %v5976_v33 = vld [vmem:[#allocation81_spill] sm:$0xff]  ;;  %v5978_v38 = vld [vmem:[#allocation83_spill] sm:$0xff]  ;;  %v5982_v62 = vld [vmem:[#allocation4_spill] sm:$0xff] }
 0x16a   : > { %v2060_v8 = vadd.f32 %v1975_v6, %v5971_v23  ;;  %v2061_v40 = vadd.f32 %v1978_v55, %v5972_v41  ;;  %v2062_v22 = vadd.f32 %v1980_v34, %v5973_v7  ;;  %v2063_v43 = vadd.f32 %v1983_v27, %v5974_v25  ;;  %v5980_v36 = vld [vmem:[#allocation85_spill] sm:$0xff]  ;;  %v5981_v49 = vld [vmem:[#allocation3_spill] sm:$0xff]  ;;  %v5983_v24 = vld [vmem:[#allocation2_spill] sm:$0xff] }
 0x16b   : > { %v2064_v26 = vadd.f32 %v1985_v53, %v5975_v52  ;;  %v2065_v11 = vadd.f32 %v1988_v29, %v5976_v33  ;;  %v2066_v0 = vadd.f32 %v1990_v16, %v5977_v32  ;;  %v2067_v58 = vadd.f32 %v1993_v19, %v5978_v38  ;;  %v5984_v44 = vld [vmem:[#allocation56_spill] sm:$0xff]  ;;  %v5985_v46 = vld [vmem:[#allocation57_spill] sm:$0xff] }
 0x16c   : > { %v2068_v6 = vadd.f32 %v1995_v9, %v5979_v30  ;;  %v2069_v55 = vadd.f32 %v1998_v37, %v5980_v36  ;;  %v2070_v34 = vadd.f32 %v2000_v35, %v5981_v49  ;;  %v2071_v27 = vadd.f32 %v2003_v12, %v5982_v62 }
 0x16d   : > { %v2072_v53 = vadd.f32 %v2005_v45, %v5983_v24  ;;  %v2073_v42 = vadd.f32 %v2008_v3, %v5984_v44  ;;  %v2074_v47 = vadd.f32 %v2010_v10, %v5985_v46  ;;  %v2082_v29 = vadd.f32 %v2409_v17, %v2043_v15 }
 0x16e   : > { %v2083_v39 = vadd.f32 %v2409_v17, %v2044_v18  ;;  %v2084_v16 = vadd.f32 %v2409_v17, %v2045_v14  ;;  %v2085_v54 = vadd.f32 %v2409_v17, %v2046_v50  ;;  %v2086_v19 = vadd.f32 %v2409_v17, %v2047_v1 }
 0x16f   : > { %v2087_v60 = vadd.f32 %v2409_v17, %v2048_v31  ;;  %v2088_v9 = vadd.f32 %v2409_v17, %v2049_v2  ;;  %v2089_v5 = vadd.f32 %v2409_v17, %v2050_v20  ;;  %v2090_v37 = vadd.f32 %v2409_v17, %v2051_v4 }
 0x170   : > { %v2091_v56 = vadd.f32 %v2409_v17, %v2052_v13  ;;  %v2092_v35 = vadd.f32 %v2409_v17, %v2053_v48  ;;  %v2093_v61 = vadd.f32 %v2409_v17, %v2054_v59  ;;  %v2094_v12 = vadd.f32 %v2409_v17, %v2055_v57 }
 0x171   : > { %v2095_v23 = vadd.f32 %v2409_v17, %v2056_v21  ;;  %v2096_v45 = vadd.f32 %v2409_v17, %v2057_v51  ;;  %v2097_v3 = vadd.f32 %v2409_v17, %v2058_v63  ;;  %v2098_v41 = vadd.f32 %v2409_v17, %v2059_v28 }
 0x172   : > { %v2099_v7 = vadd.f32 %v2409_v17, %v2060_v8  ;;  %v2100_v10 = vadd.f32 %v2409_v17, %v2061_v40  ;;  %v2101_v15 = vadd.f32 %v2409_v17, %v2062_v22  ;;  %v2102_v18 = vadd.f32 %v2409_v17, %v2063_v43 }
 0x173   : > { %v2103_v14 = vadd.f32 %v2409_v17, %v2064_v26  ;;  %v2104_v50 = vadd.f32 %v2409_v17, %v2065_v11  ;;  %v2105_v1 = vadd.f32 %v2409_v17, %v2066_v0  ;;  %v2106_v31 = vadd.f32 %v2409_v17, %v2067_v58 }
 0x174   : > { %v2107_v2 = vadd.f32 %v2409_v17, %v2068_v6  ;;  %v2108_v20 = vadd.f32 %v2409_v17, %v2069_v55  ;;  %v2109_v4 = vadd.f32 %v2409_v17, %v2070_v34  ;;  %v2110_v13 = vadd.f32 %v2409_v17, %v2071_v27 }
 0x175   : > { %v2111_v48 = vadd.f32 %v2409_v17, %v2072_v53  ;;  %v2112_v59 = vadd.f32 %v2409_v17, %v2073_v42  ;;  %v2113_v57 = vadd.f32 %v2409_v17, %v2074_v47  ;;  %v2518_v21 = vpack.c.bf16 %v2083_v39, %v2082_v29 }
 0x176   : > { %v2523_v51 = vpack.c.bf16 %v2085_v54, %v2084_v16  ;;  %v2528_v63 = vpack.c.bf16 %v2087_v60, %v2086_v19  ;;  %v2533_v28 = vpack.c.bf16 %v2089_v5, %v2088_v9  ;;  %v2538_v8 = vpack.c.bf16 %v2091_v56, %v2090_v37 }
 0x177   : > { %v2543_v40 = vpack.c.bf16 %v2093_v61, %v2092_v35  ;;  %2519 = vst [vmem:[%s5086_s28] sm:$0xff] %v2518_v21   ;;  %v2548_v22 = vpack.c.bf16 %v2095_v23, %v2094_v12  ;;  %v2553_v25 = vpack.c.bf16 %v2097_v3, %v2096_v45  ;;  %v2558_v43 = vpack.c.bf16 %v2099_v7, %v2098_v41 }
 0x178   : > { %2602 = vst [vmem:[%s5086_s28 + $0x8] sm:$0xff] %v2523_v51   ;;  %v2563_v52 = vpack.c.bf16 %v2101_v15, %v2100_v10  ;;  %2603 = vst [vmem:[%s5086_s28 + $0x10] sm:$0xff] %v2528_v63   ;;  %v2568_v26 = vpack.c.bf16 %v2103_v14, %v2102_v18  ;;  %v2573_v17 = vpack.c.bf16 %v2105_v1, %v2104_v50 }
 0x179   : > { %2604 = vst [vmem:[%s5086_s28 + $0x18] sm:$0xff] %v2533_v28   ;;  %2605 = vst [vmem:[%s5086_s28 + $0x20] sm:$0xff] %v2538_v8   ;;  %v2578_v33 = vpack.c.bf16 %v2107_v2, %v2106_v31  ;;  %v2583_v11 = vpack.c.bf16 %v2109_v4, %v2108_v20  ;;  %v2588_v32 = vpack.c.bf16 %v2111_v48, %v2110_v13 }
 0x17a   : > { %2606 = vst [vmem:[%s5086_s28 + $0x28] sm:$0xff] %v2543_v40   ;;  %2607 = vst [vmem:[%s5086_s28 + $0x30] sm:$0xff] %v2548_v22   ;;  %v2593_v0 = vpack.c.bf16 %v2113_v57, %v2112_v59 }
 0x17b   : > { %2608 = vst [vmem:[%s5086_s28 + $0x38] sm:$0xff] %v2553_v25   ;;  %2609 = vst [vmem:[%s5086_s28 + $0x40] sm:$0xff] %v2558_v43  }
 0x17c   : > { %2610 = vst [vmem:[%s5086_s28 + $0x48] sm:$0xff] %v2563_v52   ;;  %2611 = vst [vmem:[%s5086_s28 + $0x50] sm:$0xff] %v2568_v26  }
 0x17d   : > { %2612 = vst [vmem:[%s5086_s28 + $0x58] sm:$0xff] %v2573_v17   ;;  %2613 = vst [vmem:[%s5086_s28 + $0x60] sm:$0xff] %v2578_v33  }
 0x17e   : > { %2614 = vst [vmem:[%s5086_s28 + $0x68] sm:$0xff] %v2583_v11   ;;  %2615 = vst [vmem:[%s5086_s28 + $0x70] sm:$0xff] %v2588_v32  }
 0x17f   : > { %2616 = vst [vmem:[%s5086_s28 + $0x78] sm:$0xff] %v2593_v0  }
 0x180 PF: > { %s14_s17 = sadd.s32 1, %s2666_s17   ;;  %s5986_s15 = smov %s2662_s16 }
 0x181   : > { %p11_p5 = scmp.ge.s32.totalorder %s14_s17, 4   ;;  %s5987_s16 = smov %s5989_s18 }
 0x183   :  { %13 = sbr.rel (!%p11_p5) target bundleno = 2 (0x2), region = 69 }

// kernel: _decoder_forward.16
= control target key start
LH: loop header
LB: loop body
LE: loop exit
PB: predicated region body
PF: predicated region fallthrough
CT: control target
= control target key end

     0   :  { %s2585_s27 = smov 0   ;;  %s3121_s0 = inlined_call_operand.vmem [shape: bf16[512,128], index: 0, kind: input, shape index: {}]   ;;  %s3122_s1 = inlined_call_operand.vmem [shape: bf16[512,128], index: 1, kind: input, shape index: {}]   ;;  %s3123_s2 = inlined_call_operand.vmem [shape: bf16[128,128], index: 2, kind: input, shape index: {}]   ;;  %s3124_s3 = inlined_call_operand.vmem [shape: f32[1,128], index: 3, kind: input, shape index: {}]   ;;  %s3125_s4 = inlined_call_operand.vmem [shape: bf16[128,256], index: 4, kind: input, shape index: {}]   ;;  %s3126_s5 = inlined_call_operand.vmem [shape: f32[1,256], index: 5, kind: input, shape index: {}]   ;;  %s3127_s6 = inlined_call_operand.vmem [shape: bf16[256,128], index: 6, kind: input, shape index: {}]   ;;  %s3128_s7 = inlined_call_operand.vmem [shape: f32[1,128], index: 7, kind: input, shape index: {}]   ;;  %s3129_s8 = inlined_call_operand.vmem [shape: bf16[512,128], index: 8, kind: output, shape index: {}]  }
   0x1 LB: > { %s1949_s28 = sadd.s32 4294967295, %s2537_s27   ;;  %p1953_p0 = scmp.ge.s32.totalorder %s2537_s27, 1  ;;  %s2537_s27 = sphi %s2585_s27, %s18_s27  }
   0x2   : > { %p274_p1 = scmp.lt.s32.totalorder %s2537_s27, 3 }
   0x4   : > { %p275_p2 = pnand %p1953_p0, %p274_p1 }
   0x5   : > { %v2467_v0 = vld [vmem:[%s3123_s2] sm:$0xff] (!%p275_p2)   ;;  %s1954_s9 = sshll.u32 (!%p275_p2), %s1949_s28, 5  ;;  %v2468_v1 = vld [vmem:[%s3123_s2 + $0x8] sm:$0xff] (!%p275_p2)   ;;  %v2469_v2 = vld [vmem:[%s3123_s2 + $0x10] sm:$0xff] (!%p275_p2)   ;;  %v2539_v40 = vmov (!%p275_p2), 0  }
   0x6   : > { %278 = sbr.rel (%p275_p2) target bundleno = 829 (0x33d), region = 52  ;;  %p314_p3 = scmp.lt.s32.totalorder (!%p275_p2), %s1954_s9, 63  ;;  %2394 = vmatprep.subr.bf16.mxu0 (!%p275_p2), %v2467_v0  ;;  %2442 = vmatprep.subr.bf16.mxu1 (!%p275_p2), %v2467_v0  ;;  %v2470_v3 = vld [vmem:[%s3123_s2 + $0x18] sm:$0xff] (!%p275_p2)   ;;  %v2471_v5 = vld [vmem:[%s3123_s2 + $0x20] sm:$0xff] (!%p275_p2)   ;;  %v2472_v6 = vld [vmem:[%s3123_s2 + $0x28] sm:$0xff] (!%p275_p2)  }
   0x7   : > { %2395 = vmatpush3.bf16.msra.mxu0 (!%p275_p2), %v2467_v0  ;;  %2450 = vmatpush3.bf16.msra.mxu1 (!%p275_p2), %v2467_v0  ;;  %v2473_v8 = vld [vmem:[%s3123_s2 + $0x30] sm:$0xff] (!%p275_p2)   ;;  %v2474_v9 = vld [vmem:[%s3123_s2 + $0x38] sm:$0xff] (!%p275_p2)   ;;  %v2493_v11 = vld [vmem:[%s3125_s4 + $0x4] ss:$8 sps:$4 sm:$0xff] (!%p275_p2)  }
   0x8   : > { %2396 = vmatprep.subr.bf16.mxu0 (!%p275_p2), %v2468_v1  ;;  %2443 = vmatprep.subr.bf16.mxu1 (!%p275_p2), %v2468_v1  ;;  %v2491_v15 = vld [vmem:[%s3125_s4] ss:$8 sps:$4 sm:$0xff] (!%p275_p2)   ;;  %v2496_v16 = vld [vmem:[%s3125_s4 + $0x14] ss:$8 sps:$4 sm:$0xff] (!%p275_p2)   ;;  %v2494_v17 = vld [vmem:[%s3125_s4 + $0x10] ss:$8 sps:$4 sm:$0xff] (!%p275_p2)  }
   0x9   : > { %v2499_v18 = vld [vmem:[%s3125_s4 + $0x24] ss:$8 sps:$4 sm:$0xff] (!%p275_p2)   ;;  %v2497_v23 = vld [vmem:[%s3125_s4 + $0x20] ss:$8 sps:$4 sm:$0xff] (!%p275_p2)   ;;  %v2502_v24 = vld [vmem:[%s3125_s4 + $0x34] ss:$8 sps:$4 sm:$0xff] (!%p275_p2)  }
   0xa   : > { %v2500_v25 = vld [vmem:[%s3125_s4 + $0x30] ss:$8 sps:$4 sm:$0xff] (!%p275_p2)   ;;  %v2505_v26 = vld [vmem:[%s3125_s4 + $0x44] ss:$8 sps:$4 sm:$0xff] (!%p275_p2)   ;;  %v2503_v31 = vld [vmem:[%s3125_s4 + $0x40] ss:$8 sps:$4 sm:$0xff] (!%p275_p2)  }
   0xb   : > { %2397 = vmatpush3.bf16.msra.mxu0 (!%p275_p2), %v2468_v1  ;;  %2451 = vmatpush3.bf16.msra.mxu1 (!%p275_p2), %v2468_v1  ;;  %v2508_v32 = vld [vmem:[%s3125_s4 + $0x54] ss:$8 sps:$4 sm:$0xff] (!%p275_p2)   ;;  %v2506_v33 = vld [vmem:[%s3125_s4 + $0x50] ss:$8 sps:$4 sm:$0xff] (!%p275_p2)   ;;  %v2511_v36 = vld [vmem:[%s3125_s4 + $0x64] ss:$8 sps:$4 sm:$0xff] (!%p275_p2)  }
   0xc   : > { %2398 = vmatprep.subr.bf16.mxu0 (!%p275_p2), %v2469_v2  ;;  %2444 = vmatprep.subr.bf16.mxu1 (!%p275_p2), %v2469_v2  ;;  %v2509_v37 = vld [vmem:[%s3125_s4 + $0x60] ss:$8 sps:$4 sm:$0xff] (!%p275_p2)   ;;  %v2514_v38 = vld [vmem:[%s3125_s4 + $0x74] ss:$8 sps:$4 sm:$0xff] (!%p275_p2)   ;;  %v2512_v39 = vld [vmem:[%s3125_s4 + $0x70] ss:$8 sps:$4 sm:$0xff] (!%p275_p2)  }
   0xd   : > { %s3131_s9 = smov (!%p314_p3, %s1954_s9), 63  ;;  %v2699_v41 = vld [vmem:[%s3124_s3] ss:$0 sm:$0xff]  ;;  %v2517_v56 = vld [vmem:[%s3127_s6 + $0x48] sm:$0xff]   ;;  %v2519_v1 = vld [vmem:[%s3127_s6 + $0x50] sm:$0xff]  }
   0xe   : > { %s2602_s14 = sshll.u32 %s3131_s9, 2  ;;  %v2515_v54 = vld [vmem:[%s3127_s6 + $0x40] sm:$0xff]   ;;  %v2518_v62 = vld [vmem:[%s3127_s6 + $0x8] sm:$0xff]  }
   0xf   : > { %s2608_s17 = scalar_lea.vmem %s3121_s0, %s2602_s14  ;;  %2399 = vmatpush3.bf16.msra.mxu0 %v2469_v2  ;;  %2452 = vmatpush3.bf16.msra.mxu1 %v2469_v2  ;;  %s2694_s23 = scalar_lea.vmem %s3122_s1, %s2602_s14  ;;  %v2516_v55 = vld [vmem:[%s3127_s6] sm:$0xff]  }
  0x10   : > { %v2475_v4 = vld [vmem:[%s2608_s17] sm:$0xff]   ;;  %2400 = vmatprep.subr.bf16.mxu0 %v2470_v3  ;;  %2445 = vmatprep.subr.bf16.mxu1 %v2470_v3  ;;  %v2476_v10 = vld [vmem:[%s2608_s17 + $0x8] sm:$0xff]   ;;  %v2477_v12 = vld [vmem:[%s2608_s17 + $0x10] sm:$0xff]   ;;  %s3040_s25 = scalar_lea.vmem %s3129_s8, %s2602_s14 }
  0x11   : > { %2410 = vmatprep.mubr.bf16.mxu0 %v2475_v4  ;;  %v2483_v7 = vld [vmem:[%s2608_s17 + $0x40] sm:$0xff]   ;;  %v2484_v13 = vld [vmem:[%s2608_s17 + $0x48] sm:$0xff]   ;;  %v2485_v14 = vld [vmem:[%s2608_s17 + $0x50] sm:$0xff]  }
  0x12   : > { %2426 = vmatprep.mubr.bf16.mxu1 %v2483_v7  ;;  %v2478_v19 = vld [vmem:[%s2608_s17 + $0x18] sm:$0xff]   ;;  %v2479_v21 = vld [vmem:[%s2608_s17 + $0x20] sm:$0xff]   ;;  %v2480_v27 = vld [vmem:[%s2608_s17 + $0x28] sm:$0xff]  }
  0x13   : > { %2401 = vmatpush3.bf16.msra.mxu0 %v2470_v3  ;;  %2453 = vmatpush3.bf16.msra.mxu1 %v2470_v3  ;;  %v2486_v20 = vld [vmem:[%s2608_s17 + $0x58] sm:$0xff]   ;;  %v2487_v22 = vld [vmem:[%s2608_s17 + $0x60] sm:$0xff]   ;;  %v2488_v28 = vld [vmem:[%s2608_s17 + $0x68] sm:$0xff]  }
  0x14   : > { %2402 = vmatprep.subr.bf16.mxu0 %v2471_v5  ;;  %2446 = vmatprep.subr.bf16.mxu1 %v2471_v5  ;;  %v2481_v29 = vld [vmem:[%s2608_s17 + $0x30] sm:$0xff]   ;;  %v2482_v34 = vld [vmem:[%s2608_s17 + $0x38] sm:$0xff]   ;;  %v2085_v42 = vld [vmem:[%s2694_s23] sm:$0xff]  }
  0x15   : > { %v2489_v30 = vld [vmem:[%s2608_s17 + $0x70] sm:$0xff]   ;;  %v2490_v35 = vld [vmem:[%s2608_s17 + $0x78] sm:$0xff]   ;;  %v2086_v49 = vunpack.c.l.bf16 %v2085_v42  ;;  %v2087_v51 = vunpack.c.h.bf16 %v2085_v42  ;;  %v2228_v2 = vld [vmem:[%s2694_s23 + $0x8] sm:$0xff]  }
  0x16   : > { %v2091_v4 = vunpack.c.h.bf16 %v2228_v2 }
  0x17   : > { %2403 = vmatpush3.bf16.msra.mxu0 %v2471_v5  ;;  %2454 = vmatpush3.bf16.msra.mxu1 %v2471_v5 }
  0x18   : > { %2404 = vmatprep.subr.bf16.mxu0 %v2472_v6  ;;  %2447 = vmatprep.subr.bf16.mxu1 %v2472_v6 }
  0x1b   : > { %2405 = vmatpush3.bf16.msra.mxu0 %v2472_v6  ;;  %2455 = vmatpush3.bf16.msra.mxu1 %v2472_v6 }
  0x1c   : > { %2406 = vmatprep.subr.bf16.mxu0 %v2473_v8  ;;  %2448 = vmatprep.subr.bf16.mxu1 %v2473_v8 }
  0x1f   : > { %2407 = vmatpush3.bf16.msra.mxu0 %v2473_v8  ;;  %2456 = vmatpush3.bf16.msra.mxu1 %v2473_v8 }
  0x20   : > { %2408 = vmatprep.subr.bf16.mxu0 %v2474_v9  ;;  %2449 = vmatprep.subr.bf16.mxu1 %v2474_v9 }
  0x23   : > { %2409 = vmatpush3.bf16.msra.mxu0 %v2474_v9  ;;  %2457 = vmatpush3.bf16.msra.mxu1 %v2474_v9 }
  0x24   : > { %912 = vmatprep.subr.bf16.mxu1 %v2493_v11  ;;  %2282 = vmatprep.subr.bf16.mxu0 %v2515_v54  ;;  %v2520_v11 = vld [vmem:[%s3127_s6 + $0x10] sm:$0xff]  }
  0x26   : > { %2411 = vmatmul.mubr.bf16.vlgmr.msra.gmra.mrb[0].mxu0 %v2476_v10  ;;  %2427 = vmatmul.mubr.bf16.vlgmr.msra.gmra.mrb[0].mxu1 %v2484_v13  ;;  %v2090_v13 = vunpack.c.l.bf16 %v2228_v2 }
  0x27   : > { %2414 = vmatprep.mubr.bf16.mxu0 %v2477_v12  ;;  %2430 = vmatprep.mubr.bf16.mxu1 %v2485_v14 }
  0x28   : > { %913 = vmatpush1.bf16.msra.mxu1 %v2491_v15  ;;  %2283 = vmatpush3.bf16.msra.mxu0 %v2516_v55 }
  0x29   : > { %914 = vmatprep.subr.bf16.mxu1 %v2496_v16  ;;  %2284 = vmatprep.subr.bf16.mxu0 %v2517_v56 }
  0x2c   : > { %915 = vmatpush1.bf16.msra.mxu1 %v2494_v17  ;;  %2285 = vmatpush3.bf16.msra.mxu0 %v2518_v62  ;;  %v2521_v17 = vld [vmem:[%s3127_s6 + $0x58] sm:$0xff]  }
  0x2d   : > { %916 = vmatprep.subr.bf16.mxu1 %v2499_v18  ;;  %2286 = vmatprep.subr.bf16.mxu0 %v2519_v1 }
  0x2e   : > { %2415 = vmatmul.mubr.bf16.gmra.mrb[4].mxu0 %v2478_v19  ;;  %2431 = vmatmul.mubr.bf16.gmra.mrb[4].mxu1 %v2486_v20 }
  0x2f   : > { %2418 = vmatprep.mubr.bf16.mxu0 %v2479_v21  ;;  %2434 = vmatprep.mubr.bf16.mxu1 %v2487_v22  ;;  %v2229_v22 = vld [vmem:[%s2694_s23 + $0x10] sm:$0xff]  }
  0x30   : > { %917 = vmatpush1.bf16.msra.mxu1 %v2497_v23  ;;  %2287 = vmatpush3.bf16.msra.mxu0 %v2520_v11  ;;  %v2231_v11 = vld [vmem:[%s2694_s23 + $0x20] sm:$0xff]  }
  0x31   : > { %918 = vmatprep.subr.bf16.mxu1 %v2502_v24  ;;  %v2522_v24 = vld [vmem:[%s3127_s6 + $0x18] sm:$0xff]   ;;  %2288 = vmatprep.subr.bf16.mxu0 %v2521_v17  ;;  %v2103_v17 = vunpack.c.h.bf16 %v2231_v11 }
  0x34   : > { %919 = vmatpush1.bf16.msra.mxu1 %v2500_v25  ;;  %2289 = vmatpush3.bf16.msra.mxu0 %v2522_v24 }
  0x35   : > { %920 = vmatprep.subr.bf16.mxu1 %v2505_v26  ;;  %v2523_v26 = vld [vmem:[%s3127_s6 + $0x60] sm:$0xff]  }
  0x36   : > { %2419 = vmatmul.mubr.bf16.gmra.mrb[8].mxu0 %v2480_v27  ;;  %2435 = vmatmul.mubr.bf16.gmra.mrb[8].mxu1 %v2488_v28  ;;  %v2094_v27 = vunpack.c.l.bf16 %v2229_v22 }
  0x37   : > { %2422 = vmatprep.mubr.bf16.mxu0 %v2481_v29  ;;  %2438 = vmatprep.mubr.bf16.mxu1 %v2489_v30  ;;  %v2095_v30 = vunpack.c.h.bf16 %v2229_v22 }
  0x38   : > { %921 = vmatpush1.bf16.msra.mxu1 %v2503_v31  ;;  %2290 = vmatprep.subr.bf16.mxu0 %v2523_v26 }
  0x39   : > { %922 = vmatprep.subr.bf16.mxu1 %v2508_v32 }
  0x3c   : > { %923 = vmatpush1.bf16.msra.mxu1 %v2506_v33 }
  0x3d   : > { %924 = vmatprep.subr.bf16.mxu1 %v2511_v36 }
  0x3e   : > { %2423 = vmatmul.mubr.bf16.gmra.mrb[12].mxu0 %v2482_v34  ;;  %2439 = vmatmul.mubr.bf16.gmra.mrb[12].mxu1 %v2490_v35 }
  0x3f   : > { %944 = vmatprep.mubr.bf16.mxu1 %v2539_v40 }
  0x40   : > { %925 = vmatpush1.bf16.msra.mxu1 %v2509_v37  ;;  %v2524_v37 = vld [vmem:[%s3127_s6 + $0x20] sm:$0xff]  }
  0x41   : > { %926 = vmatprep.subr.bf16.mxu1 %v2514_v38  ;;  %2291 = vmatpush3.bf16.msra.mxu0 %v2524_v37 }
  0x44   : > { %927 = vmatpush1.bf16.msra.mxu1 %v2512_v39 }
  0xf9   : > { %v2412_v43 = vpop.f32.mrb[0].mxu0  ;;  %v2428_v44 = vpop.f32.mrb[0].mxu1 }
  0xfa   : > { %v565_v45 = vpop.f32.mrb[1].mxu0  ;;  %v2703_v46 = vadd.f32 %v2428_v44, %v2699_v41  ;;  %v629_v47 = vpop.f32.mrb[1].mxu1  ;;  %v574_v12 = vadd.f32 %v2412_v43, %v2699_v41 }
  0xfb   : > { %v566_v48 = vadd.f32 %v2699_v41, %v565_v45  ;;  %v2413_v50 = vpop.f32.mrb[2].mxu0  ;;  %v2707_v52 = vadd.f32 %v2699_v41, %v629_v47  ;;  %v2429_v53 = vpop.f32.mrb[2].mxu1  ;;  %v2230_v47 = vld [vmem:[%s2694_s23 + $0x18] sm:$0xff]  }
  0xfc   : > { %v568_v57 = vpop.f32.mrb[3].mxu0  ;;  %v2719_v58 = vadd.f32 %v2429_v53, %v2699_v41  ;;  %v632_v59 = vpop.f32.mrb[3].mxu1  ;;  %v577_v3 = vadd.f32 %v2413_v50, %v2699_v41  ;;  %v2765_v25 = vadd.f32 %v2090_v13, %v574_v12  ;;  %v2099_v55 = vunpack.c.h.bf16 %v2230_v47 }
  0xfd   : > { %v569_v60 = vadd.f32 %v2699_v41, %v568_v57  ;;  %v2723_v61 = vadd.f32 %v2699_v41, %v632_v59  ;;  %v2728_v63 = vadd.f32 %v2086_v49, %v566_v48  ;;  %v2102_v13 = vunpack.c.l.bf16 %v2231_v11 }
  0xfe   : > { %v2756_v21 = vadd.f32 %v2091_v4, %v577_v3 }
  0xff   : > { %v2730_v0 = vadd.f32 %v2087_v51, %v569_v60  ;;  %v2098_v51 = vunpack.c.l.bf16 %v2230_v47 }
 0x100   : > { %v789_v31 = vpack.c.bf16 %v2756_v21, %v2765_v25 }
 0x101   : > { %v788_v5 = vpack.c.bf16 %v2730_v0, %v2728_v63  ;;  %v2416_v6 = vpop.f32.mrb[4].mxu0  ;;  %v2432_v7 = vpop.f32.mrb[4].mxu1 }
 0x102   : > { %v581_v8 = vpop.f32.mrb[5].mxu0  ;;  %v2740_v9 = vadd.f32 %v2432_v7, %v2699_v41  ;;  %v645_v10 = vpop.f32.mrb[5].mxu1  ;;  %v590_v53 = vadd.f32 %v2416_v6, %v2699_v41 }
 0x103   : > { %945 = vmatmul.mubr.bf16.vlgmr.msra.gmra.mrb[16].mxu1 %v788_v5  ;;  %v2417_v14 = vpop.f32.mrb[6].mxu0  ;;  %v2747_v15 = vadd.f32 %v2699_v41, %v645_v10  ;;  %v2433_v16 = vpop.f32.mrb[6].mxu1  ;;  %v582_v28 = vadd.f32 %v2699_v41, %v581_v8 }
 0x104   : > { %v584_v18 = vpop.f32.mrb[7].mxu0  ;;  %954 = vmatprep.mubr.bf16.mxu1 %v2539_v40  ;;  %v2754_v19 = vadd.f32 %v2433_v16, %v2699_v41  ;;  %v648_v20 = vpop.f32.mrb[7].mxu1  ;;  %v593_v54 = vadd.f32 %v2417_v14, %v2699_v41  ;;  %v2809_v8 = vadd.f32 %v2098_v51, %v590_v53 }
 0x105   : > { %v2760_v23 = vadd.f32 %v2699_v41, %v648_v20  ;;  %v585_v29 = vadd.f32 %v2699_v41, %v584_v18  ;;  %v2788_v48 = vadd.f32 %v2094_v27, %v582_v28  ;;  %v2232_v20 = vld [vmem:[%s2694_s23 + $0x28] sm:$0xff]  }
 0x106   : > { %v2811_v10 = vadd.f32 %v2099_v55, %v593_v54  ;;  %v2106_v26 = vunpack.c.l.bf16 %v2232_v20 }
 0x107   : > { %v2790_v49 = vadd.f32 %v2095_v30, %v585_v29  ;;  %v2107_v29 = vunpack.c.h.bf16 %v2232_v20 }
 0x108   : > { %v791_v18 = vpack.c.bf16 %v2811_v10, %v2809_v8 }
 0x109   : > { %v2420_v32 = vpop.f32.mrb[8].mxu0  ;;  %v2436_v33 = vpop.f32.mrb[8].mxu1  ;;  %v790_v56 = vpack.c.bf16 %v2790_v49, %v2788_v48 }
 0x10a   : > { %v597_v34 = vpop.f32.mrb[9].mxu0  ;;  %v2775_v35 = vadd.f32 %v2436_v33, %v2699_v41  ;;  %v661_v36 = vpop.f32.mrb[9].mxu1  ;;  %v606_v27 = vadd.f32 %v2420_v32, %v2699_v41 }
 0x10b   : > { %955 = vmatmul.mubr.bf16.gmra.mrb[20].mxu1 %v789_v31  ;;  %v2421_v38 = vpop.f32.mrb[10].mxu0  ;;  %v2781_v39 = vadd.f32 %v2699_v41, %v661_v36  ;;  %v2437_v42 = vpop.f32.mrb[10].mxu1  ;;  %v598_v14 = vadd.f32 %v2699_v41, %v597_v34  ;;  %v2233_v34 = vld [vmem:[%s2694_s23 + $0x30] sm:$0xff]  }
 0x10c   : > { %964 = vmatprep.mubr.bf16.mxu1 %v2539_v40  ;;  %v600_v43 = vpop.f32.mrb[11].mxu0  ;;  %v2785_v44 = vadd.f32 %v2437_v42, %v2699_v41  ;;  %v664_v45 = vpop.f32.mrb[11].mxu1  ;;  %v609_v28 = vadd.f32 %v2421_v38, %v2699_v41  ;;  %v2832_v31 = vadd.f32 %v2106_v26, %v606_v27  ;;  %v2110_v36 = vunpack.c.l.bf16 %v2233_v34 }
 0x10d   : > { %v2793_v50 = vadd.f32 %v2699_v41, %v664_v45  ;;  %v601_v16 = vadd.f32 %v2699_v41, %v600_v43  ;;  %v2823_v22 = vadd.f32 %v2102_v13, %v598_v14  ;;  %v2111_v42 = vunpack.c.h.bf16 %v2233_v34  ;;  %v2234_v43 = vld [vmem:[%s2694_s23 + $0x38] sm:$0xff]  }
 0x10e   : > { %v2834_v33 = vadd.f32 %v2107_v29, %v609_v28  ;;  %v2114_v51 = vunpack.c.l.bf16 %v2234_v43  ;;  %v2115_v55 = vunpack.c.h.bf16 %v2234_v43 }
 0x10f   : > { %v2825_v24 = vadd.f32 %v2103_v17, %v601_v16 }
 0x110   : > { %v793_v38 = vpack.c.bf16 %v2834_v33, %v2832_v31 }
 0x111   : > { %v2424_v57 = vpop.f32.mrb[12].mxu0  ;;  %v2440_v59 = vpop.f32.mrb[12].mxu1  ;;  %v792_v30 = vpack.c.bf16 %v2825_v24, %v2823_v22 }
 0x112   : > { %v613_v60 = vpop.f32.mrb[13].mxu0  ;;  %v2800_v62 = vadd.f32 %v2440_v59, %v2699_v41  ;;  %v677_v1 = vpop.f32.mrb[13].mxu1  ;;  %v622_v53 = vadd.f32 %v2424_v57, %v2699_v41 }
 0x113   : > { %965 = vmatmul.mubr.bf16.gmra.mrb[24].mxu1 %v790_v56  ;;  %v2425_v2 = vpop.f32.mrb[14].mxu0  ;;  %v2803_v3 = vadd.f32 %v2699_v41, %v677_v1  ;;  %v2441_v4 = vpop.f32.mrb[14].mxu1  ;;  %v614_v37 = vadd.f32 %v2699_v41, %v613_v60  ;;  %v2235_v1 = vld [vmem:[%s2694_s23 + $0x40] sm:$0xff]  }
 0x114   : > { %974 = vmatprep.mubr.bf16.mxu1 %v2539_v40  ;;  %v616_v5 = vpop.f32.mrb[15].mxu0  ;;  %v2807_v6 = vadd.f32 %v2441_v4, %v2699_v41  ;;  %v680_v7 = vpop.f32.mrb[15].mxu1  ;;  %v625_v54 = vadd.f32 %v2425_v2, %v2699_v41  ;;  %v2852_v59 = vadd.f32 %v2114_v51, %v622_v53  ;;  %v2118_v4 = vunpack.c.l.bf16 %v2235_v1  ;;  %v2240_v51 = vld [vmem:[%s2694_s23 + $0x68] sm:$0xff]   ;;  %v2529_v53 = vld [vmem:[%s3127_s6 + $0x78] sm:$0xff]  }
 0x115   : > { %v2815_v12 = vadd.f32 %v2699_v41, %v680_v7  ;;  %v617_v32 = vadd.f32 %v2699_v41, %v616_v5  ;;  %v2843_v45 = vadd.f32 %v2110_v36, %v614_v37  ;;  %v2119_v5 = vunpack.c.h.bf16 %v2235_v1  ;;  %v2236_v7 = vld [vmem:[%s2694_s23 + $0x48] sm:$0xff]  }
 0x116   : > { %v2854_v60 = vadd.f32 %v2115_v55, %v625_v54  ;;  %v2861_v41 = vadd.f32 %v2118_v4, %v2707_v52  ;;  %v2122_v11 = vunpack.c.l.bf16 %v2236_v7  ;;  %v2123_v13 = vunpack.c.h.bf16 %v2236_v7  ;;  %v2237_v52 = vld [vmem:[%s2694_s23 + $0x50] sm:$0xff]   ;;  %v2526_v36 = vld [vmem:[%s3127_s6 + $0x28] sm:$0xff]   ;;  %v2530_v54 = vld [vmem:[%s3127_s6 + $0x38] sm:$0xff]  }
 0x117   : > { %v2845_v47 = vadd.f32 %v2111_v42, %v617_v32  ;;  %v2864_v2 = vadd.f32 %v2119_v5, %v2723_v61  ;;  %v2126_v61 = vunpack.c.l.bf16 %v2237_v52  ;;  %v2138_v55 = vunpack.c.l.bf16 %v2240_v51  ;;  %v2241_v4 = vld [vmem:[%s2694_s23 + $0x70] sm:$0xff]  }
 0x118   : > { %v795_v57 = vpack.c.bf16 %v2854_v60, %v2852_v59  ;;  %v2871_v16 = vadd.f32 %v2122_v11, %v2703_v46  ;;  %v2874_v17 = vadd.f32 %v2123_v13, %v2719_v58  ;;  %v2238_v46 = vld [vmem:[%s2694_s23 + $0x58] sm:$0xff]   ;;  %v2142_v5 = vunpack.c.l.bf16 %v2241_v4 }
 0x119   : > { %v794_v56 = vpack.c.bf16 %v2845_v47, %v2843_v45  ;;  %v796_v14 = vpack.c.bf16 %v2864_v2, %v2861_v41  ;;  %v2881_v26 = vadd.f32 %v2126_v61, %v2747_v15  ;;  %v2130_v28 = vunpack.c.l.bf16 %v2238_v46  ;;  %v2239_v15 = vld [vmem:[%s2694_s23 + $0x60] sm:$0xff]  }
 0x11a   : > { %v797_v20 = vpack.c.bf16 %v2874_v17, %v2871_v16  ;;  %v2131_v58 = vunpack.c.h.bf16 %v2238_v46  ;;  %v2134_v37 = vunpack.c.l.bf16 %v2239_v15  ;;  %v2135_v32 = vunpack.c.h.bf16 %v2239_v15 }
 0x11b   : > { %975 = vmatmul.mubr.bf16.gmra.mrb[28].mxu1 %v791_v18  ;;  %v2127_v18 = vunpack.c.h.bf16 %v2237_v52  ;;  %v2939_v11 = vadd.f32 %v2142_v5, %v2803_v3 }
 0x11c   : > { %984 = vmatprep.mubr.bf16.mxu1 %v2539_v40  ;;  %v2894_v34 = vadd.f32 %v2131_v58, %v2754_v19  ;;  %v2528_v19 = vld [vmem:[%s3127_s6 + $0x30] sm:$0xff]   ;;  %v2916_v43 = vadd.f32 %v2135_v32, %v2793_v50  ;;  %v2929_v50 = vadd.f32 %v2138_v55, %v2775_v35  ;;  %v2242_v35 = vld [vmem:[%s2694_s23 + $0x78] sm:$0xff]  }
 0x11d   : > { %v2884_v27 = vadd.f32 %v2127_v18, %v2760_v23  ;;  %v2525_v23 = vld [vmem:[%s3127_s6 + $0x68] sm:$0xff]   ;;  %v2147_v52 = vunpack.c.h.bf16 %v2242_v35 }
 0x11e   : > { %2292 = vmatprep.subr.bf16.mxu0 %v2525_v23 }
 0x11f   : > { %v798_v29 = vpack.c.bf16 %v2884_v27, %v2881_v26  ;;  %2293 = vmatpush3.bf16.msra.mxu0 %v2526_v36  ;;  %v2952_v18 = vadd.f32 %v2147_v52, %v2807_v6 }
 0x123   : > { %985 = vmatmul.mubr.bf16.gmra.mrb[32].mxu1 %v792_v30  ;;  %v2891_v30 = vadd.f32 %v2130_v28, %v2740_v9  ;;  %v2527_v9 = vld [vmem:[%s3127_s6 + $0x70] sm:$0xff]   ;;  %v820_v28 = vld [vmem:[%s3126_s5] sm:$0x3] }
 0x124   : > { %994 = vmatprep.mubr.bf16.mxu1 %v2539_v40  ;;  %2294 = vmatprep.subr.bf16.mxu0 %v2527_v9 }
 0x125   : > { %v799_v42 = vpack.c.bf16 %v2894_v34, %v2891_v30  ;;  %2295 = vmatpush3.bf16.msra.mxu0 %v2528_v19 }
 0x126   : > { %2296 = vmatprep.subr.bf16.mxu0 %v2529_v53 }
 0x129   : > { %2297 = vmatpush3.bf16.msra.mxu0 %v2530_v54 }
 0x12b   : > { %995 = vmatmul.mubr.bf16.gmra.mrb[36].mxu1 %v793_v38  ;;  %v2913_v38 = vadd.f32 %v2134_v37, %v2781_v39 }
 0x12c   : > { %1004 = vmatprep.mubr.bf16.mxu1 %v2539_v40 }
 0x12d   : > { %v800_v39 = vpack.c.bf16 %v2916_v43, %v2913_v38 }
 0x133   : > { %1005 = vmatmul.mubr.bf16.gmra.mrb[40].mxu1 %v794_v56  ;;  %v2139_v56 = vunpack.c.h.bf16 %v2240_v51 }
 0x134   : > { %1014 = vmatprep.mubr.bf16.mxu1 %v2539_v40 }
 0x135   : > { %v2932_v1 = vadd.f32 %v2139_v56, %v2785_v44 }
 0x137   : > { %v801_v7 = vpack.c.bf16 %v2932_v1, %v2929_v50 }
 0x13b   : > { %1015 = vmatmul.mubr.bf16.gmra.mrb[44].mxu1 %v795_v57  ;;  %v2143_v57 = vunpack.c.h.bf16 %v2241_v4 }
 0x13c   : > { %1024 = vmatprep.mubr.bf16.mxu1 %v2539_v40 }
 0x13d   : > { %v2942_v13 = vadd.f32 %v2143_v57, %v2815_v12  ;;  %v822_v12 = vlaneseq }
 0x13f   : > { %v802_v44 = vpack.c.bf16 %v2942_v13, %v2939_v11 }
 0x143   : > { %1025 = vmatmul.mubr.bf16.gmra.mrb[48].mxu1 %v796_v14  ;;  %v2146_v14 = vunpack.c.l.bf16 %v2242_v35 }
 0x144   : > { %1034 = vmatprep.mubr.bf16.mxu1 %v2539_v40 }
 0x145   : > { %v2949_v61 = vadd.f32 %v2146_v14, %v2800_v62 }
 0x147   : > { %v803_v3 = vpack.c.bf16 %v2952_v18, %v2949_v61 }
 0x14b   : > { %1035 = vmatmul.mubr.bf16.gmra.mrb[52].mxu1 %v797_v20  ;;  %v823_v20 = vshrl.u32 %v822_v12, 7 }
 0x14c   : > { %1044 = vmatprep.mubr.bf16.mxu1 %v2539_v40 }
 0x14d   : > { %v824_v46 = vsub.s32 0, %v823_v20  ;;  %v828_v58 = vsub.s32 1, %v823_v20 }
 0x153   : > { %1045 = vmatmul.mubr.bf16.gmra.mrb[56].mxu1 %v798_v29  ;;  %v2959_v29 = vrot.slane %v820_v28, %v824_v46 }
 0x154   : > { %1054 = vmatprep.mubr.bf16.mxu1 %v2539_v40 }
 0x15b   : > { %1055 = vmatmul.mubr.bf16.gmra.mrb[60].mxu1 %v799_v42 }
 0x15c   : > { %1064 = vmatprep.mubr.bf16.mxu1 %v2539_v40 }
 0x163   : > { %1065 = vmatmul.mubr.bf16.gmra.mrb[64].mxu1 %v800_v39 }
 0x164   : > { %1074 = vmatprep.mubr.bf16.mxu1 %v2539_v40 }
 0x16b   : > { %1075 = vmatmul.mubr.bf16.gmra.mrb[68].mxu1 %v801_v7 }
 0x16c   : > { %1084 = vmatprep.mubr.bf16.mxu1 %v2539_v40 }
 0x173   : > { %1085 = vmatmul.mubr.bf16.gmra.mrb[72].mxu1 %v802_v44 }
 0x174   : > { %1094 = vmatprep.mubr.bf16.mxu1 %v2539_v40  ;;  %v2961_v40 = vrot.slane %v820_v28, %v828_v58 }
 0x17b   : > { %1095 = vmatmul.mubr.bf16.gmra.mrb[76].mxu1 %v803_v3 }
 0x1d6   : > { %v946_v62 = vpop.f32.mrb[16].mxu1 }
 0x1d7   : > { %v947_v6 = vadd.f32 %v946_v62, %v2959_v29  ;;  %v948_v15 = vpop.f32.mrb[17].mxu1 }
 0x1d8   : > { %v949_v23 = vadd.f32 %v948_v15, %v2961_v40  ;;  %v950_v36 = vpop.f32.mrb[18].mxu1 }
 0x1d9   : > { %v1169_v37 = vmin.f32 %v947_v6, 0.0  ;;  %v951_v32 = vadd.f32 %v950_v36, %v2959_v29  ;;  %v952_v42 = vpop.f32.mrb[19].mxu1  ;;  %v1105_v56 = vmax.f32 %v947_v6, 0.0 }
 0x1da   : > { %v1170_v9 = vmin.f32 %v949_v23, 0.0  ;;  %v953_v19 = vadd.f32 %v952_v42, %v2961_v40  ;;  %v1106_v5 = vmax.f32 %v949_v23, 0.0 }
 0x1db   : > { %v1233_v51 = vmul.f32 0.01, %v1169_v37  ;;  %v1171_v53 = vmin.f32 %v951_v32, 0.0  ;;  %v1107_v39 = vmax.f32 %v951_v32, 0.0 }
 0x1dc   : > { %v1234_v54 = vmul.f32 0.01, %v1170_v9  ;;  %v1172_v55 = vmin.f32 %v953_v19, 0.0  ;;  %v1108_v57 = vmax.f32 %v953_v19, 0.0 }
 0x1dd   : > { %v1235_v4 = vmul.f32 0.01, %v1171_v53  ;;  %v1297_v14 = vadd.f32 %v1233_v51, %v1105_v56 }
 0x1de   : > { %v1236_v7 = vmul.f32 0.01, %v1172_v55  ;;  %v956_v35 = vpop.f32.mrb[20].mxu1  ;;  %v1298_v12 = vadd.f32 %v1234_v54, %v1106_v5 }
 0x1df   : > { %v1299_v52 = vadd.f32 %v1235_v4, %v1107_v39  ;;  %v957_v44 = vadd.f32 %v956_v35, %v2959_v29  ;;  %v958_v3 = vpop.f32.mrb[21].mxu1 }
 0x1e0   : > { %v1300_v20 = vadd.f32 %v1236_v7, %v1108_v57  ;;  %v959_v46 = vadd.f32 %v958_v3, %v2961_v40  ;;  %v960_v28 = vpop.f32.mrb[22].mxu1 }
 0x1e1   : > { %v1361_v58 = vpack.c.bf16 %v1299_v52, %v1297_v14  ;;  %v1173_v62 = vmin.f32 %v957_v44, 0.0  ;;  %v961_v6 = vadd.f32 %v960_v28, %v2959_v29  ;;  %v962_v15 = vpop.f32.mrb[23].mxu1  ;;  %v1109_v51 = vmax.f32 %v957_v44, 0.0 }
 0x1e2   : > { %v1174_v36 = vmin.f32 %v959_v46, 0.0  ;;  %v963_v23 = vadd.f32 %v962_v15, %v2961_v40  ;;  %v1362_v37 = vpack.c.bf16 %v1300_v20, %v1298_v12  ;;  %v1110_v55 = vmax.f32 %v959_v46, 0.0 }
 0x1e3   : > { %v1237_v32 = vmul.f32 0.01, %v1173_v62  ;;  %v1175_v42 = vmin.f32 %v961_v6, 0.0  ;;  %v1111_v53 = vmax.f32 %v961_v6, 0.0 }
 0x1e4   : > { %v1238_v9 = vmul.f32 0.01, %v1174_v36  ;;  %v1176_v19 = vmin.f32 %v963_v23, 0.0  ;;  %1560 = vmatprep.mubr.bf16.mxu0 %v1362_v37  ;;  %v1112_v56 = vmax.f32 %v963_v23, 0.0 }
 0x1e5   : > { %v1239_v54 = vmul.f32 0.01, %v1175_v42  ;;  %1561 = vmatmul.mubr.bf16.vlgmr.msra.gmra.mrb[16].mxu0 %v1361_v58  ;;  %v1301_v5 = vadd.f32 %v1237_v32, %v1109_v51 }
 0x1e6   : > { %v1240_v39 = vmul.f32 0.01, %v1176_v19  ;;  %v966_v4 = vpop.f32.mrb[24].mxu1  ;;  %v1302_v14 = vadd.f32 %v1238_v9, %v1110_v55 }
 0x1e7   : > { %v1303_v57 = vadd.f32 %v1239_v54, %v1111_v53  ;;  %v967_v7 = vadd.f32 %v966_v4, %v2959_v29  ;;  %v968_v35 = vpop.f32.mrb[25].mxu1 }
 0x1e8   : > { %v1304_v52 = vadd.f32 %v1240_v39, %v1112_v56  ;;  %v969_v3 = vadd.f32 %v968_v35, %v2961_v40  ;;  %v970_v12 = vpop.f32.mrb[26].mxu1 }
 0x1e9   : > { %v1177_v20 = vmin.f32 %v967_v7, 0.0  ;;  %v971_v44 = vadd.f32 %v970_v12, %v2959_v29  ;;  %v972_v28 = vpop.f32.mrb[27].mxu1  ;;  %v1363_v62 = vpack.c.bf16 %v1303_v57, %v1301_v5  ;;  %v1113_v32 = vmax.f32 %v967_v7, 0.0 }
 0x1ea   : > { %v1178_v58 = vmin.f32 %v969_v3, 0.0  ;;  %v973_v46 = vadd.f32 %v972_v28, %v2961_v40  ;;  %v1364_v6 = vpack.c.bf16 %v1304_v52, %v1302_v14  ;;  %v1114_v19 = vmax.f32 %v969_v3, 0.0 }
 0x1eb   : > { %v1241_v15 = vmul.f32 0.01, %v1177_v20  ;;  %v1179_v36 = vmin.f32 %v971_v44, 0.0  ;;  %v1115_v42 = vmax.f32 %v971_v44, 0.0 }
 0x1ec   : > { %v1242_v23 = vmul.f32 0.01, %v1178_v58  ;;  %v1180_v37 = vmin.f32 %v973_v46, 0.0  ;;  %1568 = vmatprep.mubr.bf16.mxu0 %v1364_v6  ;;  %v1116_v51 = vmax.f32 %v973_v46, 0.0 }
 0x1ed   : > { %v1243_v9 = vmul.f32 0.01, %v1179_v36  ;;  %1569 = vmatmul.mubr.bf16.gmra.mrb[20].mxu0 %v1363_v62  ;;  %v1305_v55 = vadd.f32 %v1241_v15, %v1113_v32 }
 0x1ee   : > { %v1244_v53 = vmul.f32 0.01, %v1180_v37  ;;  %v976_v54 = vpop.f32.mrb[28].mxu1  ;;  %v1306_v5 = vadd.f32 %v1242_v23, %v1114_v19 }
 0x1ef   : > { %v1307_v56 = vadd.f32 %v1243_v9, %v1115_v42  ;;  %v977_v39 = vadd.f32 %v976_v54, %v2959_v29  ;;  %v978_v4 = vpop.f32.mrb[29].mxu1 }
 0x1f0   : > { %v1308_v57 = vadd.f32 %v1244_v53, %v1116_v51  ;;  %v979_v35 = vadd.f32 %v978_v4, %v2961_v40  ;;  %v980_v14 = vpop.f32.mrb[30].mxu1 }
 0x1f1   : > { %v1181_v52 = vmin.f32 %v977_v39, 0.0  ;;  %v981_v7 = vadd.f32 %v980_v14, %v2959_v29  ;;  %v982_v12 = vpop.f32.mrb[31].mxu1  ;;  %v1365_v20 = vpack.c.bf16 %v1307_v56, %v1305_v55  ;;  %v1117_v15 = vmax.f32 %v977_v39, 0.0 }
 0x1f2   : > { %v1182_v44 = vmin.f32 %v979_v35, 0.0  ;;  %v983_v3 = vadd.f32 %v982_v12, %v2961_v40  ;;  %v1366_v28 = vpack.c.bf16 %v1308_v57, %v1306_v5  ;;  %v1118_v37 = vmax.f32 %v979_v35, 0.0 }
 0x1f3   : > { %v1245_v62 = vmul.f32 0.01, %v1181_v52  ;;  %v1183_v58 = vmin.f32 %v981_v7, 0.0  ;;  %v1119_v36 = vmax.f32 %v981_v7, 0.0 }
 0x1f4   : > { %v1246_v46 = vmul.f32 0.01, %v1182_v44  ;;  %v1184_v6 = vmin.f32 %v983_v3, 0.0  ;;  %1576 = vmatprep.mubr.bf16.mxu0 %v1366_v28  ;;  %v1120_v32 = vmax.f32 %v983_v3, 0.0 }
 0x1f5   : > { %v1247_v23 = vmul.f32 0.01, %v1183_v58  ;;  %1577 = vmatmul.mubr.bf16.gmra.mrb[24].mxu0 %v1365_v20  ;;  %v1309_v19 = vadd.f32 %v1245_v62, %v1117_v15 }
 0x1f6   : > { %v1248_v42 = vmul.f32 0.01, %v1184_v6  ;;  %v986_v9 = vpop.f32.mrb[32].mxu1  ;;  %v1310_v55 = vadd.f32 %v1246_v46, %v1118_v37 }
 0x1f7   : > { %v1311_v51 = vadd.f32 %v1247_v23, %v1119_v36  ;;  %v987_v53 = vadd.f32 %v986_v9, %v2959_v29  ;;  %v988_v54 = vpop.f32.mrb[33].mxu1 }
 0x1f8   : > { %v1312_v56 = vadd.f32 %v1248_v42, %v1120_v32  ;;  %v989_v4 = vadd.f32 %v988_v54, %v2961_v40  ;;  %v990_v5 = vpop.f32.mrb[34].mxu1 }
 0x1f9   : > { %v1185_v57 = vmin.f32 %v987_v53, 0.0  ;;  %v991_v39 = vadd.f32 %v990_v5, %v2959_v29  ;;  %v992_v14 = vpop.f32.mrb[35].mxu1  ;;  %v1367_v52 = vpack.c.bf16 %v1311_v51, %v1309_v19  ;;  %v1121_v62 = vmax.f32 %v987_v53, 0.0 }
 0x1fa   : > { %v1186_v7 = vmin.f32 %v989_v4, 0.0  ;;  %v993_v35 = vadd.f32 %v992_v14, %v2961_v40  ;;  %v1368_v12 = vpack.c.bf16 %v1312_v56, %v1310_v55  ;;  %v1122_v6 = vmax.f32 %v989_v4, 0.0 }
 0x1fb   : > { %v1249_v20 = vmul.f32 0.01, %v1185_v57  ;;  %v1187_v44 = vmin.f32 %v991_v39, 0.0  ;;  %v1123_v58 = vmax.f32 %v991_v39, 0.0 }
 0x1fc   : > { %v1250_v3 = vmul.f32 0.01, %v1186_v7  ;;  %v1188_v28 = vmin.f32 %v993_v35, 0.0  ;;  %1584 = vmatprep.mubr.bf16.mxu0 %v1368_v12  ;;  %v1124_v15 = vmax.f32 %v993_v35, 0.0 }
 0x1fd   : > { %v1251_v46 = vmul.f32 0.01, %v1187_v44  ;;  %1585 = vmatmul.mubr.bf16.gmra.mrb[28].mxu0 %v1367_v52  ;;  %v1313_v37 = vadd.f32 %v1249_v20, %v1121_v62 }
 0x1fe   : > { %v1252_v36 = vmul.f32 0.01, %v1188_v28  ;;  %v996_v23 = vpop.f32.mrb[36].mxu1  ;;  %v1314_v19 = vadd.f32 %v1250_v3, %v1122_v6 }
 0x1ff   : > { %v1315_v32 = vadd.f32 %v1251_v46, %v1123_v58  ;;  %v997_v42 = vadd.f32 %v996_v23, %v2959_v29  ;;  %v998_v9 = vpop.f32.mrb[37].mxu1 }
 0x200   : > { %v1316_v51 = vadd.f32 %v1252_v36, %v1124_v15  ;;  %v999_v54 = vadd.f32 %v998_v9, %v2961_v40  ;;  %v1000_v55 = vpop.f32.mrb[38].mxu1 }
 0x201   : > { %v1189_v56 = vmin.f32 %v997_v42, 0.0  ;;  %v1001_v53 = vadd.f32 %v1000_v55, %v2959_v29  ;;  %v1002_v5 = vpop.f32.mrb[39].mxu1  ;;  %v1369_v57 = vpack.c.bf16 %v1315_v32, %v1313_v37  ;;  %v1125_v20 = vmax.f32 %v997_v42, 0.0 }
 0x202   : > { %v1190_v39 = vmin.f32 %v999_v54, 0.0  ;;  %v1003_v4 = vadd.f32 %v1002_v5, %v2961_v40  ;;  %v1370_v14 = vpack.c.bf16 %v1316_v51, %v1314_v19  ;;  %v1126_v28 = vmax.f32 %v999_v54, 0.0 }
 0x203   : > { %v1253_v52 = vmul.f32 0.01, %v1189_v56  ;;  %v1191_v7 = vmin.f32 %v1001_v53, 0.0  ;;  %v1127_v44 = vmax.f32 %v1001_v53, 0.0 }
 0x204   : > { %v1254_v35 = vmul.f32 0.01, %v1190_v39  ;;  %v1192_v12 = vmin.f32 %v1003_v4, 0.0  ;;  %1592 = vmatprep.mubr.bf16.mxu0 %v1370_v14  ;;  %v1128_v62 = vmax.f32 %v1003_v4, 0.0 }
 0x205   : > { %v1255_v3 = vmul.f32 0.01, %v1191_v7  ;;  %1593 = vmatmul.mubr.bf16.gmra.mrb[32].mxu0 %v1369_v57  ;;  %v1317_v6 = vadd.f32 %v1253_v52, %v1125_v20 }
 0x206   : > { %v1256_v58 = vmul.f32 0.01, %v1192_v12  ;;  %v1006_v46 = vpop.f32.mrb[40].mxu1  ;;  %v1318_v37 = vadd.f32 %v1254_v35, %v1126_v28 }
 0x207   : > { %v1319_v15 = vadd.f32 %v1255_v3, %v1127_v44  ;;  %v1007_v36 = vadd.f32 %v1006_v46, %v2959_v29  ;;  %v1008_v23 = vpop.f32.mrb[41].mxu1 }
 0x208   : > { %v1320_v32 = vadd.f32 %v1256_v58, %v1128_v62  ;;  %v1009_v9 = vadd.f32 %v1008_v23, %v2961_v40  ;;  %v1010_v19 = vpop.f32.mrb[42].mxu1 }
 0x209   : > { %v1193_v51 = vmin.f32 %v1007_v36, 0.0  ;;  %v1011_v42 = vadd.f32 %v1010_v19, %v2959_v29  ;;  %v1012_v55 = vpop.f32.mrb[43].mxu1  ;;  %v1371_v56 = vpack.c.bf16 %v1319_v15, %v1317_v6  ;;  %v1129_v52 = vmax.f32 %v1007_v36, 0.0 }
 0x20a   : > { %v1194_v53 = vmin.f32 %v1009_v9, 0.0  ;;  %v1013_v54 = vadd.f32 %v1012_v55, %v2961_v40  ;;  %v1372_v5 = vpack.c.bf16 %v1320_v32, %v1318_v37  ;;  %v1130_v12 = vmax.f32 %v1009_v9, 0.0 }
 0x20b   : > { %v1257_v57 = vmul.f32 0.01, %v1193_v51  ;;  %v1195_v39 = vmin.f32 %v1011_v42, 0.0  ;;  %v1131_v7 = vmax.f32 %v1011_v42, 0.0 }
 0x20c   : > { %v1258_v4 = vmul.f32 0.01, %v1194_v53  ;;  %v1196_v14 = vmin.f32 %v1013_v54, 0.0  ;;  %1600 = vmatprep.mubr.bf16.mxu0 %v1372_v5  ;;  %v1132_v20 = vmax.f32 %v1013_v54, 0.0 }
 0x20d   : > { %v1259_v35 = vmul.f32 0.01, %v1195_v39  ;;  %1601 = vmatmul.mubr.bf16.gmra.mrb[36].mxu0 %v1371_v56  ;;  %v1321_v28 = vadd.f32 %v1257_v57, %v1129_v52 }
 0x20e   : > { %v1260_v44 = vmul.f32 0.01, %v1196_v14  ;;  %v1016_v3 = vpop.f32.mrb[44].mxu1  ;;  %v1322_v6 = vadd.f32 %v1258_v4, %v1130_v12 }
 0x20f   : > { %v1323_v62 = vadd.f32 %v1259_v35, %v1131_v7  ;;  %v1017_v58 = vadd.f32 %v1016_v3, %v2959_v29  ;;  %v1018_v46 = vpop.f32.mrb[45].mxu1 }
 0x210   : > { %v1324_v15 = vadd.f32 %v1260_v44, %v1132_v20  ;;  %v1019_v23 = vadd.f32 %v1018_v46, %v2961_v40  ;;  %v1020_v37 = vpop.f32.mrb[46].mxu1 }
 0x211   : > { %v1197_v32 = vmin.f32 %v1017_v58, 0.0  ;;  %v1021_v36 = vadd.f32 %v1020_v37, %v2959_v29  ;;  %v1022_v19 = vpop.f32.mrb[47].mxu1  ;;  %v1373_v51 = vpack.c.bf16 %v1323_v62, %v1321_v28  ;;  %v1133_v57 = vmax.f32 %v1017_v58, 0.0 }
 0x212   : > { %v1198_v42 = vmin.f32 %v1019_v23, 0.0  ;;  %v1023_v9 = vadd.f32 %v1022_v19, %v2961_v40  ;;  %v1374_v55 = vpack.c.bf16 %v1324_v15, %v1322_v6  ;;  %v1134_v14 = vmax.f32 %v1019_v23, 0.0 }
 0x213   : > { %v1261_v56 = vmul.f32 0.01, %v1197_v32  ;;  %v1199_v53 = vmin.f32 %v1021_v36, 0.0  ;;  %v1135_v39 = vmax.f32 %v1021_v36, 0.0 }
 0x214   : > { %v1262_v54 = vmul.f32 0.01, %v1198_v42  ;;  %v1200_v5 = vmin.f32 %v1023_v9, 0.0  ;;  %1608 = vmatprep.mubr.bf16.mxu0 %v1374_v55  ;;  %v1136_v52 = vmax.f32 %v1023_v9, 0.0 }
 0x215   : > { %v1263_v4 = vmul.f32 0.01, %v1199_v53  ;;  %1609 = vmatmul.mubr.bf16.gmra.mrb[40].mxu0 %v1373_v51  ;;  %v1325_v12 = vadd.f32 %v1261_v56, %v1133_v57 }
 0x216   : > { %v1264_v7 = vmul.f32 0.01, %v1200_v5  ;;  %v1026_v35 = vpop.f32.mrb[48].mxu1  ;;  %v1326_v28 = vadd.f32 %v1262_v54, %v1134_v14 }
 0x217   : > { %v1327_v20 = vadd.f32 %v1263_v4, %v1135_v39  ;;  %v1027_v44 = vadd.f32 %v1026_v35, %v2959_v29  ;;  %v1028_v3 = vpop.f32.mrb[49].mxu1 }
 0x218   : > { %v1328_v62 = vadd.f32 %v1264_v7, %v1136_v52  ;;  %v1029_v46 = vadd.f32 %v1028_v3, %v2961_v40  ;;  %v1030_v6 = vpop.f32.mrb[50].mxu1 }
 0x219   : > { %v1201_v15 = vmin.f32 %v1027_v44, 0.0  ;;  %v1031_v58 = vadd.f32 %v1030_v6, %v2959_v29  ;;  %v1032_v37 = vpop.f32.mrb[51].mxu1  ;;  %v1375_v32 = vpack.c.bf16 %v1327_v20, %v1325_v12  ;;  %v1137_v56 = vmax.f32 %v1027_v44, 0.0 }
 0x21a   : > { %v1202_v36 = vmin.f32 %v1029_v46, 0.0  ;;  %v1033_v23 = vadd.f32 %v1032_v37, %v2961_v40  ;;  %v1376_v19 = vpack.c.bf16 %v1328_v62, %v1326_v28  ;;  %v1138_v5 = vmax.f32 %v1029_v46, 0.0 }
 0x21b   : > { %v1265_v51 = vmul.f32 0.01, %v1201_v15  ;;  %v1203_v42 = vmin.f32 %v1031_v58, 0.0  ;;  %v1139_v53 = vmax.f32 %v1031_v58, 0.0 }
 0x21c   : > { %v1266_v9 = vmul.f32 0.01, %v1202_v36  ;;  %v1204_v55 = vmin.f32 %v1033_v23, 0.0  ;;  %1616 = vmatprep.mubr.bf16.mxu0 %v1376_v19  ;;  %v1140_v57 = vmax.f32 %v1033_v23, 0.0 }
 0x21d   : > { %v1267_v54 = vmul.f32 0.01, %v1203_v42  ;;  %1617 = vmatmul.mubr.bf16.gmra.mrb[44].mxu0 %v1375_v32  ;;  %v1329_v14 = vadd.f32 %v1265_v51, %v1137_v56 }
 0x21e   : > { %v1268_v39 = vmul.f32 0.01, %v1204_v55  ;;  %v1036_v4 = vpop.f32.mrb[52].mxu1  ;;  %v1330_v12 = vadd.f32 %v1266_v9, %v1138_v5 }
 0x21f   : > { %v1331_v52 = vadd.f32 %v1267_v54, %v1139_v53  ;;  %v1037_v7 = vadd.f32 %v1036_v4, %v2959_v29  ;;  %v1038_v35 = vpop.f32.mrb[53].mxu1 }
 0x220   : > { %v1332_v20 = vadd.f32 %v1268_v39, %v1140_v57  ;;  %v1039_v3 = vadd.f32 %v1038_v35, %v2961_v40  ;;  %v1040_v28 = vpop.f32.mrb[54].mxu1 }
 0x221   : > { %v1205_v62 = vmin.f32 %v1037_v7, 0.0  ;;  %v1041_v44 = vadd.f32 %v1040_v28, %v2959_v29  ;;  %v1042_v6 = vpop.f32.mrb[55].mxu1  ;;  %v1377_v15 = vpack.c.bf16 %v1331_v52, %v1329_v14  ;;  %v1141_v51 = vmax.f32 %v1037_v7, 0.0 }
 0x222   : > { %v1206_v58 = vmin.f32 %v1039_v3, 0.0  ;;  %v1043_v46 = vadd.f32 %v1042_v6, %v2961_v40  ;;  %v1378_v37 = vpack.c.bf16 %v1332_v20, %v1330_v12  ;;  %v1142_v55 = vmax.f32 %v1039_v3, 0.0 }
 0x223   : > { %v1269_v32 = vmul.f32 0.01, %v1205_v62  ;;  %v1207_v36 = vmin.f32 %v1041_v44, 0.0  ;;  %v1143_v42 = vmax.f32 %v1041_v44, 0.0 }
 0x224   : > { %v1270_v23 = vmul.f32 0.01, %v1206_v58  ;;  %v1208_v19 = vmin.f32 %v1043_v46, 0.0  ;;  %1624 = vmatprep.mubr.bf16.mxu0 %v1378_v37  ;;  %v1144_v56 = vmax.f32 %v1043_v46, 0.0 }
 0x225   : > { %v1271_v9 = vmul.f32 0.01, %v1207_v36  ;;  %1625 = vmatmul.mubr.bf16.gmra.mrb[48].mxu0 %v1377_v15  ;;  %v1333_v5 = vadd.f32 %v1269_v32, %v1141_v51 }
 0x226   : > { %v1272_v53 = vmul.f32 0.01, %v1208_v19  ;;  %v1046_v54 = vpop.f32.mrb[56].mxu1  ;;  %v1334_v14 = vadd.f32 %v1270_v23, %v1142_v55 }
 0x227   : > { %v1335_v57 = vadd.f32 %v1271_v9, %v1143_v42  ;;  %v1047_v39 = vadd.f32 %v1046_v54, %v2959_v29  ;;  %v1048_v4 = vpop.f32.mrb[57].mxu1 }
 0x228   : > { %v1336_v52 = vadd.f32 %v1272_v53, %v1144_v56  ;;  %v1049_v35 = vadd.f32 %v1048_v4, %v2961_v40  ;;  %v1050_v12 = vpop.f32.mrb[58].mxu1 }
 0x229   : > { %v1209_v20 = vmin.f32 %v1047_v39, 0.0  ;;  %v1051_v7 = vadd.f32 %v1050_v12, %v2959_v29  ;;  %v1052_v28 = vpop.f32.mrb[59].mxu1  ;;  %v1379_v62 = vpack.c.bf16 %v1335_v57, %v1333_v5  ;;  %v1145_v32 = vmax.f32 %v1047_v39, 0.0 }
 0x22a   : > { %v1210_v44 = vmin.f32 %v1049_v35, 0.0  ;;  %v1053_v3 = vadd.f32 %v1052_v28, %v2961_v40  ;;  %v1380_v6 = vpack.c.bf16 %v1336_v52, %v1334_v14  ;;  %v1146_v19 = vmax.f32 %v1049_v35, 0.0 }
 0x22b   : > { %v1273_v15 = vmul.f32 0.01, %v1209_v20  ;;  %v1211_v58 = vmin.f32 %v1051_v7, 0.0  ;;  %v1147_v36 = vmax.f32 %v1051_v7, 0.0 }
 0x22c   : > { %v1274_v46 = vmul.f32 0.01, %v1210_v44  ;;  %v1212_v37 = vmin.f32 %v1053_v3, 0.0  ;;  %1632 = vmatprep.mubr.bf16.mxu0 %v1380_v6  ;;  %v1148_v51 = vmax.f32 %v1053_v3, 0.0 }
 0x22d   : > { %v1275_v23 = vmul.f32 0.01, %v1211_v58  ;;  %1633 = vmatmul.mubr.bf16.gmra.mrb[52].mxu0 %v1379_v62  ;;  %v1337_v55 = vadd.f32 %v1273_v15, %v1145_v32 }
 0x22e   : > { %v1276_v42 = vmul.f32 0.01, %v1212_v37  ;;  %v1056_v9 = vpop.f32.mrb[60].mxu1  ;;  %v1338_v5 = vadd.f32 %v1274_v46, %v1146_v19 }
 0x22f   : > { %v1339_v56 = vadd.f32 %v1275_v23, %v1147_v36  ;;  %v1057_v53 = vadd.f32 %v1056_v9, %v2959_v29  ;;  %v1058_v54 = vpop.f32.mrb[61].mxu1 }
 0x230   : > { %v1340_v57 = vadd.f32 %v1276_v42, %v1148_v51  ;;  %v1059_v4 = vadd.f32 %v1058_v54, %v2961_v40  ;;  %v1060_v14 = vpop.f32.mrb[62].mxu1 }
 0x231   : > { %v1213_v52 = vmin.f32 %v1057_v53, 0.0  ;;  %v1061_v39 = vadd.f32 %v1060_v14, %v2959_v29  ;;  %v1062_v12 = vpop.f32.mrb[63].mxu1  ;;  %v1381_v20 = vpack.c.bf16 %v1339_v56, %v1337_v55  ;;  %v1149_v15 = vmax.f32 %v1057_v53, 0.0 }
 0x232   : > { %v1214_v7 = vmin.f32 %v1059_v4, 0.0  ;;  %v1063_v35 = vadd.f32 %v1062_v12, %v2961_v40  ;;  %v1382_v28 = vpack.c.bf16 %v1340_v57, %v1338_v5  ;;  %v1150_v37 = vmax.f32 %v1059_v4, 0.0 }
 0x233   : > { %v1277_v62 = vmul.f32 0.01, %v1213_v52  ;;  %v1215_v44 = vmin.f32 %v1061_v39, 0.0  ;;  %v1151_v58 = vmax.f32 %v1061_v39, 0.0 }
 0x234   : > { %v1278_v3 = vmul.f32 0.01, %v1214_v7  ;;  %v1216_v6 = vmin.f32 %v1063_v35, 0.0  ;;  %1640 = vmatprep.mubr.bf16.mxu0 %v1382_v28  ;;  %v1152_v32 = vmax.f32 %v1063_v35, 0.0 }
 0x235   : > { %v1279_v46 = vmul.f32 0.01, %v1215_v44  ;;  %1641 = vmatmul.mubr.bf16.gmra.mrb[56].mxu0 %v1381_v20  ;;  %v1341_v19 = vadd.f32 %v1277_v62, %v1149_v15 }
 0x236   : > { %v1280_v36 = vmul.f32 0.01, %v1216_v6  ;;  %v1066_v23 = vpop.f32.mrb[64].mxu1  ;;  %v1342_v55 = vadd.f32 %v1278_v3, %v1150_v37 }
 0x237   : > { %v1343_v51 = vadd.f32 %v1279_v46, %v1151_v58  ;;  %v1067_v42 = vadd.f32 %v1066_v23, %v2959_v29  ;;  %v1068_v9 = vpop.f32.mrb[65].mxu1 }
 0x238   : > { %v1344_v56 = vadd.f32 %v1280_v36, %v1152_v32  ;;  %v1069_v54 = vadd.f32 %v1068_v9, %v2961_v40  ;;  %v1070_v5 = vpop.f32.mrb[66].mxu1 }
 0x239   : > { %v1217_v57 = vmin.f32 %v1067_v42, 0.0  ;;  %v1071_v53 = vadd.f32 %v1070_v5, %v2959_v29  ;;  %v1072_v14 = vpop.f32.mrb[67].mxu1  ;;  %v1383_v52 = vpack.c.bf16 %v1343_v51, %v1341_v19  ;;  %v1153_v62 = vmax.f32 %v1067_v42, 0.0 }
 0x23a   : > { %v1218_v39 = vmin.f32 %v1069_v54, 0.0  ;;  %v1073_v4 = vadd.f32 %v1072_v14, %v2961_v40  ;;  %v1384_v12 = vpack.c.bf16 %v1344_v56, %v1342_v55  ;;  %v1154_v6 = vmax.f32 %v1069_v54, 0.0 }
 0x23b   : > { %v1281_v20 = vmul.f32 0.01, %v1217_v57  ;;  %v1219_v7 = vmin.f32 %v1071_v53, 0.0  ;;  %v1155_v44 = vmax.f32 %v1071_v53, 0.0 }
 0x23c   : > { %v1282_v35 = vmul.f32 0.01, %v1218_v39  ;;  %v1220_v28 = vmin.f32 %v1073_v4, 0.0  ;;  %1648 = vmatprep.mubr.bf16.mxu0 %v1384_v12  ;;  %v1156_v15 = vmax.f32 %v1073_v4, 0.0 }
 0x23d   : > { %v1283_v3 = vmul.f32 0.01, %v1219_v7  ;;  %1649 = vmatmul.mubr.bf16.gmra.mrb[60].mxu0 %v1383_v52  ;;  %v1345_v37 = vadd.f32 %v1281_v20, %v1153_v62 }
 0x23e   : > { %v1284_v58 = vmul.f32 0.01, %v1220_v28  ;;  %v1076_v46 = vpop.f32.mrb[68].mxu1  ;;  %v1346_v19 = vadd.f32 %v1282_v35, %v1154_v6 }
 0x23f   : > { %v1347_v32 = vadd.f32 %v1283_v3, %v1155_v44  ;;  %v1077_v36 = vadd.f32 %v1076_v46, %v2959_v29  ;;  %v1078_v23 = vpop.f32.mrb[69].mxu1 }
 0x240   : > { %v1348_v51 = vadd.f32 %v1284_v58, %v1156_v15  ;;  %v1079_v9 = vadd.f32 %v1078_v23, %v2961_v40  ;;  %v1080_v55 = vpop.f32.mrb[70].mxu1 }
 0x241   : > { %v1221_v56 = vmin.f32 %v1077_v36, 0.0  ;;  %v1081_v42 = vadd.f32 %v1080_v55, %v2959_v29  ;;  %v1082_v5 = vpop.f32.mrb[71].mxu1  ;;  %v1385_v57 = vpack.c.bf16 %v1347_v32, %v1345_v37  ;;  %v1157_v20 = vmax.f32 %v1077_v36, 0.0 }
 0x242   : > { %v1222_v53 = vmin.f32 %v1079_v9, 0.0  ;;  %v1083_v54 = vadd.f32 %v1082_v5, %v2961_v40  ;;  %v1386_v14 = vpack.c.bf16 %v1348_v51, %v1346_v19  ;;  %v1158_v28 = vmax.f32 %v1079_v9, 0.0 }
 0x243   : > { %v1285_v52 = vmul.f32 0.01, %v1221_v56  ;;  %v1223_v39 = vmin.f32 %v1081_v42, 0.0  ;;  %v1159_v7 = vmax.f32 %v1081_v42, 0.0 }
 0x244   : > { %v1286_v4 = vmul.f32 0.01, %v1222_v53  ;;  %v1224_v12 = vmin.f32 %v1083_v54, 0.0  ;;  %1656 = vmatprep.mubr.bf16.mxu0 %v1386_v14  ;;  %v1160_v62 = vmax.f32 %v1083_v54, 0.0 }
 0x245   : > { %v1287_v35 = vmul.f32 0.01, %v1223_v39  ;;  %1657 = vmatmul.mubr.bf16.gmra.mrb[64].mxu0 %v1385_v57  ;;  %v1349_v6 = vadd.f32 %v1285_v52, %v1157_v20 }
 0x246   : > { %v1288_v44 = vmul.f32 0.01, %v1224_v12  ;;  %v1086_v3 = vpop.f32.mrb[72].mxu1  ;;  %v1350_v37 = vadd.f32 %v1286_v4, %v1158_v28 }
 0x247   : > { %v1351_v15 = vadd.f32 %v1287_v35, %v1159_v7  ;;  %v1087_v58 = vadd.f32 %v1086_v3, %v2959_v29  ;;  %v1088_v46 = vpop.f32.mrb[73].mxu1 }
 0x248   : > { %v1352_v32 = vadd.f32 %v1288_v44, %v1160_v62  ;;  %v1089_v23 = vadd.f32 %v1088_v46, %v2961_v40  ;;  %v1090_v19 = vpop.f32.mrb[74].mxu1 }
 0x249   : > { %v1225_v51 = vmin.f32 %v1087_v58, 0.0  ;;  %v1091_v36 = vadd.f32 %v1090_v19, %v2959_v29  ;;  %v1092_v55 = vpop.f32.mrb[75].mxu1  ;;  %v1387_v56 = vpack.c.bf16 %v1351_v15, %v1349_v6  ;;  %v1161_v52 = vmax.f32 %v1087_v58, 0.0 }
 0x24a   : > { %v1226_v42 = vmin.f32 %v1089_v23, 0.0  ;;  %v1093_v9 = vadd.f32 %v1092_v55, %v2961_v40  ;;  %v1388_v5 = vpack.c.bf16 %v1352_v32, %v1350_v37  ;;  %v1162_v12 = vmax.f32 %v1089_v23, 0.0 }
 0x24b   : > { %v1289_v57 = vmul.f32 0.01, %v1225_v51  ;;  %v1227_v53 = vmin.f32 %v1091_v36, 0.0  ;;  %v1163_v39 = vmax.f32 %v1091_v36, 0.0 }
 0x24c   : > { %v1290_v54 = vmul.f32 0.01, %v1226_v42  ;;  %v1228_v14 = vmin.f32 %v1093_v9, 0.0  ;;  %1664 = vmatprep.mubr.bf16.mxu0 %v1388_v5  ;;  %v1164_v20 = vmax.f32 %v1093_v9, 0.0 }
 0x24d   : > { %v1291_v4 = vmul.f32 0.01, %v1227_v53  ;;  %1665 = vmatmul.mubr.bf16.gmra.mrb[68].mxu0 %v1387_v56  ;;  %v1353_v28 = vadd.f32 %v1289_v57, %v1161_v52 }
 0x24e   : > { %v1292_v7 = vmul.f32 0.01, %v1228_v14  ;;  %v1096_v35 = vpop.f32.mrb[76].mxu1  ;;  %v1354_v6 = vadd.f32 %v1290_v54, %v1162_v12 }
 0x24f   : > { %v1355_v62 = vadd.f32 %v1291_v4, %v1163_v39  ;;  %v1097_v44 = vadd.f32 %v1096_v35, %v2959_v29  ;;  %v1098_v3 = vpop.f32.mrb[77].mxu1 }
 0x250   : > { %v1356_v15 = vadd.f32 %v1292_v7, %v1164_v20  ;;  %v1099_v46 = vadd.f32 %v1098_v3, %v2961_v40  ;;  %v1100_v37 = vpop.f32.mrb[78].mxu1 }
 0x251   : > { %v1229_v32 = vmin.f32 %v1097_v44, 0.0  ;;  %v1101_v58 = vadd.f32 %v1100_v37, %v2959_v29  ;;  %v1102_v19 = vpop.f32.mrb[79].mxu1  ;;  %v1389_v51 = vpack.c.bf16 %v1355_v62, %v1353_v28  ;;  %v1165_v57 = vmax.f32 %v1097_v44, 0.0  ;;  %v3030_v28 = vld [vmem:[%s3128_s7] ss:$0 sm:$0xff] }
 0x252   : > { %v1230_v36 = vmin.f32 %v1099_v46, 0.0  ;;  %v1103_v23 = vadd.f32 %v1102_v19, %v2961_v40  ;;  %v1390_v55 = vpack.c.bf16 %v1356_v15, %v1354_v6  ;;  %v1166_v14 = vmax.f32 %v1099_v46, 0.0 }
 0x253   : > { %v1293_v56 = vmul.f32 0.01, %v1229_v32  ;;  %v1231_v42 = vmin.f32 %v1101_v58, 0.0  ;;  %v1167_v53 = vmax.f32 %v1101_v58, 0.0 }
 0x254   : > { %v1294_v9 = vmul.f32 0.01, %v1230_v36  ;;  %v1232_v5 = vmin.f32 %v1103_v23, 0.0  ;;  %1672 = vmatprep.mubr.bf16.mxu0 %v1390_v55  ;;  %v1168_v52 = vmax.f32 %v1103_v23, 0.0 }
 0x255   : > { %v1295_v54 = vmul.f32 0.01, %v1231_v42  ;;  %1673 = vmatmul.mubr.bf16.gmra.mrb[72].mxu0 %v1389_v51  ;;  %v1357_v4 = vadd.f32 %v1293_v56, %v1165_v57 }
 0x256   : > { %v1296_v39 = vmul.f32 0.01, %v1232_v5  ;;  %v1358_v12 = vadd.f32 %v1294_v9, %v1166_v14 }
 0x257   : > { %v1359_v29 = vadd.f32 %v1295_v54, %v1167_v53 }
 0x258   : > { %v1360_v20 = vadd.f32 %v1296_v39, %v1168_v52 }
 0x259   : > { %v1391_v7 = vpack.c.bf16 %v1359_v29, %v1357_v4 }
 0x25a   : > { %v1392_v40 = vpack.c.bf16 %v1360_v20, %v1358_v12 }
 0x25c   : > { %1680 = vmatprep.mubr.bf16.mxu0 %v1392_v40 }
 0x25d   : > { %1681 = vmatmul.mubr.bf16.gmra.mrb[76].mxu0 %v1391_v7 }
 0x2b8   : > { %v2298_v35 = vpop.f32.mrb[16].mxu0 }
 0x2b9   : > { %v2299_v62 = vpop.f32.mrb[17].mxu0 }
 0x2ba   : > { %v2300_v44 = vadd.f32 %v2299_v62, %v2298_v35  ;;  %v2301_v3 = vpop.f32.mrb[18].mxu0 }
 0x2bb   : > { %v2302_v6 = vpop.f32.mrb[19].mxu0 }
 0x2bc   : > { %v1563_v15 = vadd.f32 %v2300_v44, %v3030_v28  ;;  %v2303_v46 = vadd.f32 %v2302_v6, %v2301_v3 }
 0x2be   : > { %v1566_v37 = vadd.f32 %v2303_v46, %v3030_v28  ;;  %v1689_v32 = vadd.f32 %v1563_v15, %v2728_v63 }
 0x2c0   : > { %v1690_v58 = vadd.f32 %v1566_v37, %v2730_v0  ;;  %v2304_v19 = vpop.f32.mrb[20].mxu0 }
 0x2c1   : > { %v2305_v51 = vpop.f32.mrb[21].mxu0 }
 0x2c2   : > { %v2151_v36 = vpack.c.bf16 %v1690_v58, %v1689_v32  ;;  %v2306_v23 = vadd.f32 %v2305_v51, %v2304_v19  ;;  %v2307_v55 = vpop.f32.mrb[22].mxu0 }
 0x2c3   : > { %v2308_v56 = vpop.f32.mrb[23].mxu0 }
 0x2c4   : > { %2152 = vst [vmem:[%s3040_s25] sm:$0xff] %v2151_v36   ;;  %v1571_v42 = vadd.f32 %v2306_v23, %v3030_v28  ;;  %v2309_v9 = vadd.f32 %v2308_v56, %v2307_v55 }
 0x2c6   : > { %v1574_v63 = vadd.f32 %v2309_v9, %v3030_v28  ;;  %v1691_v0 = vadd.f32 %v1571_v42, %v2765_v25 }
 0x2c8   : > { %v1692_v5 = vadd.f32 %v1574_v63, %v2756_v21  ;;  %v2310_v57 = vpop.f32.mrb[24].mxu0 }
 0x2c9   : > { %v2311_v53 = vpop.f32.mrb[25].mxu0 }
 0x2ca   : > { %v2156_v54 = vpack.c.bf16 %v1692_v5, %v1691_v0  ;;  %v2312_v14 = vadd.f32 %v2311_v53, %v2310_v57  ;;  %v2313_v52 = vpop.f32.mrb[26].mxu0 }
 0x2cb   : > { %v2314_v39 = vpop.f32.mrb[27].mxu0 }
 0x2cc   : > { %2243 = vst [vmem:[%s3040_s25 + $0x8] sm:$0xff] %v2156_v54   ;;  %v1579_v4 = vadd.f32 %v2312_v14, %v3030_v28  ;;  %v2315_v29 = vadd.f32 %v2314_v39, %v2313_v52 }
 0x2ce   : > { %v1582_v12 = vadd.f32 %v2315_v29, %v3030_v28  ;;  %v1693_v20 = vadd.f32 %v1579_v4, %v2788_v48 }
 0x2d0   : > { %v1694_v7 = vadd.f32 %v1582_v12, %v2790_v49  ;;  %v2316_v25 = vpop.f32.mrb[28].mxu0 }
 0x2d1   : > { %v2317_v40 = vpop.f32.mrb[29].mxu0 }
 0x2d2   : > { %v2161_v21 = vpack.c.bf16 %v1694_v7, %v1693_v20  ;;  %v2318_v35 = vadd.f32 %v2317_v40, %v2316_v25  ;;  %v2319_v62 = vpop.f32.mrb[30].mxu0 }
 0x2d3   : > { %v2320_v44 = vpop.f32.mrb[31].mxu0 }
 0x2d4   : > { %2244 = vst [vmem:[%s3040_s25 + $0x10] sm:$0xff] %v2161_v21   ;;  %v1587_v3 = vadd.f32 %v2318_v35, %v3030_v28  ;;  %v2321_v6 = vadd.f32 %v2320_v44, %v2319_v62 }
 0x2d6   : > { %v1590_v15 = vadd.f32 %v2321_v6, %v3030_v28  ;;  %v1695_v46 = vadd.f32 %v1587_v3, %v2809_v8 }
 0x2d8   : > { %v1696_v37 = vadd.f32 %v1590_v15, %v2811_v10  ;;  %v2322_v48 = vpop.f32.mrb[32].mxu0 }
 0x2d9   : > { %v2323_v32 = vpop.f32.mrb[33].mxu0 }
 0x2da   : > { %v2166_v49 = vpack.c.bf16 %v1696_v37, %v1695_v46  ;;  %v2324_v58 = vadd.f32 %v2323_v32, %v2322_v48  ;;  %v2325_v19 = vpop.f32.mrb[34].mxu0 }
 0x2db   : > { %v2326_v51 = vpop.f32.mrb[35].mxu0 }
 0x2dc   : > { %2245 = vst [vmem:[%s3040_s25 + $0x18] sm:$0xff] %v2166_v49   ;;  %v1595_v36 = vadd.f32 %v2324_v58, %v3030_v28  ;;  %v2327_v23 = vadd.f32 %v2326_v51, %v2325_v19 }
 0x2de   : > { %v1598_v55 = vadd.f32 %v2327_v23, %v3030_v28  ;;  %v1697_v56 = vadd.f32 %v1595_v36, %v2823_v22 }
 0x2e0   : > { %v1698_v42 = vadd.f32 %v1598_v55, %v2825_v24  ;;  %v2328_v8 = vpop.f32.mrb[36].mxu0 }
 0x2e1   : > { %v2329_v9 = vpop.f32.mrb[37].mxu0 }
 0x2e2   : > { %v2171_v10 = vpack.c.bf16 %v1698_v42, %v1697_v56  ;;  %v2330_v63 = vadd.f32 %v2329_v9, %v2328_v8  ;;  %v2331_v0 = vpop.f32.mrb[38].mxu0 }
 0x2e3   : > { %v2332_v5 = vpop.f32.mrb[39].mxu0 }
 0x2e4   : > { %2246 = vst [vmem:[%s3040_s25 + $0x20] sm:$0xff] %v2171_v10   ;;  %v1603_v57 = vadd.f32 %v2330_v63, %v3030_v28  ;;  %v2333_v53 = vadd.f32 %v2332_v5, %v2331_v0 }
 0x2e6   : > { %v1606_v54 = vadd.f32 %v2333_v53, %v3030_v28  ;;  %v1699_v14 = vadd.f32 %v1603_v57, %v2832_v31 }
 0x2e8   : > { %v1700_v52 = vadd.f32 %v1606_v54, %v2834_v33  ;;  %v2334_v22 = vpop.f32.mrb[40].mxu0 }
 0x2e9   : > { %v2335_v39 = vpop.f32.mrb[41].mxu0 }
 0x2ea   : > { %v2176_v24 = vpack.c.bf16 %v1700_v52, %v1699_v14  ;;  %v2336_v4 = vadd.f32 %v2335_v39, %v2334_v22  ;;  %v2337_v29 = vpop.f32.mrb[42].mxu0 }
 0x2eb   : > { %v2338_v12 = vpop.f32.mrb[43].mxu0 }
 0x2ec   : > { %2247 = vst [vmem:[%s3040_s25 + $0x28] sm:$0xff] %v2176_v24   ;;  %v1611_v20 = vadd.f32 %v2336_v4, %v3030_v28  ;;  %v2339_v7 = vadd.f32 %v2338_v12, %v2337_v29 }
 0x2ee   : > { %v1614_v25 = vadd.f32 %v2339_v7, %v3030_v28  ;;  %v1701_v40 = vadd.f32 %v1611_v20, %v2843_v45 }
 0x2f0   : > { %v1702_v21 = vadd.f32 %v1614_v25, %v2845_v47  ;;  %v2340_v31 = vpop.f32.mrb[44].mxu0 }
 0x2f1   : > { %v2341_v35 = vpop.f32.mrb[45].mxu0 }
 0x2f2   : > { %v2181_v33 = vpack.c.bf16 %v1702_v21, %v1701_v40  ;;  %v2342_v62 = vadd.f32 %v2341_v35, %v2340_v31  ;;  %v2343_v44 = vpop.f32.mrb[46].mxu0 }
 0x2f3   : > { %v2344_v3 = vpop.f32.mrb[47].mxu0 }
 0x2f4   : > { %2248 = vst [vmem:[%s3040_s25 + $0x30] sm:$0xff] %v2181_v33   ;;  %v1619_v6 = vadd.f32 %v2342_v62, %v3030_v28  ;;  %v2345_v15 = vadd.f32 %v2344_v3, %v2343_v44 }
 0x2f6   : > { %v1622_v46 = vadd.f32 %v2345_v15, %v3030_v28  ;;  %v1703_v37 = vadd.f32 %v1619_v6, %v2852_v59 }
 0x2f8   : > { %v1704_v48 = vadd.f32 %v1622_v46, %v2854_v60  ;;  %v2346_v45 = vpop.f32.mrb[48].mxu0 }
 0x2f9   : > { %v2347_v32 = vpop.f32.mrb[49].mxu0 }
 0x2fa   : > { %v2186_v47 = vpack.c.bf16 %v1704_v48, %v1703_v37  ;;  %v2348_v49 = vadd.f32 %v2347_v32, %v2346_v45  ;;  %v2349_v58 = vpop.f32.mrb[50].mxu0 }
 0x2fb   : > { %v2350_v19 = vpop.f32.mrb[51].mxu0 }
 0x2fc   : > { %2249 = vst [vmem:[%s3040_s25 + $0x38] sm:$0xff] %v2186_v47   ;;  %v1627_v51 = vadd.f32 %v2348_v49, %v3030_v28  ;;  %v2351_v36 = vadd.f32 %v2350_v19, %v2349_v58 }
 0x2fe   : > { %v1630_v23 = vadd.f32 %v2351_v36, %v3030_v28  ;;  %v1705_v55 = vadd.f32 %v1627_v51, %v2861_v41 }
 0x300   : > { %v1706_v56 = vadd.f32 %v1630_v23, %v2864_v2  ;;  %v2352_v59 = vpop.f32.mrb[52].mxu0 }
 0x301   : > { %v2353_v42 = vpop.f32.mrb[53].mxu0 }
 0x302   : > { %v2191_v60 = vpack.c.bf16 %v1706_v56, %v1705_v55  ;;  %v2354_v8 = vadd.f32 %v2353_v42, %v2352_v59  ;;  %v2355_v9 = vpop.f32.mrb[54].mxu0 }
 0x303   : > { %v2356_v10 = vpop.f32.mrb[55].mxu0 }
 0x304   : > { %2250 = vst [vmem:[%s3040_s25 + $0x40] sm:$0xff] %v2191_v60   ;;  %v1635_v63 = vadd.f32 %v2354_v8, %v3030_v28  ;;  %v2357_v0 = vadd.f32 %v2356_v10, %v2355_v9 }
 0x306   : > { %v1638_v5 = vadd.f32 %v2357_v0, %v3030_v28  ;;  %v1707_v57 = vadd.f32 %v1635_v63, %v2871_v16 }
 0x308   : > { %v1708_v53 = vadd.f32 %v1638_v5, %v2874_v17  ;;  %v2358_v41 = vpop.f32.mrb[56].mxu0 }
 0x309   : > { %v2359_v54 = vpop.f32.mrb[57].mxu0 }
 0x30a   : > { %v2196_v2 = vpack.c.bf16 %v1708_v53, %v1707_v57  ;;  %v2360_v14 = vadd.f32 %v2359_v54, %v2358_v41  ;;  %v2361_v52 = vpop.f32.mrb[58].mxu0 }
 0x30b   : > { %v2362_v22 = vpop.f32.mrb[59].mxu0 }
 0x30c   : > { %2251 = vst [vmem:[%s3040_s25 + $0x48] sm:$0xff] %v2196_v2   ;;  %v1643_v39 = vadd.f32 %v2360_v14, %v3030_v28  ;;  %v2363_v24 = vadd.f32 %v2362_v22, %v2361_v52 }
 0x30e   : > { %v1646_v4 = vadd.f32 %v2363_v24, %v3030_v28  ;;  %v1709_v29 = vadd.f32 %v1643_v39, %v2881_v26 }
 0x310   : > { %v1710_v12 = vadd.f32 %v1646_v4, %v2884_v27  ;;  %v2364_v16 = vpop.f32.mrb[60].mxu0 }
 0x311   : > { %v2365_v20 = vpop.f32.mrb[61].mxu0 }
 0x312   : > { %v2201_v17 = vpack.c.bf16 %v1710_v12, %v1709_v29  ;;  %v2366_v7 = vadd.f32 %v2365_v20, %v2364_v16  ;;  %v2367_v25 = vpop.f32.mrb[62].mxu0 }
 0x313   : > { %v2368_v40 = vpop.f32.mrb[63].mxu0 }
 0x314   : > { %2252 = vst [vmem:[%s3040_s25 + $0x50] sm:$0xff] %v2201_v17   ;;  %v1651_v21 = vadd.f32 %v2366_v7, %v3030_v28  ;;  %v2369_v31 = vadd.f32 %v2368_v40, %v2367_v25 }
 0x316   : > { %v1654_v35 = vadd.f32 %v2369_v31, %v3030_v28  ;;  %v1711_v33 = vadd.f32 %v1651_v21, %v2891_v30 }
 0x318   : > { %v1712_v62 = vadd.f32 %v1654_v35, %v2894_v34  ;;  %v2370_v26 = vpop.f32.mrb[64].mxu0 }
 0x319   : > { %v2371_v44 = vpop.f32.mrb[65].mxu0 }
 0x31a   : > { %v2206_v27 = vpack.c.bf16 %v1712_v62, %v1711_v33  ;;  %v2372_v3 = vadd.f32 %v2371_v44, %v2370_v26  ;;  %v2373_v6 = vpop.f32.mrb[66].mxu0 }
 0x31b   : > { %v2374_v15 = vpop.f32.mrb[67].mxu0 }
 0x31c   : > { %2253 = vst [vmem:[%s3040_s25 + $0x58] sm:$0xff] %v2206_v27   ;;  %v1659_v46 = vadd.f32 %v2372_v3, %v3030_v28  ;;  %v2375_v37 = vadd.f32 %v2374_v15, %v2373_v6 }
 0x31e   : > { %v1662_v48 = vadd.f32 %v2375_v37, %v3030_v28  ;;  %v1713_v45 = vadd.f32 %v1659_v46, %v2913_v38 }
 0x320   : > { %v1714_v32 = vadd.f32 %v1662_v48, %v2916_v43  ;;  %v2376_v30 = vpop.f32.mrb[68].mxu0 }
 0x321   : > { %v2377_v47 = vpop.f32.mrb[69].mxu0 }
 0x322   : > { %v2211_v34 = vpack.c.bf16 %v1714_v32, %v1713_v45  ;;  %v2378_v49 = vadd.f32 %v2377_v47, %v2376_v30  ;;  %v2379_v58 = vpop.f32.mrb[70].mxu0 }
 0x323   : > { %v2380_v19 = vpop.f32.mrb[71].mxu0 }
 0x324   : > { %2254 = vst [vmem:[%s3040_s25 + $0x60] sm:$0xff] %v2211_v34   ;;  %v1667_v51 = vadd.f32 %v2378_v49, %v3030_v28  ;;  %v2381_v36 = vadd.f32 %v2380_v19, %v2379_v58 }
 0x326   : > { %v1670_v23 = vadd.f32 %v2381_v36, %v3030_v28  ;;  %v1715_v55 = vadd.f32 %v1667_v51, %v2929_v50 }
 0x328   : > { %v1716_v56 = vadd.f32 %v1670_v23, %v2932_v1  ;;  %v2382_v38 = vpop.f32.mrb[72].mxu0 }
 0x329   : > { %v2383_v59 = vpop.f32.mrb[73].mxu0 }
 0x32a   : > { %v2216_v43 = vpack.c.bf16 %v1716_v56, %v1715_v55  ;;  %v2384_v42 = vadd.f32 %v2383_v59, %v2382_v38  ;;  %v2385_v60 = vpop.f32.mrb[74].mxu0 }
 0x32b   : > { %v2386_v8 = vpop.f32.mrb[75].mxu0 }
 0x32c   : > { %2255 = vst [vmem:[%s3040_s25 + $0x68] sm:$0xff] %v2216_v43   ;;  %v1675_v9 = vadd.f32 %v2384_v42, %v3030_v28  ;;  %v2387_v10 = vadd.f32 %v2386_v8, %v2385_v60 }
 0x32e   : > { %v1678_v63 = vadd.f32 %v2387_v10, %v3030_v28  ;;  %v1717_v0 = vadd.f32 %v1675_v9, %v2939_v11 }
 0x330   : > { %v1718_v50 = vadd.f32 %v1678_v63, %v2942_v13  ;;  %v2388_v5 = vpop.f32.mrb[76].mxu0 }
 0x331   : > { %v2389_v1 = vpop.f32.mrb[77].mxu0 }
 0x332   : > { %v2221_v57 = vpack.c.bf16 %v1718_v50, %v1717_v0  ;;  %v2390_v53 = vadd.f32 %v2389_v1, %v2388_v5  ;;  %v2391_v41 = vpop.f32.mrb[78].mxu0 }
 0x333   : > { %v2392_v54 = vpop.f32.mrb[79].mxu0 }
 0x334   : > { %2256 = vst [vmem:[%s3040_s25 + $0x70] sm:$0xff] %v2221_v57   ;;  %v1683_v2 = vadd.f32 %v2390_v53, %v3030_v28  ;;  %v2393_v14 = vadd.f32 %v2392_v54, %v2391_v41 }
 0x336   : > { %v1686_v52 = vadd.f32 %v2393_v14, %v3030_v28  ;;  %v1719_v22 = vadd.f32 %v1683_v2, %v2949_v61 }
 0x338   : > { %v1720_v39 = vadd.f32 %v1686_v52, %v2952_v18 }
 0x33a   : > { %v2226_v24 = vpack.c.bf16 %v1720_v39, %v1719_v22 }
 0x33c   : > { %2257 = vst [vmem:[%s3040_s25 + $0x78] sm:$0xff] %v2226_v24  }
 0x33d PF: > { %s18_s27 = sadd.s32 1, %s2537_s27  }
 0x33e   : > { %p15_p4 = scmp.ge.s32.totalorder %s18_s27, 4  }
 0x340   :  { %17 = sbr.rel (!%p15_p4) target bundleno = 1 (0x1), region = 85 }

// kernel: _decoder_forward.17
= control target key start
LH: loop header
LB: loop body
LE: loop exit
PB: predicated region body
PF: predicated region fallthrough
CT: control target
= control target key end

     0   :  { %s1222_s12 = smov 0   ;;  %s1351_s0 = inlined_call_operand.vmem [shape: bf16[512,128], index: 0, kind: input, shape index: {}]   ;;  %s1352_s1 = inlined_call_operand.vmem [shape: bf16[128,128], index: 1, kind: input, shape index: {}]   ;;  %s1353_s2 = inlined_call_operand.vmem [shape: f32[1,128], index: 2, kind: input, shape index: {}]   ;;  %s1354_s3 = inlined_call_operand.vmem [shape: bf16[512,128], index: 3, kind: output, shape index: {}]  }
   0x1 LB: > { %s879_s13 = sadd.s32 4294967295, %s1200_s12   ;;  %p883_p0 = scmp.ge.s32.totalorder %s1200_s12, 1  ;;  %s1200_s12 = sphi %s1222_s12, %s13_s12  }
   0x2   : > { %p138_p1 = scmp.lt.s32.totalorder %s1200_s12, 3 }
   0x4   : > { %p139_p2 = pnand %p883_p0, %p138_p1 }
   0x5   : > { %v1170_v0 = vld [vmem:[%s1352_s1] sm:$0xff] (!%p139_p2)   ;;  %s884_s16 = sshll.u32 (!%p139_p2), %s879_s13, 5  ;;  %v1171_v1 = vld [vmem:[%s1352_s1 + $0x8] sm:$0xff] (!%p139_p2)   ;;  %v1172_v2 = vld [vmem:[%s1352_s1 + $0x10] sm:$0xff] (!%p139_p2)  }
   0x6   : > { %142 = sbr.rel (%p139_p2) target bundleno = 299 (0x12b), region = 32  ;;  %p163_p3 = scmp.lt.s32.totalorder (!%p139_p2), %s884_s16, 63  ;;  %1098 = vmatprep.subr.bf16.mxu0 (!%p139_p2), %v1170_v0  ;;  %1146 = vmatprep.subr.bf16.mxu1 (!%p139_p2), %v1170_v0  ;;  %v1173_v3 = vld [vmem:[%s1352_s1 + $0x18] sm:$0xff] (!%p139_p2)   ;;  %v1174_v6 = vld [vmem:[%s1352_s1 + $0x20] sm:$0xff] (!%p139_p2)   ;;  %v1175_v7 = vld [vmem:[%s1352_s1 + $0x28] sm:$0xff] (!%p139_p2)  }
   0x7   : > { %1099 = vmatpush3.bf16.msra.mxu0 (!%p139_p2), %v1170_v0  ;;  %1154 = vmatpush3.bf16.msra.mxu1 (!%p139_p2), %v1170_v0  ;;  %v1176_v8 = vld [vmem:[%s1352_s1 + $0x30] sm:$0xff] (!%p139_p2)   ;;  %v1177_v9 = vld [vmem:[%s1352_s1 + $0x38] sm:$0xff] (!%p139_p2)   ;;  %v1283_v24 = vld [vmem:[%s1353_s2] ss:$0 sm:$0xff] (!%p139_p2) }
   0x8   : > { %1100 = vmatprep.subr.bf16.mxu0 (!%p139_p2), %v1171_v1  ;;  %1147 = vmatprep.subr.bf16.mxu1 (!%p139_p2), %v1171_v1 }
   0xb   : > { %1101 = vmatpush3.bf16.msra.mxu0 (!%p139_p2), %v1171_v1  ;;  %1155 = vmatpush3.bf16.msra.mxu1 (!%p139_p2), %v1171_v1 }
   0xc   : > { %1102 = vmatprep.subr.bf16.mxu0 (!%p139_p2), %v1172_v2  ;;  %1148 = vmatprep.subr.bf16.mxu1 (!%p139_p2), %v1172_v2 }
   0xd   : > { %s1356_s16 = smov (!%p163_p3, %s884_s16), 63 }
   0xe   : > { %s885_s21 = sshll.u32 %s1356_s16, 2 }
   0xf   : > { %s1247_s24 = scalar_lea.vmem %s1351_s0, %s885_s21  ;;  %1103 = vmatpush3.bf16.msra.mxu0 %v1172_v2  ;;  %1156 = vmatpush3.bf16.msra.mxu1 %v1172_v2  ;;  %s1303_s13 = scalar_lea.vmem %s1354_s3, %s885_s21 }
  0x10   : > { %v1178_v4 = vld [vmem:[%s1247_s24] sm:$0xff]   ;;  %1104 = vmatprep.subr.bf16.mxu0 %v1173_v3  ;;  %1149 = vmatprep.subr.bf16.mxu1 %v1173_v3  ;;  %v1180_v10 = vld [vmem:[%s1247_s24 + $0x8] sm:$0xff]   ;;  %v1182_v12 = vld [vmem:[%s1247_s24 + $0x10] sm:$0xff]  }
  0x11   : > { %v1179_v5 = vld [vmem:[%s1247_s24 + $0x40] sm:$0xff]   ;;  %1114 = vmatprep.mubr.bf16.mxu0 %v1178_v4  ;;  %v1181_v11 = vld [vmem:[%s1247_s24 + $0x48] sm:$0xff]   ;;  %v1183_v13 = vld [vmem:[%s1247_s24 + $0x50] sm:$0xff]  }
  0x12   : > { %1130 = vmatprep.mubr.bf16.mxu1 %v1179_v5  ;;  %v1184_v14 = vld [vmem:[%s1247_s24 + $0x18] sm:$0xff]   ;;  %v1186_v16 = vld [vmem:[%s1247_s24 + $0x20] sm:$0xff]   ;;  %v1188_v18 = vld [vmem:[%s1247_s24 + $0x28] sm:$0xff]  }
  0x13   : > { %1105 = vmatpush3.bf16.msra.mxu0 %v1173_v3  ;;  %1157 = vmatpush3.bf16.msra.mxu1 %v1173_v3  ;;  %v1185_v15 = vld [vmem:[%s1247_s24 + $0x58] sm:$0xff]   ;;  %v1187_v17 = vld [vmem:[%s1247_s24 + $0x60] sm:$0xff]   ;;  %v1189_v19 = vld [vmem:[%s1247_s24 + $0x68] sm:$0xff]  }
  0x14   : > { %1106 = vmatprep.subr.bf16.mxu0 %v1174_v6  ;;  %1150 = vmatprep.subr.bf16.mxu1 %v1174_v6  ;;  %v1190_v20 = vld [vmem:[%s1247_s24 + $0x30] sm:$0xff]   ;;  %v1192_v22 = vld [vmem:[%s1247_s24 + $0x38] sm:$0xff]  }
  0x15   : > { %v1191_v21 = vld [vmem:[%s1247_s24 + $0x70] sm:$0xff]   ;;  %v1193_v23 = vld [vmem:[%s1247_s24 + $0x78] sm:$0xff]  }
  0x17   : > { %1107 = vmatpush3.bf16.msra.mxu0 %v1174_v6  ;;  %1158 = vmatpush3.bf16.msra.mxu1 %v1174_v6 }
  0x18   : > { %1108 = vmatprep.subr.bf16.mxu0 %v1175_v7  ;;  %1151 = vmatprep.subr.bf16.mxu1 %v1175_v7 }
  0x1b   : > { %1109 = vmatpush3.bf16.msra.mxu0 %v1175_v7  ;;  %1159 = vmatpush3.bf16.msra.mxu1 %v1175_v7 }
  0x1c   : > { %1110 = vmatprep.subr.bf16.mxu0 %v1176_v8  ;;  %1152 = vmatprep.subr.bf16.mxu1 %v1176_v8 }
  0x1f   : > { %1111 = vmatpush3.bf16.msra.mxu0 %v1176_v8  ;;  %1160 = vmatpush3.bf16.msra.mxu1 %v1176_v8 }
  0x20   : > { %1112 = vmatprep.subr.bf16.mxu0 %v1177_v9  ;;  %1153 = vmatprep.subr.bf16.mxu1 %v1177_v9 }
  0x23   : > { %1113 = vmatpush3.bf16.msra.mxu0 %v1177_v9  ;;  %1161 = vmatpush3.bf16.msra.mxu1 %v1177_v9 }
  0x26   : > { %1115 = vmatmul.mubr.bf16.vlgmr.msra.gmra.mrb[0].mxu0 %v1180_v10  ;;  %1131 = vmatmul.mubr.bf16.vlgmr.msra.gmra.mrb[0].mxu1 %v1181_v11 }
  0x27   : > { %1118 = vmatprep.mubr.bf16.mxu0 %v1182_v12  ;;  %1134 = vmatprep.mubr.bf16.mxu1 %v1183_v13 }
  0x2e   : > { %1119 = vmatmul.mubr.bf16.gmra.mrb[4].mxu0 %v1184_v14  ;;  %1135 = vmatmul.mubr.bf16.gmra.mrb[4].mxu1 %v1185_v15 }
  0x2f   : > { %1122 = vmatprep.mubr.bf16.mxu0 %v1186_v16  ;;  %1138 = vmatprep.mubr.bf16.mxu1 %v1187_v17 }
  0x36   : > { %1123 = vmatmul.mubr.bf16.gmra.mrb[8].mxu0 %v1188_v18  ;;  %1139 = vmatmul.mubr.bf16.gmra.mrb[8].mxu1 %v1189_v19 }
  0x37   : > { %1126 = vmatprep.mubr.bf16.mxu0 %v1190_v20  ;;  %1142 = vmatprep.mubr.bf16.mxu1 %v1191_v21 }
  0x3e   : > { %1127 = vmatmul.mubr.bf16.gmra.mrb[12].mxu0 %v1192_v22  ;;  %1143 = vmatmul.mubr.bf16.gmra.mrb[12].mxu1 %v1193_v23 }
  0xf9   : > { %v1116_v25 = vpop.f32.mrb[0].mxu0  ;;  %v1132_v26 = vpop.f32.mrb[0].mxu1 }
  0xfa   : > { %v417_v27 = vadd.f32 %v1116_v25, %v1283_v24  ;;  %v481_v28 = vadd.f32 %v1132_v26, %v1283_v24  ;;  %v408_v29 = vpop.f32.mrb[1].mxu0  ;;  %v472_v30 = vpop.f32.mrb[1].mxu1 }
  0xfb   : > { %v409_v31 = vadd.f32 %v1283_v24, %v408_v29  ;;  %v473_v32 = vadd.f32 %v1283_v24, %v472_v30  ;;  %v1117_v33 = vpop.f32.mrb[2].mxu0  ;;  %v1133_v34 = vpop.f32.mrb[2].mxu1 }
  0xfc   : > { %v569_v35 = vmin.f32 %v417_v27, 0.0  ;;  %v585_v36 = vmin.f32 %v481_v28, 0.0  ;;  %v411_v37 = vpop.f32.mrb[3].mxu0  ;;  %v475_v38 = vpop.f32.mrb[3].mxu1  ;;  %v537_v39 = vmax.f32 %v417_v27, 0.0  ;;  %v420_v44 = vadd.f32 %v1117_v33, %v1283_v24 }
  0xfd   : > { %v567_v40 = vmin.f32 %v409_v31, 0.0  ;;  %v583_v41 = vmin.f32 %v473_v32, 0.0  ;;  %v484_v45 = vadd.f32 %v1133_v34, %v1283_v24  ;;  %v553_v46 = vmax.f32 %v481_v28, 0.0 }
  0xfe   : > { %v601_v42 = vmul.f32 0.01, %v569_v35  ;;  %v617_v43 = vmul.f32 0.01, %v585_v36  ;;  %v535_v47 = vmax.f32 %v409_v31, 0.0  ;;  %v412_v48 = vadd.f32 %v1283_v24, %v411_v37 }
  0xff   : > { %v476_v49 = vadd.f32 %v1283_v24, %v475_v38  ;;  %v599_v50 = vmul.f32 0.01, %v567_v40  ;;  %v551_v51 = vmax.f32 %v473_v32, 0.0  ;;  %v615_v52 = vmul.f32 0.01, %v583_v41 }
 0x100   : > { %v570_v53 = vmin.f32 %v420_v44, 0.0  ;;  %v633_v54 = vadd.f32 %v601_v42, %v537_v39  ;;  %v649_v55 = vadd.f32 %v617_v43, %v553_v46  ;;  %v538_v56 = vmax.f32 %v420_v44, 0.0 }
 0x101   : > { %v586_v57 = vmin.f32 %v484_v45, 0.0  ;;  %v1120_v58 = vpop.f32.mrb[4].mxu0  ;;  %v1136_v59 = vpop.f32.mrb[4].mxu1  ;;  %v554_v61 = vmax.f32 %v484_v45, 0.0  ;;  %v536_v62 = vmax.f32 %v412_v48, 0.0  ;;  %v568_v63 = vmin.f32 %v412_v48, 0.0 }
 0x102   : > { %v602_v60 = vmul.f32 0.01, %v570_v53  ;;  %v424_v0 = vpop.f32.mrb[5].mxu0  ;;  %v584_v2 = vmin.f32 %v476_v49, 0.0  ;;  %v433_v3 = vadd.f32 %v1120_v58, %v1283_v24  ;;  %v497_v4 = vadd.f32 %v1136_v59, %v1283_v24  ;;  %v488_v5 = vpop.f32.mrb[5].mxu1 }
 0x103   : > { %v618_v1 = vmul.f32 0.01, %v586_v57  ;;  %v1121_v6 = vpop.f32.mrb[6].mxu0  ;;  %v600_v8 = vmul.f32 0.01, %v568_v63  ;;  %v552_v9 = vmax.f32 %v476_v49, 0.0  ;;  %v1296_v10 = vadd.f32 %v1283_v24, %v424_v0 }
 0x104   : > { %v634_v7 = vadd.f32 %v602_v60, %v538_v56  ;;  %v1137_v11 = vpop.f32.mrb[6].mxu1  ;;  %v427_v12 = vpop.f32.mrb[7].mxu0  ;;  %v616_v14 = vmul.f32 0.01, %v584_v2  ;;  %v573_v15 = vmin.f32 %v433_v3, 0.0  ;;  %v1306_v16 = vadd.f32 %v1283_v24, %v488_v5 }
 0x105   : > { %v650_v13 = vadd.f32 %v618_v1, %v554_v61  ;;  %v491_v17 = vpop.f32.mrb[7].mxu1  ;;  %v631_v18 = vadd.f32 %v599_v50, %v535_v47  ;;  %v632_v20 = vadd.f32 %v600_v8, %v536_v62  ;;  %v589_v21 = vmin.f32 %v497_v4, 0.0 }
 0x106   : > { %v987_v19 = vpack.c.bf16 %v634_v7, %v633_v54  ;;  %v647_v22 = vadd.f32 %v615_v52, %v551_v51  ;;  %v648_v25 = vadd.f32 %v616_v14, %v552_v9  ;;  %v605_v26 = vmul.f32 0.01, %v573_v15 }
 0x107   : > { %v1027_v23 = vpack.c.bf16 %v650_v13, %v649_v55  ;;  %v982_v27 = vpack.c.bf16 %v632_v20, %v631_v18  ;;  %v541_v28 = vmax.f32 %v433_v3, 0.0  ;;  %v621_v29 = vmul.f32 0.01, %v589_v21 }
 0x108   : > { %1059 = vst [vmem:[%s1303_s13 + $0x8] sm:$0xff] %v987_v19   ;;  %v571_v30 = vmin.f32 %v1296_v10, 0.0  ;;  %v1022_v31 = vpack.c.bf16 %v648_v25, %v647_v22  ;;  %v557_v32 = vmax.f32 %v497_v4, 0.0  ;;  %v587_v33 = vmin.f32 %v1306_v16, 0.0 }
 0x109   : > { %1067 = vst [vmem:[%s1303_s13 + $0x48] sm:$0xff] %v1027_v23   ;;  %v436_v34 = vadd.f32 %v1121_v6, %v1283_v24  ;;  %v1124_v35 = vpop.f32.mrb[8].mxu0  ;;  %v1140_v36 = vpop.f32.mrb[8].mxu1  ;;  %983 = vst [vmem:[%s1303_s13] sm:$0xff] %v982_v27   ;;  %v539_v37 = vmax.f32 %v1296_v10, 0.0  ;;  %v555_v38 = vmax.f32 %v1306_v16, 0.0  ;;  %v500_v39 = vadd.f32 %v1137_v11, %v1283_v24 }
 0x10a   : > { %v428_v40 = vadd.f32 %v1283_v24, %v427_v12  ;;  %v440_v41 = vpop.f32.mrb[9].mxu0  ;;  %v504_v42 = vpop.f32.mrb[9].mxu1  ;;  %1066 = vst [vmem:[%s1303_s13 + $0x40] sm:$0xff] %v1022_v31   ;;  %v637_v43 = vadd.f32 %v605_v26, %v541_v28  ;;  %v603_v44 = vmul.f32 0.01, %v571_v30  ;;  %v492_v46 = vadd.f32 %v1283_v24, %v491_v17 }
 0x10b   : > { %v574_v45 = vmin.f32 %v436_v34, 0.0  ;;  %v1125_v47 = vpop.f32.mrb[10].mxu0  ;;  %v1141_v48 = vpop.f32.mrb[10].mxu1  ;;  %v653_v49 = vadd.f32 %v621_v29, %v557_v32  ;;  %v619_v50 = vmul.f32 0.01, %v587_v33  ;;  %v542_v51 = vmax.f32 %v436_v34, 0.0 }
 0x10c   : > { %v590_v52 = vmin.f32 %v500_v39, 0.0  ;;  %v443_v53 = vpop.f32.mrb[11].mxu0  ;;  %v507_v54 = vpop.f32.mrb[11].mxu1  ;;  %v558_v56 = vmax.f32 %v500_v39, 0.0  ;;  %v540_v57 = vmax.f32 %v428_v40, 0.0  ;;  %v572_v58 = vmin.f32 %v428_v40, 0.0 }
 0x10d   : > { %v606_v55 = vmul.f32 0.01, %v574_v45  ;;  %v588_v60 = vmin.f32 %v492_v46, 0.0  ;;  %v449_v61 = vadd.f32 %v1124_v35, %v1283_v24  ;;  %v513_v62 = vadd.f32 %v1140_v36, %v1283_v24 }
 0x10e   : > { %v622_v59 = vmul.f32 0.01, %v590_v52  ;;  %v604_v0 = vmul.f32 0.01, %v572_v58  ;;  %v556_v1 = vmax.f32 %v492_v46, 0.0  ;;  %v441_v2 = vadd.f32 %v1283_v24, %v440_v41 }
 0x10f   : > { %v638_v63 = vadd.f32 %v606_v55, %v542_v51  ;;  %v620_v4 = vmul.f32 0.01, %v588_v60  ;;  %v577_v5 = vmin.f32 %v449_v61, 0.0  ;;  %v505_v6 = vadd.f32 %v1283_v24, %v504_v42 }
 0x110   : > { %v654_v3 = vadd.f32 %v622_v59, %v558_v56  ;;  %v635_v7 = vadd.f32 %v603_v44, %v539_v37  ;;  %v636_v9 = vadd.f32 %v604_v0, %v540_v57  ;;  %v593_v10 = vmin.f32 %v513_v62, 0.0 }
 0x111   : > { %v997_v8 = vpack.c.bf16 %v638_v63, %v637_v43  ;;  %v1128_v11 = vpop.f32.mrb[12].mxu0  ;;  %v1144_v12 = vpop.f32.mrb[12].mxu1  ;;  %v651_v13 = vadd.f32 %v619_v50, %v555_v38  ;;  %v652_v15 = vadd.f32 %v620_v4, %v556_v1  ;;  %v609_v16 = vmul.f32 0.01, %v577_v5 }
 0x112   : > { %v1037_v14 = vpack.c.bf16 %v654_v3, %v653_v49  ;;  %v456_v17 = vpop.f32.mrb[13].mxu0  ;;  %v520_v18 = vpop.f32.mrb[13].mxu1  ;;  %v992_v19 = vpack.c.bf16 %v636_v9, %v635_v7  ;;  %v625_v20 = vmul.f32 0.01, %v593_v10  ;;  %v575_v21 = vmin.f32 %v441_v2, 0.0 }
 0x113   : > { %1061 = vst [vmem:[%s1303_s13 + $0x18] sm:$0xff] %v997_v8   ;;  %v1129_v22 = vpop.f32.mrb[14].mxu0  ;;  %v1145_v23 = vpop.f32.mrb[14].mxu1  ;;  %v1032_v25 = vpack.c.bf16 %v652_v15, %v651_v13  ;;  %v591_v26 = vmin.f32 %v505_v6, 0.0  ;;  %v452_v27 = vadd.f32 %v1125_v47, %v1283_v24  ;;  %v545_v30 = vmax.f32 %v449_v61, 0.0 }
 0x114   : > { %1069 = vst [vmem:[%s1303_s13 + $0x58] sm:$0xff] %v1037_v14   ;;  %v459_v28 = vpop.f32.mrb[15].mxu0  ;;  %v523_v29 = vpop.f32.mrb[15].mxu1  ;;  %1060 = vst [vmem:[%s1303_s13 + $0x10] sm:$0xff] %v992_v19   ;;  %v561_v31 = vmax.f32 %v513_v62, 0.0  ;;  %v516_v32 = vadd.f32 %v1141_v48, %v1283_v24  ;;  %v444_v33 = vadd.f32 %v1283_v24, %v443_v53  ;;  %v543_v34 = vmax.f32 %v441_v2, 0.0 }
 0x115   : > { %1068 = vst [vmem:[%s1303_s13 + $0x50] sm:$0xff] %v1032_v25   ;;  %v559_v35 = vmax.f32 %v505_v6, 0.0  ;;  %v578_v36 = vmin.f32 %v452_v27, 0.0  ;;  %v508_v37 = vadd.f32 %v1283_v24, %v507_v54  ;;  %v641_v38 = vadd.f32 %v609_v16, %v545_v30 }
 0x116   : > { %v657_v39 = vadd.f32 %v625_v20, %v561_v31  ;;  %v607_v40 = vmul.f32 0.01, %v575_v21  ;;  %v594_v41 = vmin.f32 %v516_v32, 0.0  ;;  %v623_v42 = vmul.f32 0.01, %v591_v26 }
 0x117   : > { %v546_v43 = vmax.f32 %v452_v27, 0.0  ;;  %v610_v44 = vmul.f32 0.01, %v578_v36  ;;  %v576_v45 = vmin.f32 %v444_v33, 0.0  ;;  %v562_v46 = vmax.f32 %v516_v32, 0.0 }
 0x118   : > { %v626_v47 = vmul.f32 0.01, %v594_v41  ;;  %v592_v49 = vmin.f32 %v508_v37, 0.0  ;;  %v465_v48 = vadd.f32 %v1128_v11, %v1283_v24  ;;  %v544_v51 = vmax.f32 %v444_v33, 0.0 }
 0x119   : > { %v642_v50 = vadd.f32 %v610_v44, %v546_v43  ;;  %v608_v52 = vmul.f32 0.01, %v576_v45  ;;  %v529_v53 = vadd.f32 %v1144_v12, %v1283_v24  ;;  %v560_v55 = vmax.f32 %v508_v37, 0.0 }
 0x11a   : > { %v658_v54 = vadd.f32 %v626_v47, %v562_v46  ;;  %v624_v56 = vmul.f32 0.01, %v592_v49  ;;  %v457_v57 = vadd.f32 %v1283_v24, %v456_v17  ;;  %v639_v58 = vadd.f32 %v607_v40, %v543_v34 }
 0x11b   : > { %v1007_v59 = vpack.c.bf16 %v642_v50, %v641_v38  ;;  %v640_v60 = vadd.f32 %v608_v52, %v544_v51  ;;  %v521_v61 = vadd.f32 %v1283_v24, %v520_v18  ;;  %v655_v62 = vadd.f32 %v623_v42, %v559_v35 }
 0x11c   : > { %v1047_v63 = vpack.c.bf16 %v658_v54, %v657_v39  ;;  %v656_v0 = vadd.f32 %v624_v56, %v560_v55  ;;  %v581_v1 = vmin.f32 %v465_v48, 0.0  ;;  %v597_v3 = vmin.f32 %v529_v53, 0.0 }
 0x11d   : > { %1063 = vst [vmem:[%s1303_s13 + $0x28] sm:$0xff] %v1007_v59   ;;  %v1002_v2 = vpack.c.bf16 %v640_v60, %v639_v58  ;;  %v579_v5 = vmin.f32 %v457_v57, 0.0  ;;  %v468_v6 = vadd.f32 %v1129_v22, %v1283_v24  ;;  %v549_v7 = vmax.f32 %v465_v48, 0.0 }
 0x11e   : > { %1071 = vst [vmem:[%s1303_s13 + $0x68] sm:$0xff] %v1047_v63   ;;  %v1042_v4 = vpack.c.bf16 %v656_v0, %v655_v62  ;;  %v595_v8 = vmin.f32 %v521_v61, 0.0  ;;  %v532_v9 = vadd.f32 %v1145_v23, %v1283_v24  ;;  %v460_v10 = vadd.f32 %v1283_v24, %v459_v28 }
 0x11f   : > { %1062 = vst [vmem:[%s1303_s13 + $0x20] sm:$0xff] %v1002_v2   ;;  %v613_v11 = vmul.f32 0.01, %v581_v1  ;;  %v565_v12 = vmax.f32 %v529_v53, 0.0  ;;  %v582_v13 = vmin.f32 %v468_v6, 0.0  ;;  %v524_v14 = vadd.f32 %v1283_v24, %v523_v29 }
 0x120   : > { %1070 = vst [vmem:[%s1303_s13 + $0x60] sm:$0xff] %v1042_v4   ;;  %v629_v15 = vmul.f32 0.01, %v597_v3  ;;  %v547_v16 = vmax.f32 %v457_v57, 0.0  ;;  %v563_v17 = vmax.f32 %v521_v61, 0.0  ;;  %v598_v18 = vmin.f32 %v532_v9, 0.0 }
 0x121   : > { %v611_v19 = vmul.f32 0.01, %v579_v5  ;;  %v550_v20 = vmax.f32 %v468_v6, 0.0  ;;  %v614_v21 = vmul.f32 0.01, %v582_v13  ;;  %v580_v22 = vmin.f32 %v460_v10, 0.0 }
 0x122   : > { %v627_v25 = vmul.f32 0.01, %v595_v8  ;;  %v566_v26 = vmax.f32 %v532_v9, 0.0  ;;  %v630_v27 = vmul.f32 0.01, %v598_v18  ;;  %v596_v23 = vmin.f32 %v524_v14, 0.0 }
 0x123   : > { %v645_v28 = vadd.f32 %v613_v11, %v549_v7  ;;  %v646_v30 = vadd.f32 %v614_v21, %v550_v20  ;;  %v548_v31 = vmax.f32 %v460_v10, 0.0  ;;  %v612_v32 = vmul.f32 0.01, %v580_v22 }
 0x124   : > { %v661_v24 = vadd.f32 %v629_v15, %v565_v12  ;;  %v662_v29 = vadd.f32 %v630_v27, %v566_v26  ;;  %v564_v33 = vmax.f32 %v524_v14, 0.0  ;;  %v628_v34 = vmul.f32 0.01, %v596_v23 }
 0x125   : > { %v643_v35 = vadd.f32 %v611_v19, %v547_v16  ;;  %v1017_v36 = vpack.c.bf16 %v646_v30, %v645_v28  ;;  %v644_v37 = vadd.f32 %v612_v32, %v548_v31  ;;  %v659_v38 = vadd.f32 %v627_v25, %v563_v17 }
 0x126   : > { %v1057_v39 = vpack.c.bf16 %v662_v29, %v661_v24  ;;  %v660_v40 = vadd.f32 %v628_v34, %v564_v33 }
 0x127   : > { %1065 = vst [vmem:[%s1303_s13 + $0x38] sm:$0xff] %v1017_v36   ;;  %v1012_v41 = vpack.c.bf16 %v644_v37, %v643_v35 }
 0x128   : > { %1073 = vst [vmem:[%s1303_s13 + $0x78] sm:$0xff] %v1057_v39   ;;  %v1052_v42 = vpack.c.bf16 %v660_v40, %v659_v38 }
 0x129   : > { %1064 = vst [vmem:[%s1303_s13 + $0x30] sm:$0xff] %v1012_v41  }
 0x12a   : > { %1072 = vst [vmem:[%s1303_s13 + $0x70] sm:$0xff] %v1052_v42  }
 0x12b PF: > { %s13_s12 = sadd.s32 1, %s1200_s12  }
 0x12c   : > { %p10_p4 = scmp.ge.s32.totalorder %s13_s12, 4  }
 0x12e   :  { %12 = sbr.rel (!%p10_p4) target bundleno = 1 (0x1), region = 62 }

// kernel: _decoder_forward.23
= control target key start
LH: loop header
LB: loop body
LE: loop exit
PB: predicated region body
PF: predicated region fallthrough
CT: control target
= control target key end

     0   :  { %8 = vsyncpa [#allocation3], 0  ;;  %s1139_s0 = inlined_call_operand.vmem [shape: bf16[512,128], index: 0, kind: input, shape index: {}]   ;;  %s1140_s1 = inlined_call_operand.vmem [shape: bf16[128,128], index: 1, kind: input, shape index: {}]   ;;  %s1141_s2 = inlined_call_operand.vmem [shape: f32[1,128], index: 2, kind: input, shape index: {}]   ;;  %s1142_s3 = inlined_call_operand.hbm [shape: f32[512,128], index: 3, kind: output, shape index: {}]  }
   0x1   :  { %10 = vsyncpa [#allocation3 + $0x1], 0  ;;  %s919_s12 = smov 0   ;;  %s921_s13 = smov 0  }
   0x2   :  { %s923_s14 = smov 0   ;;  %s925_s15 = smov 0  }
   0x3 LB: > { %s940_s16 = sadd.s32 4294967295, %s894_s15   ;;  %s641_s17 = sadd.s32 4294967294, %s894_s15   ;;  %s894_s15 = sphi %s925_s15, %s1148_s15   ;;  %s890_s14 = sphi %s923_s14, %s1147_s14   ;;  %s886_s13 = sphi %s921_s13, %s1146_s13   ;;  %s882_s12 = sphi %s919_s12, %s1145_s12  }
   0x4   : > { %s944_s18 = sadd.s32 1, %s894_s15   ;;  %s91_s19 = sadd.s32 1, %s890_s14 }
   0x5   : > { %s88_s20 = ssub.s32 %s894_s15, %s944_s18  ;;  %p101_p0 = scmp.ne.s32.totalorder %s890_s14, %s886_s13 }
   0x6   : > { %p89_p1 = scmp.eq.s32.totalorder %s88_s20, 0  ;;  %p102_p2 = scmp.eq.s32.totalorder %s940_s16, 1 }
   0x7   : > { %p107_p3 = scmp.ne.s32.totalorder %s886_s13, %s882_s12  ;;  %p108_p4 = scmp.eq.s32.totalorder %s641_s17, 1 }
   0x8   : > { %s955_s21 = scalar_select %p89_p1, %s890_s14, %s91_s19  }
   0x9   : > { %p957_p5 = por %p102_p2, %p101_p0  ;;  %p961_p6 = por %p108_p4, %p107_p3 }
   0xa   : > { %p644_p7 = scmp.ge.s32.totalorder %s894_s15, 1  ;;  %p141_p8 = scmp.lt.s32.totalorder %s894_s15, 3 }
   0xc   : > { %p142_p9 = pnand %p644_p7, %p141_p8 }
   0xd   : > { %v808_v0 = vld [vmem:[%s1140_s1] sm:$0xff] (!%p142_p9)   ;;  %s646_s26 = sshll.u32 (!%p142_p9), %s940_s16, 5  ;;  %v809_v1 = vld [vmem:[%s1140_s1 + $0x8] sm:$0xff] (!%p142_p9)   ;;  %v810_v2 = vld [vmem:[%s1140_s1 + $0x10] sm:$0xff] (!%p142_p9)   ;;  %s162_s27 = sand.u32 (!%p142_p9), 1, %s886_s13  }
   0xe   : > { %145 = sbr.rel (%p142_p9) target bundleno = 302 (0x12e), region = 32  ;;  %p166_p10 = scmp.lt.s32.totalorder (!%p142_p9), %s646_s26, 63  ;;  %703 = vmatprep.subr.bf16.mxu0 (!%p142_p9), %v808_v0  ;;  %751 = vmatprep.subr.bf16.mxu1 (!%p142_p9), %v808_v0  ;;  %v811_v3 = vld [vmem:[%s1140_s1 + $0x18] sm:$0xff] (!%p142_p9)   ;;  %v812_v6 = vld [vmem:[%s1140_s1 + $0x20] sm:$0xff] (!%p142_p9)   ;;  %v813_v7 = vld [vmem:[%s1140_s1 + $0x28] sm:$0xff] (!%p142_p9)  }
   0xf   : > { %704 = vmatpush3.bf16.msra.mxu0 (!%p142_p9), %v808_v0  ;;  %759 = vmatpush3.bf16.msra.mxu1 (!%p142_p9), %v808_v0  ;;  %v814_v8 = vld [vmem:[%s1140_s1 + $0x30] sm:$0xff] (!%p142_p9)   ;;  %v815_v9 = vld [vmem:[%s1140_s1 + $0x38] sm:$0xff] (!%p142_p9)   ;;  %s645_s28 = sshll.u32 (!%p142_p9), %s162_s27, 8  ;;  %v1019_v24 = vld [vmem:[%s1141_s2] ss:$0 sm:$0xff] (!%p142_p9)  ;;  %s678_s5 = sshll.u32 (!%p142_p9), %s940_s16, 12 }
  0x10   : > { %705 = vmatprep.subr.bf16.mxu0 (!%p142_p9), %v809_v1  ;;  %752 = vmatprep.subr.bf16.mxu1 (!%p142_p9), %v809_v1  ;;  %s1084_s8 = scalar_lea.hbm (!%p142_p9), %s1142_s3, %s678_s5  ;;  %s1098_s9 = scalar_lea.sflag (!%p142_p9), [#allocation3], %s162_s27 }
  0x11   : > { %s896_s11 = smov (!%p142_p9), [#allocation2]  }
  0x12   : > { %s836_s17 = sshll.u32 (!%p142_p9), %s896_s11, 4  ;;  %s837_s17 = int_to_ptr.vmem [resolvable:$false] %s836_s17 }
  0x13   : > { %706 = vmatpush3.bf16.msra.mxu0 (!%p142_p9), %v809_v1  ;;  %760 = vmatpush3.bf16.msra.mxu1 (!%p142_p9), %v809_v1  ;;  %s838_s19 = scalar_lea.vmem (!%p142_p9), %s837_s17, 8192 }
  0x14   : > { %707 = vmatprep.subr.bf16.mxu0 (!%p142_p9), %v810_v2  ;;  %753 = vmatprep.subr.bf16.mxu1 (!%p142_p9), %v810_v2 }
  0x15   : > { %s1150_s26 = smov (!%p166_p10, %s646_s26), 63 }
  0x16   : > { %s647_s4 = sshll.u32 %s1150_s26, 2 }
  0x17   : > { %s980_s7 = scalar_lea.vmem %s1139_s0, %s647_s4  ;;  %708 = vmatpush3.bf16.msra.mxu0 %v810_v2  ;;  %761 = vmatpush3.bf16.msra.mxu1 %v810_v2  ;;  %s1025_s4 = scalar_lea.vmem [#allocation2], %s645_s28 }
  0x18   : > { %v816_v4 = vld [vmem:[%s980_s7] sm:$0xff]   ;;  %709 = vmatprep.subr.bf16.mxu0 %v811_v3  ;;  %754 = vmatprep.subr.bf16.mxu1 %v811_v3  ;;  %v818_v10 = vld [vmem:[%s980_s7 + $0x8] sm:$0xff]   ;;  %v820_v12 = vld [vmem:[%s980_s7 + $0x10] sm:$0xff]   ;;  %s579_s6 = sshll.u32 %s1025_s4, 4  ;;  %s1086_s6 = int_to_ptr.vmem [resolvable:$true] %s579_s6 }
  0x19   : > { %v817_v5 = vld [vmem:[%s980_s7 + $0x40] sm:$0xff]   ;;  %719 = vmatprep.mubr.bf16.mxu0 %v816_v4  ;;  %v819_v11 = vld [vmem:[%s980_s7 + $0x48] sm:$0xff]   ;;  %v821_v13 = vld [vmem:[%s980_s7 + $0x50] sm:$0xff]   ;;  %s832_s10 = scalar_lea.vmem %s1086_s6, 4096  ;;  %p839_p0 = scmp.lt.s32.totalorder %s1086_s6, %s837_s17 }
  0x1a   : > { %735 = vmatprep.mubr.bf16.mxu1 %v817_v5  ;;  %v822_v14 = vld [vmem:[%s980_s7 + $0x18] sm:$0xff]   ;;  %v824_v16 = vld [vmem:[%s980_s7 + $0x20] sm:$0xff]   ;;  %v826_v18 = vld [vmem:[%s980_s7 + $0x28] sm:$0xff]   ;;  %p833_p11 = scmp.ne.s32.totalorder %s1086_s6, %s832_s10  ;;  %p840_p1 = scmp.lt.s32.totalorder %s838_s19, %s832_s10 }
  0x1b   : > { %710 = vmatpush3.bf16.msra.mxu0 %v811_v3  ;;  %762 = vmatpush3.bf16.msra.mxu1 %v811_v3  ;;  %v823_v15 = vld [vmem:[%s980_s7 + $0x58] sm:$0xff]   ;;  %v825_v17 = vld [vmem:[%s980_s7 + $0x60] sm:$0xff]   ;;  %v827_v19 = vld [vmem:[%s980_s7 + $0x68] sm:$0xff]  }
  0x1c   : > { %711 = vmatprep.subr.bf16.mxu0 %v812_v6  ;;  %755 = vmatprep.subr.bf16.mxu1 %v812_v6  ;;  %v828_v20 = vld [vmem:[%s980_s7 + $0x30] sm:$0xff]   ;;  %v830_v22 = vld [vmem:[%s980_s7 + $0x38] sm:$0xff]   ;;  %p834_p12 = pnand %p833_p11, %p957_p5  ;;  %p841_p2 = por %p840_p1, %p839_p0 }
  0x1d   : > { %v829_v21 = vld [vmem:[%s980_s7 + $0x70] sm:$0xff]   ;;  %v831_v23 = vld [vmem:[%s980_s7 + $0x78] sm:$0xff]  }
  0x1e   : > { %p835_p13 = pneg %p834_p12 }
  0x1f   : > { %712 = vmatpush3.bf16.msra.mxu0 %v812_v6  ;;  %763 = vmatpush3.bf16.msra.mxu1 %v812_v6 }
  0x20   : > { %713 = vmatprep.subr.bf16.mxu0 %v813_v7  ;;  %756 = vmatprep.subr.bf16.mxu1 %v813_v7  ;;  %p842_p3 = pnand %p841_p2, %p835_p13 }
  0x23   : > { %714 = vmatpush3.bf16.msra.mxu0 %v813_v7  ;;  %764 = vmatpush3.bf16.msra.mxu1 %v813_v7 }
  0x24   : > { %715 = vmatprep.subr.bf16.mxu0 %v814_v8  ;;  %757 = vmatprep.subr.bf16.mxu1 %v814_v8 }
  0x27   : > { %716 = vmatpush3.bf16.msra.mxu0 %v814_v8  ;;  %765 = vmatpush3.bf16.msra.mxu1 %v814_v8 }
  0x28   : > { %717 = vmatprep.subr.bf16.mxu0 %v815_v9  ;;  %758 = vmatprep.subr.bf16.mxu1 %v815_v9 }
  0x2b   : > { %718 = vmatpush3.bf16.msra.mxu0 %v815_v9  ;;  %766 = vmatpush3.bf16.msra.mxu1 %v815_v9 }
  0x2e   : > { %720 = vmatmul.mubr.bf16.vlgmr.msra.gmra.mrb[0].mxu0 %v818_v10  ;;  %736 = vmatmul.mubr.bf16.vlgmr.msra.gmra.mrb[0].mxu1 %v819_v11 }
  0x2f   : > { %723 = vmatprep.mubr.bf16.mxu0 %v820_v12  ;;  %739 = vmatprep.mubr.bf16.mxu1 %v821_v13 }
  0x36   : > { %724 = vmatmul.mubr.bf16.gmra.mrb[4].mxu0 %v822_v14  ;;  %740 = vmatmul.mubr.bf16.gmra.mrb[4].mxu1 %v823_v15 }
  0x37   : > { %727 = vmatprep.mubr.bf16.mxu0 %v824_v16  ;;  %743 = vmatprep.mubr.bf16.mxu1 %v825_v17 }
  0x3e   : > { %728 = vmatmul.mubr.bf16.gmra.mrb[8].mxu0 %v826_v18  ;;  %744 = vmatmul.mubr.bf16.gmra.mrb[8].mxu1 %v827_v19 }
  0x3f   : > { %731 = vmatprep.mubr.bf16.mxu0 %v828_v20  ;;  %747 = vmatprep.mubr.bf16.mxu1 %v829_v21 }
  0x46   : > { %732 = vmatmul.mubr.bf16.gmra.mrb[12].mxu0 %v830_v22  ;;  %748 = vmatmul.mubr.bf16.gmra.mrb[12].mxu1 %v831_v23 }
 0x101   : > { %v721_v25 = vpop.f32.mrb[0].mxu0  ;;  %v737_v26 = vpop.f32.mrb[0].mxu1 }
 0x102   : > { %v415_v27 = vadd.f32 %v721_v25, %v1019_v24  ;;  %v479_v28 = vadd.f32 %v737_v26, %v1019_v24  ;;  %v406_v29 = vpop.f32.mrb[1].mxu0  ;;  %v470_v30 = vpop.f32.mrb[1].mxu1 }
 0x103   : > { %v407_v31 = vadd.f32 %v1019_v24, %v406_v29  ;;  %v471_v32 = vadd.f32 %v1019_v24, %v470_v30  ;;  %v722_v33 = vpop.f32.mrb[2].mxu0  ;;  %v738_v34 = vpop.f32.mrb[2].mxu1 }
 0x104   : > { %535 = vst [vmem:[%s1025_s4 + $0x10] sm:$0xff] %v415_v27  ;;  %551 = vst [vmem:[%s1025_s4 + $0x90] sm:$0xff] %v479_v28  ;;  %v418_v35 = vadd.f32 %v722_v33, %v1019_v24  ;;  %v482_v36 = vadd.f32 %v738_v34, %v1019_v24  ;;  %v409_v37 = vpop.f32.mrb[3].mxu0  ;;  %v473_v38 = vpop.f32.mrb[3].mxu1 }
 0x105   : > { %533 = vst [vmem:[%s1025_s4] sm:$0xff] %v407_v31  ;;  %549 = vst [vmem:[%s1025_s4 + $0x80] sm:$0xff] %v471_v32  ;;  %v410_v39 = vadd.f32 %v1019_v24, %v409_v37  ;;  %v474_v40 = vadd.f32 %v1019_v24, %v473_v38 }
 0x106   : > { %536 = vst [vmem:[%s1025_s4 + $0x18] sm:$0xff] %v418_v35  ;;  %552 = vst [vmem:[%s1025_s4 + $0x98] sm:$0xff] %v482_v36 }
 0x107   : > { %534 = vst [vmem:[%s1025_s4 + $0x8] sm:$0xff] %v410_v39  ;;  %550 = vst [vmem:[%s1025_s4 + $0x88] sm:$0xff] %v474_v40 }
 0x109   : > { %v725_v41 = vpop.f32.mrb[4].mxu0  ;;  %v741_v42 = vpop.f32.mrb[4].mxu1 }
 0x10a   : > { %v431_v43 = vadd.f32 %v725_v41, %v1019_v24  ;;  %v495_v44 = vadd.f32 %v741_v42, %v1019_v24  ;;  %v422_v45 = vpop.f32.mrb[5].mxu0  ;;  %v486_v46 = vpop.f32.mrb[5].mxu1 }
 0x10b   : > { %v423_v47 = vadd.f32 %v1019_v24, %v422_v45  ;;  %v487_v48 = vadd.f32 %v1019_v24, %v486_v46  ;;  %v726_v49 = vpop.f32.mrb[6].mxu0  ;;  %v742_v50 = vpop.f32.mrb[6].mxu1 }
 0x10c   : > { %539 = vst [vmem:[%s1025_s4 + $0x30] sm:$0xff] %v431_v43  ;;  %555 = vst [vmem:[%s1025_s4 + $0xb0] sm:$0xff] %v495_v44  ;;  %v434_v51 = vadd.f32 %v726_v49, %v1019_v24  ;;  %v498_v52 = vadd.f32 %v742_v50, %v1019_v24  ;;  %v425_v53 = vpop.f32.mrb[7].mxu0  ;;  %v489_v54 = vpop.f32.mrb[7].mxu1 }
 0x10d   : > { %537 = vst [vmem:[%s1025_s4 + $0x20] sm:$0xff] %v423_v47  ;;  %553 = vst [vmem:[%s1025_s4 + $0xa0] sm:$0xff] %v487_v48  ;;  %v426_v55 = vadd.f32 %v1019_v24, %v425_v53  ;;  %v490_v56 = vadd.f32 %v1019_v24, %v489_v54 }
 0x10e   : > { %540 = vst [vmem:[%s1025_s4 + $0x38] sm:$0xff] %v434_v51  ;;  %556 = vst [vmem:[%s1025_s4 + $0xb8] sm:$0xff] %v498_v52 }
 0x10f   : > { %538 = vst [vmem:[%s1025_s4 + $0x28] sm:$0xff] %v426_v55  ;;  %554 = vst [vmem:[%s1025_s4 + $0xa8] sm:$0xff] %v490_v56 }
 0x111   : > { %v729_v57 = vpop.f32.mrb[8].mxu0  ;;  %v745_v58 = vpop.f32.mrb[8].mxu1 }
 0x112   : > { %v447_v59 = vadd.f32 %v729_v57, %v1019_v24  ;;  %v511_v60 = vadd.f32 %v745_v58, %v1019_v24  ;;  %v438_v61 = vpop.f32.mrb[9].mxu0  ;;  %v502_v62 = vpop.f32.mrb[9].mxu1 }
 0x113   : > { %v439_v63 = vadd.f32 %v1019_v24, %v438_v61  ;;  %v503_v0 = vadd.f32 %v1019_v24, %v502_v62  ;;  %v730_v1 = vpop.f32.mrb[10].mxu0  ;;  %v746_v2 = vpop.f32.mrb[10].mxu1 }
 0x114   : > { %543 = vst [vmem:[%s1025_s4 + $0x50] sm:$0xff] %v447_v59  ;;  %559 = vst [vmem:[%s1025_s4 + $0xd0] sm:$0xff] %v511_v60  ;;  %v450_v3 = vadd.f32 %v730_v1, %v1019_v24  ;;  %v514_v4 = vadd.f32 %v746_v2, %v1019_v24  ;;  %v441_v5 = vpop.f32.mrb[11].mxu0  ;;  %v505_v6 = vpop.f32.mrb[11].mxu1 }
 0x115   : > { %541 = vst [vmem:[%s1025_s4 + $0x40] sm:$0xff] %v439_v63  ;;  %557 = vst [vmem:[%s1025_s4 + $0xc0] sm:$0xff] %v503_v0  ;;  %v442_v7 = vadd.f32 %v1019_v24, %v441_v5  ;;  %v506_v8 = vadd.f32 %v1019_v24, %v505_v6 }
 0x116   : > { %544 = vst [vmem:[%s1025_s4 + $0x58] sm:$0xff] %v450_v3  ;;  %560 = vst [vmem:[%s1025_s4 + $0xd8] sm:$0xff] %v514_v4 }
 0x117   : > { %542 = vst [vmem:[%s1025_s4 + $0x48] sm:$0xff] %v442_v7  ;;  %558 = vst [vmem:[%s1025_s4 + $0xc8] sm:$0xff] %v506_v8 }
 0x119   : > { %v733_v9 = vpop.f32.mrb[12].mxu0  ;;  %v749_v10 = vpop.f32.mrb[12].mxu1 }
 0x11a   : > { %v463_v11 = vadd.f32 %v733_v9, %v1019_v24  ;;  %v527_v12 = vadd.f32 %v749_v10, %v1019_v24  ;;  %v454_v13 = vpop.f32.mrb[13].mxu0  ;;  %v518_v14 = vpop.f32.mrb[13].mxu1 }
 0x11b   : > { %v455_v15 = vadd.f32 %v1019_v24, %v454_v13  ;;  %v519_v16 = vadd.f32 %v1019_v24, %v518_v14  ;;  %v734_v17 = vpop.f32.mrb[14].mxu0  ;;  %v750_v18 = vpop.f32.mrb[14].mxu1 }
 0x11c   : > { %547 = vst [vmem:[%s1025_s4 + $0x70] sm:$0xff] %v463_v11  ;;  %563 = vst [vmem:[%s1025_s4 + $0xf0] sm:$0xff] %v527_v12  ;;  %v466_v19 = vadd.f32 %v734_v17, %v1019_v24  ;;  %v530_v20 = vadd.f32 %v750_v18, %v1019_v24  ;;  %v457_v21 = vpop.f32.mrb[15].mxu0  ;;  %v521_v22 = vpop.f32.mrb[15].mxu1 }
 0x11d   : > { %545 = vst [vmem:[%s1025_s4 + $0x60] sm:$0xff] %v455_v15  ;;  %561 = vst [vmem:[%s1025_s4 + $0xe0] sm:$0xff] %v519_v16  ;;  %v458_v23 = vadd.f32 %v1019_v24, %v457_v21  ;;  %v522_v25 = vadd.f32 %v1019_v24, %v521_v22 }
 0x11e   : > { %548 = vst [vmem:[%s1025_s4 + $0x78] sm:$0xff] %v466_v19  ;;  %564 = vst [vmem:[%s1025_s4 + $0xf8] sm:$0xff] %v530_v20 }
 0x11f   : > { %546 = vst [vmem:[%s1025_s4 + $0x68] sm:$0xff] %v458_v23  ;;  %562 = vst [vmem:[%s1025_s4 + $0xe8] sm:$0xff] %v522_v25 }
 0x120   : > { %845 = shalt.err (!%p842_p3)
}
 0x121   : > { %s846_s20 = scalar_lea.hbm %s1084_s8, 4096  ;;  %s850_s26 = scalar_lea.hbm %s1142_s3, 8192 }
 0x122   : > { %p847_p4 = scmp.ne.s32.totalorder %s1084_s8, %s846_s20  ;;  %p851_p9 = scmp.lt.u32.totalorder %s1084_s8, %s1142_s3 }
 0x123   : > { %p852_p10 = scmp.lt.u32.totalorder %s850_s26, %s846_s20  ;;  %p854_p12 = scmp.lt.u32.totalorder %s846_s20, %s1084_s8 }
 0x124   : > { %p848_p7 = pnand %p847_p4, %p957_p5 }
 0x125   : > { %p853_p11 = por %p852_p10, %p851_p9 }
 0x126   : > { %p849_p8 = pneg %p848_p7 }
 0x127   : > { %p855_p13 = por %p854_p12, %p853_p11 }
 0x129   : > { %p856_p0 = pnand %p855_p13, %p849_p8 }
 0x12b   : > { %859 = shalt.err (!%p856_p0)
}
 0x12c   : > { %s897_s29 = smov 128   ;;  %s898_s30 = smov 8  }
 0x12d   : > { %767 = dma.vmem_to_hbm [thread:$0]  (%p957_p5), %s1086_s6, 4096, %s1084_s8, %s1098_s9, %s897_s29, %s897_s29, %s898_s30  }
 0x12e PF: > { %p773_p1 = scmp.ge.s32.totalorder %s894_s15, 2  ;;  %s594_s4 = sand.u32 1, %s882_s12  }
 0x12f   : > { %s595_s5 = scalar_lea.sflag [#allocation3], %s594_s4 }
 0x130   : > { %p770_p2 = pnand %p773_p1, %p961_p6 }
 0x132   : > { %877 = dma.done.wait (!%p770_p2), %s595_s5, 4096  }
 0x133   : > { %879 = vsyncadd (!%p770_p2), %s595_s5, 4294963200  ;;  %p13_p3 = scmp.ge.s32.totalorder %s944_s18, 4   ;;  %s1145_s12 = smov %s886_s13 }
 0x134   : > { %s1146_s13 = smov %s890_s14  ;;  %s1147_s14 = smov %s955_s21 }
 0x135   : > { %s1148_s15 = smov %s944_s18  ;;  %15 = sbr.rel (!%p13_p3) target bundleno = 3 (0x3), region = 67 }
 0x13c   :  { %600 = vsyncpa [#allocation3], 1 }
 0x13d   :  { %602 = vsyncpa [#allocation3 + $0x1], 1 }

</bundles_post_ra>
